<compile_context>
chip_gen: v7x
topology: tpu7x:2x2x1
jax: 0.10.0
libtpu: 0.0.40
codegen_flags: <defaults>
</compile_context>

<pallas_src>
import jax
import jax.numpy as jnp
from jax.experimental import pallas as pl
from jax.experimental.pallas import tpu as pltpu

# ---------------- configuration (BaseModel defaults, scaled down) ----------------
E = 32            # char_emb_size
H = 32            # hidden_size
NUM_SRC = 20      # num_src_chars
NUM_TGT = 20      # num_tgt_chars
V_PAD = 128       # lane-dense padded vocab width for the output projection
SOT_ID = 1
NORMS_OR_RATIOS = (1.0, 0.2)    # norm-controlled residual ratios ('relative')
EPS = 1e-8
NEG_INF = -1e9


# =======================  fused encoder+decoder kernel  =======================
def make_kernel(S, T, B):
    """Fused forward for one batch shard of size B (static S = src len, T = tgt len)."""
    S_REV = S - 1
    TH = 2 * H

    def kernel(src_ref,                 # (S, B, E)  time-major source embedding
               dec_ref,                 # (T, B, E)  teacher-forcing decoder inputs
               mask_ref,                # (S, B)     1=valid, 0=pad
               w_enc, b_enc,            # bidi encoder: (2E+2H, 8H), (1, 8H)
               w_dec, b_dec,            # decoder LSTM: (E+H, 4H), (1, 4H)
               wa,                      # attention:    (H, 2H)
               wh_all, bh,              # hidden mix:   (3H, E), (1, E)
               wout,                    # tied output projection, padded: (E, V_PAD)
               logp_ref,                # (T, B, V_PAD)
               almt_ref,                # (T, S, B)
               enc_f_s, enc_b_s):       # VMEM scratch: (S, B, H) each
        f32 = jnp.float32

        # ---- hoisted per-lane gate-activation constants ----
        # act(x) = pre * tanh(pre * x) + post  ==  sigmoid(x) on i/f/o lanes, tanh(x) on g.
        lane_e = jax.lax.broadcasted_iota(jnp.int32, (1, 8 * H), 1)
        g_e = (lane_e >= 4 * H) & (lane_e < 6 * H)          # g-gate lanes (bidi layout)
        pre_e = jnp.where(g_e, 1.0, 0.5).astype(f32)
        post_e = jnp.where(g_e, 0.0, 0.5).astype(f32)
        lane_d = jax.lax.broadcasted_iota(jnp.int32, (1, 4 * H), 1)
        g_d = (lane_d >= 2 * H) & (lane_d < 3 * H)
        pre_d = jnp.where(g_d, 1.0, 0.5).astype(f32)
        post_d = jnp.where(g_d, 0.0, 0.5).astype(f32)

        col = jax.lax.broadcasted_iota(jnp.int32, (1, V_PAD), 1)
        col_bias = jnp.where(col < NUM_TGT, 0.0, NEG_INF).astype(f32)

        # ================= encoder: fused bidirectional LSTM =================
        # One (B,128)x(128,256) MXU pass per step produces both directions' gates.
        # State carried as [fwd | bwd] concatenated (B, 2H).
        def enc_body(t, carry):
            h2, c2 = carry                                      # (B, 2H) each
            x_f = src_ref[t]                                    # (B, E)
            x_b = src_ref[S_REV - t]                            # reversed read, no flip
            inp = jnp.concatenate([x_f, x_b, h2], axis=-1)      # (B, 2E+2H) = (B,128)
            gates = (jnp.dot(inp, w_enc[...], preferred_element_type=f32)
                     + b_enc[...])                              # (B, 8H)
            a = pre_e * jnp.tanh(pre_e * gates) + post_e        # ONE EUP pass for all gates
            i2 = a[:, 0 * TH:1 * TH]                            # [i_f | i_b]
            f2 = a[:, 1 * TH:2 * TH]
            g2 = a[:, 2 * TH:3 * TH]
            o2 = a[:, 3 * TH:4 * TH]
            c2 = f2 * c2 + i2 * g2
            h2 = o2 * jnp.tanh(c2)
            enc_f_s[t] = h2[:, :H]                              # VMEM scratch stores
            enc_b_s[S_REV - t] = h2[:, H:]
            return h2, c2

        zeros2 = jnp.zeros((B, 2 * H), f32)
        _ = jax.lax.fori_loop(0, S, enc_body, (zeros2, zeros2), unroll=True)

        # Hoisted (tiny) reads for the decoder: all attention math stays S-major,
        # no transposes and no per-step broadcast/select accumulators.
        enc_f = enc_f_s[...]                                    # (S, B, H)
        enc_b = enc_b_s[...]                                    # (S, B, H)
        src_all = src_ref[...]                                  # (S, B, E)
        valid = mask_ref[...] > 0.5                             # (S, B) bool

        # ================= decoder: LSTM + attention + residual + projection ==========
        def dec_body(t, carry):
            h, c = carry                                        # (B, H) each
            x = dec_ref[t]                                      # (B, E)
            inp = jnp.concatenate([x, h], axis=-1)              # (B, E+H)
            gates = (jnp.dot(inp, w_dec[...], preferred_element_type=f32)
                     + b_dec[...])                              # (B, 4H)
            a = pre_d * jnp.tanh(pre_d * gates) + post_d
            ig = a[:, 0 * H:1 * H]
            fg = a[:, 1 * H:2 * H]
            gg = a[:, 2 * H:3 * H]
            og = a[:, 3 * H:4 * H]
            c = fg * c + ig * gg
            h = og * jnp.tanh(c)

            # global attention: score(s,b) = (h Wa) . enc_out[s,b]
            q = jnp.dot(h, wa[...], preferred_element_type=f32)  # (B, 2H)
            q_f = q[:, :H]
            q_b = q[:, H:]
            scores = (jnp.sum(q_f[None, :, :] * enc_f, axis=-1)
                      + jnp.sum(q_b[None, :, :] * enc_b, axis=-1))   # (S, B)
            scores = jnp.where(valid, scores, NEG_INF)
            m = jnp.max(scores, axis=0, keepdims=True)
            ex = jnp.exp(scores - m)
            d = jnp.sum(ex, axis=0, keepdims=True)
            r = pl.reciprocal(d, approx=True)
            r = r * (2.0 - d * r)                               # one Newton step (~1e-6)
            almt = ex * r                                       # (S, B)

            a3 = almt[:, :, None]                               # (S, B, 1)
            ctx_f = jnp.sum(a3 * enc_f, axis=0)                 # (B, H)
            ctx_b = jnp.sum(a3 * enc_b, axis=0)                 # (B, H)
            ctx_emb = jnp.sum(a3 * src_all, axis=0)             # (B, E)

            # fused hidden mixing layer over [h ; ctx]
            mix = jnp.concatenate([h, ctx_f, ctx_b], axis=-1)   # (B, 3H)
            hid = jnp.tanh(jnp.dot(mix, wh_all[...], preferred_element_type=f32)
                           + bh[...])                           # (B, E)

            # norm-controlled residual, control_mode='relative', ratios (1.0, 0.2)
            anchor = jnp.sqrt(jnp.sum(ctx_emb * ctx_emb, axis=-1, keepdims=True))
            inv1 = jax.lax.rsqrt(jnp.sum(hid * hid, axis=-1, keepdims=True) + EPS)
            hid_res = ctx_emb + hid * (NORMS_OR_RATIOS[1] * anchor) * inv1   # (B, E)

            # tied output projection (padded to 128 lanes) + exact log_softmax
            logits = (jnp.dot(hid_res, wout[...], preferred_element_type=f32)
                      + col_bias)                               # (B, V_PAD)
            lm = jnp.max(logits, axis=-1, keepdims=True)
            lse = lm + jnp.log(jnp.sum(jnp.exp(logits - lm), axis=-1, keepdims=True))
            logp_ref[t] = logits - lse                          # lane-dense (B,128) store
            almt_ref[t] = almt                                  # (S, B)
            return h, c

        zeros1 = jnp.zeros((B, H), f32)
        _ = jax.lax.fori_loop(0, T, dec_body, (zeros1, zeros1), unroll=True)

    return kernel


# =======================  fused-parameter assembly (XLA side)  =======================
def fuse_params(p):
    """Stack raw per-gate / per-direction weights into the kernel's fused layouts."""
    ef, eb, d = p['enc_lstm_fwd'], p['enc_lstm_bwd'], p['dec_lstm']
    zE = jnp.zeros((E, 4 * H), jnp.float32)
    zH = jnp.zeros((H, 4 * H), jnp.float32)
    R = 2 * E + 2 * H
    # operand row layout [x_f | x_b | h_f | h_b]; column layout gate-major, then direction
    blk_f = jnp.concatenate([ef['w_ih'], zE, ef['w_hh'], zH], axis=0)     # (R, 4H)
    blk_b = jnp.concatenate([zE, eb['w_ih'], zH, eb['w_hh']], axis=0)     # (R, 4H)
    w_enc = jnp.stack([blk_f.reshape(R, 4, H),
                       blk_b.reshape(R, 4, H)], axis=2).reshape(R, 8 * H)
    b_enc = jnp.stack([ef['b'].reshape(1, 4, H),
                       eb['b'].reshape(1, 4, H)], axis=2).reshape(1, 8 * H)
    w_dec = jnp.concatenate([d['w_ih'], d['w_hh']], axis=0)               # (E+H, 4H)
    b_dec = d['b']
    wh_all = jnp.concatenate([p['hid_wh'], p['hid_wcf'], p['hid_wcb']], axis=0)  # (3H, E)
    return (w_enc, b_enc, w_dec, b_dec,
            p['attn_wa'], wh_all, p['hid_b'], p['out_proj_pad'])


# =======================  pallas_call wrapper  =======================
def forward_pallas(fused, src_emb_sbe, dec_emb_tbe, mask_sb, num_batch_shards=1):
    S, B, _ = src_emb_sbe.shape
    T = dec_emb_tbe.shape[0]
    nb = int(num_batch_shards)
    assert B % nb == 0, "batch must divide evenly across shards"
    Bs = B // nb
    if nb > 1:
        # required so sharded BlockSpecs respect the (8,128) tiling rule
        assert Bs % 8 == 0, "per-shard batch must be a multiple of 8 sublanes"

    w_enc, b_enc, w_dec, b_dec, wa, wh_all, bh, wout = fused

    def shard_spec(shape, b_axis):
        blk = tuple(Bs if ax == b_axis else dim for ax, dim in enumerate(shape))
        nd = len(shape)

        def imap(i, _b=b_axis, _nd=nd):
            return tuple(i if ax == _b else 0 for ax in range(_nd))

        return pl.BlockSpec(blk, imap)

    def full_spec(shape):
        nd = len(shape)
        return pl.BlockSpec(tuple(shape), lambda i, _nd=nd: (0,) * _nd)

    in_specs = [shard_spec((S, B, E), 1),
                shard_spec((T, B, E), 1),
                shard_spec((S, B), 1),
                full_spec(w_enc.shape), full_spec(b_enc.shape),
                full_spec(w_dec.shape), full_spec(b_dec.shape),
                full_spec(wa.shape), full_spec(wh_all.shape), full_spec(bh.shape),
                full_spec(wout.shape)]
    out_specs = [pl.BlockSpec((T, Bs, V_PAD), lambda i: (0, i, 0)),
                 pl.BlockSpec((None, T, S, Bs), lambda i: (i, 0, 0, 0))]

    logp_pad, almt_4d = pl.pallas_call(
        make_kernel(S, T, Bs),
        out_shape=(jax.ShapeDtypeStruct((T, B, V_PAD), jnp.float32),
                   jax.ShapeDtypeStruct((nb, T, S, Bs), jnp.float32)),
        grid_spec=pltpu.PrefetchScalarGridSpec(
            num_scalar_prefetch=0,
            grid=(nb,),                 # batch shards; =1 -> single fused invocation
            in_specs=in_specs,
            out_specs=out_specs,
            scratch_shapes=[pltpu.VMEM((S, Bs, H), jnp.float32),
                            pltpu.VMEM((S, Bs, H), jnp.float32)]),
        compiler_params=pltpu.CompilerParams(
            dimension_semantics=("parallel",)),   # v7x: shards map to the 2 TensorCores
    )(src_emb_sbe, dec_emb_tbe, mask_sb,
      w_enc, b_enc, w_dec, b_dec, wa, wh_all, bh, wout)
    return logp_pad, almt_4d


# =======================  parameter init (deterministic)  =======================
def init_params(key):
    keys = iter(jax.random.split(key, 64))

    def dense(shape, scale=0.1):
        return scale * jax.random.normal(next(keys), shape, jnp.float32)

    def lstm(in_size):
        # fused-gate layout: columns are [i | f | g | o]
        return {'w_ih': dense((in_size, 4 * H)),
                'w_hh': dense((H, 4 * H)),
                'b':    dense((1, 4 * H))}

    params = {}
    params['enc_emb'] = dense((NUM_SRC, E))
    params['dec_emb'] = dense((NUM_TGT, E))
    params['enc_lstm_fwd'] = lstm(E)       # bidirectional encoder LSTM, forward dir
    params['enc_lstm_bwd'] = lstm(E)       # backward dir
    params['dec_lstm'] = lstm(E)           # input_feeding=False -> input size = E
    params['attn_wa'] = dense((H, 2 * H))
    params['hid_wh'] = dense((H, E))
    params['hid_wcf'] = dense((H, E))      # hidden-mix weight for forward-context half
    params['hid_wcb'] = dense((H, E))      # hidden-mix weight for backward-context half
    params['hid_b'] = dense((1, E))
    # separate_output=False -> output projection ties the decoder char embedding;
    # pad to 128 lanes so in-kernel logits / stores are lane-dense.
    params['out_proj_pad'] = jnp.pad(params['dec_emb'].T,
                                     ((0, 0), (0, V_PAD - NUM_TGT)))
    return params


# =======================  BaseModel.forward  =======================
def base_model_forward(params, src_ids, src_paddings, tgt_ids, num_batch_shards=1):
    """src_ids/src_paddings: (S, B); tgt_ids: (T, B).  Returns (log_probs, almt)."""
    S, B = src_ids.shape
    T = tgt_ids.shape[0]

    # encoder input embedding (gather glue); time-major for in-kernel ref[t] reads
    src_emb_sbe = jnp.take(params['enc_emb'], src_ids, axis=0)                # (S,B,E)

    # TODO(synk): _prepare_lang_emb is abstract; concrete subclass supplies it.
    lang_emb = jnp.zeros((E,), jnp.float32)

    # decoder teacher-forcing inputs: SOT followed by target[:-1]
    dec_in_ids = jnp.concatenate(
        [jnp.full((1, B), SOT_ID, jnp.int32), tgt_ids[:-1]], axis=0)
    dec_emb_tbe = jnp.take(params['dec_emb'], dec_in_ids, axis=0) + lang_emb  # (T,B,E)

    mask_sb = src_paddings.astype(jnp.float32)                                # (S,B)

    fused = fuse_params(params)
    logp_pad, almt_4d = forward_pallas(fused, src_emb_sbe, dec_emb_tbe, mask_sb,
                                       num_batch_shards=num_batch_shards)
    nb = num_batch_shards
    Bs = B // nb
    # (nb, T, S, Bs) -> (T, nb, Bs, S) -> (T, B, S)   (pure XLA glue, tiny)
    almt = jnp.transpose(almt_4d, (1, 0, 3, 2)).reshape(T, nb * Bs, S)
    return logp_pad[..., :NUM_TGT], almt                                      # (T,B,V), (T,B,S)


if __name__ == "__main__":
    key = jax.random.PRNGKey(0)
    pkey, k_src, k_tgt = jax.random.split(key, 3)
    params = init_params(pkey)

    # batch raised to 8 (fills all 8 f32 sublanes); on v7x with a larger batch, pass
    # num_batch_shards=2 to run half the batch on each TensorCore.
    B, S, T = 8, 8, 8
    src_ids = jax.random.randint(k_src, (S, B), 2, NUM_SRC).astype(jnp.int32)
    tgt_ids = jax.random.randint(k_tgt, (T, B), 2, NUM_TGT).astype(jnp.int32)
    src_paddings = jnp.ones((S, B), jnp.float32)   # all positions valid (lengths = S)

    fwd = jax.jit(base_model_forward)
    log_probs, almt = fwd(params, src_ids, src_paddings, tgt_ids)
    jax.block_until_ready((log_probs, almt))

    assert log_probs.shape == (T, B, NUM_TGT)
    assert almt.shape == (T, B, S)
    # sanity: rows of exp(log_probs) and of almt sum to 1
    assert bool(jnp.allclose(jnp.sum(jnp.exp(log_probs), axis=-1), 1.0, atol=1e-3))
    assert bool(jnp.allclose(jnp.sum(almt, axis=-1), 1.0, atol=1e-3))
    print("KERNEL_OK")
</pallas_src>

<mosaic_0001>
module attributes {stable_mosaic.version = 11 : i64} {
  func.func @kernel(%arg0: i32, %arg1: memref<8x8x32xf32, #tpu.memory_space<vmem>>, %arg2: memref<8x8x32xf32, #tpu.memory_space<vmem>>, %arg3: memref<8x8xf32, #tpu.memory_space<vmem>>, %arg4: memref<128x256xf32, #tpu.memory_space<vmem>>, %arg5: memref<1x256xf32, #tpu.memory_space<vmem>>, %arg6: memref<64x128xf32, #tpu.memory_space<vmem>>, %arg7: memref<1x128xf32, #tpu.memory_space<vmem>>, %arg8: memref<32x64xf32, #tpu.memory_space<vmem>>, %arg9: memref<96x32xf32, #tpu.memory_space<vmem>>, %arg10: memref<1x32xf32, #tpu.memory_space<vmem>>, %arg11: memref<32x128xf32, #tpu.memory_space<vmem>>, %arg12: memref<8x8x128xf32, #tpu.memory_space<vmem>>, %arg13: memref<1x8x8x8xf32, #tpu.memory_space<vmem>>, %arg14: memref<8x8x32xf32, #tpu.memory_space<vmem>>, %arg15: memref<8x8x32xf32, #tpu.memory_space<vmem>>) attributes {dimension_semantics = [#tpu.dimension_semantics<parallel>], iteration_bounds = array<i64: 1>, scalar_prefetch = 0 : i64, scratch_operands = 2 : i64, tpu.core_type = #tpu.core_type<tc>, window_params = [{transform_indices = @transform_0, window_bounds = array<i64: 8, 8, 32>}, {transform_indices = @transform_1, window_bounds = array<i64: 8, 8, 32>}, {transform_indices = @transform_2, window_bounds = array<i64: 8, 8>}, {pipeline_mode = #tpu.pipeline_mode<synchronous>, transform_indices = @transform_3, window_bounds = array<i64: 128, 256>}, {pipeline_mode = #tpu.pipeline_mode<synchronous>, transform_indices = @transform_4, window_bounds = array<i64: 1, 256>}, {pipeline_mode = #tpu.pipeline_mode<synchronous>, transform_indices = @transform_5, window_bounds = array<i64: 64, 128>}, {pipeline_mode = #tpu.pipeline_mode<synchronous>, transform_indices = @transform_6, window_bounds = array<i64: 1, 128>}, {pipeline_mode = #tpu.pipeline_mode<synchronous>, transform_indices = @transform_7, window_bounds = array<i64: 32, 64>}, {pipeline_mode = #tpu.pipeline_mode<synchronous>, transform_indices = @transform_8, window_bounds = array<i64: 96, 32>}, {pipeline_mode = #tpu.pipeline_mode<synchronous>, transform_indices = @transform_9, window_bounds = array<i64: 1, 32>}, {pipeline_mode = #tpu.pipeline_mode<synchronous>, transform_indices = @transform_10, window_bounds = array<i64: 32, 128>}, {transform_indices = @transform_11, window_bounds = array<i64: 8, 8, 128>}, {transform_indices = @transform_12, window_bounds = array<i64: 1, 8, 8, 8>}]} {
    %0 = tpu.iota {dimensions = array<i32: 1>} : vector<1x256xi32>
    %c128_i32 = arith.constant 128 : i32
    %1 = vector.broadcast %c128_i32 : i32 to vector<1x256xi32>
    %2 = arith.cmpi sge, %0, %1 : vector<1x256xi32>
    %c192_i32 = arith.constant 192 : i32
    %3 = vector.broadcast %c192_i32 : i32 to vector<1x256xi32>
    %4 = arith.cmpi slt, %0, %3 : vector<1x256xi32>
    %5 = arith.andi %2, %4 : vector<1x256xi1>
    %cst = arith.constant 1.000000e+00 : f32
    %cst_0 = arith.constant 5.000000e-01 : f32
    %6 = vector.broadcast %cst : f32 to vector<1x256xf32>
    %7 = vector.broadcast %cst_0 : f32 to vector<1x256xf32>
    %8 = arith.select %5, %6, %7 : vector<1x256xi1>, vector<1x256xf32>
    %cst_1 = arith.constant 0.000000e+00 : f32
    %cst_2 = arith.constant 5.000000e-01 : f32
    %9 = vector.broadcast %cst_1 : f32 to vector<1x256xf32>
    %10 = vector.broadcast %cst_2 : f32 to vector<1x256xf32>
    %11 = arith.select %5, %9, %10 : vector<1x256xi1>, vector<1x256xf32>
    %12 = tpu.iota {dimensions = array<i32: 1>} : vector<1x128xi32>
    %c64_i32 = arith.constant 64 : i32
    %13 = vector.broadcast %c64_i32 : i32 to vector<1x128xi32>
    %14 = arith.cmpi sge, %12, %13 : vector<1x128xi32>
    %c96_i32 = arith.constant 96 : i32
    %15 = vector.broadcast %c96_i32 : i32 to vector<1x128xi32>
    %16 = arith.cmpi slt, %12, %15 : vector<1x128xi32>
    %17 = arith.andi %14, %16 : vector<1x128xi1>
    %cst_3 = arith.constant 1.000000e+00 : f32
    %cst_4 = arith.constant 5.000000e-01 : f32
    %18 = vector.broadcast %cst_3 : f32 to vector<1x128xf32>
    %19 = vector.broadcast %cst_4 : f32 to vector<1x128xf32>
    %20 = arith.select %17, %18, %19 : vector<1x128xi1>, vector<1x128xf32>
    %cst_5 = arith.constant 0.000000e+00 : f32
    %cst_6 = arith.constant 5.000000e-01 : f32
    %21 = vector.broadcast %cst_5 : f32 to vector<1x128xf32>
    %22 = vector.broadcast %cst_6 : f32 to vector<1x128xf32>
    %23 = arith.select %17, %21, %22 : vector<1x128xi1>, vector<1x128xf32>
    %24 = tpu.iota {dimensions = array<i32: 1>} : vector<1x128xi32>
    %c20_i32 = arith.constant 20 : i32
    %25 = vector.broadcast %c20_i32 : i32 to vector<1x128xi32>
    %26 = arith.cmpi slt, %24, %25 : vector<1x128xi32>
    %cst_7 = arith.constant 0.000000e+00 : f32
    %cst_8 = arith.constant -1.000000e+09 : f32
    %27 = vector.broadcast %cst_7 : f32 to vector<1x128xf32>
    %28 = vector.broadcast %cst_8 : f32 to vector<1x128xf32>
    %29 = arith.select %26, %27, %28 : vector<1x128xi1>, vector<1x128xf32>
    %cst_9 = arith.constant 0.000000e+00 : f32
    %30 = vector.broadcast %cst_9 : f32 to vector<8x64xf32>
    %c0_i32 = arith.constant 0 : i32
    %31 = arith.index_cast %c0_i32 : i32 to index
    %c0 = arith.constant 0 : index
    %c0_10 = arith.constant 0 : index
    %32 = vector.load %arg1[%31, %c0, %c0_10] : memref<8x8x32xf32, #tpu.memory_space<vmem>>, vector<1x8x32xf32>
    %33 = vector.shape_cast %32 : vector<1x8x32xf32> to vector<8x32xf32>
    %c7_i32 = arith.constant 7 : i32
    %34 = arith.subi %c7_i32, %c0_i32 : i32
    %35 = arith.index_cast %34 : i32 to index
    %c0_11 = arith.constant 0 : index
    %c0_12 = arith.constant 0 : index
    %36 = vector.load %arg1[%35, %c0_11, %c0_12] : memref<8x8x32xf32, #tpu.memory_space<vmem>>, vector<1x8x32xf32>
    %37 = vector.shape_cast %36 : vector<1x8x32xf32> to vector<8x32xf32>
    %38 = tpu.concatenate %33, %37, %30 in 1 : vector<8x32xf32>, vector<8x32xf32>, vector<8x64xf32> -> vector<8x128xf32>
    %c0_13 = arith.constant 0 : index
    %c0_14 = arith.constant 0 : index
    %39 = vector.load %arg4[%c0_13, %c0_14] : memref<128x256xf32, #tpu.memory_space<vmem>>, vector<128x256xf32>
    %cst_15 = arith.constant dense<0.000000e+00> : vector<8x256xf32>
    %40 = tpu.matmul %38, %39, %cst_15 {dimension_numbers = #tpu.dot_dimension_numbers<[1], [0], [0], [1], [0, 0, 1, 1], [], []>} : vector<8x128xf32>, vector<128x256xf32>, vector<8x256xf32> -> vector<8x256xf32>
    %c0_16 = arith.constant 0 : index
    %c0_17 = arith.constant 0 : index
    %41 = vector.load %arg5[%c0_16, %c0_17] : memref<1x256xf32, #tpu.memory_space<vmem>>, vector<1x256xf32>
    %42 = vector.broadcast %41 : vector<1x256xf32> to vector<8x256xf32>
    %43 = arith.addf %40, %42 : vector<8x256xf32>
    %44 = vector.broadcast %8 : vector<1x256xf32> to vector<8x256xf32>
    %45 = arith.mulf %44, %43 : vector<8x256xf32>
    %46 = math.tanh %45 : vector<8x256xf32>
    %47 = vector.broadcast %8 : vector<1x256xf32> to vector<8x256xf32>
    %48 = arith.mulf %47, %46 : vector<8x256xf32>
    %49 = vector.broadcast %11 : vector<1x256xf32> to vector<8x256xf32>
    %50 = arith.addf %48, %49 : vector<8x256xf32>
    %51 = vector.extract_strided_slice %50 {offsets = [0, 0], sizes = [8, 64], strides = [1, 1]} : vector<8x256xf32> to vector<8x64xf32>
    %52 = vector.extract_strided_slice %50 {offsets = [0, 64], sizes = [8, 64], strides = [1, 1]} : vector<8x256xf32> to vector<8x64xf32>
    %53 = vector.extract_strided_slice %50 {offsets = [0, 128], sizes = [8, 64], strides = [1, 1]} : vector<8x256xf32> to vector<8x64xf32>
    %54 = vector.extract_strided_slice %50 {offsets = [0, 192], sizes = [8, 64], strides = [1, 1]} : vector<8x256xf32> to vector<8x64xf32>
    %55 = arith.mulf %52, %30 : vector<8x64xf32>
    %56 = arith.mulf %51, %53 : vector<8x64xf32>
    %57 = arith.addf %55, %56 : vector<8x64xf32>
    %58 = math.tanh %57 : vector<8x64xf32>
    %59 = arith.mulf %54, %58 : vector<8x64xf32>
    %60 = vector.extract_strided_slice %59 {offsets = [0, 0], sizes = [8, 32], strides = [1, 1]} : vector<8x64xf32> to vector<8x32xf32>
    %61 = arith.index_cast %c0_i32 : i32 to index
    %c0_18 = arith.constant 0 : index
    %c0_19 = arith.constant 0 : index
    %62 = vector.load %arg14[%61, %c0_18, %c0_19] : memref<8x8x32xf32, #tpu.memory_space<vmem>>, vector<1x8x32xf32>
    %63 = vector.shape_cast %62 : vector<1x8x32xf32> to vector<8x32xf32>
    %64 = vector.shape_cast %60 : vector<8x32xf32> to vector<1x8x32xf32>
    tpu.vector_store %arg14[%61, %c0_18, %c0_19], %64 {strides = array<i32>} : memref<8x8x32xf32, #tpu.memory_space<vmem>>, vector<1x8x32xf32>,
    %65 = vector.extract_strided_slice %59 {offsets = [0, 32], sizes = [8, 32], strides = [1, 1]} : vector<8x64xf32> to vector<8x32xf32>
    %c7_i32_20 = arith.constant 7 : i32
    %66 = arith.subi %c7_i32_20, %c0_i32 : i32
    %67 = arith.index_cast %66 : i32 to index
    %c0_21 = arith.constant 0 : index
    %c0_22 = arith.constant 0 : index
    %68 = vector.load %arg15[%67, %c0_21, %c0_22] : memref<8x8x32xf32, #tpu.memory_space<vmem>>, vector<1x8x32xf32>
    %69 = vector.shape_cast %68 : vector<1x8x32xf32> to vector<8x32xf32>
    %70 = vector.shape_cast %65 : vector<8x32xf32> to vector<1x8x32xf32>
    tpu.vector_store %arg15[%67, %c0_21, %c0_22], %70 {strides = array<i32>} : memref<8x8x32xf32, #tpu.memory_space<vmem>>, vector<1x8x32xf32>,
    %c1_i32 = arith.constant 1 : i32
    %71 = arith.index_cast %c1_i32 : i32 to index
    %c0_23 = arith.constant 0 : index
    %c0_24 = arith.constant 0 : index
    %72 = vector.load %arg1[%71, %c0_23, %c0_24] : memref<8x8x32xf32, #tpu.memory_space<vmem>>, vector<1x8x32xf32>
    %73 = vector.shape_cast %72 : vector<1x8x32xf32> to vector<8x32xf32>
    %c7_i32_25 = arith.constant 7 : i32
    %74 = arith.subi %c7_i32_25, %c1_i32 : i32
    %75 = arith.index_cast %74 : i32 to index
    %c0_26 = arith.constant 0 : index
    %c0_27 = arith.constant 0 : index
    %76 = vector.load %arg1[%75, %c0_26, %c0_27] : memref<8x8x32xf32, #tpu.memory_space<vmem>>, vector<1x8x32xf32>
    %77 = vector.shape_cast %76 : vector<1x8x32xf32> to vector<8x32xf32>
    %78 = tpu.concatenate %73, %77, %59 in 1 : vector<8x32xf32>, vector<8x32xf32>, vector<8x64xf32> -> vector<8x128xf32>
    %c0_28 = arith.constant 0 : index
    %c0_29 = arith.constant 0 : index
    %79 = vector.load %arg4[%c0_28, %c0_29] : memref<128x256xf32, #tpu.memory_space<vmem>>, vector<128x256xf32>
    %cst_30 = arith.constant dense<0.000000e+00> : vector<8x256xf32>
    %80 = tpu.matmul %78, %79, %cst_30 {dimension_numbers = #tpu.dot_dimension_numbers<[1], [0], [0], [1], [0, 0, 1, 1], [], []>} : vector<8x128xf32>, vector<128x256xf32>, vector<8x256xf32> -> vector<8x256xf32>
    %c0_31 = arith.constant 0 : index
    %c0_32 = arith.constant 0 : index
    %81 = vector.load %arg5[%c0_31, %c0_32] : memref<1x256xf32, #tpu.memory_space<vmem>>, vector<1x256xf32>
    %82 = vector.broadcast %81 : vector<1x256xf32> to vector<8x256xf32>
    %83 = arith.addf %80, %82 : vector<8x256xf32>
    %84 = vector.broadcast %8 : vector<1x256xf32> to vector<8x256xf32>
    %85 = arith.mulf %84, %83 : vector<8x256xf32>
    %86 = math.tanh %85 : vector<8x256xf32>
    %87 = vector.broadcast %8 : vector<1x256xf32> to vector<8x256xf32>
    %88 = arith.mulf %87, %86 : vector<8x256xf32>
    %89 = vector.broadcast %11 : vector<1x256xf32> to vector<8x256xf32>
    %90 = arith.addf %88, %89 : vector<8x256xf32>
    %91 = vector.extract_strided_slice %90 {offsets = [0, 0], sizes = [8, 64], strides = [1, 1]} : vector<8x256xf32> to vector<8x64xf32>
    %92 = vector.extract_strided_slice %90 {offsets = [0, 64], sizes = [8, 64], strides = [1, 1]} : vector<8x256xf32> to vector<8x64xf32>
    %93 = vector.extract_strided_slice %90 {offsets = [0, 128], sizes = [8, 64], strides = [1, 1]} : vector<8x256xf32> to vector<8x64xf32>
    %94 = vector.extract_strided_slice %90 {offsets = [0, 192], sizes = [8, 64], strides = [1, 1]} : vector<8x256xf32> to vector<8x64xf32>
    %95 = arith.mulf %92, %57 : vector<8x64xf32>
    %96 = arith.mulf %91, %93 : vector<8x64xf32>
    %97 = arith.addf %95, %96 : vector<8x64xf32>
    %98 = math.tanh %97 : vector<8x64xf32>
    %99 = arith.mulf %94, %98 : vector<8x64xf32>
    %100 = vector.extract_strided_slice %99 {offsets = [0, 0], sizes = [8, 32], strides = [1, 1]} : vector<8x64xf32> to vector<8x32xf32>
    %101 = arith.index_cast %c1_i32 : i32 to index
    %c0_33 = arith.constant 0 : index
    %c0_34 = arith.constant 0 : index
    %102 = vector.load %arg14[%101, %c0_33, %c0_34] : memref<8x8x32xf32, #tpu.memory_space<vmem>>, vector<1x8x32xf32>
    %103 = vector.shape_cast %102 : vector<1x8x32xf32> to vector<8x32xf32>
    %104 = vector.shape_cast %100 : vector<8x32xf32> to vector<1x8x32xf32>
    tpu.vector_store %arg14[%101, %c0_33, %c0_34], %104 {strides = array<i32>} : memref<8x8x32xf32, #tpu.memory_space<vmem>>, vector<1x8x32xf32>,
    %105 = vector.extract_strided_slice %99 {offsets = [0, 32], sizes = [8, 32], strides = [1, 1]} : vector<8x64xf32> to vector<8x32xf32>
    %c7_i32_35 = arith.constant 7 : i32
    %106 = arith.subi %c7_i32_35, %c1_i32 : i32
    %107 = arith.index_cast %106 : i32 to index
    %c0_36 = arith.constant 0 : index
    %c0_37 = arith.constant 0 : index
    %108 = vector.load %arg15[%107, %c0_36, %c0_37] : memref<8x8x32xf32, #tpu.memory_space<vmem>>, vector<1x8x32xf32>
    %109 = vector.shape_cast %108 : vector<1x8x32xf32> to vector<8x32xf32>
    %110 = vector.shape_cast %105 : vector<8x32xf32> to vector<1x8x32xf32>
    tpu.vector_store %arg15[%107, %c0_36, %c0_37], %110 {strides = array<i32>} : memref<8x8x32xf32, #tpu.memory_space<vmem>>, vector<1x8x32xf32>,
    %c2_i32 = arith.constant 2 : i32
    %111 = arith.index_cast %c2_i32 : i32 to index
    %c0_38 = arith.constant 0 : index
    %c0_39 = arith.constant 0 : index
    %112 = vector.load %arg1[%111, %c0_38, %c0_39] : memref<8x8x32xf32, #tpu.memory_space<vmem>>, vector<1x8x32xf32>
    %113 = vector.shape_cast %112 : vector<1x8x32xf32> to vector<8x32xf32>
    %c7_i32_40 = arith.constant 7 : i32
    %114 = arith.subi %c7_i32_40, %c2_i32 : i32
    %115 = arith.index_cast %114 : i32 to index
    %c0_41 = arith.constant 0 : index
    %c0_42 = arith.constant 0 : index
    %116 = vector.load %arg1[%115, %c0_41, %c0_42] : memref<8x8x32xf32, #tpu.memory_space<vmem>>, vector<1x8x32xf32>
    %117 = vector.shape_cast %116 : vector<1x8x32xf32> to vector<8x32xf32>
    %118 = tpu.concatenate %113, %117, %99 in 1 : vector<8x32xf32>, vector<8x32xf32>, vector<8x64xf32> -> vector<8x128xf32>
    %c0_43 = arith.constant 0 : index
    %c0_44 = arith.constant 0 : index
    %119 = vector.load %arg4[%c0_43, %c0_44] : memref<128x256xf32, #tpu.memory_space<vmem>>, vector<128x256xf32>
    %cst_45 = arith.constant dense<0.000000e+00> : vector<8x256xf32>
    %120 = tpu.matmul %118, %119, %cst_45 {dimension_numbers = #tpu.dot_dimension_numbers<[1], [0], [0], [1], [0, 0, 1, 1], [], []>} : vector<8x128xf32>, vector<128x256xf32>, vector<8x256xf32> -> vector<8x256xf32>
    %c0_46 = arith.constant 0 : index
    %c0_47 = arith.constant 0 : index
    %121 = vector.load %arg5[%c0_46, %c0_47] : memref<1x256xf32, #tpu.memory_space<vmem>>, vector<1x256xf32>
    %122 = vector.broadcast %121 : vector<1x256xf32> to vector<8x256xf32>
    %123 = arith.addf %120, %122 : vector<8x256xf32>
    %124 = vector.broadcast %8 : vector<1x256xf32> to vector<8x256xf32>
    %125 = arith.mulf %124, %123 : vector<8x256xf32>
    %126 = math.tanh %125 : vector<8x256xf32>
    %127 = vector.broadcast %8 : vector<1x256xf32> to vector<8x256xf32>
    %128 = arith.mulf %127, %126 : vector<8x256xf32>
    %129 = vector.broadcast %11 : vector<1x256xf32> to vector<8x256xf32>
    %130 = arith.addf %128, %129 : vector<8x256xf32>
    %131 = vector.extract_strided_slice %130 {offsets = [0, 0], sizes = [8, 64], strides = [1, 1]} : vector<8x256xf32> to vector<8x64xf32>
    %132 = vector.extract_strided_slice %130 {offsets = [0, 64], sizes = [8, 64], strides = [1, 1]} : vector<8x256xf32> to vector<8x64xf32>
    %133 = vector.extract_strided_slice %130 {offsets = [0, 128], sizes = [8, 64], strides = [1, 1]} : vector<8x256xf32> to vector<8x64xf32>
    %134 = vector.extract_strided_slice %130 {offsets = [0, 192], sizes = [8, 64], strides = [1, 1]} : vector<8x256xf32> to vector<8x64xf32>
    %135 = arith.mulf %132, %97 : vector<8x64xf32>
    %136 = arith.mulf %131, %133 : vector<8x64xf32>
    %137 = arith.addf %135, %136 : vector<8x64xf32>
    %138 = math.tanh %137 : vector<8x64xf32>
    %139 = arith.mulf %134, %138 : vector<8x64xf32>
    %140 = vector.extract_strided_slice %139 {offsets = [0, 0], sizes = [8, 32], strides = [1, 1]} : vector<8x64xf32> to vector<8x32xf32>
    %141 = arith.index_cast %c2_i32 : i32 to index
    %c0_48 = arith.constant 0 : index
    %c0_49 = arith.constant 0 : index
    %142 = vector.load %arg14[%141, %c0_48, %c0_49] : memref<8x8x32xf32, #tpu.memory_space<vmem>>, vector<1x8x32xf32>
    %143 = vector.shape_cast %142 : vector<1x8x32xf32> to vector<8x32xf32>
    %144 = vector.shape_cast %140 : vector<8x32xf32> to vector<1x8x32xf32>
    tpu.vector_store %arg14[%141, %c0_48, %c0_49], %144 {strides = array<i32>} : memref<8x8x32xf32, #tpu.memory_space<vmem>>, vector<1x8x32xf32>,
    %145 = vector.extract_strided_slice %139 {offsets = [0, 32], sizes = [8, 32], strides = [1, 1]} : vector<8x64xf32> to vector<8x32xf32>
    %c7_i32_50 = arith.constant 7 : i32
    %146 = arith.subi %c7_i32_50, %c2_i32 : i32
    %147 = arith.index_cast %146 : i32 to index
    %c0_51 = arith.constant 0 : index
    %c0_52 = arith.constant 0 : index
    %148 = vector.load %arg15[%147, %c0_51, %c0_52] : memref<8x8x32xf32, #tpu.memory_space<vmem>>, vector<1x8x32xf32>
    %149 = vector.shape_cast %148 : vector<1x8x32xf32> to vector<8x32xf32>
    %150 = vector.shape_cast %145 : vector<8x32xf32> to vector<1x8x32xf32>
    tpu.vector_store %arg15[%147, %c0_51, %c0_52], %150 {strides = array<i32>} : memref<8x8x32xf32, #tpu.memory_space<vmem>>, vector<1x8x32xf32>,
    %c3_i32 = arith.constant 3 : i32
    %151 = arith.index_cast %c3_i32 : i32 to index
    %c0_53 = arith.constant 0 : index
    %c0_54 = arith.constant 0 : index
    %152 = vector.load %arg1[%151, %c0_53, %c0_54] : memref<8x8x32xf32, #tpu.memory_space<vmem>>, vector<1x8x32xf32>
    %153 = vector.shape_cast %152 : vector<1x8x32xf32> to vector<8x32xf32>
    %c7_i32_55 = arith.constant 7 : i32
    %154 = arith.subi %c7_i32_55, %c3_i32 : i32
    %155 = arith.index_cast %154 : i32 to index
    %c0_56 = arith.constant 0 : index
    %c0_57 = arith.constant 0 : index
    %156 = vector.load %arg1[%155, %c0_56, %c0_57] : memref<8x8x32xf32, #tpu.memory_space<vmem>>, vector<1x8x32xf32>
    %157 = vector.shape_cast %156 : vector<1x8x32xf32> to vector<8x32xf32>
    %158 = tpu.concatenate %153, %157, %139 in 1 : vector<8x32xf32>, vector<8x32xf32>, vector<8x64xf32> -> vector<8x128xf32>
    %c0_58 = arith.constant 0 : index
    %c0_59 = arith.constant 0 : index
    %159 = vector.load %arg4[%c0_58, %c0_59] : memref<128x256xf32, #tpu.memory_space<vmem>>, vector<128x256xf32>
    %cst_60 = arith.constant dense<0.000000e+00> : vector<8x256xf32>
    %160 = tpu.matmul %158, %159, %cst_60 {dimension_numbers = #tpu.dot_dimension_numbers<[1], [0], [0], [1], [0, 0, 1, 1], [], []>} : vector<8x128xf32>, vector<128x256xf32>, vector<8x256xf32> -> vector<8x256xf32>
    %c0_61 = arith.constant 0 : index
    %c0_62 = arith.constant 0 : index
    %161 = vector.load %arg5[%c0_61, %c0_62] : memref<1x256xf32, #tpu.memory_space<vmem>>, vector<1x256xf32>
    %162 = vector.broadcast %161 : vector<1x256xf32> to vector<8x256xf32>
    %163 = arith.addf %160, %162 : vector<8x256xf32>
    %164 = vector.broadcast %8 : vector<1x256xf32> to vector<8x256xf32>
    %165 = arith.mulf %164, %163 : vector<8x256xf32>
    %166 = math.tanh %165 : vector<8x256xf32>
    %167 = vector.broadcast %8 : vector<1x256xf32> to vector<8x256xf32>
    %168 = arith.mulf %167, %166 : vector<8x256xf32>
    %169 = vector.broadcast %11 : vector<1x256xf32> to vector<8x256xf32>
    %170 = arith.addf %168, %169 : vector<8x256xf32>
    %171 = vector.extract_strided_slice %170 {offsets = [0, 0], sizes = [8, 64], strides = [1, 1]} : vector<8x256xf32> to vector<8x64xf32>
    %172 = vector.extract_strided_slice %170 {offsets = [0, 64], sizes = [8, 64], strides = [1, 1]} : vector<8x256xf32> to vector<8x64xf32>
    %173 = vector.extract_strided_slice %170 {offsets = [0, 128], sizes = [8, 64], strides = [1, 1]} : vector<8x256xf32> to vector<8x64xf32>
    %174 = vector.extract_strided_slice %170 {offsets = [0, 192], sizes = [8, 64], strides = [1, 1]} : vector<8x256xf32> to vector<8x64xf32>
    %175 = arith.mulf %172, %137 : vector<8x64xf32>
    %176 = arith.mulf %171, %173 : vector<8x64xf32>
    %177 = arith.addf %175, %176 : vector<8x64xf32>
    %178 = math.tanh %177 : vector<8x64xf32>
    %179 = arith.mulf %174, %178 : vector<8x64xf32>
    %180 = vector.extract_strided_slice %179 {offsets = [0, 0], sizes = [8, 32], strides = [1, 1]} : vector<8x64xf32> to vector<8x32xf32>
    %181 = arith.index_cast %c3_i32 : i32 to index
    %c0_63 = arith.constant 0 : index
    %c0_64 = arith.constant 0 : index
    %182 = vector.load %arg14[%181, %c0_63, %c0_64] : memref<8x8x32xf32, #tpu.memory_space<vmem>>, vector<1x8x32xf32>
    %183 = vector.shape_cast %182 : vector<1x8x32xf32> to vector<8x32xf32>
    %184 = vector.shape_cast %180 : vector<8x32xf32> to vector<1x8x32xf32>
    tpu.vector_store %arg14[%181, %c0_63, %c0_64], %184 {strides = array<i32>} : memref<8x8x32xf32, #tpu.memory_space<vmem>>, vector<1x8x32xf32>,
    %185 = vector.extract_strided_slice %179 {offsets = [0, 32], sizes = [8, 32], strides = [1, 1]} : vector<8x64xf32> to vector<8x32xf32>
    %c7_i32_65 = arith.constant 7 : i32
    %186 = arith.subi %c7_i32_65, %c3_i32 : i32
    %187 = arith.index_cast %186 : i32 to index
    %c0_66 = arith.constant 0 : index
    %c0_67 = arith.constant 0 : index
    %188 = vector.load %arg15[%187, %c0_66, %c0_67] : memref<8x8x32xf32, #tpu.memory_space<vmem>>, vector<1x8x32xf32>
    %189 = vector.shape_cast %188 : vector<1x8x32xf32> to vector<8x32xf32>
    %190 = vector.shape_cast %185 : vector<8x32xf32> to vector<1x8x32xf32>
    tpu.vector_store %arg15[%187, %c0_66, %c0_67], %190 {strides = array<i32>} : memref<8x8x32xf32, #tpu.memory_space<vmem>>, vector<1x8x32xf32>,
    %c4_i32 = arith.constant 4 : i32
    %191 = arith.index_cast %c4_i32 : i32 to index
    %c0_68 = arith.constant 0 : index
    %c0_69 = arith.constant 0 : index
    %192 = vector.load %arg1[%191, %c0_68, %c0_69] : memref<8x8x32xf32, #tpu.memory_space<vmem>>, vector<1x8x32xf32>
    %193 = vector.shape_cast %192 : vector<1x8x32xf32> to vector<8x32xf32>
    %c7_i32_70 = arith.constant 7 : i32
    %194 = arith.subi %c7_i32_70, %c4_i32 : i32
    %195 = arith.index_cast %194 : i32 to index
    %c0_71 = arith.constant 0 : index
    %c0_72 = arith.constant 0 : index
    %196 = vector.load %arg1[%195, %c0_71, %c0_72] : memref<8x8x32xf32, #tpu.memory_space<vmem>>, vector<1x8x32xf32>
    %197 = vector.shape_cast %196 : vector<1x8x32xf32> to vector<8x32xf32>
    %198 = tpu.concatenate %193, %197, %179 in 1 : vector<8x32xf32>, vector<8x32xf32>, vector<8x64xf32> -> vector<8x128xf32>
    %c0_73 = arith.constant 0 : index
    %c0_74 = arith.constant 0 : index
    %199 = vector.load %arg4[%c0_73, %c0_74] : memref<128x256xf32, #tpu.memory_space<vmem>>, vector<128x256xf32>
    %cst_75 = arith.constant dense<0.000000e+00> : vector<8x256xf32>
    %200 = tpu.matmul %198, %199, %cst_75 {dimension_numbers = #tpu.dot_dimension_numbers<[1], [0], [0], [1], [0, 0, 1, 1], [], []>} : vector<8x128xf32>, vector<128x256xf32>, vector<8x256xf32> -> vector<8x256xf32>
    %c0_76 = arith.constant 0 : index
    %c0_77 = arith.constant 0 : index
    %201 = vector.load %arg5[%c0_76, %c0_77] : memref<1x256xf32, #tpu.memory_space<vmem>>, vector<1x256xf32>
    %202 = vector.broadcast %201 : vector<1x256xf32> to vector<8x256xf32>
    %203 = arith.addf %200, %202 : vector<8x256xf32>
    %204 = vector.broadcast %8 : vector<1x256xf32> to vector<8x256xf32>
    %205 = arith.mulf %204, %203 : vector<8x256xf32>
    %206 = math.tanh %205 : vector<8x256xf32>
    %207 = vector.broadcast %8 : vector<1x256xf32> to vector<8x256xf32>
    %208 = arith.mulf %207, %206 : vector<8x256xf32>
    %209 = vector.broadcast %11 : vector<1x256xf32> to vector<8x256xf32>
    %210 = arith.addf %208, %209 : vector<8x256xf32>
    %211 = vector.extract_strided_slice %210 {offsets = [0, 0], sizes = [8, 64], strides = [1, 1]} : vector<8x256xf32> to vector<8x64xf32>
    %212 = vector.extract_strided_slice %210 {offsets = [0, 64], sizes = [8, 64], strides = [1, 1]} : vector<8x256xf32> to vector<8x64xf32>
    %213 = vector.extract_strided_slice %210 {offsets = [0, 128], sizes = [8, 64], strides = [1, 1]} : vector<8x256xf32> to vector<8x64xf32>
    %214 = vector.extract_strided_slice %210 {offsets = [0, 192], sizes = [8, 64], strides = [1, 1]} : vector<8x256xf32> to vector<8x64xf32>
    %215 = arith.mulf %212, %177 : vector<8x64xf32>
    %216 = arith.mulf %211, %213 : vector<8x64xf32>
    %217 = arith.addf %215, %216 : vector<8x64xf32>
    %218 = math.tanh %217 : vector<8x64xf32>
    %219 = arith.mulf %214, %218 : vector<8x64xf32>
    %220 = vector.extract_strided_slice %219 {offsets = [0, 0], sizes = [8, 32], strides = [1, 1]} : vector<8x64xf32> to vector<8x32xf32>
    %221 = arith.index_cast %c4_i32 : i32 to index
    %c0_78 = arith.constant 0 : index
    %c0_79 = arith.constant 0 : index
    %222 = vector.load %arg14[%221, %c0_78, %c0_79] : memref<8x8x32xf32, #tpu.memory_space<vmem>>, vector<1x8x32xf32>
    %223 = vector.shape_cast %222 : vector<1x8x32xf32> to vector<8x32xf32>
    %224 = vector.shape_cast %220 : vector<8x32xf32> to vector<1x8x32xf32>
    tpu.vector_store %arg14[%221, %c0_78, %c0_79], %224 {strides = array<i32>} : memref<8x8x32xf32, #tpu.memory_space<vmem>>, vector<1x8x32xf32>,
    %225 = vector.extract_strided_slice %219 {offsets = [0, 32], sizes = [8, 32], strides = [1, 1]} : vector<8x64xf32> to vector<8x32xf32>
    %c7_i32_80 = arith.constant 7 : i32
    %226 = arith.subi %c7_i32_80, %c4_i32 : i32
    %227 = arith.index_cast %226 : i32 to index
    %c0_81 = arith.constant 0 : index
    %c0_82 = arith.constant 0 : index
    %228 = vector.load %arg15[%227, %c0_81, %c0_82] : memref<8x8x32xf32, #tpu.memory_space<vmem>>, vector<1x8x32xf32>
    %229 = vector.shape_cast %228 : vector<1x8x32xf32> to vector<8x32xf32>
    %230 = vector.shape_cast %225 : vector<8x32xf32> to vector<1x8x32xf32>
    tpu.vector_store %arg15[%227, %c0_81, %c0_82], %230 {strides = array<i32>} : memref<8x8x32xf32, #tpu.memory_space<vmem>>, vector<1x8x32xf32>,
    %c5_i32 = arith.constant 5 : i32
    %231 = arith.index_cast %c5_i32 : i32 to index
    %c0_83 = arith.constant 0 : index
    %c0_84 = arith.constant 0 : index
    %232 = vector.load %arg1[%231, %c0_83, %c0_84] : memref<8x8x32xf32, #tpu.memory_space<vmem>>, vector<1x8x32xf32>
    %233 = vector.shape_cast %232 : vector<1x8x32xf32> to vector<8x32xf32>
    %c7_i32_85 = arith.constant 7 : i32
    %234 = arith.subi %c7_i32_85, %c5_i32 : i32
    %235 = arith.index_cast %234 : i32 to index
    %c0_86 = arith.constant 0 : index
    %c0_87 = arith.constant 0 : index
    %236 = vector.load %arg1[%235, %c0_86, %c0_87] : memref<8x8x32xf32, #tpu.memory_space<vmem>>, vector<1x8x32xf32>
    %237 = vector.shape_cast %236 : vector<1x8x32xf32> to vector<8x32xf32>
    %238 = tpu.concatenate %233, %237, %219 in 1 : vector<8x32xf32>, vector<8x32xf32>, vector<8x64xf32> -> vector<8x128xf32>
    %c0_88 = arith.constant 0 : index
    %c0_89 = arith.constant 0 : index
    %239 = vector.load %arg4[%c0_88, %c0_89] : memref<128x256xf32, #tpu.memory_space<vmem>>, vector<128x256xf32>
    %cst_90 = arith.constant dense<0.000000e+00> : vector<8x256xf32>
    %240 = tpu.matmul %238, %239, %cst_90 {dimension_numbers = #tpu.dot_dimension_numbers<[1], [0], [0], [1], [0, 0, 1, 1], [], []>} : vector<8x128xf32>, vector<128x256xf32>, vector<8x256xf32> -> vector<8x256xf32>
    %c0_91 = arith.constant 0 : index
    %c0_92 = arith.constant 0 : index
    %241 = vector.load %arg5[%c0_91, %c0_92] : memref<1x256xf32, #tpu.memory_space<vmem>>, vector<1x256xf32>
    %242 = vector.broadcast %241 : vector<1x256xf32> to vector<8x256xf32>
    %243 = arith.addf %240, %242 : vector<8x256xf32>
    %244 = vector.broadcast %8 : vector<1x256xf32> to vector<8x256xf32>
    %245 = arith.mulf %244, %243 : vector<8x256xf32>
    %246 = math.tanh %245 : vector<8x256xf32>
    %247 = vector.broadcast %8 : vector<1x256xf32> to vector<8x256xf32>
    %248 = arith.mulf %247, %246 : vector<8x256xf32>
    %249 = vector.broadcast %11 : vector<1x256xf32> to vector<8x256xf32>
    %250 = arith.addf %248, %249 : vector<8x256xf32>
    %251 = vector.extract_strided_slice %250 {offsets = [0, 0], sizes = [8, 64], strides = [1, 1]} : vector<8x256xf32> to vector<8x64xf32>
    %252 = vector.extract_strided_slice %250 {offsets = [0, 64], sizes = [8, 64], strides = [1, 1]} : vector<8x256xf32> to vector<8x64xf32>
    %253 = vector.extract_strided_slice %250 {offsets = [0, 128], sizes = [8, 64], strides = [1, 1]} : vector<8x256xf32> to vector<8x64xf32>
    %254 = vector.extract_strided_slice %250 {offsets = [0, 192], sizes = [8, 64], strides = [1, 1]} : vector<8x256xf32> to vector<8x64xf32>
    %255 = arith.mulf %252, %217 : vector<8x64xf32>
    %256 = arith.mulf %251, %253 : vector<8x64xf32>
    %257 = arith.addf %255, %256 : vector<8x64xf32>
    %258 = math.tanh %257 : vector<8x64xf32>
    %259 = arith.mulf %254, %258 : vector<8x64xf32>
    %260 = vector.extract_strided_slice %259 {offsets = [0, 0], sizes = [8, 32], strides = [1, 1]} : vector<8x64xf32> to vector<8x32xf32>
    %261 = arith.index_cast %c5_i32 : i32 to index
    %c0_93 = arith.constant 0 : index
    %c0_94 = arith.constant 0 : index
    %262 = vector.load %arg14[%261, %c0_93, %c0_94] : memref<8x8x32xf32, #tpu.memory_space<vmem>>, vector<1x8x32xf32>
    %263 = vector.shape_cast %262 : vector<1x8x32xf32> to vector<8x32xf32>
    %264 = vector.shape_cast %260 : vector<8x32xf32> to vector<1x8x32xf32>
    tpu.vector_store %arg14[%261, %c0_93, %c0_94], %264 {strides = array<i32>} : memref<8x8x32xf32, #tpu.memory_space<vmem>>, vector<1x8x32xf32>,
    %265 = vector.extract_strided_slice %259 {offsets = [0, 32], sizes = [8, 32], strides = [1, 1]} : vector<8x64xf32> to vector<8x32xf32>
    %c7_i32_95 = arith.constant 7 : i32
    %266 = arith.subi %c7_i32_95, %c5_i32 : i32
    %267 = arith.index_cast %266 : i32 to index
    %c0_96 = arith.constant 0 : index
    %c0_97 = arith.constant 0 : index
    %268 = vector.load %arg15[%267, %c0_96, %c0_97] : memref<8x8x32xf32, #tpu.memory_space<vmem>>, vector<1x8x32xf32>
    %269 = vector.shape_cast %268 : vector<1x8x32xf32> to vector<8x32xf32>
    %270 = vector.shape_cast %265 : vector<8x32xf32> to vector<1x8x32xf32>
    tpu.vector_store %arg15[%267, %c0_96, %c0_97], %270 {strides = array<i32>} : memref<8x8x32xf32, #tpu.memory_space<vmem>>, vector<1x8x32xf32>,
    %c6_i32 = arith.constant 6 : i32
    %271 = arith.index_cast %c6_i32 : i32 to index
    %c0_98 = arith.constant 0 : index
    %c0_99 = arith.constant 0 : index
    %272 = vector.load %arg1[%271, %c0_98, %c0_99] : memref<8x8x32xf32, #tpu.memory_space<vmem>>, vector<1x8x32xf32>
    %273 = vector.shape_cast %272 : vector<1x8x32xf32> to vector<8x32xf32>
    %c7_i32_100 = arith.constant 7 : i32
    %274 = arith.subi %c7_i32_100, %c6_i32 : i32
    %275 = arith.index_cast %274 : i32 to index
    %c0_101 = arith.constant 0 : index
    %c0_102 = arith.constant 0 : index
    %276 = vector.load %arg1[%275, %c0_101, %c0_102] : memref<8x8x32xf32, #tpu.memory_space<vmem>>, vector<1x8x32xf32>
    %277 = vector.shape_cast %276 : vector<1x8x32xf32> to vector<8x32xf32>
    %278 = tpu.concatenate %273, %277, %259 in 1 : vector<8x32xf32>, vector<8x32xf32>, vector<8x64xf32> -> vector<8x128xf32>
    %c0_103 = arith.constant 0 : index
    %c0_104 = arith.constant 0 : index
    %279 = vector.load %arg4[%c0_103, %c0_104] : memref<128x256xf32, #tpu.memory_space<vmem>>, vector<128x256xf32>
    %cst_105 = arith.constant dense<0.000000e+00> : vector<8x256xf32>
    %280 = tpu.matmul %278, %279, %cst_105 {dimension_numbers = #tpu.dot_dimension_numbers<[1], [0], [0], [1], [0, 0, 1, 1], [], []>} : vector<8x128xf32>, vector<128x256xf32>, vector<8x256xf32> -> vector<8x256xf32>
    %c0_106 = arith.constant 0 : index
    %c0_107 = arith.constant 0 : index
    %281 = vector.load %arg5[%c0_106, %c0_107] : memref<1x256xf32, #tpu.memory_space<vmem>>, vector<1x256xf32>
    %282 = vector.broadcast %281 : vector<1x256xf32> to vector<8x256xf32>
    %283 = arith.addf %280, %282 : vector<8x256xf32>
    %284 = vector.broadcast %8 : vector<1x256xf32> to vector<8x256xf32>
    %285 = arith.mulf %284, %283 : vector<8x256xf32>
    %286 = math.tanh %285 : vector<8x256xf32>
    %287 = vector.broadcast %8 : vector<1x256xf32> to vector<8x256xf32>
    %288 = arith.mulf %287, %286 : vector<8x256xf32>
    %289 = vector.broadcast %11 : vector<1x256xf32> to vector<8x256xf32>
    %290 = arith.addf %288, %289 : vector<8x256xf32>
    %291 = vector.extract_strided_slice %290 {offsets = [0, 0], sizes = [8, 64], strides = [1, 1]} : vector<8x256xf32> to vector<8x64xf32>
    %292 = vector.extract_strided_slice %290 {offsets = [0, 64], sizes = [8, 64], strides = [1, 1]} : vector<8x256xf32> to vector<8x64xf32>
    %293 = vector.extract_strided_slice %290 {offsets = [0, 128], sizes = [8, 64], strides = [1, 1]} : vector<8x256xf32> to vector<8x64xf32>
    %294 = vector.extract_strided_slice %290 {offsets = [0, 192], sizes = [8, 64], strides = [1, 1]} : vector<8x256xf32> to vector<8x64xf32>
    %295 = arith.mulf %292, %257 : vector<8x64xf32>
    %296 = arith.mulf %291, %293 : vector<8x64xf32>
    %297 = arith.addf %295, %296 : vector<8x64xf32>
    %298 = math.tanh %297 : vector<8x64xf32>
    %299 = arith.mulf %294, %298 : vector<8x64xf32>
    %300 = vector.extract_strided_slice %299 {offsets = [0, 0], sizes = [8, 32], strides = [1, 1]} : vector<8x64xf32> to vector<8x32xf32>
    %301 = arith.index_cast %c6_i32 : i32 to index
    %c0_108 = arith.constant 0 : index
    %c0_109 = arith.constant 0 : index
    %302 = vector.load %arg14[%301, %c0_108, %c0_109] : memref<8x8x32xf32, #tpu.memory_space<vmem>>, vector<1x8x32xf32>
    %303 = vector.shape_cast %302 : vector<1x8x32xf32> to vector<8x32xf32>
    %304 = vector.shape_cast %300 : vector<8x32xf32> to vector<1x8x32xf32>
    tpu.vector_store %arg14[%301, %c0_108, %c0_109], %304 {strides = array<i32>} : memref<8x8x32xf32, #tpu.memory_space<vmem>>, vector<1x8x32xf32>,
    %305 = vector.extract_strided_slice %299 {offsets = [0, 32], sizes = [8, 32], strides = [1, 1]} : vector<8x64xf32> to vector<8x32xf32>
    %c7_i32_110 = arith.constant 7 : i32
    %306 = arith.subi %c7_i32_110, %c6_i32 : i32
    %307 = arith.index_cast %306 : i32 to index
    %c0_111 = arith.constant 0 : index
    %c0_112 = arith.constant 0 : index
    %308 = vector.load %arg15[%307, %c0_111, %c0_112] : memref<8x8x32xf32, #tpu.memory_space<vmem>>, vector<1x8x32xf32>
    %309 = vector.shape_cast %308 : vector<1x8x32xf32> to vector<8x32xf32>
    %310 = vector.shape_cast %305 : vector<8x32xf32> to vector<1x8x32xf32>
    tpu.vector_store %arg15[%307, %c0_111, %c0_112], %310 {strides = array<i32>} : memref<8x8x32xf32, #tpu.memory_space<vmem>>, vector<1x8x32xf32>,
    %c7_i32_113 = arith.constant 7 : i32
    %311 = arith.index_cast %c7_i32_113 : i32 to index
    %c0_114 = arith.constant 0 : index
    %c0_115 = arith.constant 0 : index
    %312 = vector.load %arg1[%311, %c0_114, %c0_115] : memref<8x8x32xf32, #tpu.memory_space<vmem>>, vector<1x8x32xf32>
    %313 = vector.shape_cast %312 : vector<1x8x32xf32> to vector<8x32xf32>
    %c7_i32_116 = arith.constant 7 : i32
    %314 = arith.subi %c7_i32_116, %c7_i32_113 : i32
    %315 = arith.index_cast %314 : i32 to index
    %c0_117 = arith.constant 0 : index
    %c0_118 = arith.constant 0 : index
    %316 = vector.load %arg1[%315, %c0_117, %c0_118] : memref<8x8x32xf32, #tpu.memory_space<vmem>>, vector<1x8x32xf32>
    %317 = vector.shape_cast %316 : vector<1x8x32xf32> to vector<8x32xf32>
    %318 = tpu.concatenate %313, %317, %299 in 1 : vector<8x32xf32>, vector<8x32xf32>, vector<8x64xf32> -> vector<8x128xf32>
    %c0_119 = arith.constant 0 : index
    %c0_120 = arith.constant 0 : index
    %319 = vector.load %arg4[%c0_119, %c0_120] : memref<128x256xf32, #tpu.memory_space<vmem>>, vector<128x256xf32>
    %cst_121 = arith.constant dense<0.000000e+00> : vector<8x256xf32>
    %320 = tpu.matmul %318, %319, %cst_121 {dimension_numbers = #tpu.dot_dimension_numbers<[1], [0], [0], [1], [0, 0, 1, 1], [], []>} : vector<8x128xf32>, vector<128x256xf32>, vector<8x256xf32> -> vector<8x256xf32>
    %c0_122 = arith.constant 0 : index
    %c0_123 = arith.constant 0 : index
    %321 = vector.load %arg5[%c0_122, %c0_123] : memref<1x256xf32, #tpu.memory_space<vmem>>, vector<1x256xf32>
    %322 = vector.broadcast %321 : vector<1x256xf32> to vector<8x256xf32>
    %323 = arith.addf %320, %322 : vector<8x256xf32>
    %324 = vector.broadcast %8 : vector<1x256xf32> to vector<8x256xf32>
    %325 = arith.mulf %324, %323 : vector<8x256xf32>
    %326 = math.tanh %325 : vector<8x256xf32>
    %327 = vector.broadcast %8 : vector<1x256xf32> to vector<8x256xf32>
    %328 = arith.mulf %327, %326 : vector<8x256xf32>
    %329 = vector.broadcast %11 : vector<1x256xf32> to vector<8x256xf32>
    %330 = arith.addf %328, %329 : vector<8x256xf32>
    %331 = vector.extract_strided_slice %330 {offsets = [0, 0], sizes = [8, 64], strides = [1, 1]} : vector<8x256xf32> to vector<8x64xf32>
    %332 = vector.extract_strided_slice %330 {offsets = [0, 64], sizes = [8, 64], strides = [1, 1]} : vector<8x256xf32> to vector<8x64xf32>
    %333 = vector.extract_strided_slice %330 {offsets = [0, 128], sizes = [8, 64], strides = [1, 1]} : vector<8x256xf32> to vector<8x64xf32>
    %334 = vector.extract_strided_slice %330 {offsets = [0, 192], sizes = [8, 64], strides = [1, 1]} : vector<8x256xf32> to vector<8x64xf32>
    %335 = arith.mulf %332, %297 : vector<8x64xf32>
    %336 = arith.mulf %331, %333 : vector<8x64xf32>
    %337 = arith.addf %335, %336 : vector<8x64xf32>
    %338 = math.tanh %337 : vector<8x64xf32>
    %339 = arith.mulf %334, %338 : vector<8x64xf32>
    %340 = vector.extract_strided_slice %339 {offsets = [0, 0], sizes = [8, 32], strides = [1, 1]} : vector<8x64xf32> to vector<8x32xf32>
    %341 = arith.index_cast %c7_i32_113 : i32 to index
    %c0_124 = arith.constant 0 : index
    %c0_125 = arith.constant 0 : index
    %342 = vector.load %arg14[%341, %c0_124, %c0_125] : memref<8x8x32xf32, #tpu.memory_space<vmem>>, vector<1x8x32xf32>
    %343 = vector.shape_cast %342 : vector<1x8x32xf32> to vector<8x32xf32>
    %344 = vector.shape_cast %340 : vector<8x32xf32> to vector<1x8x32xf32>
    tpu.vector_store %arg14[%341, %c0_124, %c0_125], %344 {strides = array<i32>} : memref<8x8x32xf32, #tpu.memory_space<vmem>>, vector<1x8x32xf32>,
    %345 = vector.extract_strided_slice %339 {offsets = [0, 32], sizes = [8, 32], strides = [1, 1]} : vector<8x64xf32> to vector<8x32xf32>
    %c7_i32_126 = arith.constant 7 : i32
    %346 = arith.subi %c7_i32_126, %c7_i32_113 : i32
    %347 = arith.index_cast %346 : i32 to index
    %c0_127 = arith.constant 0 : index
    %c0_128 = arith.constant 0 : index
    %348 = vector.load %arg15[%347, %c0_127, %c0_128] : memref<8x8x32xf32, #tpu.memory_space<vmem>>, vector<1x8x32xf32>
    %349 = vector.shape_cast %348 : vector<1x8x32xf32> to vector<8x32xf32>
    %350 = vector.shape_cast %345 : vector<8x32xf32> to vector<1x8x32xf32>
    tpu.vector_store %arg15[%347, %c0_127, %c0_128], %350 {strides = array<i32>} : memref<8x8x32xf32, #tpu.memory_space<vmem>>, vector<1x8x32xf32>,
    %c8_i32 = arith.constant 8 : i32
    %c0_129 = arith.constant 0 : index
    %c0_130 = arith.constant 0 : index
    %c0_131 = arith.constant 0 : index
    %351 = vector.load %arg14[%c0_129, %c0_130, %c0_131] : memref<8x8x32xf32, #tpu.memory_space<vmem>>, vector<8x8x32xf32>
    %c0_132 = arith.constant 0 : index
    %c0_133 = arith.constant 0 : index
    %c0_134 = arith.constant 0 : index
    %352 = vector.load %arg15[%c0_132, %c0_133, %c0_134] : memref<8x8x32xf32, #tpu.memory_space<vmem>>, vector<8x8x32xf32>
    %c0_135 = arith.constant 0 : index
    %c0_136 = arith.constant 0 : index
    %c0_137 = arith.constant 0 : index
    %353 = vector.load %arg1[%c0_135, %c0_136, %c0_137] : memref<8x8x32xf32, #tpu.memory_space<vmem>>, vector<8x8x32xf32>
    %c0_138 = arith.constant 0 : index
    %c0_139 = arith.constant 0 : index
    %354 = vector.load %arg3[%c0_138, %c0_139] : memref<8x8xf32, #tpu.memory_space<vmem>>, vector<8x8xf32>
    %cst_140 = arith.constant 5.000000e-01 : f32
    %355 = vector.broadcast %cst_140 : f32 to vector<8x8xf32>
    %356 = arith.cmpf ogt, %354, %355 : vector<8x8xf32>
    %cst_141 = arith.constant 0.000000e+00 : f32
    %357 = vector.broadcast %cst_141 : f32 to vector<8x32xf32>
    %c0_i32_142 = arith.constant 0 : i32
    %358 = arith.index_cast %c0_i32_142 : i32 to index
    %c0_143 = arith.constant 0 : index
    %c0_144 = arith.constant 0 : index
    %359 = vector.load %arg2[%358, %c0_143, %c0_144] : memref<8x8x32xf32, #tpu.memory_space<vmem>>, vector<1x8x32xf32>
    %360 = vector.shape_cast %359 : vector<1x8x32xf32> to vector<8x32xf32>
    %361 = tpu.concatenate %360, %357 in 1 : vector<8x32xf32>, vector<8x32xf32> -> vector<8x64xf32>
    %c0_145 = arith.constant 0 : index
    %c0_146 = arith.constant 0 : index
    %362 = vector.load %arg6[%c0_145, %c0_146] : memref<64x128xf32, #tpu.memory_space<vmem>>, vector<64x128xf32>
    %cst_147 = arith.constant dense<0.000000e+00> : vector<8x128xf32>
    %363 = tpu.matmul %361, %362, %cst_147 {dimension_numbers = #tpu.dot_dimension_numbers<[1], [0], [0], [1], [0, 0, 1, 1], [], []>} : vector<8x64xf32>, vector<64x128xf32>, vector<8x128xf32> -> vector<8x128xf32>
    %c0_148 = arith.constant 0 : index
    %c0_149 = arith.constant 0 : index
    %364 = vector.load %arg7[%c0_148, %c0_149] : memref<1x128xf32, #tpu.memory_space<vmem>>, vector<1x128xf32>
    %365 = vector.broadcast %364 : vector<1x128xf32> to vector<8x128xf32>
    %366 = arith.addf %363, %365 : vector<8x128xf32>
    %367 = vector.broadcast %20 : vector<1x128xf32> to vector<8x128xf32>
    %368 = arith.mulf %367, %366 : vector<8x128xf32>
    %369 = math.tanh %368 : vector<8x128xf32>
    %370 = vector.broadcast %20 : vector<1x128xf32> to vector<8x128xf32>
    %371 = arith.mulf %370, %369 : vector<8x128xf32>
    %372 = vector.broadcast %23 : vector<1x128xf32> to vector<8x128xf32>
    %373 = arith.addf %371, %372 : vector<8x128xf32>
    %374 = vector.extract_strided_slice %373 {offsets = [0, 0], sizes = [8, 32], strides = [1, 1]} : vector<8x128xf32> to vector<8x32xf32>
    %375 = vector.extract_strided_slice %373 {offsets = [0, 32], sizes = [8, 32], strides = [1, 1]} : vector<8x128xf32> to vector<8x32xf32>
    %376 = vector.extract_strided_slice %373 {offsets = [0, 64], sizes = [8, 32], strides = [1, 1]} : vector<8x128xf32> to vector<8x32xf32>
    %377 = vector.extract_strided_slice %373 {offsets = [0, 96], sizes = [8, 32], strides = [1, 1]} : vector<8x128xf32> to vector<8x32xf32>
    %378 = arith.mulf %375, %357 : vector<8x32xf32>
    %379 = arith.mulf %374, %376 : vector<8x32xf32>
    %380 = arith.addf %378, %379 : vector<8x32xf32>
    %381 = math.tanh %380 : vector<8x32xf32>
    %382 = arith.mulf %377, %381 : vector<8x32xf32>
    %c0_150 = arith.constant 0 : index
    %c0_151 = arith.constant 0 : index
    %383 = vector.load %arg8[%c0_150, %c0_151] : memref<32x64xf32, #tpu.memory_space<vmem>>, vector<32x64xf32>
    %cst_152 = arith.constant dense<0.000000e+00> : vector<8x64xf32>
    %384 = tpu.matmul %382, %383, %cst_152 {dimension_numbers = #tpu.dot_dimension_numbers<[1], [0], [0], [1], [0, 0, 1, 1], [], []>} : vector<8x32xf32>, vector<32x64xf32>, vector<8x64xf32> -> vector<8x64xf32>
    %385 = vector.extract_strided_slice %384 {offsets = [0, 0], sizes = [8, 32], strides = [1, 1]} : vector<8x64xf32> to vector<8x32xf32>
    %386 = vector.extract_strided_slice %384 {offsets = [0, 32], sizes = [8, 32], strides = [1, 1]} : vector<8x64xf32> to vector<8x32xf32>
    %387 = vector.shape_cast %385 : vector<8x32xf32> to vector<1x8x32xf32>
    %388 = vector.broadcast %387 : vector<1x8x32xf32> to vector<8x8x32xf32>
    %389 = arith.mulf %388, %351 : vector<8x8x32xf32>
    %cst_153 = arith.constant dense<0.000000e+00> : vector<8x8xf32>
    %390 = vector.multi_reduction <add>, %389, %cst_153 [2] : vector<8x8x32xf32> to vector<8x8xf32>
    %391 = vector.shape_cast %386 : vector<8x32xf32> to vector<1x8x32xf32>
    %392 = vector.broadcast %391 : vector<1x8x32xf32> to vector<8x8x32xf32>
    %393 = arith.mulf %392, %352 : vector<8x8x32xf32>
    %cst_154 = arith.constant dense<0.000000e+00> : vector<8x8xf32>
    %394 = vector.multi_reduction <add>, %393, %cst_154 [2] : vector<8x8x32xf32> to vector<8x8xf32>
    %395 = arith.addf %390, %394 : vector<8x8xf32>
    %cst_155 = arith.constant -1.000000e+09 : f32
    %396 = vector.broadcast %cst_155 : f32 to vector<8x8xf32>
    %397 = arith.select %356, %395, %396 : vector<8x8xi1>, vector<8x8xf32>
    %cst_156 = arith.constant dense<0xFF800000> : vector<8xf32>
    %398 = vector.multi_reduction <maximumf>, %397, %cst_156 [0] : vector<8x8xf32> to vector<8xf32>
    %399 = vector.shape_cast %398 : vector<8xf32> to vector<1x8xf32>
    %400 = vector.broadcast %399 : vector<1x8xf32> to vector<8x8xf32>
    %401 = arith.subf %397, %400 : vector<8x8xf32>
    %402 = math.exp %401 : vector<8x8xf32>
    %cst_157 = arith.constant dense<0.000000e+00> : vector<8xf32>
    %403 = vector.multi_reduction <add>, %402, %cst_157 [0] : vector<8x8xf32> to vector<8xf32>
    %404 = vector.shape_cast %403 : vector<8xf32> to vector<1x8xf32>
    %405 = tpu.reciprocal %404 {approx = true} : vector<1x8xf32> -> vector<1x8xf32>
    %406 = arith.mulf %404, %405 : vector<1x8xf32>
    %cst_158 = arith.constant 2.000000e+00 : f32
    %407 = vector.broadcast %cst_158 : f32 to vector<1x8xf32>
    %408 = arith.subf %407, %406 : vector<1x8xf32>
    %409 = arith.mulf %405, %408 : vector<1x8xf32>
    %410 = vector.broadcast %409 : vector<1x8xf32> to vector<8x8xf32>
    %411 = arith.mulf %402, %410 : vector<8x8xf32>
    %412 = vector.shape_cast %411 : vector<8x8xf32> to vector<8x8x1xf32>
    %413 = vector.broadcast %412 : vector<8x8x1xf32> to vector<8x8x32xf32>
    %414 = arith.mulf %413, %351 : vector<8x8x32xf32>
    %cst_159 = arith.constant dense<0.000000e+00> : vector<8x32xf32>
    %415 = vector.multi_reduction <add>, %414, %cst_159 [0] : vector<8x8x32xf32> to vector<8x32xf32>
    %416 = vector.broadcast %412 : vector<8x8x1xf32> to vector<8x8x32xf32>
    %417 = arith.mulf %416, %352 : vector<8x8x32xf32>
    %cst_160 = arith.constant dense<0.000000e+00> : vector<8x32xf32>
    %418 = vector.multi_reduction <add>, %417, %cst_160 [0] : vector<8x8x32xf32> to vector<8x32xf32>
    %419 = vector.broadcast %412 : vector<8x8x1xf32> to vector<8x8x32xf32>
    %420 = arith.mulf %419, %353 : vector<8x8x32xf32>
    %cst_161 = arith.constant dense<0.000000e+00> : vector<8x32xf32>
    %421 = vector.multi_reduction <add>, %420, %cst_161 [0] : vector<8x8x32xf32> to vector<8x32xf32>
    %422 = tpu.concatenate %382, %415, %418 in 1 : vector<8x32xf32>, vector<8x32xf32>, vector<8x32xf32> -> vector<8x96xf32>
    %c0_162 = arith.constant 0 : index
    %c0_163 = arith.constant 0 : index
    %423 = vector.load %arg9[%c0_162, %c0_163] : memref<96x32xf32, #tpu.memory_space<vmem>>, vector<96x32xf32>
    %cst_164 = arith.constant dense<0.000000e+00> : vector<8x32xf32>
    %424 = tpu.matmul %422, %423, %cst_164 {dimension_numbers = #tpu.dot_dimension_numbers<[1], [0], [0], [1], [0, 0, 1, 1], [], []>} : vector<8x96xf32>, vector<96x32xf32>, vector<8x32xf32> -> vector<8x32xf32>
    %c0_165 = arith.constant 0 : index
    %c0_166 = arith.constant 0 : index
    %425 = vector.load %arg10[%c0_165, %c0_166] : memref<1x32xf32, #tpu.memory_space<vmem>>, vector<1x32xf32>
    %426 = vector.broadcast %425 : vector<1x32xf32> to vector<8x32xf32>
    %427 = arith.addf %424, %426 : vector<8x32xf32>
    %428 = math.tanh %427 : vector<8x32xf32>
    %429 = arith.mulf %421, %421 : vector<8x32xf32>
    %cst_167 = arith.constant dense<0.000000e+00> : vector<8xf32>
    %430 = vector.multi_reduction <add>, %429, %cst_167 [1] : vector<8x32xf32> to vector<8xf32>
    %431 = vector.shape_cast %430 : vector<8xf32> to vector<8x1xf32>
    %432 = math.sqrt %431 : vector<8x1xf32>
    %433 = arith.mulf %428, %428 : vector<8x32xf32>
    %cst_168 = arith.constant dense<0.000000e+00> : vector<8xf32>
    %434 = vector.multi_reduction <add>, %433, %cst_168 [1] : vector<8x32xf32> to vector<8xf32>
    %435 = vector.shape_cast %434 : vector<8xf32> to vector<8x1xf32>
    %cst_169 = arith.constant 9.99999993E-9 : f32
    %436 = vector.broadcast %cst_169 : f32 to vector<8x1xf32>
    %437 = arith.addf %435, %436 : vector<8x1xf32>
    %438 = math.rsqrt %437 : vector<8x1xf32>
    %cst_170 = arith.constant 2.000000e-01 : f32
    %439 = vector.broadcast %cst_170 : f32 to vector<8x1xf32>
    %440 = arith.mulf %439, %432 : vector<8x1xf32>
    %441 = vector.broadcast %440 : vector<8x1xf32> to vector<8x32xf32>
    %442 = arith.mulf %428, %441 : vector<8x32xf32>
    %443 = vector.broadcast %438 : vector<8x1xf32> to vector<8x32xf32>
    %444 = arith.mulf %442, %443 : vector<8x32xf32>
    %445 = arith.addf %421, %444 : vector<8x32xf32>
    %c0_171 = arith.constant 0 : index
    %c0_172 = arith.constant 0 : index
    %446 = vector.load %arg11[%c0_171, %c0_172] : memref<32x128xf32, #tpu.memory_space<vmem>>, vector<32x128xf32>
    %cst_173 = arith.constant dense<0.000000e+00> : vector<8x128xf32>
    %447 = tpu.matmul %445, %446, %cst_173 {dimension_numbers = #tpu.dot_dimension_numbers<[1], [0], [0], [1], [0, 0, 1, 1], [], []>} : vector<8x32xf32>, vector<32x128xf32>, vector<8x128xf32> -> vector<8x128xf32>
    %448 = vector.broadcast %29 : vector<1x128xf32> to vector<8x128xf32>
    %449 = arith.addf %447, %448 : vector<8x128xf32>
    %cst_174 = arith.constant dense<0xFF800000> : vector<8xf32>
    %450 = vector.multi_reduction <maximumf>, %449, %cst_174 [1] : vector<8x128xf32> to vector<8xf32>
    %451 = vector.shape_cast %450 : vector<8xf32> to vector<8x1xf32>
    %452 = vector.broadcast %451 : vector<8x1xf32> to vector<8x128xf32>
    %453 = arith.subf %449, %452 : vector<8x128xf32>
    %454 = math.exp %453 : vector<8x128xf32>
    %cst_175 = arith.constant dense<0.000000e+00> : vector<8xf32>
    %455 = vector.multi_reduction <add>, %454, %cst_175 [1] : vector<8x128xf32> to vector<8xf32>
    %456 = vector.shape_cast %455 : vector<8xf32> to vector<8x1xf32>
    %457 = math.log %456 : vector<8x1xf32>
    %458 = arith.addf %451, %457 : vector<8x1xf32>
    %459 = vector.broadcast %458 : vector<8x1xf32> to vector<8x128xf32>
    %460 = arith.subf %449, %459 : vector<8x128xf32>
    %461 = arith.index_cast %c0_i32_142 : i32 to index
    %c0_176 = arith.constant 0 : index
    %c0_177 = arith.constant 0 : index
    %462 = vector.load %arg12[%461, %c0_176, %c0_177] : memref<8x8x128xf32, #tpu.memory_space<vmem>>, vector<1x8x128xf32>
    %463 = vector.shape_cast %462 : vector<1x8x128xf32> to vector<8x128xf32>
    %464 = vector.shape_cast %460 : vector<8x128xf32> to vector<1x8x128xf32>
    tpu.vector_store %arg12[%461, %c0_176, %c0_177], %464 {strides = array<i32>} : memref<8x8x128xf32, #tpu.memory_space<vmem>>, vector<1x8x128xf32>,
    %c0_178 = arith.constant 0 : index
    %465 = arith.index_cast %c0_i32_142 : i32 to index
    %c0_179 = arith.constant 0 : index
    %c0_180 = arith.constant 0 : index
    %466 = vector.load %arg13[%c0_178, %465, %c0_179, %c0_180] : memref<1x8x8x8xf32, #tpu.memory_space<vmem>>, vector<1x1x8x8xf32>
    %467 = vector.shape_cast %466 : vector<1x1x8x8xf32> to vector<8x8xf32>
    %468 = vector.shape_cast %411 : vector<8x8xf32> to vector<1x1x8x8xf32>
    tpu.vector_store %arg13[%c0_178, %465, %c0_179, %c0_180], %468 {strides = array<i32>} : memref<1x8x8x8xf32, #tpu.memory_space<vmem>>, vector<1x1x8x8xf32>,
    %c1_i32_181 = arith.constant 1 : i32
    %469 = arith.index_cast %c1_i32_181 : i32 to index
    %c0_182 = arith.constant 0 : index
    %c0_183 = arith.constant 0 : index
    %470 = vector.load %arg2[%469, %c0_182, %c0_183] : memref<8x8x32xf32, #tpu.memory_space<vmem>>, vector<1x8x32xf32>
    %471 = vector.shape_cast %470 : vector<1x8x32xf32> to vector<8x32xf32>
    %472 = tpu.concatenate %471, %382 in 1 : vector<8x32xf32>, vector<8x32xf32> -> vector<8x64xf32>
    %c0_184 = arith.constant 0 : index
    %c0_185 = arith.constant 0 : index
    %473 = vector.load %arg6[%c0_184, %c0_185] : memref<64x128xf32, #tpu.memory_space<vmem>>, vector<64x128xf32>
    %cst_186 = arith.constant dense<0.000000e+00> : vector<8x128xf32>
    %474 = tpu.matmul %472, %473, %cst_186 {dimension_numbers = #tpu.dot_dimension_numbers<[1], [0], [0], [1], [0, 0, 1, 1], [], []>} : vector<8x64xf32>, vector<64x128xf32>, vector<8x128xf32> -> vector<8x128xf32>
    %c0_187 = arith.constant 0 : index
    %c0_188 = arith.constant 0 : index
    %475 = vector.load %arg7[%c0_187, %c0_188] : memref<1x128xf32, #tpu.memory_space<vmem>>, vector<1x128xf32>
    %476 = vector.broadcast %475 : vector<1x128xf32> to vector<8x128xf32>
    %477 = arith.addf %474, %476 : vector<8x128xf32>
    %478 = vector.broadcast %20 : vector<1x128xf32> to vector<8x128xf32>
    %479 = arith.mulf %478, %477 : vector<8x128xf32>
    %480 = math.tanh %479 : vector<8x128xf32>
    %481 = vector.broadcast %20 : vector<1x128xf32> to vector<8x128xf32>
    %482 = arith.mulf %481, %480 : vector<8x128xf32>
    %483 = vector.broadcast %23 : vector<1x128xf32> to vector<8x128xf32>
    %484 = arith.addf %482, %483 : vector<8x128xf32>
    %485 = vector.extract_strided_slice %484 {offsets = [0, 0], sizes = [8, 32], strides = [1, 1]} : vector<8x128xf32> to vector<8x32xf32>
    %486 = vector.extract_strided_slice %484 {offsets = [0, 32], sizes = [8, 32], strides = [1, 1]} : vector<8x128xf32> to vector<8x32xf32>
    %487 = vector.extract_strided_slice %484 {offsets = [0, 64], sizes = [8, 32], strides = [1, 1]} : vector<8x128xf32> to vector<8x32xf32>
    %488 = vector.extract_strided_slice %484 {offsets = [0, 96], sizes = [8, 32], strides = [1, 1]} : vector<8x128xf32> to vector<8x32xf32>
    %489 = arith.mulf %486, %380 : vector<8x32xf32>
    %490 = arith.mulf %485, %487 : vector<8x32xf32>
    %491 = arith.addf %489, %490 : vector<8x32xf32>
    %492 = math.tanh %491 : vector<8x32xf32>
    %493 = arith.mulf %488, %492 : vector<8x32xf32>
    %c0_189 = arith.constant 0 : index
    %c0_190 = arith.constant 0 : index
    %494 = vector.load %arg8[%c0_189, %c0_190] : memref<32x64xf32, #tpu.memory_space<vmem>>, vector<32x64xf32>
    %cst_191 = arith.constant dense<0.000000e+00> : vector<8x64xf32>
    %495 = tpu.matmul %493, %494, %cst_191 {dimension_numbers = #tpu.dot_dimension_numbers<[1], [0], [0], [1], [0, 0, 1, 1], [], []>} : vector<8x32xf32>, vector<32x64xf32>, vector<8x64xf32> -> vector<8x64xf32>
    %496 = vector.extract_strided_slice %495 {offsets = [0, 0], sizes = [8, 32], strides = [1, 1]} : vector<8x64xf32> to vector<8x32xf32>
    %497 = vector.extract_strided_slice %495 {offsets = [0, 32], sizes = [8, 32], strides = [1, 1]} : vector<8x64xf32> to vector<8x32xf32>
    %498 = vector.shape_cast %496 : vector<8x32xf32> to vector<1x8x32xf32>
    %499 = vector.broadcast %498 : vector<1x8x32xf32> to vector<8x8x32xf32>
    %500 = arith.mulf %499, %351 : vector<8x8x32xf32>
    %cst_192 = arith.constant dense<0.000000e+00> : vector<8x8xf32>
    %501 = vector.multi_reduction <add>, %500, %cst_192 [2] : vector<8x8x32xf32> to vector<8x8xf32>
    %502 = vector.shape_cast %497 : vector<8x32xf32> to vector<1x8x32xf32>
    %503 = vector.broadcast %502 : vector<1x8x32xf32> to vector<8x8x32xf32>
    %504 = arith.mulf %503, %352 : vector<8x8x32xf32>
    %cst_193 = arith.constant dense<0.000000e+00> : vector<8x8xf32>
    %505 = vector.multi_reduction <add>, %504, %cst_193 [2] : vector<8x8x32xf32> to vector<8x8xf32>
    %506 = arith.addf %501, %505 : vector<8x8xf32>
    %cst_194 = arith.constant -1.000000e+09 : f32
    %507 = vector.broadcast %cst_194 : f32 to vector<8x8xf32>
    %508 = arith.select %356, %506, %507 : vector<8x8xi1>, vector<8x8xf32>
    %cst_195 = arith.constant dense<0xFF800000> : vector<8xf32>
    %509 = vector.multi_reduction <maximumf>, %508, %cst_195 [0] : vector<8x8xf32> to vector<8xf32>
    %510 = vector.shape_cast %509 : vector<8xf32> to vector<1x8xf32>
    %511 = vector.broadcast %510 : vector<1x8xf32> to vector<8x8xf32>
    %512 = arith.subf %508, %511 : vector<8x8xf32>
    %513 = math.exp %512 : vector<8x8xf32>
    %cst_196 = arith.constant dense<0.000000e+00> : vector<8xf32>
    %514 = vector.multi_reduction <add>, %513, %cst_196 [0] : vector<8x8xf32> to vector<8xf32>
    %515 = vector.shape_cast %514 : vector<8xf32> to vector<1x8xf32>
    %516 = tpu.reciprocal %515 {approx = true} : vector<1x8xf32> -> vector<1x8xf32>
    %517 = arith.mulf %515, %516 : vector<1x8xf32>
    %cst_197 = arith.constant 2.000000e+00 : f32
    %518 = vector.broadcast %cst_197 : f32 to vector<1x8xf32>
    %519 = arith.subf %518, %517 : vector<1x8xf32>
    %520 = arith.mulf %516, %519 : vector<1x8xf32>
    %521 = vector.broadcast %520 : vector<1x8xf32> to vector<8x8xf32>
    %522 = arith.mulf %513, %521 : vector<8x8xf32>
    %523 = vector.shape_cast %522 : vector<8x8xf32> to vector<8x8x1xf32>
    %524 = vector.broadcast %523 : vector<8x8x1xf32> to vector<8x8x32xf32>
    %525 = arith.mulf %524, %351 : vector<8x8x32xf32>
    %cst_198 = arith.constant dense<0.000000e+00> : vector<8x32xf32>
    %526 = vector.multi_reduction <add>, %525, %cst_198 [0] : vector<8x8x32xf32> to vector<8x32xf32>
    %527 = vector.broadcast %523 : vector<8x8x1xf32> to vector<8x8x32xf32>
    %528 = arith.mulf %527, %352 : vector<8x8x32xf32>
    %cst_199 = arith.constant dense<0.000000e+00> : vector<8x32xf32>
    %529 = vector.multi_reduction <add>, %528, %cst_199 [0] : vector<8x8x32xf32> to vector<8x32xf32>
    %530 = vector.broadcast %523 : vector<8x8x1xf32> to vector<8x8x32xf32>
    %531 = arith.mulf %530, %353 : vector<8x8x32xf32>
    %cst_200 = arith.constant dense<0.000000e+00> : vector<8x32xf32>
    %532 = vector.multi_reduction <add>, %531, %cst_200 [0] : vector<8x8x32xf32> to vector<8x32xf32>
    %533 = tpu.concatenate %493, %526, %529 in 1 : vector<8x32xf32>, vector<8x32xf32>, vector<8x32xf32> -> vector<8x96xf32>
    %c0_201 = arith.constant 0 : index
    %c0_202 = arith.constant 0 : index
    %534 = vector.load %arg9[%c0_201, %c0_202] : memref<96x32xf32, #tpu.memory_space<vmem>>, vector<96x32xf32>
    %cst_203 = arith.constant dense<0.000000e+00> : vector<8x32xf32>
    %535 = tpu.matmul %533, %534, %cst_203 {dimension_numbers = #tpu.dot_dimension_numbers<[1], [0], [0], [1], [0, 0, 1, 1], [], []>} : vector<8x96xf32>, vector<96x32xf32>, vector<8x32xf32> -> vector<8x32xf32>
    %c0_204 = arith.constant 0 : index
    %c0_205 = arith.constant 0 : index
    %536 = vector.load %arg10[%c0_204, %c0_205] : memref<1x32xf32, #tpu.memory_space<vmem>>, vector<1x32xf32>
    %537 = vector.broadcast %536 : vector<1x32xf32> to vector<8x32xf32>
    %538 = arith.addf %535, %537 : vector<8x32xf32>
    %539 = math.tanh %538 : vector<8x32xf32>
    %540 = arith.mulf %532, %532 : vector<8x32xf32>
    %cst_206 = arith.constant dense<0.000000e+00> : vector<8xf32>
    %541 = vector.multi_reduction <add>, %540, %cst_206 [1] : vector<8x32xf32> to vector<8xf32>
    %542 = vector.shape_cast %541 : vector<8xf32> to vector<8x1xf32>
    %543 = math.sqrt %542 : vector<8x1xf32>
    %544 = arith.mulf %539, %539 : vector<8x32xf32>
    %cst_207 = arith.constant dense<0.000000e+00> : vector<8xf32>
    %545 = vector.multi_reduction <add>, %544, %cst_207 [1] : vector<8x32xf32> to vector<8xf32>
    %546 = vector.shape_cast %545 : vector<8xf32> to vector<8x1xf32>
    %cst_208 = arith.constant 9.99999993E-9 : f32
    %547 = vector.broadcast %cst_208 : f32 to vector<8x1xf32>
    %548 = arith.addf %546, %547 : vector<8x1xf32>
    %549 = math.rsqrt %548 : vector<8x1xf32>
    %cst_209 = arith.constant 2.000000e-01 : f32
    %550 = vector.broadcast %cst_209 : f32 to vector<8x1xf32>
    %551 = arith.mulf %550, %543 : vector<8x1xf32>
    %552 = vector.broadcast %551 : vector<8x1xf32> to vector<8x32xf32>
    %553 = arith.mulf %539, %552 : vector<8x32xf32>
    %554 = vector.broadcast %549 : vector<8x1xf32> to vector<8x32xf32>
    %555 = arith.mulf %553, %554 : vector<8x32xf32>
    %556 = arith.addf %532, %555 : vector<8x32xf32>
    %c0_210 = arith.constant 0 : index
    %c0_211 = arith.constant 0 : index
    %557 = vector.load %arg11[%c0_210, %c0_211] : memref<32x128xf32, #tpu.memory_space<vmem>>, vector<32x128xf32>
    %cst_212 = arith.constant dense<0.000000e+00> : vector<8x128xf32>
    %558 = tpu.matmul %556, %557, %cst_212 {dimension_numbers = #tpu.dot_dimension_numbers<[1], [0], [0], [1], [0, 0, 1, 1], [], []>} : vector<8x32xf32>, vector<32x128xf32>, vector<8x128xf32> -> vector<8x128xf32>
    %559 = vector.broadcast %29 : vector<1x128xf32> to vector<8x128xf32>
    %560 = arith.addf %558, %559 : vector<8x128xf32>
    %cst_213 = arith.constant dense<0xFF800000> : vector<8xf32>
    %561 = vector.multi_reduction <maximumf>, %560, %cst_213 [1] : vector<8x128xf32> to vector<8xf32>
    %562 = vector.shape_cast %561 : vector<8xf32> to vector<8x1xf32>
    %563 = vector.broadcast %562 : vector<8x1xf32> to vector<8x128xf32>
    %564 = arith.subf %560, %563 : vector<8x128xf32>
    %565 = math.exp %564 : vector<8x128xf32>
    %cst_214 = arith.constant dense<0.000000e+00> : vector<8xf32>
    %566 = vector.multi_reduction <add>, %565, %cst_214 [1] : vector<8x128xf32> to vector<8xf32>
    %567 = vector.shape_cast %566 : vector<8xf32> to vector<8x1xf32>
    %568 = math.log %567 : vector<8x1xf32>
    %569 = arith.addf %562, %568 : vector<8x1xf32>
    %570 = vector.broadcast %569 : vector<8x1xf32> to vector<8x128xf32>
    %571 = arith.subf %560, %570 : vector<8x128xf32>
    %572 = arith.index_cast %c1_i32_181 : i32 to index
    %c0_215 = arith.constant 0 : index
    %c0_216 = arith.constant 0 : index
    %573 = vector.load %arg12[%572, %c0_215, %c0_216] : memref<8x8x128xf32, #tpu.memory_space<vmem>>, vector<1x8x128xf32>
    %574 = vector.shape_cast %573 : vector<1x8x128xf32> to vector<8x128xf32>
    %575 = vector.shape_cast %571 : vector<8x128xf32> to vector<1x8x128xf32>
    tpu.vector_store %arg12[%572, %c0_215, %c0_216], %575 {strides = array<i32>} : memref<8x8x128xf32, #tpu.memory_space<vmem>>, vector<1x8x128xf32>,
    %c0_217 = arith.constant 0 : index
    %576 = arith.index_cast %c1_i32_181 : i32 to index
    %c0_218 = arith.constant 0 : index
    %c0_219 = arith.constant 0 : index
    %577 = vector.load %arg13[%c0_217, %576, %c0_218, %c0_219] : memref<1x8x8x8xf32, #tpu.memory_space<vmem>>, vector<1x1x8x8xf32>
    %578 = vector.shape_cast %577 : vector<1x1x8x8xf32> to vector<8x8xf32>
    %579 = vector.shape_cast %522 : vector<8x8xf32> to vector<1x1x8x8xf32>
    tpu.vector_store %arg13[%c0_217, %576, %c0_218, %c0_219], %579 {strides = array<i32>} : memref<1x8x8x8xf32, #tpu.memory_space<vmem>>, vector<1x1x8x8xf32>,
    %c2_i32_220 = arith.constant 2 : i32
    %580 = arith.index_cast %c2_i32_220 : i32 to index
    %c0_221 = arith.constant 0 : index
    %c0_222 = arith.constant 0 : index
    %581 = vector.load %arg2[%580, %c0_221, %c0_222] : memref<8x8x32xf32, #tpu.memory_space<vmem>>, vector<1x8x32xf32>
    %582 = vector.shape_cast %581 : vector<1x8x32xf32> to vector<8x32xf32>
    %583 = tpu.concatenate %582, %493 in 1 : vector<8x32xf32>, vector<8x32xf32> -> vector<8x64xf32>
    %c0_223 = arith.constant 0 : index
    %c0_224 = arith.constant 0 : index
    %584 = vector.load %arg6[%c0_223, %c0_224] : memref<64x128xf32, #tpu.memory_space<vmem>>, vector<64x128xf32>
    %cst_225 = arith.constant dense<0.000000e+00> : vector<8x128xf32>
    %585 = tpu.matmul %583, %584, %cst_225 {dimension_numbers = #tpu.dot_dimension_numbers<[1], [0], [0], [1], [0, 0, 1, 1], [], []>} : vector<8x64xf32>, vector<64x128xf32>, vector<8x128xf32> -> vector<8x128xf32>
    %c0_226 = arith.constant 0 : index
    %c0_227 = arith.constant 0 : index
    %586 = vector.load %arg7[%c0_226, %c0_227] : memref<1x128xf32, #tpu.memory_space<vmem>>, vector<1x128xf32>
    %587 = vector.broadcast %586 : vector<1x128xf32> to vector<8x128xf32>
    %588 = arith.addf %585, %587 : vector<8x128xf32>
    %589 = vector.broadcast %20 : vector<1x128xf32> to vector<8x128xf32>
    %590 = arith.mulf %589, %588 : vector<8x128xf32>
    %591 = math.tanh %590 : vector<8x128xf32>
    %592 = vector.broadcast %20 : vector<1x128xf32> to vector<8x128xf32>
    %593 = arith.mulf %592, %591 : vector<8x128xf32>
    %594 = vector.broadcast %23 : vector<1x128xf32> to vector<8x128xf32>
    %595 = arith.addf %593, %594 : vector<8x128xf32>
    %596 = vector.extract_strided_slice %595 {offsets = [0, 0], sizes = [8, 32], strides = [1, 1]} : vector<8x128xf32> to vector<8x32xf32>
    %597 = vector.extract_strided_slice %595 {offsets = [0, 32], sizes = [8, 32], strides = [1, 1]} : vector<8x128xf32> to vector<8x32xf32>
    %598 = vector.extract_strided_slice %595 {offsets = [0, 64], sizes = [8, 32], strides = [1, 1]} : vector<8x128xf32> to vector<8x32xf32>
    %599 = vector.extract_strided_slice %595 {offsets = [0, 96], sizes = [8, 32], strides = [1, 1]} : vector<8x128xf32> to vector<8x32xf32>
    %600 = arith.mulf %597, %491 : vector<8x32xf32>
    %601 = arith.mulf %596, %598 : vector<8x32xf32>
    %602 = arith.addf %600, %601 : vector<8x32xf32>
    %603 = math.tanh %602 : vector<8x32xf32>
    %604 = arith.mulf %599, %603 : vector<8x32xf32>
    %c0_228 = arith.constant 0 : index
    %c0_229 = arith.constant 0 : index
    %605 = vector.load %arg8[%c0_228, %c0_229] : memref<32x64xf32, #tpu.memory_space<vmem>>, vector<32x64xf32>
    %cst_230 = arith.constant dense<0.000000e+00> : vector<8x64xf32>
    %606 = tpu.matmul %604, %605, %cst_230 {dimension_numbers = #tpu.dot_dimension_numbers<[1], [0], [0], [1], [0, 0, 1, 1], [], []>} : vector<8x32xf32>, vector<32x64xf32>, vector<8x64xf32> -> vector<8x64xf32>
    %607 = vector.extract_strided_slice %606 {offsets = [0, 0], sizes = [8, 32], strides = [1, 1]} : vector<8x64xf32> to vector<8x32xf32>
    %608 = vector.extract_strided_slice %606 {offsets = [0, 32], sizes = [8, 32], strides = [1, 1]} : vector<8x64xf32> to vector<8x32xf32>
    %609 = vector.shape_cast %607 : vector<8x32xf32> to vector<1x8x32xf32>
    %610 = vector.broadcast %609 : vector<1x8x32xf32> to vector<8x8x32xf32>
    %611 = arith.mulf %610, %351 : vector<8x8x32xf32>
    %cst_231 = arith.constant dense<0.000000e+00> : vector<8x8xf32>
    %612 = vector.multi_reduction <add>, %611, %cst_231 [2] : vector<8x8x32xf32> to vector<8x8xf32>
    %613 = vector.shape_cast %608 : vector<8x32xf32> to vector<1x8x32xf32>
    %614 = vector.broadcast %613 : vector<1x8x32xf32> to vector<8x8x32xf32>
    %615 = arith.mulf %614, %352 : vector<8x8x32xf32>
    %cst_232 = arith.constant dense<0.000000e+00> : vector<8x8xf32>
    %616 = vector.multi_reduction <add>, %615, %cst_232 [2] : vector<8x8x32xf32> to vector<8x8xf32>
    %617 = arith.addf %612, %616 : vector<8x8xf32>
    %cst_233 = arith.constant -1.000000e+09 : f32
    %618 = vector.broadcast %cst_233 : f32 to vector<8x8xf32>
    %619 = arith.select %356, %617, %618 : vector<8x8xi1>, vector<8x8xf32>
    %cst_234 = arith.constant dense<0xFF800000> : vector<8xf32>
    %620 = vector.multi_reduction <maximumf>, %619, %cst_234 [0] : vector<8x8xf32> to vector<8xf32>
    %621 = vector.shape_cast %620 : vector<8xf32> to vector<1x8xf32>
    %622 = vector.broadcast %621 : vector<1x8xf32> to vector<8x8xf32>
    %623 = arith.subf %619, %622 : vector<8x8xf32>
    %624 = math.exp %623 : vector<8x8xf32>
    %cst_235 = arith.constant dense<0.000000e+00> : vector<8xf32>
    %625 = vector.multi_reduction <add>, %624, %cst_235 [0] : vector<8x8xf32> to vector<8xf32>
    %626 = vector.shape_cast %625 : vector<8xf32> to vector<1x8xf32>
    %627 = tpu.reciprocal %626 {approx = true} : vector<1x8xf32> -> vector<1x8xf32>
    %628 = arith.mulf %626, %627 : vector<1x8xf32>
    %cst_236 = arith.constant 2.000000e+00 : f32
    %629 = vector.broadcast %cst_236 : f32 to vector<1x8xf32>
    %630 = arith.subf %629, %628 : vector<1x8xf32>
    %631 = arith.mulf %627, %630 : vector<1x8xf32>
    %632 = vector.broadcast %631 : vector<1x8xf32> to vector<8x8xf32>
    %633 = arith.mulf %624, %632 : vector<8x8xf32>
    %634 = vector.shape_cast %633 : vector<8x8xf32> to vector<8x8x1xf32>
    %635 = vector.broadcast %634 : vector<8x8x1xf32> to vector<8x8x32xf32>
    %636 = arith.mulf %635, %351 : vector<8x8x32xf32>
    %cst_237 = arith.constant dense<0.000000e+00> : vector<8x32xf32>
    %637 = vector.multi_reduction <add>, %636, %cst_237 [0] : vector<8x8x32xf32> to vector<8x32xf32>
    %638 = vector.broadcast %634 : vector<8x8x1xf32> to vector<8x8x32xf32>
    %639 = arith.mulf %638, %352 : vector<8x8x32xf32>
    %cst_238 = arith.constant dense<0.000000e+00> : vector<8x32xf32>
    %640 = vector.multi_reduction <add>, %639, %cst_238 [0] : vector<8x8x32xf32> to vector<8x32xf32>
    %641 = vector.broadcast %634 : vector<8x8x1xf32> to vector<8x8x32xf32>
    %642 = arith.mulf %641, %353 : vector<8x8x32xf32>
    %cst_239 = arith.constant dense<0.000000e+00> : vector<8x32xf32>
    %643 = vector.multi_reduction <add>, %642, %cst_239 [0] : vector<8x8x32xf32> to vector<8x32xf32>
    %644 = tpu.concatenate %604, %637, %640 in 1 : vector<8x32xf32>, vector<8x32xf32>, vector<8x32xf32> -> vector<8x96xf32>
    %c0_240 = arith.constant 0 : index
    %c0_241 = arith.constant 0 : index
    %645 = vector.load %arg9[%c0_240, %c0_241] : memref<96x32xf32, #tpu.memory_space<vmem>>, vector<96x32xf32>
    %cst_242 = arith.constant dense<0.000000e+00> : vector<8x32xf32>
    %646 = tpu.matmul %644, %645, %cst_242 {dimension_numbers = #tpu.dot_dimension_numbers<[1], [0], [0], [1], [0, 0, 1, 1], [], []>} : vector<8x96xf32>, vector<96x32xf32>, vector<8x32xf32> -> vector<8x32xf32>
    %c0_243 = arith.constant 0 : index
    %c0_244 = arith.constant 0 : index
    %647 = vector.load %arg10[%c0_243, %c0_244] : memref<1x32xf32, #tpu.memory_space<vmem>>, vector<1x32xf32>
    %648 = vector.broadcast %647 : vector<1x32xf32> to vector<8x32xf32>
    %649 = arith.addf %646, %648 : vector<8x32xf32>
    %650 = math.tanh %649 : vector<8x32xf32>
    %651 = arith.mulf %643, %643 : vector<8x32xf32>
    %cst_245 = arith.constant dense<0.000000e+00> : vector<8xf32>
    %652 = vector.multi_reduction <add>, %651, %cst_245 [1] : vector<8x32xf32> to vector<8xf32>
    %653 = vector.shape_cast %652 : vector<8xf32> to vector<8x1xf32>
    %654 = math.sqrt %653 : vector<8x1xf32>
    %655 = arith.mulf %650, %650 : vector<8x32xf32>
    %cst_246 = arith.constant dense<0.000000e+00> : vector<8xf32>
    %656 = vector.multi_reduction <add>, %655, %cst_246 [1] : vector<8x32xf32> to vector<8xf32>
    %657 = vector.shape_cast %656 : vector<8xf32> to vector<8x1xf32>
    %cst_247 = arith.constant 9.99999993E-9 : f32
    %658 = vector.broadcast %cst_247 : f32 to vector<8x1xf32>
    %659 = arith.addf %657, %658 : vector<8x1xf32>
    %660 = math.rsqrt %659 : vector<8x1xf32>
    %cst_248 = arith.constant 2.000000e-01 : f32
    %661 = vector.broadcast %cst_248 : f32 to vector<8x1xf32>
    %662 = arith.mulf %661, %654 : vector<8x1xf32>
    %663 = vector.broadcast %662 : vector<8x1xf32> to vector<8x32xf32>
    %664 = arith.mulf %650, %663 : vector<8x32xf32>
    %665 = vector.broadcast %660 : vector<8x1xf32> to vector<8x32xf32>
    %666 = arith.mulf %664, %665 : vector<8x32xf32>
    %667 = arith.addf %643, %666 : vector<8x32xf32>
    %c0_249 = arith.constant 0 : index
    %c0_250 = arith.constant 0 : index
    %668 = vector.load %arg11[%c0_249, %c0_250] : memref<32x128xf32, #tpu.memory_space<vmem>>, vector<32x128xf32>
    %cst_251 = arith.constant dense<0.000000e+00> : vector<8x128xf32>
    %669 = tpu.matmul %667, %668, %cst_251 {dimension_numbers = #tpu.dot_dimension_numbers<[1], [0], [0], [1], [0, 0, 1, 1], [], []>} : vector<8x32xf32>, vector<32x128xf32>, vector<8x128xf32> -> vector<8x128xf32>
    %670 = vector.broadcast %29 : vector<1x128xf32> to vector<8x128xf32>
    %671 = arith.addf %669, %670 : vector<8x128xf32>
    %cst_252 = arith.constant dense<0xFF800000> : vector<8xf32>
    %672 = vector.multi_reduction <maximumf>, %671, %cst_252 [1] : vector<8x128xf32> to vector<8xf32>
    %673 = vector.shape_cast %672 : vector<8xf32> to vector<8x1xf32>
    %674 = vector.broadcast %673 : vector<8x1xf32> to vector<8x128xf32>
    %675 = arith.subf %671, %674 : vector<8x128xf32>
    %676 = math.exp %675 : vector<8x128xf32>
    %cst_253 = arith.constant dense<0.000000e+00> : vector<8xf32>
    %677 = vector.multi_reduction <add>, %676, %cst_253 [1] : vector<8x128xf32> to vector<8xf32>
    %678 = vector.shape_cast %677 : vector<8xf32> to vector<8x1xf32>
    %679 = math.log %678 : vector<8x1xf32>
    %680 = arith.addf %673, %679 : vector<8x1xf32>
    %681 = vector.broadcast %680 : vector<8x1xf32> to vector<8x128xf32>
    %682 = arith.subf %671, %681 : vector<8x128xf32>
    %683 = arith.index_cast %c2_i32_220 : i32 to index
    %c0_254 = arith.constant 0 : index
    %c0_255 = arith.constant 0 : index
    %684 = vector.load %arg12[%683, %c0_254, %c0_255] : memref<8x8x128xf32, #tpu.memory_space<vmem>>, vector<1x8x128xf32>
    %685 = vector.shape_cast %684 : vector<1x8x128xf32> to vector<8x128xf32>
    %686 = vector.shape_cast %682 : vector<8x128xf32> to vector<1x8x128xf32>
    tpu.vector_store %arg12[%683, %c0_254, %c0_255], %686 {strides = array<i32>} : memref<8x8x128xf32, #tpu.memory_space<vmem>>, vector<1x8x128xf32>,
    %c0_256 = arith.constant 0 : index
    %687 = arith.index_cast %c2_i32_220 : i32 to index
    %c0_257 = arith.constant 0 : index
    %c0_258 = arith.constant 0 : index
    %688 = vector.load %arg13[%c0_256, %687, %c0_257, %c0_258] : memref<1x8x8x8xf32, #tpu.memory_space<vmem>>, vector<1x1x8x8xf32>
    %689 = vector.shape_cast %688 : vector<1x1x8x8xf32> to vector<8x8xf32>
    %690 = vector.shape_cast %633 : vector<8x8xf32> to vector<1x1x8x8xf32>
    tpu.vector_store %arg13[%c0_256, %687, %c0_257, %c0_258], %690 {strides = array<i32>} : memref<1x8x8x8xf32, #tpu.memory_space<vmem>>, vector<1x1x8x8xf32>,
    %c3_i32_259 = arith.constant 3 : i32
    %691 = arith.index_cast %c3_i32_259 : i32 to index
    %c0_260 = arith.constant 0 : index
    %c0_261 = arith.constant 0 : index
    %692 = vector.load %arg2[%691, %c0_260, %c0_261] : memref<8x8x32xf32, #tpu.memory_space<vmem>>, vector<1x8x32xf32>
    %693 = vector.shape_cast %692 : vector<1x8x32xf32> to vector<8x32xf32>
    %694 = tpu.concatenate %693, %604 in 1 : vector<8x32xf32>, vector<8x32xf32> -> vector<8x64xf32>
    %c0_262 = arith.constant 0 : index
    %c0_263 = arith.constant 0 : index
    %695 = vector.load %arg6[%c0_262, %c0_263] : memref<64x128xf32, #tpu.memory_space<vmem>>, vector<64x128xf32>
    %cst_264 = arith.constant dense<0.000000e+00> : vector<8x128xf32>
    %696 = tpu.matmul %694, %695, %cst_264 {dimension_numbers = #tpu.dot_dimension_numbers<[1], [0], [0], [1], [0, 0, 1, 1], [], []>} : vector<8x64xf32>, vector<64x128xf32>, vector<8x128xf32> -> vector<8x128xf32>
    %c0_265 = arith.constant 0 : index
    %c0_266 = arith.constant 0 : index
    %697 = vector.load %arg7[%c0_265, %c0_266] : memref<1x128xf32, #tpu.memory_space<vmem>>, vector<1x128xf32>
    %698 = vector.broadcast %697 : vector<1x128xf32> to vector<8x128xf32>
    %699 = arith.addf %696, %698 : vector<8x128xf32>
    %700 = vector.broadcast %20 : vector<1x128xf32> to vector<8x128xf32>
    %701 = arith.mulf %700, %699 : vector<8x128xf32>
    %702 = math.tanh %701 : vector<8x128xf32>
    %703 = vector.broadcast %20 : vector<1x128xf32> to vector<8x128xf32>
    %704 = arith.mulf %703, %702 : vector<8x128xf32>
    %705 = vector.broadcast %23 : vector<1x128xf32> to vector<8x128xf32>
    %706 = arith.addf %704, %705 : vector<8x128xf32>
    %707 = vector.extract_strided_slice %706 {offsets = [0, 0], sizes = [8, 32], strides = [1, 1]} : vector<8x128xf32> to vector<8x32xf32>
    %708 = vector.extract_strided_slice %706 {offsets = [0, 32], sizes = [8, 32], strides = [1, 1]} : vector<8x128xf32> to vector<8x32xf32>
    %709 = vector.extract_strided_slice %706 {offsets = [0, 64], sizes = [8, 32], strides = [1, 1]} : vector<8x128xf32> to vector<8x32xf32>
    %710 = vector.extract_strided_slice %706 {offsets = [0, 96], sizes = [8, 32], strides = [1, 1]} : vector<8x128xf32> to vector<8x32xf32>
    %711 = arith.mulf %708, %602 : vector<8x32xf32>
    %712 = arith.mulf %707, %709 : vector<8x32xf32>
    %713 = arith.addf %711, %712 : vector<8x32xf32>
    %714 = math.tanh %713 : vector<8x32xf32>
    %715 = arith.mulf %710, %714 : vector<8x32xf32>
    %c0_267 = arith.constant 0 : index
    %c0_268 = arith.constant 0 : index
    %716 = vector.load %arg8[%c0_267, %c0_268] : memref<32x64xf32, #tpu.memory_space<vmem>>, vector<32x64xf32>
    %cst_269 = arith.constant dense<0.000000e+00> : vector<8x64xf32>
    %717 = tpu.matmul %715, %716, %cst_269 {dimension_numbers = #tpu.dot_dimension_numbers<[1], [0], [0], [1], [0, 0, 1, 1], [], []>} : vector<8x32xf32>, vector<32x64xf32>, vector<8x64xf32> -> vector<8x64xf32>
    %718 = vector.extract_strided_slice %717 {offsets = [0, 0], sizes = [8, 32], strides = [1, 1]} : vector<8x64xf32> to vector<8x32xf32>
    %719 = vector.extract_strided_slice %717 {offsets = [0, 32], sizes = [8, 32], strides = [1, 1]} : vector<8x64xf32> to vector<8x32xf32>
    %720 = vector.shape_cast %718 : vector<8x32xf32> to vector<1x8x32xf32>
    %721 = vector.broadcast %720 : vector<1x8x32xf32> to vector<8x8x32xf32>
    %722 = arith.mulf %721, %351 : vector<8x8x32xf32>
    %cst_270 = arith.constant dense<0.000000e+00> : vector<8x8xf32>
    %723 = vector.multi_reduction <add>, %722, %cst_270 [2] : vector<8x8x32xf32> to vector<8x8xf32>
    %724 = vector.shape_cast %719 : vector<8x32xf32> to vector<1x8x32xf32>
    %725 = vector.broadcast %724 : vector<1x8x32xf32> to vector<8x8x32xf32>
    %726 = arith.mulf %725, %352 : vector<8x8x32xf32>
    %cst_271 = arith.constant dense<0.000000e+00> : vector<8x8xf32>
    %727 = vector.multi_reduction <add>, %726, %cst_271 [2] : vector<8x8x32xf32> to vector<8x8xf32>
    %728 = arith.addf %723, %727 : vector<8x8xf32>
    %cst_272 = arith.constant -1.000000e+09 : f32
    %729 = vector.broadcast %cst_272 : f32 to vector<8x8xf32>
    %730 = arith.select %356, %728, %729 : vector<8x8xi1>, vector<8x8xf32>
    %cst_273 = arith.constant dense<0xFF800000> : vector<8xf32>
    %731 = vector.multi_reduction <maximumf>, %730, %cst_273 [0] : vector<8x8xf32> to vector<8xf32>
    %732 = vector.shape_cast %731 : vector<8xf32> to vector<1x8xf32>
    %733 = vector.broadcast %732 : vector<1x8xf32> to vector<8x8xf32>
    %734 = arith.subf %730, %733 : vector<8x8xf32>
    %735 = math.exp %734 : vector<8x8xf32>
    %cst_274 = arith.constant dense<0.000000e+00> : vector<8xf32>
    %736 = vector.multi_reduction <add>, %735, %cst_274 [0] : vector<8x8xf32> to vector<8xf32>
    %737 = vector.shape_cast %736 : vector<8xf32> to vector<1x8xf32>
    %738 = tpu.reciprocal %737 {approx = true} : vector<1x8xf32> -> vector<1x8xf32>
    %739 = arith.mulf %737, %738 : vector<1x8xf32>
    %cst_275 = arith.constant 2.000000e+00 : f32
    %740 = vector.broadcast %cst_275 : f32 to vector<1x8xf32>
    %741 = arith.subf %740, %739 : vector<1x8xf32>
    %742 = arith.mulf %738, %741 : vector<1x8xf32>
    %743 = vector.broadcast %742 : vector<1x8xf32> to vector<8x8xf32>
    %744 = arith.mulf %735, %743 : vector<8x8xf32>
    %745 = vector.shape_cast %744 : vector<8x8xf32> to vector<8x8x1xf32>
    %746 = vector.broadcast %745 : vector<8x8x1xf32> to vector<8x8x32xf32>
    %747 = arith.mulf %746, %351 : vector<8x8x32xf32>
    %cst_276 = arith.constant dense<0.000000e+00> : vector<8x32xf32>
    %748 = vector.multi_reduction <add>, %747, %cst_276 [0] : vector<8x8x32xf32> to vector<8x32xf32>
    %749 = vector.broadcast %745 : vector<8x8x1xf32> to vector<8x8x32xf32>
    %750 = arith.mulf %749, %352 : vector<8x8x32xf32>
    %cst_277 = arith.constant dense<0.000000e+00> : vector<8x32xf32>
    %751 = vector.multi_reduction <add>, %750, %cst_277 [0] : vector<8x8x32xf32> to vector<8x32xf32>
    %752 = vector.broadcast %745 : vector<8x8x1xf32> to vector<8x8x32xf32>
    %753 = arith.mulf %752, %353 : vector<8x8x32xf32>
    %cst_278 = arith.constant dense<0.000000e+00> : vector<8x32xf32>
    %754 = vector.multi_reduction <add>, %753, %cst_278 [0] : vector<8x8x32xf32> to vector<8x32xf32>
    %755 = tpu.concatenate %715, %748, %751 in 1 : vector<8x32xf32>, vector<8x32xf32>, vector<8x32xf32> -> vector<8x96xf32>
    %c0_279 = arith.constant 0 : index
    %c0_280 = arith.constant 0 : index
    %756 = vector.load %arg9[%c0_279, %c0_280] : memref<96x32xf32, #tpu.memory_space<vmem>>, vector<96x32xf32>
    %cst_281 = arith.constant dense<0.000000e+00> : vector<8x32xf32>
    %757 = tpu.matmul %755, %756, %cst_281 {dimension_numbers = #tpu.dot_dimension_numbers<[1], [0], [0], [1], [0, 0, 1, 1], [], []>} : vector<8x96xf32>, vector<96x32xf32>, vector<8x32xf32> -> vector<8x32xf32>
    %c0_282 = arith.constant 0 : index
    %c0_283 = arith.constant 0 : index
    %758 = vector.load %arg10[%c0_282, %c0_283] : memref<1x32xf32, #tpu.memory_space<vmem>>, vector<1x32xf32>
    %759 = vector.broadcast %758 : vector<1x32xf32> to vector<8x32xf32>
    %760 = arith.addf %757, %759 : vector<8x32xf32>
    %761 = math.tanh %760 : vector<8x32xf32>
    %762 = arith.mulf %754, %754 : vector<8x32xf32>
    %cst_284 = arith.constant dense<0.000000e+00> : vector<8xf32>
    %763 = vector.multi_reduction <add>, %762, %cst_284 [1] : vector<8x32xf32> to vector<8xf32>
    %764 = vector.shape_cast %763 : vector<8xf32> to vector<8x1xf32>
    %765 = math.sqrt %764 : vector<8x1xf32>
    %766 = arith.mulf %761, %761 : vector<8x32xf32>
    %cst_285 = arith.constant dense<0.000000e+00> : vector<8xf32>
    %767 = vector.multi_reduction <add>, %766, %cst_285 [1] : vector<8x32xf32> to vector<8xf32>
    %768 = vector.shape_cast %767 : vector<8xf32> to vector<8x1xf32>
    %cst_286 = arith.constant 9.99999993E-9 : f32
    %769 = vector.broadcast %cst_286 : f32 to vector<8x1xf32>
    %770 = arith.addf %768, %769 : vector<8x1xf32>
    %771 = math.rsqrt %770 : vector<8x1xf32>
    %cst_287 = arith.constant 2.000000e-01 : f32
    %772 = vector.broadcast %cst_287 : f32 to vector<8x1xf32>
    %773 = arith.mulf %772, %765 : vector<8x1xf32>
    %774 = vector.broadcast %773 : vector<8x1xf32> to vector<8x32xf32>
    %775 = arith.mulf %761, %774 : vector<8x32xf32>
    %776 = vector.broadcast %771 : vector<8x1xf32> to vector<8x32xf32>
    %777 = arith.mulf %775, %776 : vector<8x32xf32>
    %778 = arith.addf %754, %777 : vector<8x32xf32>
    %c0_288 = arith.constant 0 : index
    %c0_289 = arith.constant 0 : index
    %779 = vector.load %arg11[%c0_288, %c0_289] : memref<32x128xf32, #tpu.memory_space<vmem>>, vector<32x128xf32>
    %cst_290 = arith.constant dense<0.000000e+00> : vector<8x128xf32>
    %780 = tpu.matmul %778, %779, %cst_290 {dimension_numbers = #tpu.dot_dimension_numbers<[1], [0], [0], [1], [0, 0, 1, 1], [], []>} : vector<8x32xf32>, vector<32x128xf32>, vector<8x128xf32> -> vector<8x128xf32>
    %781 = vector.broadcast %29 : vector<1x128xf32> to vector<8x128xf32>
    %782 = arith.addf %780, %781 : vector<8x128xf32>
    %cst_291 = arith.constant dense<0xFF800000> : vector<8xf32>
    %783 = vector.multi_reduction <maximumf>, %782, %cst_291 [1] : vector<8x128xf32> to vector<8xf32>
    %784 = vector.shape_cast %783 : vector<8xf32> to vector<8x1xf32>
    %785 = vector.broadcast %784 : vector<8x1xf32> to vector<8x128xf32>
    %786 = arith.subf %782, %785 : vector<8x128xf32>
    %787 = math.exp %786 : vector<8x128xf32>
    %cst_292 = arith.constant dense<0.000000e+00> : vector<8xf32>
    %788 = vector.multi_reduction <add>, %787, %cst_292 [1] : vector<8x128xf32> to vector<8xf32>
    %789 = vector.shape_cast %788 : vector<8xf32> to vector<8x1xf32>
    %790 = math.log %789 : vector<8x1xf32>
    %791 = arith.addf %784, %790 : vector<8x1xf32>
    %792 = vector.broadcast %791 : vector<8x1xf32> to vector<8x128xf32>
    %793 = arith.subf %782, %792 : vector<8x128xf32>
    %794 = arith.index_cast %c3_i32_259 : i32 to index
    %c0_293 = arith.constant 0 : index
    %c0_294 = arith.constant 0 : index
    %795 = vector.load %arg12[%794, %c0_293, %c0_294] : memref<8x8x128xf32, #tpu.memory_space<vmem>>, vector<1x8x128xf32>
    %796 = vector.shape_cast %795 : vector<1x8x128xf32> to vector<8x128xf32>
    %797 = vector.shape_cast %793 : vector<8x128xf32> to vector<1x8x128xf32>
    tpu.vector_store %arg12[%794, %c0_293, %c0_294], %797 {strides = array<i32>} : memref<8x8x128xf32, #tpu.memory_space<vmem>>, vector<1x8x128xf32>,
    %c0_295 = arith.constant 0 : index
    %798 = arith.index_cast %c3_i32_259 : i32 to index
    %c0_296 = arith.constant 0 : index
    %c0_297 = arith.constant 0 : index
    %799 = vector.load %arg13[%c0_295, %798, %c0_296, %c0_297] : memref<1x8x8x8xf32, #tpu.memory_space<vmem>>, vector<1x1x8x8xf32>
    %800 = vector.shape_cast %799 : vector<1x1x8x8xf32> to vector<8x8xf32>
    %801 = vector.shape_cast %744 : vector<8x8xf32> to vector<1x1x8x8xf32>
    tpu.vector_store %arg13[%c0_295, %798, %c0_296, %c0_297], %801 {strides = array<i32>} : memref<1x8x8x8xf32, #tpu.memory_space<vmem>>, vector<1x1x8x8xf32>,
    %c4_i32_298 = arith.constant 4 : i32
    %802 = arith.index_cast %c4_i32_298 : i32 to index
    %c0_299 = arith.constant 0 : index
    %c0_300 = arith.constant 0 : index
    %803 = vector.load %arg2[%802, %c0_299, %c0_300] : memref<8x8x32xf32, #tpu.memory_space<vmem>>, vector<1x8x32xf32>
    %804 = vector.shape_cast %803 : vector<1x8x32xf32> to vector<8x32xf32>
    %805 = tpu.concatenate %804, %715 in 1 : vector<8x32xf32>, vector<8x32xf32> -> vector<8x64xf32>
    %c0_301 = arith.constant 0 : index
    %c0_302 = arith.constant 0 : index
    %806 = vector.load %arg6[%c0_301, %c0_302] : memref<64x128xf32, #tpu.memory_space<vmem>>, vector<64x128xf32>
    %cst_303 = arith.constant dense<0.000000e+00> : vector<8x128xf32>
    %807 = tpu.matmul %805, %806, %cst_303 {dimension_numbers = #tpu.dot_dimension_numbers<[1], [0], [0], [1], [0, 0, 1, 1], [], []>} : vector<8x64xf32>, vector<64x128xf32>, vector<8x128xf32> -> vector<8x128xf32>
    %c0_304 = arith.constant 0 : index
    %c0_305 = arith.constant 0 : index
    %808 = vector.load %arg7[%c0_304, %c0_305] : memref<1x128xf32, #tpu.memory_space<vmem>>, vector<1x128xf32>
    %809 = vector.broadcast %808 : vector<1x128xf32> to vector<8x128xf32>
    %810 = arith.addf %807, %809 : vector<8x128xf32>
    %811 = vector.broadcast %20 : vector<1x128xf32> to vector<8x128xf32>
    %812 = arith.mulf %811, %810 : vector<8x128xf32>
    %813 = math.tanh %812 : vector<8x128xf32>
    %814 = vector.broadcast %20 : vector<1x128xf32> to vector<8x128xf32>
    %815 = arith.mulf %814, %813 : vector<8x128xf32>
    %816 = vector.broadcast %23 : vector<1x128xf32> to vector<8x128xf32>
    %817 = arith.addf %815, %816 : vector<8x128xf32>
    %818 = vector.extract_strided_slice %817 {offsets = [0, 0], sizes = [8, 32], strides = [1, 1]} : vector<8x128xf32> to vector<8x32xf32>
    %819 = vector.extract_strided_slice %817 {offsets = [0, 32], sizes = [8, 32], strides = [1, 1]} : vector<8x128xf32> to vector<8x32xf32>
    %820 = vector.extract_strided_slice %817 {offsets = [0, 64], sizes = [8, 32], strides = [1, 1]} : vector<8x128xf32> to vector<8x32xf32>
    %821 = vector.extract_strided_slice %817 {offsets = [0, 96], sizes = [8, 32], strides = [1, 1]} : vector<8x128xf32> to vector<8x32xf32>
    %822 = arith.mulf %819, %713 : vector<8x32xf32>
    %823 = arith.mulf %818, %820 : vector<8x32xf32>
    %824 = arith.addf %822, %823 : vector<8x32xf32>
    %825 = math.tanh %824 : vector<8x32xf32>
    %826 = arith.mulf %821, %825 : vector<8x32xf32>
    %c0_306 = arith.constant 0 : index
    %c0_307 = arith.constant 0 : index
    %827 = vector.load %arg8[%c0_306, %c0_307] : memref<32x64xf32, #tpu.memory_space<vmem>>, vector<32x64xf32>
    %cst_308 = arith.constant dense<0.000000e+00> : vector<8x64xf32>
    %828 = tpu.matmul %826, %827, %cst_308 {dimension_numbers = #tpu.dot_dimension_numbers<[1], [0], [0], [1], [0, 0, 1, 1], [], []>} : vector<8x32xf32>, vector<32x64xf32>, vector<8x64xf32> -> vector<8x64xf32>
    %829 = vector.extract_strided_slice %828 {offsets = [0, 0], sizes = [8, 32], strides = [1, 1]} : vector<8x64xf32> to vector<8x32xf32>
    %830 = vector.extract_strided_slice %828 {offsets = [0, 32], sizes = [8, 32], strides = [1, 1]} : vector<8x64xf32> to vector<8x32xf32>
    %831 = vector.shape_cast %829 : vector<8x32xf32> to vector<1x8x32xf32>
    %832 = vector.broadcast %831 : vector<1x8x32xf32> to vector<8x8x32xf32>
    %833 = arith.mulf %832, %351 : vector<8x8x32xf32>
    %cst_309 = arith.constant dense<0.000000e+00> : vector<8x8xf32>
    %834 = vector.multi_reduction <add>, %833, %cst_309 [2] : vector<8x8x32xf32> to vector<8x8xf32>
    %835 = vector.shape_cast %830 : vector<8x32xf32> to vector<1x8x32xf32>
    %836 = vector.broadcast %835 : vector<1x8x32xf32> to vector<8x8x32xf32>
    %837 = arith.mulf %836, %352 : vector<8x8x32xf32>
    %cst_310 = arith.constant dense<0.000000e+00> : vector<8x8xf32>
    %838 = vector.multi_reduction <add>, %837, %cst_310 [2] : vector<8x8x32xf32> to vector<8x8xf32>
    %839 = arith.addf %834, %838 : vector<8x8xf32>
    %cst_311 = arith.constant -1.000000e+09 : f32
    %840 = vector.broadcast %cst_311 : f32 to vector<8x8xf32>
    %841 = arith.select %356, %839, %840 : vector<8x8xi1>, vector<8x8xf32>
    %cst_312 = arith.constant dense<0xFF800000> : vector<8xf32>
    %842 = vector.multi_reduction <maximumf>, %841, %cst_312 [0] : vector<8x8xf32> to vector<8xf32>
    %843 = vector.shape_cast %842 : vector<8xf32> to vector<1x8xf32>
    %844 = vector.broadcast %843 : vector<1x8xf32> to vector<8x8xf32>
    %845 = arith.subf %841, %844 : vector<8x8xf32>
    %846 = math.exp %845 : vector<8x8xf32>
    %cst_313 = arith.constant dense<0.000000e+00> : vector<8xf32>
    %847 = vector.multi_reduction <add>, %846, %cst_313 [0] : vector<8x8xf32> to vector<8xf32>
    %848 = vector.shape_cast %847 : vector<8xf32> to vector<1x8xf32>
    %849 = tpu.reciprocal %848 {approx = true} : vector<1x8xf32> -> vector<1x8xf32>
    %850 = arith.mulf %848, %849 : vector<1x8xf32>
    %cst_314 = arith.constant 2.000000e+00 : f32
    %851 = vector.broadcast %cst_314 : f32 to vector<1x8xf32>
    %852 = arith.subf %851, %850 : vector<1x8xf32>
    %853 = arith.mulf %849, %852 : vector<1x8xf32>
    %854 = vector.broadcast %853 : vector<1x8xf32> to vector<8x8xf32>
    %855 = arith.mulf %846, %854 : vector<8x8xf32>
    %856 = vector.shape_cast %855 : vector<8x8xf32> to vector<8x8x1xf32>
    %857 = vector.broadcast %856 : vector<8x8x1xf32> to vector<8x8x32xf32>
    %858 = arith.mulf %857, %351 : vector<8x8x32xf32>
    %cst_315 = arith.constant dense<0.000000e+00> : vector<8x32xf32>
    %859 = vector.multi_reduction <add>, %858, %cst_315 [0] : vector<8x8x32xf32> to vector<8x32xf32>
    %860 = vector.broadcast %856 : vector<8x8x1xf32> to vector<8x8x32xf32>
    %861 = arith.mulf %860, %352 : vector<8x8x32xf32>
    %cst_316 = arith.constant dense<0.000000e+00> : vector<8x32xf32>
    %862 = vector.multi_reduction <add>, %861, %cst_316 [0] : vector<8x8x32xf32> to vector<8x32xf32>
    %863 = vector.broadcast %856 : vector<8x8x1xf32> to vector<8x8x32xf32>
    %864 = arith.mulf %863, %353 : vector<8x8x32xf32>
    %cst_317 = arith.constant dense<0.000000e+00> : vector<8x32xf32>
    %865 = vector.multi_reduction <add>, %864, %cst_317 [0] : vector<8x8x32xf32> to vector<8x32xf32>
    %866 = tpu.concatenate %826, %859, %862 in 1 : vector<8x32xf32>, vector<8x32xf32>, vector<8x32xf32> -> vector<8x96xf32>
    %c0_318 = arith.constant 0 : index
    %c0_319 = arith.constant 0 : index
    %867 = vector.load %arg9[%c0_318, %c0_319] : memref<96x32xf32, #tpu.memory_space<vmem>>, vector<96x32xf32>
    %cst_320 = arith.constant dense<0.000000e+00> : vector<8x32xf32>
    %868 = tpu.matmul %866, %867, %cst_320 {dimension_numbers = #tpu.dot_dimension_numbers<[1], [0], [0], [1], [0, 0, 1, 1], [], []>} : vector<8x96xf32>, vector<96x32xf32>, vector<8x32xf32> -> vector<8x32xf32>
    %c0_321 = arith.constant 0 : index
    %c0_322 = arith.constant 0 : index
    %869 = vector.load %arg10[%c0_321, %c0_322] : memref<1x32xf32, #tpu.memory_space<vmem>>, vector<1x32xf32>
    %870 = vector.broadcast %869 : vector<1x32xf32> to vector<8x32xf32>
    %871 = arith.addf %868, %870 : vector<8x32xf32>
    %872 = math.tanh %871 : vector<8x32xf32>
    %873 = arith.mulf %865, %865 : vector<8x32xf32>
    %cst_323 = arith.constant dense<0.000000e+00> : vector<8xf32>
    %874 = vector.multi_reduction <add>, %873, %cst_323 [1] : vector<8x32xf32> to vector<8xf32>
    %875 = vector.shape_cast %874 : vector<8xf32> to vector<8x1xf32>
    %876 = math.sqrt %875 : vector<8x1xf32>
    %877 = arith.mulf %872, %872 : vector<8x32xf32>
    %cst_324 = arith.constant dense<0.000000e+00> : vector<8xf32>
    %878 = vector.multi_reduction <add>, %877, %cst_324 [1] : vector<8x32xf32> to vector<8xf32>
    %879 = vector.shape_cast %878 : vector<8xf32> to vector<8x1xf32>
    %cst_325 = arith.constant 9.99999993E-9 : f32
    %880 = vector.broadcast %cst_325 : f32 to vector<8x1xf32>
    %881 = arith.addf %879, %880 : vector<8x1xf32>
    %882 = math.rsqrt %881 : vector<8x1xf32>
    %cst_326 = arith.constant 2.000000e-01 : f32
    %883 = vector.broadcast %cst_326 : f32 to vector<8x1xf32>
    %884 = arith.mulf %883, %876 : vector<8x1xf32>
    %885 = vector.broadcast %884 : vector<8x1xf32> to vector<8x32xf32>
    %886 = arith.mulf %872, %885 : vector<8x32xf32>
    %887 = vector.broadcast %882 : vector<8x1xf32> to vector<8x32xf32>
    %888 = arith.mulf %886, %887 : vector<8x32xf32>
    %889 = arith.addf %865, %888 : vector<8x32xf32>
    %c0_327 = arith.constant 0 : index
    %c0_328 = arith.constant 0 : index
    %890 = vector.load %arg11[%c0_327, %c0_328] : memref<32x128xf32, #tpu.memory_space<vmem>>, vector<32x128xf32>
    %cst_329 = arith.constant dense<0.000000e+00> : vector<8x128xf32>
    %891 = tpu.matmul %889, %890, %cst_329 {dimension_numbers = #tpu.dot_dimension_numbers<[1], [0], [0], [1], [0, 0, 1, 1], [], []>} : vector<8x32xf32>, vector<32x128xf32>, vector<8x128xf32> -> vector<8x128xf32>
    %892 = vector.broadcast %29 : vector<1x128xf32> to vector<8x128xf32>
    %893 = arith.addf %891, %892 : vector<8x128xf32>
    %cst_330 = arith.constant dense<0xFF800000> : vector<8xf32>
    %894 = vector.multi_reduction <maximumf>, %893, %cst_330 [1] : vector<8x128xf32> to vector<8xf32>
    %895 = vector.shape_cast %894 : vector<8xf32> to vector<8x1xf32>
    %896 = vector.broadcast %895 : vector<8x1xf32> to vector<8x128xf32>
    %897 = arith.subf %893, %896 : vector<8x128xf32>
    %898 = math.exp %897 : vector<8x128xf32>
    %cst_331 = arith.constant dense<0.000000e+00> : vector<8xf32>
    %899 = vector.multi_reduction <add>, %898, %cst_331 [1] : vector<8x128xf32> to vector<8xf32>
    %900 = vector.shape_cast %899 : vector<8xf32> to vector<8x1xf32>
    %901 = math.log %900 : vector<8x1xf32>
    %902 = arith.addf %895, %901 : vector<8x1xf32>
    %903 = vector.broadcast %902 : vector<8x1xf32> to vector<8x128xf32>
    %904 = arith.subf %893, %903 : vector<8x128xf32>
    %905 = arith.index_cast %c4_i32_298 : i32 to index
    %c0_332 = arith.constant 0 : index
    %c0_333 = arith.constant 0 : index
    %906 = vector.load %arg12[%905, %c0_332, %c0_333] : memref<8x8x128xf32, #tpu.memory_space<vmem>>, vector<1x8x128xf32>
    %907 = vector.shape_cast %906 : vector<1x8x128xf32> to vector<8x128xf32>
    %908 = vector.shape_cast %904 : vector<8x128xf32> to vector<1x8x128xf32>
    tpu.vector_store %arg12[%905, %c0_332, %c0_333], %908 {strides = array<i32>} : memref<8x8x128xf32, #tpu.memory_space<vmem>>, vector<1x8x128xf32>,
    %c0_334 = arith.constant 0 : index
    %909 = arith.index_cast %c4_i32_298 : i32 to index
    %c0_335 = arith.constant 0 : index
    %c0_336 = arith.constant 0 : index
    %910 = vector.load %arg13[%c0_334, %909, %c0_335, %c0_336] : memref<1x8x8x8xf32, #tpu.memory_space<vmem>>, vector<1x1x8x8xf32>
    %911 = vector.shape_cast %910 : vector<1x1x8x8xf32> to vector<8x8xf32>
    %912 = vector.shape_cast %855 : vector<8x8xf32> to vector<1x1x8x8xf32>
    tpu.vector_store %arg13[%c0_334, %909, %c0_335, %c0_336], %912 {strides = array<i32>} : memref<1x8x8x8xf32, #tpu.memory_space<vmem>>, vector<1x1x8x8xf32>,
    %c5_i32_337 = arith.constant 5 : i32
    %913 = arith.index_cast %c5_i32_337 : i32 to index
    %c0_338 = arith.constant 0 : index
    %c0_339 = arith.constant 0 : index
    %914 = vector.load %arg2[%913, %c0_338, %c0_339] : memref<8x8x32xf32, #tpu.memory_space<vmem>>, vector<1x8x32xf32>
    %915 = vector.shape_cast %914 : vector<1x8x32xf32> to vector<8x32xf32>
    %916 = tpu.concatenate %915, %826 in 1 : vector<8x32xf32>, vector<8x32xf32> -> vector<8x64xf32>
    %c0_340 = arith.constant 0 : index
    %c0_341 = arith.constant 0 : index
    %917 = vector.load %arg6[%c0_340, %c0_341] : memref<64x128xf32, #tpu.memory_space<vmem>>, vector<64x128xf32>
    %cst_342 = arith.constant dense<0.000000e+00> : vector<8x128xf32>
    %918 = tpu.matmul %916, %917, %cst_342 {dimension_numbers = #tpu.dot_dimension_numbers<[1], [0], [0], [1], [0, 0, 1, 1], [], []>} : vector<8x64xf32>, vector<64x128xf32>, vector<8x128xf32> -> vector<8x128xf32>
    %c0_343 = arith.constant 0 : index
    %c0_344 = arith.constant 0 : index
    %919 = vector.load %arg7[%c0_343, %c0_344] : memref<1x128xf32, #tpu.memory_space<vmem>>, vector<1x128xf32>
    %920 = vector.broadcast %919 : vector<1x128xf32> to vector<8x128xf32>
    %921 = arith.addf %918, %920 : vector<8x128xf32>
    %922 = vector.broadcast %20 : vector<1x128xf32> to vector<8x128xf32>
    %923 = arith.mulf %922, %921 : vector<8x128xf32>
    %924 = math.tanh %923 : vector<8x128xf32>
    %925 = vector.broadcast %20 : vector<1x128xf32> to vector<8x128xf32>
    %926 = arith.mulf %925, %924 : vector<8x128xf32>
    %927 = vector.broadcast %23 : vector<1x128xf32> to vector<8x128xf32>
    %928 = arith.addf %926, %927 : vector<8x128xf32>
    %929 = vector.extract_strided_slice %928 {offsets = [0, 0], sizes = [8, 32], strides = [1, 1]} : vector<8x128xf32> to vector<8x32xf32>
    %930 = vector.extract_strided_slice %928 {offsets = [0, 32], sizes = [8, 32], strides = [1, 1]} : vector<8x128xf32> to vector<8x32xf32>
    %931 = vector.extract_strided_slice %928 {offsets = [0, 64], sizes = [8, 32], strides = [1, 1]} : vector<8x128xf32> to vector<8x32xf32>
    %932 = vector.extract_strided_slice %928 {offsets = [0, 96], sizes = [8, 32], strides = [1, 1]} : vector<8x128xf32> to vector<8x32xf32>
    %933 = arith.mulf %930, %824 : vector<8x32xf32>
    %934 = arith.mulf %929, %931 : vector<8x32xf32>
    %935 = arith.addf %933, %934 : vector<8x32xf32>
    %936 = math.tanh %935 : vector<8x32xf32>
    %937 = arith.mulf %932, %936 : vector<8x32xf32>
    %c0_345 = arith.constant 0 : index
    %c0_346 = arith.constant 0 : index
    %938 = vector.load %arg8[%c0_345, %c0_346] : memref<32x64xf32, #tpu.memory_space<vmem>>, vector<32x64xf32>
    %cst_347 = arith.constant dense<0.000000e+00> : vector<8x64xf32>
    %939 = tpu.matmul %937, %938, %cst_347 {dimension_numbers = #tpu.dot_dimension_numbers<[1], [0], [0], [1], [0, 0, 1, 1], [], []>} : vector<8x32xf32>, vector<32x64xf32>, vector<8x64xf32> -> vector<8x64xf32>
    %940 = vector.extract_strided_slice %939 {offsets = [0, 0], sizes = [8, 32], strides = [1, 1]} : vector<8x64xf32> to vector<8x32xf32>
    %941 = vector.extract_strided_slice %939 {offsets = [0, 32], sizes = [8, 32], strides = [1, 1]} : vector<8x64xf32> to vector<8x32xf32>
    %942 = vector.shape_cast %940 : vector<8x32xf32> to vector<1x8x32xf32>
    %943 = vector.broadcast %942 : vector<1x8x32xf32> to vector<8x8x32xf32>
    %944 = arith.mulf %943, %351 : vector<8x8x32xf32>
    %cst_348 = arith.constant dense<0.000000e+00> : vector<8x8xf32>
    %945 = vector.multi_reduction <add>, %944, %cst_348 [2] : vector<8x8x32xf32> to vector<8x8xf32>
    %946 = vector.shape_cast %941 : vector<8x32xf32> to vector<1x8x32xf32>
    %947 = vector.broadcast %946 : vector<1x8x32xf32> to vector<8x8x32xf32>
    %948 = arith.mulf %947, %352 : vector<8x8x32xf32>
    %cst_349 = arith.constant dense<0.000000e+00> : vector<8x8xf32>
    %949 = vector.multi_reduction <add>, %948, %cst_349 [2] : vector<8x8x32xf32> to vector<8x8xf32>
    %950 = arith.addf %945, %949 : vector<8x8xf32>
    %cst_350 = arith.constant -1.000000e+09 : f32
    %951 = vector.broadcast %cst_350 : f32 to vector<8x8xf32>
    %952 = arith.select %356, %950, %951 : vector<8x8xi1>, vector<8x8xf32>
    %cst_351 = arith.constant dense<0xFF800000> : vector<8xf32>
    %953 = vector.multi_reduction <maximumf>, %952, %cst_351 [0] : vector<8x8xf32> to vector<8xf32>
    %954 = vector.shape_cast %953 : vector<8xf32> to vector<1x8xf32>
    %955 = vector.broadcast %954 : vector<1x8xf32> to vector<8x8xf32>
    %956 = arith.subf %952, %955 : vector<8x8xf32>
    %957 = math.exp %956 : vector<8x8xf32>
    %cst_352 = arith.constant dense<0.000000e+00> : vector<8xf32>
    %958 = vector.multi_reduction <add>, %957, %cst_352 [0] : vector<8x8xf32> to vector<8xf32>
    %959 = vector.shape_cast %958 : vector<8xf32> to vector<1x8xf32>
    %960 = tpu.reciprocal %959 {approx = true} : vector<1x8xf32> -> vector<1x8xf32>
    %961 = arith.mulf %959, %960 : vector<1x8xf32>
    %cst_353 = arith.constant 2.000000e+00 : f32
    %962 = vector.broadcast %cst_353 : f32 to vector<1x8xf32>
    %963 = arith.subf %962, %961 : vector<1x8xf32>
    %964 = arith.mulf %960, %963 : vector<1x8xf32>
    %965 = vector.broadcast %964 : vector<1x8xf32> to vector<8x8xf32>
    %966 = arith.mulf %957, %965 : vector<8x8xf32>
    %967 = vector.shape_cast %966 : vector<8x8xf32> to vector<8x8x1xf32>
    %968 = vector.broadcast %967 : vector<8x8x1xf32> to vector<8x8x32xf32>
    %969 = arith.mulf %968, %351 : vector<8x8x32xf32>
    %cst_354 = arith.constant dense<0.000000e+00> : vector<8x32xf32>
    %970 = vector.multi_reduction <add>, %969, %cst_354 [0] : vector<8x8x32xf32> to vector<8x32xf32>
    %971 = vector.broadcast %967 : vector<8x8x1xf32> to vector<8x8x32xf32>
    %972 = arith.mulf %971, %352 : vector<8x8x32xf32>
    %cst_355 = arith.constant dense<0.000000e+00> : vector<8x32xf32>
    %973 = vector.multi_reduction <add>, %972, %cst_355 [0] : vector<8x8x32xf32> to vector<8x32xf32>
    %974 = vector.broadcast %967 : vector<8x8x1xf32> to vector<8x8x32xf32>
    %975 = arith.mulf %974, %353 : vector<8x8x32xf32>
    %cst_356 = arith.constant dense<0.000000e+00> : vector<8x32xf32>
    %976 = vector.multi_reduction <add>, %975, %cst_356 [0] : vector<8x8x32xf32> to vector<8x32xf32>
    %977 = tpu.concatenate %937, %970, %973 in 1 : vector<8x32xf32>, vector<8x32xf32>, vector<8x32xf32> -> vector<8x96xf32>
    %c0_357 = arith.constant 0 : index
    %c0_358 = arith.constant 0 : index
    %978 = vector.load %arg9[%c0_357, %c0_358] : memref<96x32xf32, #tpu.memory_space<vmem>>, vector<96x32xf32>
    %cst_359 = arith.constant dense<0.000000e+00> : vector<8x32xf32>
    %979 = tpu.matmul %977, %978, %cst_359 {dimension_numbers = #tpu.dot_dimension_numbers<[1], [0], [0], [1], [0, 0, 1, 1], [], []>} : vector<8x96xf32>, vector<96x32xf32>, vector<8x32xf32> -> vector<8x32xf32>
    %c0_360 = arith.constant 0 : index
    %c0_361 = arith.constant 0 : index
    %980 = vector.load %arg10[%c0_360, %c0_361] : memref<1x32xf32, #tpu.memory_space<vmem>>, vector<1x32xf32>
    %981 = vector.broadcast %980 : vector<1x32xf32> to vector<8x32xf32>
    %982 = arith.addf %979, %981 : vector<8x32xf32>
    %983 = math.tanh %982 : vector<8x32xf32>
    %984 = arith.mulf %976, %976 : vector<8x32xf32>
    %cst_362 = arith.constant dense<0.000000e+00> : vector<8xf32>
    %985 = vector.multi_reduction <add>, %984, %cst_362 [1] : vector<8x32xf32> to vector<8xf32>
    %986 = vector.shape_cast %985 : vector<8xf32> to vector<8x1xf32>
    %987 = math.sqrt %986 : vector<8x1xf32>
    %988 = arith.mulf %983, %983 : vector<8x32xf32>
    %cst_363 = arith.constant dense<0.000000e+00> : vector<8xf32>
    %989 = vector.multi_reduction <add>, %988, %cst_363 [1] : vector<8x32xf32> to vector<8xf32>
    %990 = vector.shape_cast %989 : vector<8xf32> to vector<8x1xf32>
    %cst_364 = arith.constant 9.99999993E-9 : f32
    %991 = vector.broadcast %cst_364 : f32 to vector<8x1xf32>
    %992 = arith.addf %990, %991 : vector<8x1xf32>
    %993 = math.rsqrt %992 : vector<8x1xf32>
    %cst_365 = arith.constant 2.000000e-01 : f32
    %994 = vector.broadcast %cst_365 : f32 to vector<8x1xf32>
    %995 = arith.mulf %994, %987 : vector<8x1xf32>
    %996 = vector.broadcast %995 : vector<8x1xf32> to vector<8x32xf32>
    %997 = arith.mulf %983, %996 : vector<8x32xf32>
    %998 = vector.broadcast %993 : vector<8x1xf32> to vector<8x32xf32>
    %999 = arith.mulf %997, %998 : vector<8x32xf32>
    %1000 = arith.addf %976, %999 : vector<8x32xf32>
    %c0_366 = arith.constant 0 : index
    %c0_367 = arith.constant 0 : index
    %1001 = vector.load %arg11[%c0_366, %c0_367] : memref<32x128xf32, #tpu.memory_space<vmem>>, vector<32x128xf32>
    %cst_368 = arith.constant dense<0.000000e+00> : vector<8x128xf32>
    %1002 = tpu.matmul %1000, %1001, %cst_368 {dimension_numbers = #tpu.dot_dimension_numbers<[1], [0], [0], [1], [0, 0, 1, 1], [], []>} : vector<8x32xf32>, vector<32x128xf32>, vector<8x128xf32> -> vector<8x128xf32>
    %1003 = vector.broadcast %29 : vector<1x128xf32> to vector<8x128xf32>
    %1004 = arith.addf %1002, %1003 : vector<8x128xf32>
    %cst_369 = arith.constant dense<0xFF800000> : vector<8xf32>
    %1005 = vector.multi_reduction <maximumf>, %1004, %cst_369 [1] : vector<8x128xf32> to vector<8xf32>
    %1006 = vector.shape_cast %1005 : vector<8xf32> to vector<8x1xf32>
    %1007 = vector.broadcast %1006 : vector<8x1xf32> to vector<8x128xf32>
    %1008 = arith.subf %1004, %1007 : vector<8x128xf32>
    %1009 = math.exp %1008 : vector<8x128xf32>
    %cst_370 = arith.constant dense<0.000000e+00> : vector<8xf32>
    %1010 = vector.multi_reduction <add>, %1009, %cst_370 [1] : vector<8x128xf32> to vector<8xf32>
    %1011 = vector.shape_cast %1010 : vector<8xf32> to vector<8x1xf32>
    %1012 = math.log %1011 : vector<8x1xf32>
    %1013 = arith.addf %1006, %1012 : vector<8x1xf32>
    %1014 = vector.broadcast %1013 : vector<8x1xf32> to vector<8x128xf32>
    %1015 = arith.subf %1004, %1014 : vector<8x128xf32>
    %1016 = arith.index_cast %c5_i32_337 : i32 to index
    %c0_371 = arith.constant 0 : index
    %c0_372 = arith.constant 0 : index
    %1017 = vector.load %arg12[%1016, %c0_371, %c0_372] : memref<8x8x128xf32, #tpu.memory_space<vmem>>, vector<1x8x128xf32>
    %1018 = vector.shape_cast %1017 : vector<1x8x128xf32> to vector<8x128xf32>
    %1019 = vector.shape_cast %1015 : vector<8x128xf32> to vector<1x8x128xf32>
    tpu.vector_store %arg12[%1016, %c0_371, %c0_372], %1019 {strides = array<i32>} : memref<8x8x128xf32, #tpu.memory_space<vmem>>, vector<1x8x128xf32>,
    %c0_373 = arith.constant 0 : index
    %1020 = arith.index_cast %c5_i32_337 : i32 to index
    %c0_374 = arith.constant 0 : index
    %c0_375 = arith.constant 0 : index
    %1021 = vector.load %arg13[%c0_373, %1020, %c0_374, %c0_375] : memref<1x8x8x8xf32, #tpu.memory_space<vmem>>, vector<1x1x8x8xf32>
    %1022 = vector.shape_cast %1021 : vector<1x1x8x8xf32> to vector<8x8xf32>
    %1023 = vector.shape_cast %966 : vector<8x8xf32> to vector<1x1x8x8xf32>
    tpu.vector_store %arg13[%c0_373, %1020, %c0_374, %c0_375], %1023 {strides = array<i32>} : memref<1x8x8x8xf32, #tpu.memory_space<vmem>>, vector<1x1x8x8xf32>,
    %c6_i32_376 = arith.constant 6 : i32
    %1024 = arith.index_cast %c6_i32_376 : i32 to index
    %c0_377 = arith.constant 0 : index
    %c0_378 = arith.constant 0 : index
    %1025 = vector.load %arg2[%1024, %c0_377, %c0_378] : memref<8x8x32xf32, #tpu.memory_space<vmem>>, vector<1x8x32xf32>
    %1026 = vector.shape_cast %1025 : vector<1x8x32xf32> to vector<8x32xf32>
    %1027 = tpu.concatenate %1026, %937 in 1 : vector<8x32xf32>, vector<8x32xf32> -> vector<8x64xf32>
    %c0_379 = arith.constant 0 : index
    %c0_380 = arith.constant 0 : index
    %1028 = vector.load %arg6[%c0_379, %c0_380] : memref<64x128xf32, #tpu.memory_space<vmem>>, vector<64x128xf32>
    %cst_381 = arith.constant dense<0.000000e+00> : vector<8x128xf32>
    %1029 = tpu.matmul %1027, %1028, %cst_381 {dimension_numbers = #tpu.dot_dimension_numbers<[1], [0], [0], [1], [0, 0, 1, 1], [], []>} : vector<8x64xf32>, vector<64x128xf32>, vector<8x128xf32> -> vector<8x128xf32>
    %c0_382 = arith.constant 0 : index
    %c0_383 = arith.constant 0 : index
    %1030 = vector.load %arg7[%c0_382, %c0_383] : memref<1x128xf32, #tpu.memory_space<vmem>>, vector<1x128xf32>
    %1031 = vector.broadcast %1030 : vector<1x128xf32> to vector<8x128xf32>
    %1032 = arith.addf %1029, %1031 : vector<8x128xf32>
    %1033 = vector.broadcast %20 : vector<1x128xf32> to vector<8x128xf32>
    %1034 = arith.mulf %1033, %1032 : vector<8x128xf32>
    %1035 = math.tanh %1034 : vector<8x128xf32>
    %1036 = vector.broadcast %20 : vector<1x128xf32> to vector<8x128xf32>
    %1037 = arith.mulf %1036, %1035 : vector<8x128xf32>
    %1038 = vector.broadcast %23 : vector<1x128xf32> to vector<8x128xf32>
    %1039 = arith.addf %1037, %1038 : vector<8x128xf32>
    %1040 = vector.extract_strided_slice %1039 {offsets = [0, 0], sizes = [8, 32], strides = [1, 1]} : vector<8x128xf32> to vector<8x32xf32>
    %1041 = vector.extract_strided_slice %1039 {offsets = [0, 32], sizes = [8, 32], strides = [1, 1]} : vector<8x128xf32> to vector<8x32xf32>
    %1042 = vector.extract_strided_slice %1039 {offsets = [0, 64], sizes = [8, 32], strides = [1, 1]} : vector<8x128xf32> to vector<8x32xf32>
    %1043 = vector.extract_strided_slice %1039 {offsets = [0, 96], sizes = [8, 32], strides = [1, 1]} : vector<8x128xf32> to vector<8x32xf32>
    %1044 = arith.mulf %1041, %935 : vector<8x32xf32>
    %1045 = arith.mulf %1040, %1042 : vector<8x32xf32>
    %1046 = arith.addf %1044, %1045 : vector<8x32xf32>
    %1047 = math.tanh %1046 : vector<8x32xf32>
    %1048 = arith.mulf %1043, %1047 : vector<8x32xf32>
    %c0_384 = arith.constant 0 : index
    %c0_385 = arith.constant 0 : index
    %1049 = vector.load %arg8[%c0_384, %c0_385] : memref<32x64xf32, #tpu.memory_space<vmem>>, vector<32x64xf32>
    %cst_386 = arith.constant dense<0.000000e+00> : vector<8x64xf32>
    %1050 = tpu.matmul %1048, %1049, %cst_386 {dimension_numbers = #tpu.dot_dimension_numbers<[1], [0], [0], [1], [0, 0, 1, 1], [], []>} : vector<8x32xf32>, vector<32x64xf32>, vector<8x64xf32> -> vector<8x64xf32>
    %1051 = vector.extract_strided_slice %1050 {offsets = [0, 0], sizes = [8, 32], strides = [1, 1]} : vector<8x64xf32> to vector<8x32xf32>
    %1052 = vector.extract_strided_slice %1050 {offsets = [0, 32], sizes = [8, 32], strides = [1, 1]} : vector<8x64xf32> to vector<8x32xf32>
    %1053 = vector.shape_cast %1051 : vector<8x32xf32> to vector<1x8x32xf32>
    %1054 = vector.broadcast %1053 : vector<1x8x32xf32> to vector<8x8x32xf32>
    %1055 = arith.mulf %1054, %351 : vector<8x8x32xf32>
    %cst_387 = arith.constant dense<0.000000e+00> : vector<8x8xf32>
    %1056 = vector.multi_reduction <add>, %1055, %cst_387 [2] : vector<8x8x32xf32> to vector<8x8xf32>
    %1057 = vector.shape_cast %1052 : vector<8x32xf32> to vector<1x8x32xf32>
    %1058 = vector.broadcast %1057 : vector<1x8x32xf32> to vector<8x8x32xf32>
    %1059 = arith.mulf %1058, %352 : vector<8x8x32xf32>
    %cst_388 = arith.constant dense<0.000000e+00> : vector<8x8xf32>
    %1060 = vector.multi_reduction <add>, %1059, %cst_388 [2] : vector<8x8x32xf32> to vector<8x8xf32>
    %1061 = arith.addf %1056, %1060 : vector<8x8xf32>
    %cst_389 = arith.constant -1.000000e+09 : f32
    %1062 = vector.broadcast %cst_389 : f32 to vector<8x8xf32>
    %1063 = arith.select %356, %1061, %1062 : vector<8x8xi1>, vector<8x8xf32>
    %cst_390 = arith.constant dense<0xFF800000> : vector<8xf32>
    %1064 = vector.multi_reduction <maximumf>, %1063, %cst_390 [0] : vector<8x8xf32> to vector<8xf32>
    %1065 = vector.shape_cast %1064 : vector<8xf32> to vector<1x8xf32>
    %1066 = vector.broadcast %1065 : vector<1x8xf32> to vector<8x8xf32>
    %1067 = arith.subf %1063, %1066 : vector<8x8xf32>
    %1068 = math.exp %1067 : vector<8x8xf32>
    %cst_391 = arith.constant dense<0.000000e+00> : vector<8xf32>
    %1069 = vector.multi_reduction <add>, %1068, %cst_391 [0] : vector<8x8xf32> to vector<8xf32>
    %1070 = vector.shape_cast %1069 : vector<8xf32> to vector<1x8xf32>
    %1071 = tpu.reciprocal %1070 {approx = true} : vector<1x8xf32> -> vector<1x8xf32>
    %1072 = arith.mulf %1070, %1071 : vector<1x8xf32>
    %cst_392 = arith.constant 2.000000e+00 : f32
    %1073 = vector.broadcast %cst_392 : f32 to vector<1x8xf32>
    %1074 = arith.subf %1073, %1072 : vector<1x8xf32>
    %1075 = arith.mulf %1071, %1074 : vector<1x8xf32>
    %1076 = vector.broadcast %1075 : vector<1x8xf32> to vector<8x8xf32>
    %1077 = arith.mulf %1068, %1076 : vector<8x8xf32>
    %1078 = vector.shape_cast %1077 : vector<8x8xf32> to vector<8x8x1xf32>
    %1079 = vector.broadcast %1078 : vector<8x8x1xf32> to vector<8x8x32xf32>
    %1080 = arith.mulf %1079, %351 : vector<8x8x32xf32>
    %cst_393 = arith.constant dense<0.000000e+00> : vector<8x32xf32>
    %1081 = vector.multi_reduction <add>, %1080, %cst_393 [0] : vector<8x8x32xf32> to vector<8x32xf32>
    %1082 = vector.broadcast %1078 : vector<8x8x1xf32> to vector<8x8x32xf32>
    %1083 = arith.mulf %1082, %352 : vector<8x8x32xf32>
    %cst_394 = arith.constant dense<0.000000e+00> : vector<8x32xf32>
    %1084 = vector.multi_reduction <add>, %1083, %cst_394 [0] : vector<8x8x32xf32> to vector<8x32xf32>
    %1085 = vector.broadcast %1078 : vector<8x8x1xf32> to vector<8x8x32xf32>
    %1086 = arith.mulf %1085, %353 : vector<8x8x32xf32>
    %cst_395 = arith.constant dense<0.000000e+00> : vector<8x32xf32>
    %1087 = vector.multi_reduction <add>, %1086, %cst_395 [0] : vector<8x8x32xf32> to vector<8x32xf32>
    %1088 = tpu.concatenate %1048, %1081, %1084 in 1 : vector<8x32xf32>, vector<8x32xf32>, vector<8x32xf32> -> vector<8x96xf32>
    %c0_396 = arith.constant 0 : index
    %c0_397 = arith.constant 0 : index
    %1089 = vector.load %arg9[%c0_396, %c0_397] : memref<96x32xf32, #tpu.memory_space<vmem>>, vector<96x32xf32>
    %cst_398 = arith.constant dense<0.000000e+00> : vector<8x32xf32>
    %1090 = tpu.matmul %1088, %1089, %cst_398 {dimension_numbers = #tpu.dot_dimension_numbers<[1], [0], [0], [1], [0, 0, 1, 1], [], []>} : vector<8x96xf32>, vector<96x32xf32>, vector<8x32xf32> -> vector<8x32xf32>
    %c0_399 = arith.constant 0 : index
    %c0_400 = arith.constant 0 : index
    %1091 = vector.load %arg10[%c0_399, %c0_400] : memref<1x32xf32, #tpu.memory_space<vmem>>, vector<1x32xf32>
    %1092 = vector.broadcast %1091 : vector<1x32xf32> to vector<8x32xf32>
    %1093 = arith.addf %1090, %1092 : vector<8x32xf32>
    %1094 = math.tanh %1093 : vector<8x32xf32>
    %1095 = arith.mulf %1087, %1087 : vector<8x32xf32>
    %cst_401 = arith.constant dense<0.000000e+00> : vector<8xf32>
    %1096 = vector.multi_reduction <add>, %1095, %cst_401 [1] : vector<8x32xf32> to vector<8xf32>
    %1097 = vector.shape_cast %1096 : vector<8xf32> to vector<8x1xf32>
    %1098 = math.sqrt %1097 : vector<8x1xf32>
    %1099 = arith.mulf %1094, %1094 : vector<8x32xf32>
    %cst_402 = arith.constant dense<0.000000e+00> : vector<8xf32>
    %1100 = vector.multi_reduction <add>, %1099, %cst_402 [1] : vector<8x32xf32> to vector<8xf32>
    %1101 = vector.shape_cast %1100 : vector<8xf32> to vector<8x1xf32>
    %cst_403 = arith.constant 9.99999993E-9 : f32
    %1102 = vector.broadcast %cst_403 : f32 to vector<8x1xf32>
    %1103 = arith.addf %1101, %1102 : vector<8x1xf32>
    %1104 = math.rsqrt %1103 : vector<8x1xf32>
    %cst_404 = arith.constant 2.000000e-01 : f32
    %1105 = vector.broadcast %cst_404 : f32 to vector<8x1xf32>
    %1106 = arith.mulf %1105, %1098 : vector<8x1xf32>
    %1107 = vector.broadcast %1106 : vector<8x1xf32> to vector<8x32xf32>
    %1108 = arith.mulf %1094, %1107 : vector<8x32xf32>
    %1109 = vector.broadcast %1104 : vector<8x1xf32> to vector<8x32xf32>
    %1110 = arith.mulf %1108, %1109 : vector<8x32xf32>
    %1111 = arith.addf %1087, %1110 : vector<8x32xf32>
    %c0_405 = arith.constant 0 : index
    %c0_406 = arith.constant 0 : index
    %1112 = vector.load %arg11[%c0_405, %c0_406] : memref<32x128xf32, #tpu.memory_space<vmem>>, vector<32x128xf32>
    %cst_407 = arith.constant dense<0.000000e+00> : vector<8x128xf32>
    %1113 = tpu.matmul %1111, %1112, %cst_407 {dimension_numbers = #tpu.dot_dimension_numbers<[1], [0], [0], [1], [0, 0, 1, 1], [], []>} : vector<8x32xf32>, vector<32x128xf32>, vector<8x128xf32> -> vector<8x128xf32>
    %1114 = vector.broadcast %29 : vector<1x128xf32> to vector<8x128xf32>
    %1115 = arith.addf %1113, %1114 : vector<8x128xf32>
    %cst_408 = arith.constant dense<0xFF800000> : vector<8xf32>
    %1116 = vector.multi_reduction <maximumf>, %1115, %cst_408 [1] : vector<8x128xf32> to vector<8xf32>
    %1117 = vector.shape_cast %1116 : vector<8xf32> to vector<8x1xf32>
    %1118 = vector.broadcast %1117 : vector<8x1xf32> to vector<8x128xf32>
    %1119 = arith.subf %1115, %1118 : vector<8x128xf32>
    %1120 = math.exp %1119 : vector<8x128xf32>
    %cst_409 = arith.constant dense<0.000000e+00> : vector<8xf32>
    %1121 = vector.multi_reduction <add>, %1120, %cst_409 [1] : vector<8x128xf32> to vector<8xf32>
    %1122 = vector.shape_cast %1121 : vector<8xf32> to vector<8x1xf32>
    %1123 = math.log %1122 : vector<8x1xf32>
    %1124 = arith.addf %1117, %1123 : vector<8x1xf32>
    %1125 = vector.broadcast %1124 : vector<8x1xf32> to vector<8x128xf32>
    %1126 = arith.subf %1115, %1125 : vector<8x128xf32>
    %1127 = arith.index_cast %c6_i32_376 : i32 to index
    %c0_410 = arith.constant 0 : index
    %c0_411 = arith.constant 0 : index
    %1128 = vector.load %arg12[%1127, %c0_410, %c0_411] : memref<8x8x128xf32, #tpu.memory_space<vmem>>, vector<1x8x128xf32>
    %1129 = vector.shape_cast %1128 : vector<1x8x128xf32> to vector<8x128xf32>
    %1130 = vector.shape_cast %1126 : vector<8x128xf32> to vector<1x8x128xf32>
    tpu.vector_store %arg12[%1127, %c0_410, %c0_411], %1130 {strides = array<i32>} : memref<8x8x128xf32, #tpu.memory_space<vmem>>, vector<1x8x128xf32>,
    %c0_412 = arith.constant 0 : index
    %1131 = arith.index_cast %c6_i32_376 : i32 to index
    %c0_413 = arith.constant 0 : index
    %c0_414 = arith.constant 0 : index
    %1132 = vector.load %arg13[%c0_412, %1131, %c0_413, %c0_414] : memref<1x8x8x8xf32, #tpu.memory_space<vmem>>, vector<1x1x8x8xf32>
    %1133 = vector.shape_cast %1132 : vector<1x1x8x8xf32> to vector<8x8xf32>
    %1134 = vector.shape_cast %1077 : vector<8x8xf32> to vector<1x1x8x8xf32>
    tpu.vector_store %arg13[%c0_412, %1131, %c0_413, %c0_414], %1134 {strides = array<i32>} : memref<1x8x8x8xf32, #tpu.memory_space<vmem>>, vector<1x1x8x8xf32>,
    %c7_i32_415 = arith.constant 7 : i32
    %1135 = arith.index_cast %c7_i32_415 : i32 to index
    %c0_416 = arith.constant 0 : index
    %c0_417 = arith.constant 0 : index
    %1136 = vector.load %arg2[%1135, %c0_416, %c0_417] : memref<8x8x32xf32, #tpu.memory_space<vmem>>, vector<1x8x32xf32>
    %1137 = vector.shape_cast %1136 : vector<1x8x32xf32> to vector<8x32xf32>
    %1138 = tpu.concatenate %1137, %1048 in 1 : vector<8x32xf32>, vector<8x32xf32> -> vector<8x64xf32>
    %c0_418 = arith.constant 0 : index
    %c0_419 = arith.constant 0 : index
    %1139 = vector.load %arg6[%c0_418, %c0_419] : memref<64x128xf32, #tpu.memory_space<vmem>>, vector<64x128xf32>
    %cst_420 = arith.constant dense<0.000000e+00> : vector<8x128xf32>
    %1140 = tpu.matmul %1138, %1139, %cst_420 {dimension_numbers = #tpu.dot_dimension_numbers<[1], [0], [0], [1], [0, 0, 1, 1], [], []>} : vector<8x64xf32>, vector<64x128xf32>, vector<8x128xf32> -> vector<8x128xf32>
    %c0_421 = arith.constant 0 : index
    %c0_422 = arith.constant 0 : index
    %1141 = vector.load %arg7[%c0_421, %c0_422] : memref<1x128xf32, #tpu.memory_space<vmem>>, vector<1x128xf32>
    %1142 = vector.broadcast %1141 : vector<1x128xf32> to vector<8x128xf32>
    %1143 = arith.addf %1140, %1142 : vector<8x128xf32>
    %1144 = vector.broadcast %20 : vector<1x128xf32> to vector<8x128xf32>
    %1145 = arith.mulf %1144, %1143 : vector<8x128xf32>
    %1146 = math.tanh %1145 : vector<8x128xf32>
    %1147 = vector.broadcast %20 : vector<1x128xf32> to vector<8x128xf32>
    %1148 = arith.mulf %1147, %1146 : vector<8x128xf32>
    %1149 = vector.broadcast %23 : vector<1x128xf32> to vector<8x128xf32>
    %1150 = arith.addf %1148, %1149 : vector<8x128xf32>
    %1151 = vector.extract_strided_slice %1150 {offsets = [0, 0], sizes = [8, 32], strides = [1, 1]} : vector<8x128xf32> to vector<8x32xf32>
    %1152 = vector.extract_strided_slice %1150 {offsets = [0, 32], sizes = [8, 32], strides = [1, 1]} : vector<8x128xf32> to vector<8x32xf32>
    %1153 = vector.extract_strided_slice %1150 {offsets = [0, 64], sizes = [8, 32], strides = [1, 1]} : vector<8x128xf32> to vector<8x32xf32>
    %1154 = vector.extract_strided_slice %1150 {offsets = [0, 96], sizes = [8, 32], strides = [1, 1]} : vector<8x128xf32> to vector<8x32xf32>
    %1155 = arith.mulf %1152, %1046 : vector<8x32xf32>
    %1156 = arith.mulf %1151, %1153 : vector<8x32xf32>
    %1157 = arith.addf %1155, %1156 : vector<8x32xf32>
    %1158 = math.tanh %1157 : vector<8x32xf32>
    %1159 = arith.mulf %1154, %1158 : vector<8x32xf32>
    %c0_423 = arith.constant 0 : index
    %c0_424 = arith.constant 0 : index
    %1160 = vector.load %arg8[%c0_423, %c0_424] : memref<32x64xf32, #tpu.memory_space<vmem>>, vector<32x64xf32>
    %cst_425 = arith.constant dense<0.000000e+00> : vector<8x64xf32>
    %1161 = tpu.matmul %1159, %1160, %cst_425 {dimension_numbers = #tpu.dot_dimension_numbers<[1], [0], [0], [1], [0, 0, 1, 1], [], []>} : vector<8x32xf32>, vector<32x64xf32>, vector<8x64xf32> -> vector<8x64xf32>
    %1162 = vector.extract_strided_slice %1161 {offsets = [0, 0], sizes = [8, 32], strides = [1, 1]} : vector<8x64xf32> to vector<8x32xf32>
    %1163 = vector.extract_strided_slice %1161 {offsets = [0, 32], sizes = [8, 32], strides = [1, 1]} : vector<8x64xf32> to vector<8x32xf32>
    %1164 = vector.shape_cast %1162 : vector<8x32xf32> to vector<1x8x32xf32>
    %1165 = vector.broadcast %1164 : vector<1x8x32xf32> to vector<8x8x32xf32>
    %1166 = arith.mulf %1165, %351 : vector<8x8x32xf32>
    %cst_426 = arith.constant dense<0.000000e+00> : vector<8x8xf32>
    %1167 = vector.multi_reduction <add>, %1166, %cst_426 [2] : vector<8x8x32xf32> to vector<8x8xf32>
    %1168 = vector.shape_cast %1163 : vector<8x32xf32> to vector<1x8x32xf32>
    %1169 = vector.broadcast %1168 : vector<1x8x32xf32> to vector<8x8x32xf32>
    %1170 = arith.mulf %1169, %352 : vector<8x8x32xf32>
    %cst_427 = arith.constant dense<0.000000e+00> : vector<8x8xf32>
    %1171 = vector.multi_reduction <add>, %1170, %cst_427 [2] : vector<8x8x32xf32> to vector<8x8xf32>
    %1172 = arith.addf %1167, %1171 : vector<8x8xf32>
    %cst_428 = arith.constant -1.000000e+09 : f32
    %1173 = vector.broadcast %cst_428 : f32 to vector<8x8xf32>
    %1174 = arith.select %356, %1172, %1173 : vector<8x8xi1>, vector<8x8xf32>
    %cst_429 = arith.constant dense<0xFF800000> : vector<8xf32>
    %1175 = vector.multi_reduction <maximumf>, %1174, %cst_429 [0] : vector<8x8xf32> to vector<8xf32>
    %1176 = vector.shape_cast %1175 : vector<8xf32> to vector<1x8xf32>
    %1177 = vector.broadcast %1176 : vector<1x8xf32> to vector<8x8xf32>
    %1178 = arith.subf %1174, %1177 : vector<8x8xf32>
    %1179 = math.exp %1178 : vector<8x8xf32>
    %cst_430 = arith.constant dense<0.000000e+00> : vector<8xf32>
    %1180 = vector.multi_reduction <add>, %1179, %cst_430 [0] : vector<8x8xf32> to vector<8xf32>
    %1181 = vector.shape_cast %1180 : vector<8xf32> to vector<1x8xf32>
    %1182 = tpu.reciprocal %1181 {approx = true} : vector<1x8xf32> -> vector<1x8xf32>
    %1183 = arith.mulf %1181, %1182 : vector<1x8xf32>
    %cst_431 = arith.constant 2.000000e+00 : f32
    %1184 = vector.broadcast %cst_431 : f32 to vector<1x8xf32>
    %1185 = arith.subf %1184, %1183 : vector<1x8xf32>
    %1186 = arith.mulf %1182, %1185 : vector<1x8xf32>
    %1187 = vector.broadcast %1186 : vector<1x8xf32> to vector<8x8xf32>
    %1188 = arith.mulf %1179, %1187 : vector<8x8xf32>
    %1189 = vector.shape_cast %1188 : vector<8x8xf32> to vector<8x8x1xf32>
    %1190 = vector.broadcast %1189 : vector<8x8x1xf32> to vector<8x8x32xf32>
    %1191 = arith.mulf %1190, %351 : vector<8x8x32xf32>
    %cst_432 = arith.constant dense<0.000000e+00> : vector<8x32xf32>
    %1192 = vector.multi_reduction <add>, %1191, %cst_432 [0] : vector<8x8x32xf32> to vector<8x32xf32>
    %1193 = vector.broadcast %1189 : vector<8x8x1xf32> to vector<8x8x32xf32>
    %1194 = arith.mulf %1193, %352 : vector<8x8x32xf32>
    %cst_433 = arith.constant dense<0.000000e+00> : vector<8x32xf32>
    %1195 = vector.multi_reduction <add>, %1194, %cst_433 [0] : vector<8x8x32xf32> to vector<8x32xf32>
    %1196 = vector.broadcast %1189 : vector<8x8x1xf32> to vector<8x8x32xf32>
    %1197 = arith.mulf %1196, %353 : vector<8x8x32xf32>
    %cst_434 = arith.constant dense<0.000000e+00> : vector<8x32xf32>
    %1198 = vector.multi_reduction <add>, %1197, %cst_434 [0] : vector<8x8x32xf32> to vector<8x32xf32>
    %1199 = tpu.concatenate %1159, %1192, %1195 in 1 : vector<8x32xf32>, vector<8x32xf32>, vector<8x32xf32> -> vector<8x96xf32>
    %c0_435 = arith.constant 0 : index
    %c0_436 = arith.constant 0 : index
    %1200 = vector.load %arg9[%c0_435, %c0_436] : memref<96x32xf32, #tpu.memory_space<vmem>>, vector<96x32xf32>
    %cst_437 = arith.constant dense<0.000000e+00> : vector<8x32xf32>
    %1201 = tpu.matmul %1199, %1200, %cst_437 {dimension_numbers = #tpu.dot_dimension_numbers<[1], [0], [0], [1], [0, 0, 1, 1], [], []>} : vector<8x96xf32>, vector<96x32xf32>, vector<8x32xf32> -> vector<8x32xf32>
    %c0_438 = arith.constant 0 : index
    %c0_439 = arith.constant 0 : index
    %1202 = vector.load %arg10[%c0_438, %c0_439] : memref<1x32xf32, #tpu.memory_space<vmem>>, vector<1x32xf32>
    %1203 = vector.broadcast %1202 : vector<1x32xf32> to vector<8x32xf32>
    %1204 = arith.addf %1201, %1203 : vector<8x32xf32>
    %1205 = math.tanh %1204 : vector<8x32xf32>
    %1206 = arith.mulf %1198, %1198 : vector<8x32xf32>
    %cst_440 = arith.constant dense<0.000000e+00> : vector<8xf32>
    %1207 = vector.multi_reduction <add>, %1206, %cst_440 [1] : vector<8x32xf32> to vector<8xf32>
    %1208 = vector.shape_cast %1207 : vector<8xf32> to vector<8x1xf32>
    %1209 = math.sqrt %1208 : vector<8x1xf32>
    %1210 = arith.mulf %1205, %1205 : vector<8x32xf32>
    %cst_441 = arith.constant dense<0.000000e+00> : vector<8xf32>
    %1211 = vector.multi_reduction <add>, %1210, %cst_441 [1] : vector<8x32xf32> to vector<8xf32>
    %1212 = vector.shape_cast %1211 : vector<8xf32> to vector<8x1xf32>
    %cst_442 = arith.constant 9.99999993E-9 : f32
    %1213 = vector.broadcast %cst_442 : f32 to vector<8x1xf32>
    %1214 = arith.addf %1212, %1213 : vector<8x1xf32>
    %1215 = math.rsqrt %1214 : vector<8x1xf32>
    %cst_443 = arith.constant 2.000000e-01 : f32
    %1216 = vector.broadcast %cst_443 : f32 to vector<8x1xf32>
    %1217 = arith.mulf %1216, %1209 : vector<8x1xf32>
    %1218 = vector.broadcast %1217 : vector<8x1xf32> to vector<8x32xf32>
    %1219 = arith.mulf %1205, %1218 : vector<8x32xf32>
    %1220 = vector.broadcast %1215 : vector<8x1xf32> to vector<8x32xf32>
    %1221 = arith.mulf %1219, %1220 : vector<8x32xf32>
    %1222 = arith.addf %1198, %1221 : vector<8x32xf32>
    %c0_444 = arith.constant 0 : index
    %c0_445 = arith.constant 0 : index
    %1223 = vector.load %arg11[%c0_444, %c0_445] : memref<32x128xf32, #tpu.memory_space<vmem>>, vector<32x128xf32>
    %cst_446 = arith.constant dense<0.000000e+00> : vector<8x128xf32>
    %1224 = tpu.matmul %1222, %1223, %cst_446 {dimension_numbers = #tpu.dot_dimension_numbers<[1], [0], [0], [1], [0, 0, 1, 1], [], []>} : vector<8x32xf32>, vector<32x128xf32>, vector<8x128xf32> -> vector<8x128xf32>
    %1225 = vector.broadcast %29 : vector<1x128xf32> to vector<8x128xf32>
    %1226 = arith.addf %1224, %1225 : vector<8x128xf32>
    %cst_447 = arith.constant dense<0xFF800000> : vector<8xf32>
    %1227 = vector.multi_reduction <maximumf>, %1226, %cst_447 [1] : vector<8x128xf32> to vector<8xf32>
    %1228 = vector.shape_cast %1227 : vector<8xf32> to vector<8x1xf32>
    %1229 = vector.broadcast %1228 : vector<8x1xf32> to vector<8x128xf32>
    %1230 = arith.subf %1226, %1229 : vector<8x128xf32>
    %1231 = math.exp %1230 : vector<8x128xf32>
    %cst_448 = arith.constant dense<0.000000e+00> : vector<8xf32>
    %1232 = vector.multi_reduction <add>, %1231, %cst_448 [1] : vector<8x128xf32> to vector<8xf32>
    %1233 = vector.shape_cast %1232 : vector<8xf32> to vector<8x1xf32>
    %1234 = math.log %1233 : vector<8x1xf32>
    %1235 = arith.addf %1228, %1234 : vector<8x1xf32>
    %1236 = vector.broadcast %1235 : vector<8x1xf32> to vector<8x128xf32>
    %1237 = arith.subf %1226, %1236 : vector<8x128xf32>
    %1238 = arith.index_cast %c7_i32_415 : i32 to index
    %c0_449 = arith.constant 0 : index
    %c0_450 = arith.constant 0 : index
    %1239 = vector.load %arg12[%1238, %c0_449, %c0_450] : memref<8x8x128xf32, #tpu.memory_space<vmem>>, vector<1x8x128xf32>
    %1240 = vector.shape_cast %1239 : vector<1x8x128xf32> to vector<8x128xf32>
    %1241 = vector.shape_cast %1237 : vector<8x128xf32> to vector<1x8x128xf32>
    tpu.vector_store %arg12[%1238, %c0_449, %c0_450], %1241 {strides = array<i32>} : memref<8x8x128xf32, #tpu.memory_space<vmem>>, vector<1x8x128xf32>,
    %c0_451 = arith.constant 0 : index
    %1242 = arith.index_cast %c7_i32_415 : i32 to index
    %c0_452 = arith.constant 0 : index
    %c0_453 = arith.constant 0 : index
    %1243 = vector.load %arg13[%c0_451, %1242, %c0_452, %c0_453] : memref<1x8x8x8xf32, #tpu.memory_space<vmem>>, vector<1x1x8x8xf32>
    %1244 = vector.shape_cast %1243 : vector<1x1x8x8xf32> to vector<8x8xf32>
    %1245 = vector.shape_cast %1188 : vector<8x8xf32> to vector<1x1x8x8xf32>
    tpu.vector_store %arg13[%c0_451, %1242, %c0_452, %c0_453], %1245 {strides = array<i32>} : memref<1x8x8x8xf32, #tpu.memory_space<vmem>>, vector<1x1x8x8xf32>,
    %c8_i32_454 = arith.constant 8 : i32
    return
  }
  func.func @transform_0(%arg0: i32) -> (i32, i32, i32) {
    %c0_i32 = arith.constant 0 : i32
    %c0_i32_0 = arith.constant 0 : i32
    %c0_i32_1 = arith.constant 0 : i32
    return %c0_i32, %arg0, %c0_i32_0 : i32, i32, i32
  }
  func.func @transform_1(%arg0: i32) -> (i32, i32, i32) {
    %c0_i32 = arith.constant 0 : i32
    %c0_i32_0 = arith.constant 0 : i32
    %c0_i32_1 = arith.constant 0 : i32
    return %c0_i32, %arg0, %c0_i32_0 : i32, i32, i32
  }
  func.func @transform_2(%arg0: i32) -> (i32, i32) {
    %c0_i32 = arith.constant 0 : i32
    %c0_i32_0 = arith.constant 0 : i32
    return %c0_i32, %arg0 : i32, i32
  }
  func.func @transform_3(%arg0: i32) -> (i32, i32) {
    %c0_i32 = arith.constant 0 : i32
    %c0_i32_0 = arith.constant 0 : i32
    %c0_i32_1 = arith.constant 0 : i32
    return %c0_i32, %c0_i32_0 : i32, i32
  }
  func.func @transform_4(%arg0: i32) -> (i32, i32) {
    %c0_i32 = arith.constant 0 : i32
    %c0_i32_0 = arith.constant 0 : i32
    %c0_i32_1 = arith.constant 0 : i32
    return %c0_i32, %c0_i32_0 : i32, i32
  }
  func.func @transform_5(%arg0: i32) -> (i32, i32) {
    %c0_i32 = arith.constant 0 : i32
    %c0_i32_0 = arith.constant 0 : i32
    %c0_i32_1 = arith.constant 0 : i32
    return %c0_i32, %c0_i32_0 : i32, i32
  }
  func.func @transform_6(%arg0: i32) -> (i32, i32) {
    %c0_i32 = arith.constant 0 : i32
    %c0_i32_0 = arith.constant 0 : i32
    %c0_i32_1 = arith.constant 0 : i32
    return %c0_i32, %c0_i32_0 : i32, i32
  }
  func.func @transform_7(%arg0: i32) -> (i32, i32) {
    %c0_i32 = arith.constant 0 : i32
    %c0_i32_0 = arith.constant 0 : i32
    %c0_i32_1 = arith.constant 0 : i32
    return %c0_i32, %c0_i32_0 : i32, i32
  }
  func.func @transform_8(%arg0: i32) -> (i32, i32) {
    %c0_i32 = arith.constant 0 : i32
    %c0_i32_0 = arith.constant 0 : i32
    %c0_i32_1 = arith.constant 0 : i32
    return %c0_i32, %c0_i32_0 : i32, i32
  }
  func.func @transform_9(%arg0: i32) -> (i32, i32) {
    %c0_i32 = arith.constant 0 : i32
    %c0_i32_0 = arith.constant 0 : i32
    %c0_i32_1 = arith.constant 0 : i32
    return %c0_i32, %c0_i32_0 : i32, i32
  }
  func.func @transform_10(%arg0: i32) -> (i32, i32) {
    %c0_i32 = arith.constant 0 : i32
    %c0_i32_0 = arith.constant 0 : i32
    %c0_i32_1 = arith.constant 0 : i32
    return %c0_i32, %c0_i32_0 : i32, i32
  }
  func.func @transform_11(%arg0: i32) -> (i32, i32, i32) {
    %c0_i32 = arith.constant 0 : i32
    %c0_i32_0 = arith.constant 0 : i32
    %c0_i32_1 = arith.constant 0 : i32
    return %c0_i32, %arg0, %c0_i32_0 : i32, i32, i32
  }
  func.func @transform_12(%arg0: i32) -> (i32, i32, i32, i32) {
    %c0_i32 = arith.constant 0 : i32
    %c0_i32_0 = arith.constant 0 : i32
    %c0_i32_1 = arith.constant 0 : i32
    %c0_i32_2 = arith.constant 0 : i32
    return %arg0, %c0_i32, %c0_i32_0, %c0_i32_1 : i32, i32, i32, i32
  }
}

</mosaic_0001>

<bundles_post_ra>
// kernel: base_model_forward.1
= control target key start
LH: loop header
LB: loop body
LE: loop exit
PB: predicated region body
PF: predicated region fallthrough
CT: control target
= control target key end

     0   :  { %s8831_s27 = smov 32   ;;  %v11952_v7 = vmov 0.0   ;;  %s11939_s0 = inlined_call_operand.vmem [shape: f32[8,8,32], index: 0, kind: input, shape index: {}]   ;;  %s11940_s1 = inlined_call_operand.vmem [shape: f32[8,8,32], index: 1, kind: input, shape index: {}]   ;;  %s11941_s2 = inlined_call_operand.vmem [shape: f32[8,8], index: 2, kind: input, shape index: {}]   ;;  %s11942_s3 = inlined_call_operand.vmem [shape: f32[128,256], index: 3, kind: input, shape index: {}]   ;;  %s11943_s4 = inlined_call_operand.vmem [shape: f32[1,256], index: 4, kind: input, shape index: {}]   ;;  %s11944_s5 = inlined_call_operand.vmem [shape: f32[64,128], index: 5, kind: input, shape index: {}]   ;;  %s11945_s6 = inlined_call_operand.vmem [shape: f32[1,128], index: 6, kind: input, shape index: {}]   ;;  %s11946_s7 = inlined_call_operand.vmem [shape: f32[32,64], index: 7, kind: input, shape index: {}]   ;;  %s11947_s8 = inlined_call_operand.vmem [shape: f32[96,32], index: 8, kind: input, shape index: {}]   ;;  %s11948_s9 = inlined_call_operand.vmem [shape: f32[1,32], index: 9, kind: input, shape index: {}]   ;;  %s11949_s10 = inlined_call_operand.vmem [shape: f32[32,128], index: 10, kind: input, shape index: {}]   ;;  %s11950_s11 = inlined_call_operand.hbm [shape: f32[8,8,128], index: 11, kind: output, shape index: {0}]   ;;  %s11951_s12 = inlined_call_operand.vmem [shape: f32[1,8,8,8], index: 12, kind: output, shape index: {1}]  }
   0x1   :  { %v7045_v0 = vld [vmem:[%s11939_s0 + $0x38] sm:$0xff]  ;;  %v73_v1 = vld [vmem:[%s11942_s3 + $0x8] sm:$0xff]  ;;  %v72_v4 = vld [vmem:[%s11942_s3] sm:$0xff]  ;;  %180 = vmatprep.mubr.f32.mxu0 %v11952_v7  ;;  %332 = vmatprep.mubr.f32.mxu1 %v11952_v7 }
   0x2   :  { %v75_v2 = vld [vmem:[%s11942_s3 + $0x18] sm:$0xff]  ;;  %65 = vrot.lane.b32.xlu0 %v7045_v0, %s8831_s27  ;;  %v74_v5 = vld [vmem:[%s11942_s3 + $0x10] sm:$0xff]  ;;  %v77_v6 = vld [vmem:[%s11942_s3 + $0x28] sm:$0xff] }
   0x3   :  { %v8917_v3 = vpack.c.bf16 %v75_v2, %v73_v1  ;;  %v8929_v8 = vpack.c.bf16 %v74_v5, %v72_v4  ;;  %v79_v9 = vld [vmem:[%s11942_s3 + $0x38] sm:$0xff]  ;;  %v76_v10 = vld [vmem:[%s11942_s3 + $0x20] sm:$0xff]  ;;  %v78_v11 = vld [vmem:[%s11942_s3 + $0x30] sm:$0xff] }
   0x4   :  { %v8942_v12 = vpack.c.bf16 %v79_v9, %v77_v6  ;;  %v81_v13 = vld [vmem:[%s11942_s3 + $0x48] sm:$0xff]  ;;  %v83_v14 = vld [vmem:[%s11942_s3 + $0x58] sm:$0xff]  ;;  %v8952_v15 = vpack.c.bf16 %v78_v11, %v76_v10  ;;  %v80_v17 = vld [vmem:[%s11942_s3 + $0x40] sm:$0xff] }
   0x5   :  { %7923 = vmatprep.subr.bf16.mxu0 %v8917_v3  ;;  %7955 = vmatprep.subr.bf16.mxu1 %v8917_v3  ;;  %v8956_v16 = vpack.c.bf16 %v83_v14, %v81_v13  ;;  %v82_v18 = vld [vmem:[%s11942_s3 + $0x50] sm:$0xff]  ;;  %v85_v19 = vld [vmem:[%s11942_s3 + $0x68] sm:$0xff]  ;;  %v87_v20 = vld [vmem:[%s11942_s3 + $0x78] sm:$0xff] }
   0x6   :  { %7925 = vmatpush1.bf16.msra.mxu0 %v8929_v8  ;;  %7957 = vmatpush1.bf16.msra.mxu1 %v8929_v8  ;;  %v8972_v21 = vpack.c.bf16 %v82_v18, %v80_v17  ;;  %v8976_v22 = vpack.c.bf16 %v87_v20, %v85_v19  ;;  %v84_v23 = vld [vmem:[%s11942_s3 + $0x60] sm:$0xff]  ;;  %v86_v24 = vld [vmem:[%s11942_s3 + $0x70] sm:$0xff]  ;;  %v89_v25 = vld [vmem:[%s11942_s3 + $0x88] sm:$0xff] }
   0x7   :  { %7927 = vmatprep.subr.bf16.mxu0 %v8942_v12  ;;  %7959 = vmatprep.subr.bf16.mxu1 %v8942_v12  ;;  %v91_v26 = vld [vmem:[%s11942_s3 + $0x98] sm:$0xff] }
   0xa   :  { %7929 = vmatpush1.bf16.msra.mxu0 %v8952_v15  ;;  %7961 = vmatpush1.bf16.msra.mxu1 %v8952_v15 }
   0xb   :  { %7931 = vmatprep.subr.bf16.mxu0 %v8956_v16  ;;  %7963 = vmatprep.subr.bf16.mxu1 %v8956_v16 }
   0xc   :  { %18 = vsyncpa [#allocation5], 0  ;;  %v8992_v27 = vpack.c.bf16 %v86_v24, %v84_v23  ;;  %v8996_v28 = vpack.c.bf16 %v91_v26, %v89_v25  ;;  %v88_v29 = vld [vmem:[%s11942_s3 + $0x80] sm:$0xff]  ;;  %v90_v30 = vld [vmem:[%s11942_s3 + $0x90] sm:$0xff]  ;;  %vm68_vm0 = vcmask 261120   ;;  %vm70_vm1 = vcmask 523264  }
   0xd   :  { %v93_v31 = vld [vmem:[%s11942_s3 + $0xa8] sm:$0xff]  ;;  %v95_v32 = vld [vmem:[%s11942_s3 + $0xb8] sm:$0xff]  ;;  %v9012_v33 = vpack.c.bf16 %v90_v30, %v88_v29  ;;  %v92_v35 = vld [vmem:[%s11942_s3 + $0xa0] sm:$0xff]  ;;  %v41_v54 = vlaneseq  ;;  %v8833_v1 = vmov 0.5   ;;  %s8834_s25 = smov 64   ;;  %vm8836_vm3 = vmmov 0  }
   0xe   :  { %7933 = vmatpush1.bf16.msra.mxu0 %v8972_v21  ;;  %7965 = vmatpush1.bf16.msra.mxu1 %v8972_v21  ;;  %v9016_v34 = vpack.c.bf16 %v95_v32, %v93_v31  ;;  %v94_v36 = vld [vmem:[%s11942_s3 + $0xb0] sm:$0xff]  ;;  %v97_v37 = vld [vmem:[%s11942_s3 + $0xc8] sm:$0xff]  ;;  %v99_v38 = vld [vmem:[%s11942_s3 + $0xd8] sm:$0xff]  ;;  %s8837_s15 = smov 96   ;;  %vm1668_vm7 = vcmask 1041409   ;;  %vm1670_vm8 = vcmask 1042434  }
   0xf   :  { %7935 = vmatprep.subr.bf16.mxu0 %v8976_v22  ;;  %7967 = vmatprep.subr.bf16.mxu1 %v8976_v22  ;;  %v9032_v39 = vpack.c.bf16 %v94_v36, %v92_v35  ;;  %v9036_v40 = vpack.c.bf16 %v99_v38, %v97_v37  ;;  %v96_v41 = vld [vmem:[%s11942_s3 + $0xc0] sm:$0xff]  ;;  %v98_v42 = vld [vmem:[%s11942_s3 + $0xd0] sm:$0xff]  ;;  %v101_v43 = vld [vmem:[%s11942_s3 + $0xe8] sm:$0xff]  ;;  %v9101_v55 = vshrl.u32 %v41_v54, 7  ;;  %v9103_v56 = vand.u32 127, %v41_v54 }
  0x10   :  { %v103_v44 = vld [vmem:[%s11942_s3 + $0xf8] sm:$0xff]  ;;  %v9052_v45 = vpack.c.bf16 %v98_v42, %v96_v41  ;;  %v100_v47 = vld [vmem:[%s11942_s3 + $0xe0] sm:$0xff]  ;;  %v102_v48 = vld [vmem:[%s11942_s3 + $0xf0] sm:$0xff]  ;;  %vm1672_vm9 = vcmask 1043459   ;;  %vm1674_vm10 = vcmask 1044484   ;;  %vm1676_vm11 = vcmask 1045509  }
  0x11   :  { %v9056_v46 = vpack.c.bf16 %v103_v44, %v101_v43  ;;  %v9066_v49 = vpack.c.bf16 %v102_v48, %v100_v47  ;;  %v61_v50 = vld [vmem:[%s11939_s0] sm:$0xff]  ;;  %v7048_v53 = vld [vmem:[%s11939_s0 + $0x30] sm:$0xff]  ;;  %12009 = vst [vmem:[#allocation7_spill] sm:$0xff] %v9103_v56  ;;  %v9106_v57 = vsub.s32 0, %v9101_v55  ;;  %v43_v59 = vadd.s32 128, %v9103_v56  ;;  %v9130_v26 = vld [vmem:[%s11939_s0 + $0x8] sm:$0xff] }
  0x12   :  { %7937 = vmatpush1.bf16.msra.mxu0 %v8992_v27  ;;  %7969 = vmatpush1.bf16.msra.mxu1 %v8992_v27  ;;  %v104_v58 = vld [vmem:[%s11943_s4] sm:$0x3]  ;;  %v9113_v60 = vsub.s32 1, %v9101_v55  ;;  %v9158_v36 = vld [vmem:[%s11939_s0 + $0x28] sm:$0xff]  ;;  %vm54_vm4 = vcmp.ge.s32.totalorder %v9103_v56, 64  ;;  %vm55_vm5 = vcmp.lt.s32.totalorder %v9103_v56, 96 }
  0x13   :  { %7939 = vmatprep.subr.bf16.mxu0 %v8996_v28  ;;  %7971 = vmatprep.subr.bf16.mxu1 %v8996_v28  ;;  %v109_v61 = vrot.slane %v104_v58, %v9106_v57  ;;  %vm47_vm2 = vcmp.lt.s32.totalorder %v43_v59, 192  ;;  %v256_v37 = vld [vmem:[%s11943_s4] sm:$0x3]  ;;  %vm9449_vm6 = vmand %vm54_vm4, %vm55_vm5  ;;  %vm1678_vm12 = vcmask 1046534   ;;  %vm1680_vm13 = vcmask 1047559  }
  0x14   :  { %219 = vrot.lane.b32.xlu1 %v7048_v53, %s8831_s27  ;;  %v113_v62 = vrot.slane %v104_v58, %v9113_v60  ;;  %v9118_v2 = vsel %vm47_vm2, 1.0, %v8833_v1  ;;  %v9122_v14 = vsel %vm47_vm2, 0.0, %v8833_v1  ;;  %v261_v38 = vrot.slane %v256_v37, %v9106_v57 }
  0x15   :  { %v265_v41 = vrot.slane %v256_v37, %v9113_v60  ;;  %vm1684_vm15 = vcmask 64512   ;;  %vm1862_vm2 = vcmask 785408  }
  0x16   :  { %7941 = vmatpush1.bf16.msra.mxu0 %v9012_v33  ;;  %7973 = vmatpush1.bf16.msra.mxu1 %v9012_v33 }
  0x17   :  { %7943 = vmatprep.subr.bf16.mxu0 %v9016_v34  ;;  %7975 = vmatprep.subr.bf16.mxu1 %v9016_v34 }
  0x1a   :  { %7945 = vmatpush1.bf16.msra.mxu0 %v9032_v39  ;;  %7977 = vmatpush1.bf16.msra.mxu1 %v9032_v39 }
  0x1b   :  { %7947 = vmatprep.subr.bf16.mxu0 %v9036_v40  ;;  %7979 = vmatprep.subr.bf16.mxu1 %v9036_v40 }
  0x1e   :  { %7949 = vmatpush1.bf16.msra.mxu0 %v9052_v45  ;;  %7981 = vmatpush1.bf16.msra.mxu1 %v9052_v45 }
  0x1f   :  { %7951 = vmatprep.subr.bf16.mxu0 %v9056_v46  ;;  %7983 = vmatprep.subr.bf16.mxu1 %v9056_v46 }
  0x22   :  { %7953 = vmatpush1.bf16.msra.mxu0 %v9066_v49  ;;  %7985 = vmatpush1.bf16.msra.mxu1 %v9066_v49 }
  0x23   :  { %7987 = vmatprep.subr.bf16.mxu0 %v8917_v3  ;;  %8019 = vmatprep.subr.bf16.mxu1 %v8917_v3 }
  0x74   :  { %v66_v51 = vpop.permute.xlu0 %65 }
  0x75   :  { %v69_v52 = vsel %vm68_vm0, %v61_v50, %v66_v51 }
  0x76   :  { %7046 = vmatmul.mubr.msk.f32.vlgmr.msra.gmra.mrb[0].mxu0 %vm70_vm1, %v69_v52 }
  0x77   :  { %7989 = vmatpush1.bf16.msra.mxu0 %v8929_v8  ;;  %485 = vmatprep.mubr.f32.mxu0 %v11952_v7 }
  0x78   :  { %7991 = vmatprep.subr.bf16.mxu0 %v8942_v12 }
  0x7b   :  { %7993 = vmatpush1.bf16.msra.mxu0 %v8952_v15 }
  0x7c   :  { %7995 = vmatprep.subr.bf16.mxu0 %v8956_v16 }
  0x7f   :  { %7997 = vmatpush1.bf16.msra.mxu0 %v8972_v21 }
  0x80   :  { %7999 = vmatprep.subr.bf16.mxu0 %v8976_v22 }
  0x83   :  { %8001 = vmatpush1.bf16.msra.mxu0 %v8992_v27 }
  0x84   :  { %8003 = vmatprep.subr.bf16.mxu0 %v8996_v28 }
  0x86   :  { %v220_v29 = vpop.permute.xlu1 %219 }
  0x87   :  { %8005 = vmatpush1.bf16.msra.mxu0 %v9012_v33  ;;  %v222_v31 = vsel %vm68_vm0, %v9130_v26, %v220_v29 }
  0x88   :  { %8007 = vmatprep.subr.bf16.mxu0 %v9016_v34 }
  0x8b   :  { %8009 = vmatpush1.bf16.msra.mxu0 %v9032_v39 }
  0x8c   :  { %8011 = vmatprep.subr.bf16.mxu0 %v9036_v40 }
  0x8f   :  { %8013 = vmatpush1.bf16.msra.mxu0 %v9052_v45 }
  0x90   :  { %8015 = vmatprep.subr.bf16.mxu0 %v9056_v46 }
  0x93   :  { %8017 = vmatpush1.bf16.msra.mxu0 %v9066_v49 }
  0x94   :  { %8051 = vmatprep.subr.bf16.mxu0 %v8917_v3 }
 0x149   :  { %v182_v63 = vpop.f32.mrb[0].mxu0 }
 0x14a   :  { %v183_v0 = vadd.f32 %v182_v63, %v109_v61  ;;  %v184_v4 = vpop.f32.mrb[1].mxu0 }
 0x14b   :  { %v185_v5 = vadd.f32 %v184_v4, %v113_v62 }
 0x14c   :  { %v187_v6 = vmul.f32 0.5, %v183_v0  ;;  %v7049_v0 = vld [vmem:[%s11939_s0 + $0x10] sm:$0xff] }
 0x14d   :  { %v188_v9 = vmul.f32 %v185_v5, %v9118_v2 }
 0x14e   :  { %8525 = vtanh.f32 %v187_v6 }
 0x14f   :  { %8527 = vtanh.f32 %v188_v9 }
 0x158   :  { %v8526_v10 = vpop.eup %8525 }
 0x159   :  { %v8528_v11 = vpop.eup %8527  ;;  %v191_v13 = vmul.f32 0.5, %v8526_v10 }
 0x15a   :  { %v192_v17 = vmul.f32 %v8528_v11, %v9118_v2  ;;  %v9198_v11 = vld [vmem:[%s11939_s0 + $0x20] sm:$0xff] }
 0x15b   :  { %v193_v18 = vadd.f32 0.5, %v191_v13  ;;  %v409_v13 = vld [vmem:[%s11943_s4] sm:$0x3] }
 0x15c   :  { %v194_v19 = vadd.f32 %v192_v17, %v9122_v14  ;;  %v414_v17 = vrot.slane %v409_v13, %v9106_v57 }
 0x15d   :  { %v195_v23 = vmul.f32 0.0, %v193_v18 }
 0x15e   :  { %v196_v20 = vmul.f32 %v194_v19, %v193_v18  ;;  %v418_v18 = vrot.slane %v409_v13, %v9113_v60 }
 0x160   :  { %198 = vrot.lane.b32.xlu0 %v196_v20, %s8834_s25 }
 0x164   :  { %372 = vrot.lane.b32.xlu0 %v9158_v36, %s8831_s27 }
 0x168   :  { %525 = vrot.lane.b32.xlu0 %v9198_v11, %s8831_s27 }
 0x1d2   :  { %v199_v24 = vpop.permute.xlu0 %198 }
 0x1d3   :  { %v201_v25 = vadd.f32 %v199_v24, %v195_v23 }
 0x1d5   :  { %8529 = vtanh.f32 %v201_v25 }
 0x1d6   :  { %v373_v4 = vpop.permute.xlu0 %372 }
 0x1d7   :  { %v375_v6 = vsel %vm68_vm0, %v7049_v0, %v373_v4 }
 0x1df   :  { %v8530_v30 = vpop.eup %8529 }
 0x1e0   :  { %v9134_v32 = vmul.f32 %v8530_v30, %v194_v19  ;;  %v7051_v30 = vld [vmem:[%s11939_s0 + $0x18] sm:$0xff] }
 0x1e1   :  { %676 = vrot.lane.b32.xlu0 %v7051_v30, %s8831_s27 }
 0x1e2   :  { %v223_v35 = vsel %vm70_vm1, %v222_v31, %v9134_v32 }
 0x1e3   :  { %333 = vmatmul.mubr.f32.vlgmr.msra.gmra.mrb[0].mxu1 %v223_v35 }
 0x1e4   :  { %8021 = vmatpush1.bf16.msra.mxu1 %v8929_v8  ;;  %638 = vmatprep.mubr.f32.mxu1 %v11952_v7 }
 0x1e5   :  { %8023 = vmatprep.subr.bf16.mxu1 %v8942_v12  ;;  %827 = vrot.lane.b32.xlu0 %v7049_v0, %s8831_s27 }
 0x1e8   :  { %8025 = vmatpush1.bf16.msra.mxu1 %v8952_v15 }
 0x1e9   :  { %8027 = vmatprep.subr.bf16.mxu1 %v8956_v16  ;;  %978 = vrot.lane.b32.xlu0 %v9130_v26, %s8831_s27 }
 0x1ec   :  { %8029 = vmatpush1.bf16.msra.mxu1 %v8972_v21 }
 0x1ed   :  { %8031 = vmatprep.subr.bf16.mxu1 %v8976_v22 }
 0x1f0   :  { %8033 = vmatpush1.bf16.msra.mxu1 %v8992_v27 }
 0x1f1   :  { %8035 = vmatprep.subr.bf16.mxu1 %v8996_v28 }
 0x1f4   :  { %8037 = vmatpush1.bf16.msra.mxu1 %v9012_v33 }
 0x1f5   :  { %8039 = vmatprep.subr.bf16.mxu1 %v9016_v34 }
 0x1f8   :  { %8041 = vmatpush1.bf16.msra.mxu1 %v9032_v39 }
 0x1f9   :  { %8043 = vmatprep.subr.bf16.mxu1 %v9036_v40 }
 0x1fc   :  { %8045 = vmatpush1.bf16.msra.mxu1 %v9052_v45 }
 0x1fd   :  { %8047 = vmatprep.subr.bf16.mxu1 %v9056_v46 }
 0x200   :  { %8049 = vmatpush1.bf16.msra.mxu1 %v9066_v49 }
 0x201   :  { %8083 = vmatprep.subr.bf16.mxu1 %v8917_v3 }
 0x2b6   :  { %v334_v42 = vpop.f32.mrb[0].mxu1 }
 0x2b7   :  { %v335_v43 = vadd.f32 %v334_v42, %v261_v38  ;;  %v336_v44 = vpop.f32.mrb[1].mxu1 }
 0x2b8   :  { %v337_v3 = vadd.f32 %v336_v44, %v265_v41 }
 0x2b9   :  { %v339_v47 = vmul.f32 0.5, %v335_v43 }
 0x2ba   :  { %v340_v48 = vmul.f32 %v337_v3, %v9118_v2 }
 0x2bb   :  { %8531 = vtanh.f32 %v339_v47 }
 0x2bc   :  { %8533 = vtanh.f32 %v340_v48  ;;  %v526_v48 = vpop.permute.xlu0 %525 }
 0x2c5   :  { %v8532_v50 = vpop.eup %8531 }
 0x2c6   :  { %v8534_v51 = vpop.eup %8533  ;;  %v343_v52 = vmul.f32 0.5, %v8532_v50 }
 0x2c7   :  { %v344_v53 = vmul.f32 %v8534_v51, %v9118_v2  ;;  %v528_v51 = vsel %vm68_vm0, %v7051_v30, %v526_v48  ;;  %v984_v48 = vld [vmem:[%s11942_s3 + $0x8] sm:$0xff] }
 0x2c8   :  { %v345_v54 = vadd.f32 0.5, %v343_v52 }
 0x2c9   :  { %v346_v58 = vadd.f32 %v344_v53, %v9122_v14 }
 0x2ca   :  { %v347_v61 = vmul.f32 %v345_v54, %v201_v25 }
 0x2cb   :  { %v348_v59 = vmul.f32 %v346_v58, %v345_v54 }
 0x2cd   :  { %350 = vrot.lane.b32.xlu1 %v348_v59, %s8834_s25 }
 0x33f   :  { %v351_v62 = vpop.permute.xlu1 %350 }
 0x340   :  { %v353_v63 = vadd.f32 %v351_v62, %v347_v61  ;;  %v677_v61 = vpop.permute.xlu0 %676 }
 0x342   :  { %8535 = vtanh.f32 %v353_v63 }
 0x34c   :  { %v8536_v5 = vpop.eup %8535 }
 0x34d   :  { %v9175_v9 = vmul.f32 %v8536_v5, %v346_v58  ;;  %v713_v5 = vld [vmem:[%s11943_s4] sm:$0x3] }
 0x34f   :  { %v376_v10 = vsel %vm70_vm1, %v375_v6, %v9175_v9  ;;  %v718_v6 = vrot.slane %v713_v5, %v9106_v57 }
 0x350   :  { %486 = vmatmul.mubr.f32.vlgmr.msra.gmra.mrb[2].mxu0 %v376_v10  ;;  %v722_v10 = vrot.slane %v713_v5, %v9113_v60 }
 0x351   :  { %8053 = vmatpush1.bf16.msra.mxu0 %v8929_v8  ;;  %789 = vmatprep.mubr.f32.mxu0 %v11952_v7 }
 0x352   :  { %8055 = vmatprep.subr.bf16.mxu0 %v8942_v12 }
 0x355   :  { %8057 = vmatpush1.bf16.msra.mxu0 %v8952_v15 }
 0x356   :  { %8059 = vmatprep.subr.bf16.mxu0 %v8956_v16 }
 0x359   :  { %8061 = vmatpush1.bf16.msra.mxu0 %v8972_v21 }
 0x35a   :  { %8063 = vmatprep.subr.bf16.mxu0 %v8976_v22 }
 0x35d   :  { %8065 = vmatpush1.bf16.msra.mxu0 %v8992_v27 }
 0x35e   :  { %8067 = vmatprep.subr.bf16.mxu0 %v8996_v28 }
 0x361   :  { %8069 = vmatpush1.bf16.msra.mxu0 %v9012_v33 }
 0x362   :  { %8071 = vmatprep.subr.bf16.mxu0 %v9016_v34 }
 0x365   :  { %8073 = vmatpush1.bf16.msra.mxu0 %v9032_v39 }
 0x366   :  { %8075 = vmatprep.subr.bf16.mxu0 %v9036_v40 }
 0x369   :  { %8077 = vmatpush1.bf16.msra.mxu0 %v9052_v45 }
 0x36a   :  { %8079 = vmatprep.subr.bf16.mxu0 %v9056_v46 }
 0x36d   :  { %8081 = vmatpush1.bf16.msra.mxu0 %v9066_v49 }
 0x423   :  { %v487_v19 = vpop.f32.mrb[2].mxu0 }
 0x424   :  { %v488_v20 = vadd.f32 %v487_v19, %v414_v17  ;;  %v489_v23 = vpop.f32.mrb[3].mxu0 }
 0x425   :  { %v490_v24 = vadd.f32 %v489_v23, %v418_v18 }
 0x426   :  { %v492_v25 = vmul.f32 0.5, %v488_v20 }
 0x427   :  { %v493_v29 = vmul.f32 %v490_v24, %v9118_v2 }
 0x428   :  { %8537 = vtanh.f32 %v492_v25 }
 0x429   :  { %8539 = vtanh.f32 %v493_v29 }
 0x432   :  { %v8538_v31 = vpop.eup %8537 }
 0x433   :  { %v8540_v35 = vpop.eup %8539  ;;  %v496_v37 = vmul.f32 0.5, %v8538_v31 }
 0x434   :  { %v497_v38 = vmul.f32 %v8540_v35, %v9118_v2 }
 0x435   :  { %v498_v41 = vadd.f32 0.5, %v496_v37 }
 0x436   :  { %v499_v42 = vadd.f32 %v497_v38, %v9122_v14 }
 0x437   :  { %v500_v44 = vmul.f32 %v498_v41, %v353_v63  ;;  %v679_v63 = vsel %vm68_vm0, %v9198_v11, %v677_v61  ;;  %v1002_v61 = vld [vmem:[%s11942_s3 + $0x98] sm:$0xff] }
 0x438   :  { %v501_v43 = vmul.f32 %v499_v42, %v498_v41 }
 0x43a   :  { %503 = vrot.lane.b32.xlu1 %v501_v43, %s8834_s25 }
 0x4ac   :  { %v504_v3 = vpop.permute.xlu1 %503 }
 0x4ad   :  { %v506_v47 = vadd.f32 %v504_v3, %v500_v44 }
 0x4af   :  { %8541 = vtanh.f32 %v506_v47 }
 0x4b9   :  { %v8542_v50 = vpop.eup %8541 }
 0x4ba   :  { %v9219_v52 = vmul.f32 %v8542_v50, %v499_v42  ;;  %v828_v42 = vpop.permute.xlu0 %827  ;;  %v986_v50 = vld [vmem:[%s11942_s3 + $0x18] sm:$0xff] }
 0x4bb   :  { %v830_v44 = vsel %vm68_vm0, %v9158_v36, %v828_v42  ;;  %v983_v36 = vld [vmem:[%s11942_s3] sm:$0xff]  ;;  %v1010_v42 = vld [vmem:[%s11942_s3 + $0xd8] sm:$0xff] }
 0x4bc   :  { %v529_v53 = vsel %vm70_vm1, %v528_v51, %v9219_v52  ;;  %v8114_v51 = vpack.c.bf16 %v986_v50, %v984_v48  ;;  %v1012_v48 = vld [vmem:[%s11942_s3 + $0xe8] sm:$0xff]  ;;  %v1014_v50 = vld [vmem:[%s11942_s3 + $0xf8] sm:$0xff] }
 0x4bd   :  { %639 = vmatmul.mubr.f32.vlgmr.msra.gmra.mrb[2].mxu1 %v529_v53  ;;  %v985_v53 = vld [vmem:[%s11942_s3 + $0x10] sm:$0xff] }
 0x4be   :  { %8085 = vmatpush1.bf16.msra.mxu1 %v8929_v8  ;;  %940 = vmatprep.mubr.f32.mxu1 %v11952_v7  ;;  %v562_v8 = vld [vmem:[%s11943_s4] sm:$0x3] }
 0x4bf   :  { %8087 = vmatprep.subr.bf16.mxu1 %v8942_v12  ;;  %v567_v12 = vrot.slane %v562_v8, %v9106_v57  ;;  %8115 = vmatprep.subr.bf16.mxu0 %v8114_v51 }
 0x4c2   :  { %8089 = vmatpush1.bf16.msra.mxu1 %v8952_v15  ;;  %v571_v15 = vrot.slane %v562_v8, %v9113_v60  ;;  %v988_v8 = vld [vmem:[%s11942_s3 + $0x28] sm:$0xff] }
 0x4c3   :  { %8091 = vmatprep.subr.bf16.mxu1 %v8956_v16 }
 0x4c6   :  { %8093 = vmatpush1.bf16.msra.mxu1 %v8972_v21 }
 0x4c7   :  { %8095 = vmatprep.subr.bf16.mxu1 %v8976_v22 }
 0x4ca   :  { %8097 = vmatpush1.bf16.msra.mxu1 %v8992_v27 }
 0x4cb   :  { %8099 = vmatprep.subr.bf16.mxu1 %v8996_v28 }
 0x4ce   :  { %8101 = vmatpush1.bf16.msra.mxu1 %v9012_v33 }
 0x4cf   :  { %8103 = vmatprep.subr.bf16.mxu1 %v9016_v34 }
 0x4d2   :  { %8105 = vmatpush1.bf16.msra.mxu1 %v9032_v39 }
 0x4d3   :  { %8107 = vmatprep.subr.bf16.mxu1 %v9036_v40 }
 0x4d6   :  { %8109 = vmatpush1.bf16.msra.mxu1 %v9052_v45 }
 0x4d7   :  { %8111 = vmatprep.subr.bf16.mxu1 %v9056_v46 }
 0x4da   :  { %8113 = vmatpush1.bf16.msra.mxu1 %v9066_v49 }
 0x4db   :  { %8147 = vmatprep.subr.bf16.mxu1 %v8114_v51 }
 0x590   :  { %v640_v16 = vpop.f32.mrb[2].mxu1 }
 0x591   :  { %v641_v21 = vadd.f32 %v640_v16, %v567_v12  ;;  %v642_v22 = vpop.f32.mrb[3].mxu1  ;;  %v990_v12 = vld [vmem:[%s11942_s3 + $0x38] sm:$0xff] }
 0x592   :  { %v643_v27 = vadd.f32 %v642_v22, %v571_v15  ;;  %v8116_v15 = vpack.c.bf16 %v985_v53, %v983_v36  ;;  %v8118_v16 = vpack.c.bf16 %v990_v12, %v988_v8  ;;  %v989_v22 = vld [vmem:[%s11942_s3 + $0x30] sm:$0xff]  ;;  %v8142_v53 = vpack.c.bf16 %v1014_v50, %v1012_v48  ;;  %v1011_v8 = vld [vmem:[%s11942_s3 + $0xe0] sm:$0xff] }
 0x593   :  { %v645_v28 = vmul.f32 0.5, %v641_v21  ;;  %v987_v21 = vld [vmem:[%s11942_s3 + $0x20] sm:$0xff]  ;;  %v1013_v12 = vld [vmem:[%s11942_s3 + $0xf0] sm:$0xff] }
 0x594   :  { %v646_v33 = vmul.f32 %v643_v27, %v9118_v2  ;;  %v992_v27 = vld [vmem:[%s11942_s3 + $0x48] sm:$0xff] }
 0x595   :  { %8543 = vtanh.f32 %v645_v28  ;;  %v994_v28 = vld [vmem:[%s11942_s3 + $0x58] sm:$0xff] }
 0x596   :  { %8545 = vtanh.f32 %v646_v33  ;;  %v8120_v33 = vpack.c.bf16 %v989_v22, %v987_v21 }
 0x59f   :  { %v8544_v34 = vpop.eup %8543 }
 0x5a0   :  { %v8546_v39 = vpop.eup %8545  ;;  %v649_v40 = vmul.f32 0.5, %v8544_v34  ;;  %v8122_v34 = vpack.c.bf16 %v994_v28, %v992_v27  ;;  %v8144_v27 = vpack.c.bf16 %v1013_v12, %v1011_v8 }
 0x5a1   :  { %v650_v45 = vmul.f32 %v8546_v39, %v9118_v2  ;;  %v991_v39 = vld [vmem:[%s11942_s3 + $0x40] sm:$0xff] }
 0x5a2   :  { %v651_v46 = vadd.f32 0.5, %v649_v40  ;;  %v993_v40 = vld [vmem:[%s11942_s3 + $0x50] sm:$0xff] }
 0x5a3   :  { %v652_v49 = vadd.f32 %v650_v45, %v9122_v14  ;;  %v996_v45 = vld [vmem:[%s11942_s3 + $0x68] sm:$0xff] }
 0x5a4   :  { %v653_v54 = vmul.f32 %v651_v46, %v506_v47 }
 0x5a5   :  { %v654_v26 = vmul.f32 %v652_v49, %v651_v46  ;;  %v998_v46 = vld [vmem:[%s11942_s3 + $0x78] sm:$0xff] }
 0x5a7   :  { %656 = vrot.lane.b32.xlu1 %v654_v26, %s8834_s25  ;;  %v8126_v26 = vpack.c.bf16 %v998_v46, %v996_v45  ;;  %v7057_v46 = vld [vmem:[%s11939_s0 + $0x30] sm:$0xff] }
 0x619   :  { %v657_v58 = vpop.permute.xlu1 %656 }
 0x61a   :  { %v659_v59 = vadd.f32 %v657_v58, %v653_v54  ;;  %v995_v54 = vld [vmem:[%s11942_s3 + $0x60] sm:$0xff]  ;;  %v997_v58 = vld [vmem:[%s11942_s3 + $0x70] sm:$0xff] }
 0x61c   :  { %8547 = vtanh.f32 %v659_v59 }
 0x626   :  { %v8548_v62 = vpop.eup %8547 }
 0x627   :  { %v9250_v0 = vmul.f32 %v8548_v62, %v652_v49  ;;  %v8124_v49 = vpack.c.bf16 %v993_v40, %v991_v39  ;;  %v8128_v62 = vpack.c.bf16 %v997_v58, %v995_v54  ;;  %v1305_v54 = vld [vmem:[%s11944_s5 + $0x8] sm:$0xff] }
 0x629   :  { %v680_v4 = vsel %vm70_vm1, %v679_v63, %v9250_v0 }
 0x62a   :  { %790 = vmatmul.mubr.f32.vlgmr.msra.gmra.mrb[4].mxu0 %v680_v4  ;;  %v864_v4 = vld [vmem:[%s11943_s4] sm:$0x3] }
 0x62b   :  { %1091 = vmatprep.mubr.f32.mxu0 %v11952_v7  ;;  %8117 = vmatpush1.bf16.msra.mxu0 %v8116_v15  ;;  %v869_v5 = vrot.slane %v864_v4, %v9106_v57 }
 0x62c   :  { %8119 = vmatprep.subr.bf16.mxu0 %v8118_v16 }
 0x62f   :  { %8121 = vmatpush1.bf16.msra.mxu0 %v8120_v33 }
 0x630   :  { %8123 = vmatprep.subr.bf16.mxu0 %v8122_v34 }
 0x633   :  { %8125 = vmatpush1.bf16.msra.mxu0 %v8124_v49 }
 0x634   :  { %8127 = vmatprep.subr.bf16.mxu0 %v8126_v26 }
 0x637   :  { %8129 = vmatpush1.bf16.msra.mxu0 %v8128_v62 }
 0x6fd   :  { %v791_v13 = vpop.f32.mrb[4].mxu0 }
 0x6fe   :  { %v792_v17 = vadd.f32 %v791_v13, %v718_v6  ;;  %v793_v18 = vpop.f32.mrb[5].mxu0  ;;  %v873_v6 = vrot.slane %v864_v4, %v9113_v60 }
 0x6ff   :  { %v794_v11 = vadd.f32 %v793_v18, %v722_v10 }
 0x700   :  { %v796_v19 = vmul.f32 0.5, %v792_v17 }
 0x701   :  { %v797_v20 = vmul.f32 %v794_v11, %v9118_v2 }
 0x702   :  { %8549 = vtanh.f32 %v796_v19 }
 0x703   :  { %8551 = vtanh.f32 %v797_v20  ;;  %v999_v20 = vld [vmem:[%s11942_s3 + $0x80] sm:$0xff] }
 0x70c   :  { %v8550_v23 = vpop.eup %8549 }
 0x70d   :  { %v8552_v24 = vpop.eup %8551  ;;  %v800_v25 = vmul.f32 0.5, %v8550_v23  ;;  %v1001_v23 = vld [vmem:[%s11942_s3 + $0x90] sm:$0xff] }
 0x70e   :  { %v801_v29 = vmul.f32 %v8552_v24, %v9118_v2  ;;  %v8132_v24 = vpack.c.bf16 %v1001_v23, %v999_v20  ;;  %v9437_v23 = vld [vmem:[%s11939_s0] sm:$0xff] }
 0x70f   :  { %v802_v30 = vadd.f32 0.5, %v800_v25  ;;  %v1004_v25 = vld [vmem:[%s11942_s3 + $0xa8] sm:$0xff]  ;;  %1129 = vrot.lane.b32.xlu0 %v9437_v23, %s8831_s27 }
 0x710   :  { %v803_v31 = vadd.f32 %v801_v29, %v9122_v14  ;;  %v1006_v29 = vld [vmem:[%s11942_s3 + $0xb8] sm:$0xff] }
 0x711   :  { %v804_v37 = vmul.f32 %v802_v30, %v659_v59  ;;  %v1000_v59 = vld [vmem:[%s11942_s3 + $0x88] sm:$0xff] }
 0x712   :  { %v805_v35 = vmul.f32 %v803_v31, %v802_v30  ;;  %v8130_v63 = vpack.c.bf16 %v1002_v61, %v1000_v59  ;;  %v8134_v30 = vpack.c.bf16 %v1006_v29, %v1004_v25 }
 0x714   :  { %807 = vrot.lane.b32.xlu1 %v805_v35, %s8834_s25  ;;  %8131 = vmatprep.subr.bf16.mxu0 %v8130_v63  ;;  %v1005_v35 = vld [vmem:[%s11942_s3 + $0xb0] sm:$0xff] }
 0x715   :  { %8133 = vmatpush1.bf16.msra.mxu0 %v8132_v24 }
 0x716   :  { %8135 = vmatprep.subr.bf16.mxu0 %v8134_v30 }
 0x786   :  { %v808_v38 = vpop.permute.xlu1 %807 }
 0x787   :  { %v9264_v41 = vadd.f32 %v808_v38, %v804_v37  ;;  %v1008_v38 = vld [vmem:[%s11942_s3 + $0xc8] sm:$0xff] }
 0x789   :  { %8553 = vtanh.f32 %v9264_v41 }
 0x793   :  { %v8554_v43 = vpop.eup %8553 }
 0x794   :  { %v9269_v3 = vmul.f32 %v8554_v43, %v803_v31  ;;  %v1003_v31 = vld [vmem:[%s11942_s3 + $0xa0] sm:$0xff] }
 0x795   :  { %v8136_v37 = vpack.c.bf16 %v1005_v35, %v1003_v31  ;;  %v1007_v43 = vld [vmem:[%s11942_s3 + $0xc0] sm:$0xff] }
 0x796   :  { %v831_v47 = vsel %vm70_vm1, %v830_v44, %v9269_v3  ;;  %v8138_v44 = vpack.c.bf16 %v1010_v42, %v1008_v38 }
 0x797   :  { %941 = vmatmul.mubr.f32.vlgmr.msra.gmra.mrb[4].mxu1 %v831_v47  ;;  %v1009_v47 = vld [vmem:[%s11942_s3 + $0xd0] sm:$0xff]  ;;  %8137 = vmatpush1.bf16.msra.mxu0 %v8136_v37 }
 0x798   :  { %1242 = vmatprep.mubr.f32.mxu1 %v11952_v7  ;;  %8149 = vmatpush1.bf16.msra.mxu1 %v8116_v15  ;;  %v8140_v36 = vpack.c.bf16 %v1009_v47, %v1007_v43 }
 0x799   :  { %8151 = vmatprep.subr.bf16.mxu1 %v8118_v16  ;;  %8139 = vmatprep.subr.bf16.mxu0 %v8138_v44 }
 0x79b   :  { %8141 = vmatpush1.bf16.msra.mxu0 %v8140_v36 }
 0x79c   :  { %8153 = vmatpush1.bf16.msra.mxu1 %v8120_v33  ;;  %8143 = vmatprep.subr.bf16.mxu0 %v8142_v53 }
 0x79d   :  { %8155 = vmatprep.subr.bf16.mxu1 %v8122_v34  ;;  %v11954_v34 = vmov 0.0|0.0  }
 0x79f   :  { %8145 = vmatpush1.bf16.msra.mxu0 %v8144_v27 }
 0x7a0   :  { %8157 = vmatpush1.bf16.msra.mxu1 %v8124_v49  ;;  %8178 = vmatprep.subr.bf16.mxu0 %v11954_v34  ;;  %v979_v49 = vpop.permute.xlu0 %978 }
 0x7a1   :  { %8159 = vmatprep.subr.bf16.mxu1 %v8126_v26  ;;  %v1304_v26 = vld [vmem:[%s11944_s5] sm:$0xff] }
 0x7a2   :  { %v8179_v61 = vpack.c.bf16 %v1305_v54, %v1304_v26  ;;  %v9480_v26 = vld [vmem:[%s11939_s0 + $0x38] sm:$0xff] }
 0x7a4   :  { %8161 = vmatpush1.bf16.msra.mxu1 %v8128_v62  ;;  %v1306_v62 = vld [vmem:[%s11944_s5 + $0x10] sm:$0xff]  ;;  %v1130_v54 = vpop.permute.xlu0 %1129 }
 0x7a5   :  { %8163 = vmatprep.subr.bf16.mxu1 %v8130_v63  ;;  %v1307_v63 = vld [vmem:[%s11944_s5 + $0x18] sm:$0xff] }
 0x7a8   :  { %8165 = vmatpush1.bf16.msra.mxu1 %v8132_v24  ;;  %v1015_v24 = vld [vmem:[%s11943_s4] sm:$0x3] }
 0x7a9   :  { %8167 = vmatprep.subr.bf16.mxu1 %v8134_v30  ;;  %v1020_v25 = vrot.slane %v1015_v24, %v9106_v57  ;;  %v1024_v29 = vrot.slane %v1015_v24, %v9113_v60 }
 0x7ac   :  { %8169 = vmatpush1.bf16.msra.mxu1 %v8136_v37 }
 0x7ad   :  { %8171 = vmatprep.subr.bf16.mxu1 %v8138_v44  ;;  %v9456_v44 = vld [vmem:[%s11945_s6] ss:$0 sm:$0xff] }
 0x7b0   :  { %8173 = vmatpush1.bf16.msra.mxu1 %v8140_v36  ;;  %v9461_v36 = vsel %vm9449_vm6, 1.0, %v8833_v1 }
 0x7b1   :  { %8175 = vmatprep.subr.bf16.mxu1 %v8142_v53 }
 0x7b4   :  { %8177 = vmatpush1.bf16.msra.mxu1 %v8144_v27 }
 0x7b5   :  { %8190 = vmatprep.subr.bf16.mxu1 %v11954_v34 }
 0x86a   :  { %v942_v10 = vpop.f32.mrb[4].mxu1 }
 0x86b   :  { %v943_v13 = vadd.f32 %v942_v10, %v869_v5  ;;  %v944_v17 = vpop.f32.mrb[5].mxu1  ;;  %v8182_v5 = vpack.c.bf16 %v1307_v63, %v1306_v62  ;;  %v1309_v10 = vld [vmem:[%s11944_s5 + $0x28] sm:$0xff] }
 0x86c   :  { %v945_v18 = vadd.f32 %v944_v17, %v873_v6  ;;  %v1308_v6 = vld [vmem:[%s11944_s5 + $0x20] sm:$0xff]  ;;  %v1310_v17 = vld [vmem:[%s11944_s5 + $0x30] sm:$0xff] }
 0x86d   :  { %v947_v11 = vmul.f32 0.5, %v943_v13  ;;  %v8185_v13 = vpack.c.bf16 %v1309_v10, %v1308_v6  ;;  %v1166_v10 = vld [vmem:[%s11943_s4] sm:$0x3] }
 0x86e   :  { %v948_v19 = vmul.f32 %v945_v18, %v9118_v2  ;;  %v1311_v18 = vld [vmem:[%s11944_s5 + $0x38] sm:$0xff] }
 0x86f   :  { %8555 = vtanh.f32 %v947_v11  ;;  %v8188_v11 = vpack.c.bf16 %v1311_v18, %v1310_v17  ;;  %v1175_v17 = vrot.slane %v1166_v10, %v9113_v60 }
 0x870   :  { %8557 = vtanh.f32 %v948_v19  ;;  %v1302_v19 = vld [vmem:[%s11940_s1] sm:$0xff] }
 0x871   :  { %v1303_v20 = vsel %vm68_vm0, %v1302_v19, 0.0 }
 0x879   :  { %v8556_v51 = vpop.eup %8555 }
 0x87a   :  { %v8558_v15 = vpop.eup %8557  ;;  %v951_v16 = vmul.f32 0.5, %v8556_v51 }
 0x87b   :  { %v952_v21 = vmul.f32 %v8558_v15, %v9118_v2 }
 0x87c   :  { %v953_v22 = vadd.f32 0.5, %v951_v16 }
 0x87d   :  { %v954_v28 = vadd.f32 %v952_v21, %v9122_v14 }
 0x87e   :  { %v955_v39 = vmul.f32 %v953_v22, %v9264_v41  ;;  %v981_v41 = vsel %vm68_vm0, %v7057_v46, %v979_v49 }
 0x87f   :  { %v956_v33 = vmul.f32 %v954_v28, %v953_v22 }
 0x881   :  { %958 = vrot.lane.b32.xlu1 %v956_v33, %s8834_s25 }
 0x8f3   :  { %v959_v40 = vpop.permute.xlu1 %958 }
 0x8f4   :  { %v9382_v45 = vadd.f32 %v959_v40, %v955_v39 }
 0x8f6   :  { %8559 = vtanh.f32 %v9382_v45 }
 0x900   :  { %v8560_v58 = vpop.eup %8559 }
 0x901   :  { %v9395_v59 = vmul.f32 %v8560_v58, %v954_v28  ;;  %v9471_v28 = vsel %vm9449_vm6, 0.0, %v8833_v1 }
 0x903   :  { %v982_v4 = vsel %vm70_vm1, %v981_v41, %v9395_v59  ;;  %v1132_v41 = vsel %vm68_vm0, %v9480_v26, %v1130_v54 }
 0x904   :  { %1092 = vmatmul.mubr.f32.vlgmr.msra.gmra.mrb[6].mxu0 %v982_v4 }
 0x905   :  { %8180 = vmatpush3.bf16.msra.mxu0 %v8179_v61  ;;  %7394 = vmatprep.mubr.msk.f32.mxu0 %vm8836_vm3, %v11952_v7 }
 0x906   :  { %8181 = vmatprep.subr.bf16.mxu0 %v11954_v34 }
 0x909   :  { %8183 = vmatpush3.bf16.msra.mxu0 %v8182_v5 }
 0x90a   :  { %8184 = vmatprep.subr.bf16.mxu0 %v11954_v34 }
 0x90d   :  { %8186 = vmatpush3.bf16.msra.mxu0 %v8185_v13 }
 0x90e   :  { %8187 = vmatprep.subr.bf16.mxu0 %v11954_v34 }
 0x911   :  { %8189 = vmatpush3.bf16.msra.mxu0 %v8188_v11 }
 0x912   :  { %8220 = vmatprep.subr.bf16.mxu0 %v11954_v34 }
 0x914   :  { %7395 = vmatmul.mubr.msk.f32.vlgmr.msra.gmra.mrb[8].mxu0 %vm70_vm1, %v1303_v20 }
 0x915   :  { %8222 = vmatpush3.bf16.msra.mxu0 %v8179_v61  ;;  %7462 = vmatprep.mubr.msk.f32.mxu0 %vm8836_vm3, %v11952_v7 }
 0x916   :  { %8223 = vmatprep.subr.bf16.mxu0 %v11954_v34 }
 0x919   :  { %8225 = vmatpush3.bf16.msra.mxu0 %v8182_v5 }
 0x91a   :  { %8226 = vmatprep.subr.bf16.mxu0 %v11954_v34 }
 0x91d   :  { %8228 = vmatpush3.bf16.msra.mxu0 %v8185_v13  ;;  %v1171_v13 = vrot.slane %v1166_v10, %v9106_v57 }
 0x91e   :  { %8229 = vmatprep.subr.bf16.mxu0 %v11954_v34 }
 0x921   :  { %8231 = vmatpush3.bf16.msra.mxu0 %v8188_v11 }
 0x922   :  { %8238 = vmatprep.subr.bf16.mxu0 %v11954_v34 }
 0x9d7   :  { %v1093_v30 = vpop.f32.mrb[6].mxu0 }
 0x9d8   :  { %v1094_v31 = vadd.f32 %v1093_v30, %v1020_v25  ;;  %v1095_v35 = vpop.f32.mrb[7].mxu0  ;;  %v1414_v30 = vld [vmem:[%s11946_s7 + $0x8] sm:$0xff] }
 0x9d9   :  { %v1096_v37 = vadd.f32 %v1095_v35, %v1024_v29  ;;  %v1413_v29 = vld [vmem:[%s11946_s7] sm:$0xff]  ;;  %v1415_v35 = vld [vmem:[%s11946_s7 + $0x10] sm:$0xff] }
 0x9da   :  { %v1098_v38 = vmul.f32 0.5, %v1094_v31  ;;  %v9507_v31 = vpack.c.bf16 %v1414_v30, %v1413_v29 }
 0x9db   :  { %v1099_v42 = vmul.f32 %v1096_v37, %v9118_v2  ;;  %v1416_v37 = vld [vmem:[%s11946_s7 + $0x18] sm:$0xff] }
 0x9dc   :  { %8561 = vtanh.f32 %v1098_v38 }
 0x9dd   :  { %8563 = vtanh.f32 %v1099_v42  ;;  %v9517_v42 = vpack.c.bf16 %v1416_v37, %v1415_v35 }
 0x9e6   :  { %v8562_v47 = vpop.eup %8561 }
 0x9e7   :  { %v8564_v48 = vpop.eup %8563  ;;  %v1102_v50 = vmul.f32 0.5, %v8562_v47  ;;  %v1388_v51 = vpop.f32.mrb[8].mxu0 }
 0x9e8   :  { %v1389_v53 = vadd.f32 %v9456_v44, %v1388_v51  ;;  %v1103_v8 = vmul.f32 %v8564_v48, %v9118_v2  ;;  %v7396_v12 = vpop.f32.mrb[9].mxu0 }
 0x9e9   :  { %v1104_v15 = vadd.f32 0.5, %v1102_v50 }
 0x9ea   :  { %v1392_v16 = vmul.f32 %v1389_v53, %v9461_v36  ;;  %v1105_v21 = vadd.f32 %v1103_v8, %v9122_v14 }
 0x9eb   :  { %v1106_v40 = vmul.f32 %v1104_v15, %v9382_v45 }
 0x9ec   :  { %8565 = vtanh.f32 %v1392_v16  ;;  %v1107_v22 = vmul.f32 %v1105_v21, %v1104_v15 }
 0x9ee   :  { %1109 = vrot.lane.b32.xlu1 %v1107_v22, %s8834_s25 }
 0x9f6   :  { %v8566_v27 = vpop.eup %8565 }
 0x9f7   :  { %v1394_v33 = vmul.f32 %v8566_v27, %v9461_v36 }
 0x9f9   :  { %v1395_v39 = vadd.f32 %v1394_v33, %v9471_v28 }
 0x9fb   :  { %1398 = vrot.lane.b32.xlu1 %v1395_v39, %s8834_s25  ;;  %v1396_v63 = vmul.f32 0.0, %v1395_v39 }
 0xa60   :  { %v1110_v46 = vpop.permute.xlu1 %1109 }
 0xa61   :  { %v1112_v49 = vadd.f32 %v1110_v46, %v1106_v40 }
 0xa63   :  { %8567 = vtanh.f32 %v1112_v49 }
 0xa6d   :  { %v8568_v58 = vpop.eup %8567  ;;  %v1399_v1 = vpop.permute.xlu1 %1398 }
 0xa6e   :  { %v1401_v61 = vmul.f32 %v1399_v1, %v1395_v39  ;;  %v9484_v62 = vmul.f32 %v8568_v58, %v1105_v21 }
 0xa70   :  { %1403 = vrot.lane.b32.xlu0 %v1401_v61, %s8831_s27  ;;  %v1133_v45 = vsel %vm70_vm1, %v1132_v41, %v9484_v62 }
 0xa71   :  { %1243 = vmatmul.mubr.f32.vlgmr.msra.gmra.mrb[6].mxu1 %v1133_v45 }
 0xa72   :  { %7405 = vmatprep.mubr.msk.f32.mxu1 %vm8836_vm3, %v11952_v7  ;;  %8192 = vmatpush3.bf16.msra.mxu1 %v9507_v31 }
 0xa73   :  { %8193 = vmatprep.subr.bf16.mxu1 %v11954_v34 }
 0xa76   :  { %8195 = vmatpush3.bf16.msra.mxu1 %v9517_v42 }
 0xa77   :  { %8196 = vmatprep.subr.bf16.mxu1 %v11954_v34 }
 0xae2   :  { %v1404_v4 = vpop.permute.xlu0 %1403 }
 0xae3   :  { %v9491_v5 = vadd.f32 %v1404_v4, %v1396_v63 }
 0xae5   :  { %8569 = vtanh.f32 %v9491_v5 }
 0xaef   :  { %v8570_v6 = vpop.eup %8569 }
 0xaf0   :  { %1409 = vrot.lane.b32.xlu1 %v8570_v6, %s8834_s25 }
 0xb44   :  { %v1244_v18 = vpop.f32.mrb[6].mxu1 }
 0xb45   :  { %v1245_v11 = vadd.f32 %v1244_v18, %v1171_v13  ;;  %v1246_v19 = vpop.f32.mrb[7].mxu1 }
 0xb46   :  { %v1247_v20 = vadd.f32 %v1246_v19, %v1175_v17 }
 0xb47   :  { %v1249_v24 = vmul.f32 0.5, %v1245_v11 }
 0xb48   :  { %v1250_v25 = vmul.f32 %v1247_v20, %v9118_v2 }
 0xb49   :  { %8571 = vtanh.f32 %v1249_v24 }
 0xb4a   :  { %8573 = vtanh.f32 %v1250_v25 }
 0xb53   :  { %v8572_v38 = vpop.eup %8571 }
 0xb54   :  { %v8574_v43 = vpop.eup %8573  ;;  %v1253_v47 = vmul.f32 0.5, %v8572_v38 }
 0xb55   :  { %v1254_v48 = vmul.f32 %v8574_v43, %v9118_v2 }
 0xb56   :  { %v1255_v50 = vadd.f32 0.5, %v1253_v47 }
 0xb57   :  { %v1256_v51 = vadd.f32 %v1254_v48, %v9122_v14 }
 0xb58   :  { %v1257_v2 = vmul.f32 %v1255_v50, %v1112_v49 }
 0xb59   :  { %v1258_v53 = vmul.f32 %v1256_v51, %v1255_v50 }
 0xb5b   :  { %1260 = vrot.lane.b32.xlu1 %v1258_v53, %s8834_s25 }
 0xb5f   :  { %819 = vrot.lane.b32.xlu1 %v9269_v3, %s8831_s27 }
 0xb62   :  { %v1410_v8 = vpop.permute.xlu1 %1409 }
 0xb63   :  { %v9526_v12 = vmul.f32 %v1410_v8, %v1395_v39 }
 0xb65   :  { %1418 = vrot.lane.b32.xlu0 %v9526_v12, %s8831_s27 }
 0xb69   :  { %1121 = vrot.lane.b32.xlu0 %v9484_v62, %s8831_s27 }
 0xb6d   :  { %970 = vrot.lane.b32.xlu0 %v9395_v59, %s8831_s27 }
 0xb71   :  { %668 = vrot.lane.b32.xlu0 %v9250_v0, %s8831_s27 }
 0xb75   :  { %362 = vrot.lane.b32.xlu0 %v9175_v9, %s8831_s27 }
 0xbcd   :  { %v1261_v14 = vpop.permute.xlu1 %1260 }
 0xbce   :  { %v1263_v15 = vadd.f32 %v1261_v14, %v1257_v2 }
 0xbd0   :  { %8575 = vtanh.f32 %v1263_v15 }
 0xbd1   :  { %v820_v16 = vpop.permute.xlu1 %819 }
 0xbd2   :  { %823 = vst.msk [vmem:[#allocation3 + $0x18] sm:$0xff] %vm68_vm0, %v820_v16 }
 0xbd7   :  { %v9539_v21 = vpop.permute.xlu0 %1418 }
 0xbd8   :  { %7406 = vmatmul.mubr.msk.f32.vlgmr.msra.gmra.mrb[8].mxu1 %vm68_vm0, %v9539_v21 }
 0xbd9   :  { %7432 = vmatprep.mubr.msk.f32.mxu1 %vm8836_vm3, %v11952_v7  ;;  %v9562_v58 = vld [vmem:[#allocation3 + $0x18] sm:$0xff] }
 0xbda   :  { %v8576_v22 = vpop.eup %8575 }
 0xbdb   :  { %v1122_v27 = vpop.permute.xlu0 %1121  ;;  %v1265_v33 = vmul.f32 %v8576_v22, %v1256_v51 }
 0xbdc   :  { %1125 = vst.msk [vmem:[#allocation3 + $0x8] sm:$0xff] %vm68_vm0, %v1122_v27 }
 0xbdd   :  { %1272 = vrot.lane.b32.xlu1 %v1265_v33, %s8831_s27 }
 0xbdf   :  { %v971_v39 = vpop.permute.xlu0 %970 }
 0xbe0   :  { %974 = vst.msk [vmem:[#allocation3 + $0x10] sm:$0xff] %vm68_vm0, %v971_v39 }
 0xbe1   :  { %515 = vrot.lane.b32.xlu1 %v9219_v52, %s8831_s27 }
 0xbe3   :  { %v669_v40 = vpop.permute.xlu0 %668  ;;  %v9558_v54 = vld [vmem:[#allocation3 + $0x8] sm:$0xff] }
 0xbe4   :  { %672 = vst.msk [vmem:[#allocation3 + $0x20] sm:$0xff] %vm68_vm0, %v669_v40 }
 0xbe5   :  { %209 = vrot.lane.b32.xlu1 %v9134_v32, %s8831_s27 }
 0xbe7   :  { %v363_v46 = vpop.permute.xlu0 %362  ;;  %v9553_v49 = vld [vmem:[#allocation3 + $0x10] sm:$0xff] }
 0xbe8   :  { %366 = vst.msk [vmem:[#allocation3 + $0x30] sm:$0xff] %vm68_vm0, %v363_v46  ;;  %1536 = vrot.lane.b32.xlu0 %v9553_v49, %s8831_s27 }
 0xbe9   :  { %1534 = vrot.lane.b32.xlu1 %v9558_v54, %s8831_s27 }
 0xbeb   :  { %v9573_v63 = vld [vmem:[#allocation3 + $0x20] sm:$0xff] }
 0xbed   :  { %1538 = vrot.lane.b32.xlu1 %v9562_v58, %s8831_s27 }
 0xbef   :  { %v9581_v6 = vld [vmem:[#allocation3 + $0x30] sm:$0xff] }
 0xc4f   :  { %v1273_v1 = vpop.permute.xlu1 %1272 }
 0xc50   :  { %1275 = vst.msk [vmem:[#allocation3] sm:$0xff] %vm68_vm0, %v1273_v1 }
 0xc53   :  { %v516_v41 = vpop.permute.xlu1 %515 }
 0xc54   :  { %519 = vst.msk [vmem:[#allocation3 + $0x28] sm:$0xff] %vm68_vm0, %v516_v41 }
 0xc57   :  { %v210_v61 = vpop.permute.xlu1 %209  ;;  %v9568_v45 = vld [vmem:[#allocation3] sm:$0xff] }
 0xc58   :  { %213 = vst.msk [vmem:[#allocation3 + $0x38] sm:$0xff] %vm68_vm0, %v210_v61  ;;  %1532 = vrot.lane.b32.xlu0 %v9568_v45, %s8831_s27 }
 0xc5b   :  { %v9575_v4 = vld [vmem:[#allocation3 + $0x28] sm:$0xff] }
 0xc5c   :  { %1540 = vrot.lane.b32.xlu0 %v9573_v63, %s8831_s27  ;;  %1542 = vrot.lane.b32.xlu1 %v9575_v4, %s8831_s27 }
 0xc5f   :  { %v9583_v10 = vld [vmem:[#allocation3 + $0x38] sm:$0xff] }
 0xc60   :  { %1544 = vrot.lane.b32.xlu0 %v9581_v6, %s8831_s27  ;;  %1546 = vrot.lane.b32.xlu1 %v9583_v10, %s8831_s27 }
 0xc64   :  { %205 = vrot.lane.b32.xlu0 %v9134_v32, %s8834_s25  ;;  %357 = vrot.lane.b32.xlu1 %v9175_v9, %s8834_s25  ;;  %v9604_v32 = vpop.permute.xlu1 %1534  ;;  %v9606_v9 = vpop.permute.xlu0 %1536 }
 0xc65   :  { %12012 = vst [vmem:[#allocation8_spill] sm:$0xff] %v9606_v9 }
 0xc68   :  { %510 = vrot.lane.b32.xlu0 %v9219_v52, %s8834_s25  ;;  %663 = vrot.lane.b32.xlu1 %v9250_v0, %s8834_s25 }
 0xc6c   :  { %814 = vrot.lane.b32.xlu0 %v9269_v3, %s8834_s25  ;;  %965 = vrot.lane.b32.xlu1 %v9395_v59, %s8834_s25  ;;  %v9616_v59 = vpop.permute.xlu1 %1538 }
 0xc70   :  { %1116 = vrot.lane.b32.xlu0 %v9484_v62, %s8834_s25  ;;  %1267 = vrot.lane.b32.xlu1 %v1265_v33, %s8834_s25 }
 0xcab   :  { %v9608_v13 = vpop.f32.mrb[8].mxu1 }
 0xcac   :  { %v7407_v52 = vpop.f32.mrb[9].mxu1  ;;  %v1558_v0 = vmul.f32 %v9606_v9, %v9608_v13  ;;  %v1557_v3 = vmul.f32 %v9604_v32, %v9608_v13  ;;  %v1559_v62 = vmul.f32 %v9616_v59, %v9608_v13 }
 0xcae   :  { %1576 = vrot.lane.b32.xlu0 %v1558_v0, %s8837_s15  ;;  %1574 = vrot.lane.b32.xlu1 %v1557_v3, %s8837_s15 }
 0xcb2   :  { %1578 = vrot.lane.b32.xlu1 %v1559_v62, %s8837_s15 }
 0xcca   :  { %v9621_v17 = vpop.permute.xlu0 %1532 }
 0xccb   :  { %v1556_v18 = vmul.f32 %v9621_v17, %v9608_v13 }
 0xccd   :  { %1572 = vrot.lane.b32.xlu0 %v1556_v18, %s8837_s15 }
 0xcce   :  { %v9626_v11 = vpop.permute.xlu0 %1540  ;;  %v9628_v19 = vpop.permute.xlu1 %1542 }
 0xccf   :  { %12013 = vst [vmem:[#allocation9_spill] sm:$0xff] %v9626_v11  ;;  %12014 = vst [vmem:[#allocation10_spill] sm:$0xff] %v9628_v19  ;;  %v1560_v20 = vmul.f32 %v9626_v11, %v9608_v13  ;;  %v1561_v24 = vmul.f32 %v9628_v19, %v9608_v13 }
 0xcd1   :  { %1580 = vrot.lane.b32.xlu0 %v1560_v20, %s8837_s15  ;;  %1582 = vrot.lane.b32.xlu1 %v1561_v24, %s8837_s15 }
 0xcd2   :  { %v9636_v25 = vpop.permute.xlu0 %1544  ;;  %v9638_v29 = vpop.permute.xlu1 %1546 }
 0xcd3   :  { %12015 = vst [vmem:[#allocation11_spill] sm:$0xff] %v9636_v25  ;;  %12016 = vst [vmem:[#allocation12_spill] sm:$0xff] %v9638_v29  ;;  %v1562_v30 = vmul.f32 %v9636_v25, %v9608_v13  ;;  %v1563_v35 = vmul.f32 %v9638_v29, %v9608_v13 }
 0xcd5   :  { %1584 = vrot.lane.b32.xlu0 %v1562_v30, %s8837_s15  ;;  %1586 = vrot.lane.b32.xlu1 %v1563_v35, %s8837_s15 }
 0xcd6   :  { %v206_v37 = vpop.permute.xlu0 %205  ;;  %v358_v38 = vpop.permute.xlu1 %357 }
 0xcd7   :  { %208 = vst.msk [vmem:[#allocation2] sm:$0xff] %vm68_vm0, %v206_v37  ;;  %361 = vst.msk [vmem:[#allocation2 + $0x8] sm:$0xff] %vm68_vm0, %v358_v38 }
 0xcda   :  { %v511_v43 = vpop.permute.xlu0 %510  ;;  %v664_v47 = vpop.permute.xlu1 %663 }
 0xcdb   :  { %514 = vst.msk [vmem:[#allocation2 + $0x10] sm:$0xff] %vm68_vm0, %v511_v43  ;;  %667 = vst.msk [vmem:[#allocation2 + $0x18] sm:$0xff] %vm68_vm0, %v664_v47 }
 0xcde   :  { %v815_v48 = vpop.permute.xlu0 %814  ;;  %v966_v50 = vpop.permute.xlu1 %965  ;;  %v9654_v8 = vld [vmem:[#allocation2] sm:$0xff]  ;;  %v9658_v14 = vld [vmem:[#allocation2 + $0x8] sm:$0xff] }
 0xcdf   :  { %818 = vst.msk [vmem:[#allocation2 + $0x20] sm:$0xff] %vm68_vm0, %v815_v48  ;;  %969 = vst.msk [vmem:[#allocation2 + $0x28] sm:$0xff] %vm68_vm0, %v966_v50  ;;  %v1492_v2 = vmul.f32 %v9608_v13, %v9654_v8  ;;  %v1493_v16 = vmul.f32 %v9608_v13, %v9658_v14 }
 0xce1   :  { %v1500_v15 = vsel %vm68_vm0, %v1492_v2, 0.0  ;;  %v1503_v27 = vsel %vm68_vm0, %v1493_v16, 0.0 }
 0xce2   :  { %v1117_v51 = vpop.permute.xlu0 %1116  ;;  %v1268_v53 = vpop.permute.xlu1 %1267  ;;  %v9663_v22 = vld [vmem:[#allocation2 + $0x10] sm:$0xff]  ;;  %v9668_v39 = vld [vmem:[#allocation2 + $0x18] sm:$0xff] }
 0xce3   :  { %1120 = vst.msk [vmem:[#allocation2 + $0x30] sm:$0xff] %vm68_vm0, %v1117_v51  ;;  %1271 = vst.msk [vmem:[#allocation2 + $0x38] sm:$0xff] %vm68_vm0, %v1268_v53  ;;  %v1494_v33 = vmul.f32 %v9608_v13, %v9663_v22  ;;  %v1495_v46 = vmul.f32 %v9608_v13, %v9668_v39 }
 0xce5   :  { %v1506_v40 = vsel %vm68_vm0, %v1494_v33, 0.0  ;;  %v1509_v41 = vsel %vm68_vm0, %v1495_v46, 0.0 }
 0xce6   :  { %v9673_v1 = vld [vmem:[#allocation2 + $0x20] sm:$0xff]  ;;  %v9678_v52 = vld [vmem:[#allocation2 + $0x28] sm:$0xff] }
 0xce7   :  { %v1496_v61 = vmul.f32 %v9608_v13, %v9673_v1  ;;  %v1497_v3 = vmul.f32 %v9608_v13, %v9678_v52 }
 0xce9   :  { %v1512_v0 = vsel %vm68_vm0, %v1496_v61, 0.0  ;;  %v1515_v18 = vsel %vm68_vm0, %v1497_v3, 0.0 }
 0xcea   :  { %v9683_v62 = vld [vmem:[#allocation2 + $0x30] sm:$0xff]  ;;  %v9688_v24 = vld [vmem:[#allocation2 + $0x38] sm:$0xff] }
 0xceb   :  { %v1498_v20 = vmul.f32 %v9608_v13, %v9683_v62  ;;  %v1499_v35 = vmul.f32 %v9608_v13, %v9688_v24 }
 0xced   :  { %v1518_v30 = vsel %vm68_vm0, %v1498_v20, 0.0  ;;  %v1521_v37 = vsel %vm68_vm0, %v1499_v35, 0.0  ;;  %v7066_v35 = vld [vmem:[%s11940_s1 + $0x8] sm:$0xff] }
 0xcf4   :  { %1501 = vadd.xlane.f32.xlu0 %v1500_v15 }
 0xcf9   :  { %1504 = vadd.xlane.f32.xlu1 %v1503_v27 }
 0xcfd   :  { %1507 = vadd.xlane.f32.xlu1 %v1506_v40 }
 0xd01   :  { %1510 = vadd.xlane.f32.xlu1 %v1509_v41 }
 0xd05   :  { %1513 = vadd.xlane.f32.xlu1 %v1512_v0 }
 0xd09   :  { %1516 = vadd.xlane.f32.xlu1 %v1515_v18 }
 0xd0d   :  { %1519 = vadd.xlane.f32.xlu1 %v1518_v30 }
 0xd11   :  { %1522 = vadd.xlane.f32.xlu1 %v1521_v37 }
 0xd20   :  { %v1575_v38 = vpop.permute.xlu1 %1574  ;;  %v1577_v47 = vpop.permute.xlu0 %1576 }
 0xd21   :  { %v1599_v43 = vsel %vm68_vm0, %v1575_v38, 0.0  ;;  %v1602_v48 = vsel %vm68_vm0, %v1577_v47, 0.0 }
 0xd22   :  { %1600 = vadd.xlane.f32.xlu0 %v1599_v43  ;;  %2050 = vrot.lane.b32.xlu1 %v9526_v12, %s8834_s25 }
 0xd24   :  { %v1579_v50 = vpop.permute.xlu1 %1578 }
 0xd25   :  { %v1605_v51 = vsel %vm68_vm0, %v1579_v50, 0.0 }
 0xd26   :  { %1603 = vadd.xlane.f32.xlu0 %v1602_v48 }
 0xd2a   :  { %1606 = vadd.xlane.f32.xlu0 %v1605_v51 }
 0xd3f   :  { %v1573_v13 = vpop.permute.xlu0 %1572 }
 0xd40   :  { %v1596_v27 = vsel %vm68_vm0, %v1573_v13, 0.0 }
 0xd43   :  { %v1581_v53 = vpop.permute.xlu0 %1580  ;;  %v1583_v15 = vpop.permute.xlu1 %1582 }
 0xd44   :  { %v1608_v2 = vsel %vm68_vm0, %v1581_v53, 0.0  ;;  %v1611_v16 = vsel %vm68_vm0, %v1583_v15, 0.0  ;;  %v9713_v53 = vsub.s32 %v9103_v56, %v9101_v55 }
 0xd45   :  { %1609 = vadd.xlane.f32.xlu0 %v1608_v2 }
 0xd47   :  { %v1585_v33 = vpop.permute.xlu0 %1584  ;;  %v1587_v40 = vpop.permute.xlu1 %1586 }
 0xd48   :  { %v1614_v12 = vsel %vm68_vm0, %v1585_v33, 0.0  ;;  %v1617_v46 = vsel %vm68_vm0, %v1587_v40, 0.0 }
 0xd49   :  { %1612 = vadd.xlane.f32.xlu0 %v1611_v16 }
 0xd4d   :  { %1597 = vadd.xlane.f32.xlu0 %v1596_v27 }
 0xd51   :  { %1615 = vadd.xlane.f32.xlu0 %v1614_v12 }
 0xd55   :  { %1618 = vadd.xlane.f32.xlu0 %v1617_v46 }
 0xd81   :  { %v1502_v43 = vpop.xlane.xlu0 %1501 }
 0xd86   :  { %v1505_v41 = vpop.xlane.xlu1 %1504 }
 0xd8a   :  { %v1508_v61 = vpop.xlane.xlu1 %1507 }
 0xd8e   :  { %v1511_v0 = vpop.xlane.xlu1 %1510 }
 0xd92   :  { %v1514_v3 = vpop.xlane.xlu1 %1513 }
 0xd96   :  { %v1517_v18 = vpop.xlane.xlu1 %1516 }
 0xd9a   :  { %v1520_v20 = vpop.xlane.xlu1 %1519 }
 0xd9e   :  { %v1523_v30 = vpop.xlane.xlu1 %1522 }
 0xda2   :  { %v2051_v37 = vpop.permute.xlu1 %2050 }
 0xda3   :  { %v2053_v38 = vsel %vm68_vm0, %v7066_v35, %v2051_v37 }
 0xda4   :  { %7463 = vmatmul.mubr.msk.f32.vlgmr.msra.gmra.mrb[10].mxu0 %vm70_vm1, %v2053_v38 }
 0xda5   :  { %7500 = vmatprep.mubr.msk.f32.mxu0 %vm8836_vm3, %v11952_v7 }
 0xdaf   :  { %v1601_v47 = vpop.xlane.xlu0 %1600 }
 0xdb0   :  { %v1621_v2 = vadd.f32 %v1601_v47, %v1505_v41 }
 0xdb2   :  { %v1643_v40 = vrot.slane %v1621_v2, %v9713_v53 }
 0xdb3   :  { %v1604_v48 = vpop.xlane.xlu0 %1603 }
 0xdb4   :  { %v1622_v15 = vadd.f32 %v1604_v48, %v1508_v61 }
 0xdb6   :  { %v1647_v37 = vrot.slane %v1622_v15, %v9713_v53 }
 0xdb7   :  { %v1607_v50 = vpop.xlane.xlu0 %1606 }
 0xdb8   :  { %v1623_v27 = vadd.f32 %v1607_v50, %v1511_v0  ;;  %v9729_v50 = vld [vmem:[%s11941_s2] sm:$0xff] }
 0xdb9   :  { %vm1301_vm14 = vcmp.gt.f32.partialorder %v9729_v50, 0.5 }
 0xdba   :  { %v1651_v7 = vrot.slane %v1623_v27, %v9713_v53 }
 0xdd2   :  { %v1610_v51 = vpop.xlane.xlu0 %1609 }
 0xdd3   :  { %v1624_v12 = vadd.f32 %v1610_v51, %v1514_v3 }
 0xdd5   :  { %v1655_v0 = vrot.slane %v1624_v12, %v9713_v53 }
 0xdd6   :  { %v1613_v13 = vpop.xlane.xlu0 %1612 }
 0xdd7   :  { %v1625_v46 = vadd.f32 %v1613_v13, %v1517_v18 }
 0xdd9   :  { %v1659_v18 = vrot.slane %v1625_v46, %v9713_v53 }
 0xdda   :  { %v1598_v16 = vpop.xlane.xlu0 %1597 }
 0xddb   :  { %v1620_v33 = vadd.f32 %v1598_v16, %v1502_v43 }
 0xddd   :  { %v1639_v35 = vrot.slane %v1620_v33, %v9713_v53 }
 0xdde   :  { %v1616_v38 = vpop.xlane.xlu0 %1615 }
 0xddf   :  { %v1669_v41 = vsel %vm1668_vm7, %v1643_v40, %v1639_v35  ;;  %v1626_v61 = vadd.f32 %v1616_v38, %v1520_v20 }
 0xde0   :  { %v1671_v3 = vsel %vm1670_vm8, %v1647_v37, %v1669_v41 }
 0xde1   :  { %v1673_v43 = vsel %vm1672_vm9, %v1651_v7, %v1671_v3  ;;  %v1663_v47 = vrot.slane %v1626_v61, %v9713_v53 }
 0xde2   :  { %v1675_v48 = vsel %vm1674_vm10, %v1655_v0, %v1673_v43  ;;  %v1619_v51 = vpop.xlane.xlu0 %1618 }
 0xde3   :  { %v1677_v20 = vsel %vm1676_vm11, %v1659_v18, %v1675_v48  ;;  %v1627_v13 = vadd.f32 %v1619_v51, %v1523_v30 }
 0xde4   :  { %v1679_v7 = vsel %vm1678_vm12, %v1663_v47, %v1677_v20 }
 0xde5   :  { %v1667_v2 = vrot.slane %v1627_v13, %v9713_v53 }
 0xde7   :  { %v1681_v15 = vsel %vm1680_vm13, %v1667_v2, %v1679_v7 }
 0xde8   :  { %v1683_v16 = vsel %vm1301_vm14, %v1681_v15, -1e+09 }
 0xde9   :  { %v1685_v27 = vsel %vm1684_vm15, %v1683_v16, -inf }
 0xdea   :  { %v1686_v33 = vrot.slane %v1685_v27, 4 }
 0xdec   :  { %v1687_v12 = vmax.f32 %v1685_v27, %v1686_v33  ;;  %v9747_v27 = vsub.s32 2, %v9101_v55  ;;  %v9750_v33 = vsub.s32 3, %v9101_v55 }
 0xdee   :  { %v1688_v40 = vrot.slane %v1687_v12, 2 }
 0xdf0   :  { %v1689_v46 = vmax.f32 %v1687_v12, %v1688_v40 }
 0xdf2   :  { %v1690_v30 = vrot.slane %v1689_v46, 1 }
 0xdf4   :  { %v1691_v35 = vmax.f32 %v1689_v46, %v1690_v30  ;;  %v9755_v46 = vsub.s32 4, %v9101_v55  ;;  %v9758_v30 = vsub.s32 5, %v9101_v55 }
 0xdf6   :  { %v1692_v37 = vsub.f32 %v1683_v16, %v1691_v35  ;;  %12017 = vst [vmem:[#allocation13_spill] sm:$0xff] %v9755_v46  ;;  %12018 = vst [vmem:[#allocation14_spill] sm:$0xff] %v9758_v30 }
 0xdf8   :  { %v1693_v38 = vmul.f32 1.442695, %v1692_v37 }
 0xdfa   :  { %8577 = vpow2.f32 %v1693_v38  ;;  %v9763_v38 = vsub.s32 6, %v9101_v55 }
 0xdfc   :  { %12019 = vst [vmem:[#allocation15_spill] sm:$0xff] %v9763_v38 }
 0xe04   :  { %v8578_v41 = vpop.eup %8577 }
 0xe05   :  { %v1695_v61 = vsel %vm1684_vm15, %v8578_v41, 0.0 }
 0xe06   :  { %v1696_v0 = vrot.slane %v1695_v61, 4 }
 0xe08   :  { %v1697_v3 = vadd.f32 %v1696_v0, %v1695_v61 }
 0xe0a   :  { %v1698_v18 = vrot.slane %v1697_v3, 2 }
 0xe0c   :  { %v1699_v43 = vadd.f32 %v1698_v18, %v1697_v3  ;;  %v1843_v3 = vld [vmem:[%s11947_s8] sm:$0xff]  ;;  %v1844_v18 = vld [vmem:[%s11947_s8 + $0x8] sm:$0xff] }
 0xe0e   :  { %v1700_v47 = vrot.slane %v1699_v43, 1 }
 0xe10   :  { %v1701_v48 = vadd.f32 %v1700_v47, %v1699_v43  ;;  %v1845_v43 = vld [vmem:[%s11947_s8 + $0x10] sm:$0xff]  ;;  %v1846_v47 = vld [vmem:[%s11947_s8 + $0x18] sm:$0xff] }
 0xe12   :  { %8579 = vrcp.f32 %v1701_v48 }
 0xe1c   :  { %v8580_v51 = vpop.eup %8579 }
 0xe1d   :  { %v1703_v20 = vmul.f32 %v8580_v51, %v1701_v48  ;;  %v8200_v48 = vpack.c.bf16 %v1846_v47, %v1845_v43 }
 0xe1f   :  { %v1704_v13 = vsub.f32 2.0, %v1703_v20  ;;  %v1848_v20 = vld [vmem:[%s11947_s8 + $0x28] sm:$0xff] }
 0xe21   :  { %v1705_v2 = vmul.f32 %v8580_v51, %v1704_v13  ;;  %v1847_v51 = vld [vmem:[%s11947_s8 + $0x20] sm:$0xff] }
 0xe22   :  { %v8203_v13 = vpack.c.bf16 %v1848_v20, %v1847_v51 }
 0xe23   :  { %v1706_v7 = vmul.f32 %v8578_v41, %v1705_v2  ;;  %v9766_v41 = vsub.s32 7, %v9101_v55  ;;  %v8197_v55 = vpack.c.bf16 %v1844_v18, %v1843_v3  ;;  %v1849_v2 = vld [vmem:[%s11947_s8 + $0x30] sm:$0xff] }
 0xe25   :  { %2047 = vst.msk [vmem:[%s11951_s12] sm:$0xff] %vm1684_vm15, %v1706_v7  ;;  %v1717_v15 = vrot.slane %v1706_v7, %v9113_v60  ;;  %v1710_v16 = vrot.slane %v1706_v7, %v9106_v57  ;;  %v1724_v12 = vrot.slane %v1706_v7, %v9747_v27  ;;  %v1731_v40 = vrot.slane %v1706_v7, %v9750_v33 }
 0xe26   :  { %v1738_v35 = vrot.slane %v1706_v7, %v9755_v46  ;;  %v1745_v37 = vrot.slane %v1706_v7, %v9758_v30  ;;  %12020 = vst [vmem:[#allocation16_spill] sm:$0xff] %v9766_v41  ;;  %v1752_v61 = vrot.slane %v1706_v7, %v9763_v38  ;;  %v1759_v0 = vrot.slane %v1706_v7, %v9766_v41  ;;  %v1850_v7 = vld [vmem:[%s11947_s8 + $0x38] sm:$0xff] }
 0xe27   :  { %1719 = vbcast.lane.b32.xlu1 %v1717_v15, 256  ;;  %1712 = vbcast.lane.b32.xlu0 %v1710_v16, 256  ;;  %v8206_v15 = vpack.c.bf16 %v1850_v7, %v1849_v2  ;;  %v1851_v16 = vld [vmem:[%s11947_s8 + $0x40] sm:$0xff] }
 0xe28   :  { %8198 = vmatpush3.bf16.msra.mxu1 %v8197_v55  ;;  %8240 = vmatpush3.bf16.msra.mxu0 %v8197_v55 }
 0xe29   :  { %8199 = vmatprep.subr.bf16.mxu1 %v11954_v34  ;;  %8241 = vmatprep.subr.bf16.mxu0 %v11954_v34 }
 0xe2b   :  { %1726 = vbcast.lane.b32.xlu1 %v1724_v12, 256  ;;  %1733 = vbcast.lane.b32.xlu0 %v1731_v40, 256  ;;  %v1852_v12 = vld [vmem:[%s11947_s8 + $0x48] sm:$0xff] }
 0xe2c   :  { %8201 = vmatpush3.bf16.msra.mxu1 %v8200_v48  ;;  %8243 = vmatpush3.bf16.msra.mxu0 %v8200_v48  ;;  %v8209_v40 = vpack.c.bf16 %v1852_v12, %v1851_v16 }
 0xe2d   :  { %8202 = vmatprep.subr.bf16.mxu1 %v11954_v34  ;;  %8244 = vmatprep.subr.bf16.mxu0 %v11954_v34 }
 0xe2f   :  { %1740 = vbcast.lane.b32.xlu1 %v1738_v35, 256  ;;  %1747 = vbcast.lane.b32.xlu0 %v1745_v37, 256  ;;  %v1853_v35 = vld [vmem:[%s11947_s8 + $0x50] sm:$0xff]  ;;  %v1854_v37 = vld [vmem:[%s11947_s8 + $0x58] sm:$0xff] }
 0xe30   :  { %8204 = vmatpush3.bf16.msra.mxu1 %v8203_v13  ;;  %8246 = vmatpush3.bf16.msra.mxu0 %v8203_v13 }
 0xe31   :  { %8205 = vmatprep.subr.bf16.mxu1 %v11954_v34  ;;  %8247 = vmatprep.subr.bf16.mxu0 %v11954_v34 }
 0xe33   :  { %1754 = vbcast.lane.b32.xlu1 %v1752_v61, 256  ;;  %1761 = vbcast.lane.b32.xlu0 %v1759_v0, 256  ;;  %v8212_v61 = vpack.c.bf16 %v1854_v37, %v1853_v35 }
 0xe34   :  { %8207 = vmatpush3.bf16.msra.mxu1 %v8206_v15  ;;  %8249 = vmatpush3.bf16.msra.mxu0 %v8206_v15 }
 0xe35   :  { %8208 = vmatprep.subr.bf16.mxu1 %v11954_v34  ;;  %8250 = vmatprep.subr.bf16.mxu0 %v11954_v34 }
 0xe38   :  { %8210 = vmatpush3.bf16.msra.mxu1 %v8209_v40  ;;  %8252 = vmatpush3.bf16.msra.mxu0 %v8209_v40 }
 0xe39   :  { %8211 = vmatprep.subr.bf16.mxu1 %v11954_v34  ;;  %8253 = vmatprep.subr.bf16.mxu0 %v11954_v34 }
 0xe3c   :  { %8213 = vmatpush3.bf16.msra.mxu1 %v8212_v61  ;;  %8255 = vmatpush3.bf16.msra.mxu0 %v8212_v61 }
 0xe3d   :  { %8214 = vmatprep.subr.bf16.mxu1 %v11954_v34  ;;  %8274 = vmatprep.subr.bf16.mxu0 %v11954_v34 }
 0xe77   :  { %v2138_v0 = vpop.f32.mrb[10].mxu0 }
 0xe78   :  { %v7464_v3 = vpop.f32.mrb[11].mxu0  ;;  %v2139_v18 = vadd.f32 %v9456_v44, %v2138_v0 }
 0xe7a   :  { %v2142_v20 = vmul.f32 %v2139_v18, %v9461_v36 }
 0xe7c   :  { %8581 = vtanh.f32 %v2142_v20 }
 0xe99   :  { %v9819_v43 = vpop.permute.xlu0 %1712  ;;  %v9821_v55 = vpop.permute.xlu1 %1719 }
 0xe9a   :  { %v1763_v47 = vmul.f32 %v9819_v43, %v9654_v8  ;;  %v1786_v48 = vmul.f32 %v9819_v43, %v9568_v45  ;;  %v1764_v51 = vmul.f32 %v9821_v55, %v9658_v14  ;;  %v1787_v13 = vmul.f32 %v9821_v55, %v9558_v54 }
 0xe9c   :  { %v1771_v44 = vsel %vm68_vm0, %v1763_v47, 0.0  ;;  %v1794_v2 = vsel %vm68_vm0, %v1786_v48, 0.0  ;;  %v1772_v7 = vsel %vm68_vm0, %v1764_v51, 0.0  ;;  %v1795_v15 = vsel %vm68_vm0, %v1787_v13, 0.0 }
 0xe9d   :  { %v9836_v16 = vpop.permute.xlu0 %1733  ;;  %v1727_v12 = vpop.permute.xlu1 %1726  ;;  %v1773_v37 = vadd.f32 %v1772_v7, %v1771_v44  ;;  %v1796_v61 = vadd.f32 %v1795_v15, %v1794_v2 }
 0xe9e   :  { %v1766_v45 = vmul.f32 %v9836_v16, %v9668_v39  ;;  %v1789_v40 = vmul.f32 %v9836_v16, %v9562_v58  ;;  %v1765_v54 = vmul.f32 %v1727_v12, %v9663_v22  ;;  %v1788_v35 = vmul.f32 %v1727_v12, %v9553_v49 }
 0xea0   :  { %v1774_v0 = vsel %vm68_vm0, %v1765_v54, 0.0  ;;  %v1797_v3 = vsel %vm68_vm0, %v1788_v35, 0.0  ;;  %v1776_v48 = vsel %vm68_vm0, %v1766_v45, 0.0  ;;  %v1799_v13 = vsel %vm68_vm0, %v1789_v40, 0.0 }
 0xea1   :  { %v9846_v18 = vpop.permute.xlu0 %1747  ;;  %v1741_v47 = vpop.permute.xlu1 %1740  ;;  %v1775_v51 = vadd.f32 %v1774_v0, %v1773_v37  ;;  %v1798_v20 = vadd.f32 %v1797_v3, %v1796_v61 }
 0xea2   :  { %v1768_v58 = vmul.f32 %v9846_v18, %v9678_v52  ;;  %v1791_v49 = vmul.f32 %v9846_v18, %v9575_v4  ;;  %v1767_v44 = vmul.f32 %v1741_v47, %v9673_v1  ;;  %v1790_v2 = vmul.f32 %v1741_v47, %v9573_v63 }
 0xea3   :  { %v1777_v7 = vadd.f32 %v1776_v48, %v1775_v51  ;;  %v1800_v15 = vadd.f32 %v1799_v13, %v1798_v20  ;;  %v8582_v13 = vpop.eup %8581 }
 0xea4   :  { %v1778_v54 = vsel %vm68_vm0, %v1767_v44, 0.0  ;;  %v1801_v45 = vsel %vm68_vm0, %v1790_v2, 0.0  ;;  %v1780_v61 = vsel %vm68_vm0, %v1768_v58, 0.0  ;;  %v1803_v0 = vsel %vm68_vm0, %v1791_v49, 0.0 }
 0xea5   :  { %v1762_v35 = vpop.permute.xlu0 %1761  ;;  %v1755_v37 = vpop.permute.xlu1 %1754  ;;  %v1779_v40 = vadd.f32 %v1778_v54, %v1777_v7  ;;  %v1802_v3 = vadd.f32 %v1801_v45, %v1800_v15  ;;  %v9876_v45 = vld [vmem:[%s11939_s0 + $0x8] sm:$0xff] }
 0xea6   :  { %v1770_v4 = vmul.f32 %v1762_v35, %v9688_v24  ;;  %v1793_v34 = vmul.f32 %v1762_v35, %v9583_v10  ;;  %v1769_v63 = vmul.f32 %v1755_v37, %v9683_v62  ;;  %v1792_v48 = vmul.f32 %v1755_v37, %v9581_v6 }
 0xea7   :  { %v1804_v51 = vadd.f32 %v1803_v0, %v1802_v3  ;;  %v1781_v20 = vadd.f32 %v1780_v61, %v1779_v40  ;;  %v2144_v10 = vmul.f32 %v8582_v13, %v9461_v36  ;;  %v1810_v61 = vmul.f32 %v9821_v55, %v9876_v45  ;;  %v9899_v55 = vld [vmem:[%s11939_s0 + $0x18] sm:$0xff]  ;;  %v9905_v13 = vld [vmem:[%s11939_s0 + $0x20] sm:$0xff] }
 0xea8   :  { %v1805_v44 = vsel %vm68_vm0, %v1792_v48, 0.0  ;;  %v1782_v2 = vsel %vm68_vm0, %v1769_v63, 0.0  ;;  %v1807_v49 = vsel %vm68_vm0, %v1793_v34, 0.0  ;;  %v1784_v7 = vsel %vm68_vm0, %v1770_v4, 0.0  ;;  %v9881_v34 = vld [vmem:[%s11939_s0 + $0x10] sm:$0xff] }
 0xea9   :  { %v1806_v58 = vadd.f32 %v1805_v44, %v1804_v51  ;;  %v1783_v56 = vadd.f32 %v1782_v2, %v1781_v20  ;;  %v2145_v6 = vadd.f32 %v2144_v10, %v9471_v28  ;;  %v1811_v4 = vmul.f32 %v1727_v12, %v9881_v34  ;;  %v9921_v10 = vld [vmem:[%s11939_s0 + $0x30] sm:$0xff] }
 0xeaa   :  { %v1818_v51 = vsel %vm68_vm0, %v1810_v61, 0.0  ;;  %v1812_v44 = vmul.f32 %v9836_v16, %v9899_v55 }
 0xeab   :  { %v1808_v15 = vadd.f32 %v1807_v49, %v1806_v58  ;;  %v1785_v54 = vadd.f32 %v1784_v7, %v1783_v56  ;;  %v1809_v56 = vmul.f32 %v9819_v43, %v9437_v23  ;;  %v12021_v43 = vmov 0.0   ;;  %v9915_v7 = vld [vmem:[%s11939_s0 + $0x28] sm:$0xff] }
 0xeac   :  { %v1820_v12 = vsel %vm68_vm0, %v1811_v4, 0.0  ;;  %v1813_v58 = vmul.f32 %v1741_v47, %v9905_v13  ;;  %v1822_v49 = vsel %vm68_vm0, %v1812_v44, 0.0  ;;  %v1814_v16 = vmul.f32 %v9846_v18, %v9915_v7 }
 0xead   :  { %1838 = vrot.lane.b32.xlu0 %v1808_v15, %s8834_s25  ;;  %1834 = vrot.lane.b32.xlu1 %v1785_v54, %s8831_s27  ;;  %v1817_v48 = vsel %vm68_vm0, %v1809_v56, 0.0  ;;  %v1815_v47 = vmul.f32 %v1755_v37, %v9921_v10  ;;  %v2146_v18 = vmul.f32 %v2145_v6, %v9491_v5 }
 0xeae   :  { %v1819_v20 = vadd.f32 %v1818_v51, %v1817_v48  ;;  %v1824_v54 = vsel %vm68_vm0, %v1813_v58, 0.0  ;;  %v1826_v61 = vsel %vm68_vm0, %v1814_v16, 0.0  ;;  %v1959_v16 = vld [vmem:[%s11949_s10 + $0x8] sm:$0xff] }
 0xeb0   :  { %v1821_v2 = vadd.f32 %v1820_v12, %v1819_v20 }
 0xeb1   :  { %2148 = vrot.lane.b32.xlu1 %v2145_v6, %s8834_s25 }
 0xeb2   :  { %v1823_v15 = vadd.f32 %v1822_v49, %v1821_v2 }
 0xeb4   :  { %v1825_v56 = vadd.f32 %v1824_v54, %v1823_v15  ;;  %v1958_v54 = vld [vmem:[%s11949_s10] sm:$0xff] }
 0xf1f   :  { %v1839_v0 = vpop.permute.xlu0 %1838  ;;  %v1835_v40 = vpop.permute.xlu1 %1834 }
 0xf20   :  { %v1841_v3 = vsel %vm68_vm0, %v9539_v21, %v1835_v40  ;;  %v1828_v40 = vsel %vm68_vm0, %v1815_v47, 0.0  ;;  %v12022_v47 = vmov 0.0|0.0  }
 0xf21   :  { %v1842_v63 = vsel %vm70_vm1, %v1841_v3, %v1839_v0  ;;  %v1827_v0 = vadd.f32 %v1826_v61, %v1825_v56  ;;  %v1816_v3 = vmul.f32 %v9480_v26, %v1762_v35  ;;  %v9939_v26 = vld [vmem:[%s11948_s9] ss:$0 sm:$0xff]  ;;  %v8215_v56 = vpack.c.bf16 %v1959_v16, %v1958_v54  ;;  %v1961_v61 = vld [vmem:[%s11949_s10 + $0x18] sm:$0xff] }
 0xf22   :  { %7433 = vmatmul.mubr.msk.f32.vlgmr.msra.gmra.mrb[10].mxu1 %vm1862_vm2, %v1842_v63 }
 0xf23   :  { %v2149_v23 = vpop.permute.xlu1 %2148  ;;  %7443 = vmatprep.mubr.msk.f32.mxu1 %vm8836_vm3, %v12021_v43  ;;  %v1829_v4 = vadd.f32 %v1828_v40, %v1827_v0  ;;  %v1830_v63 = vsel %vm68_vm0, %v1816_v3, 0.0  ;;  %8216 = vmatpush3.bf16.msra.mxu1 %v8215_v56 }
 0xf24   :  { %v2151_v21 = vmul.f32 %v2149_v23, %v2145_v6  ;;  %8217 = vmatprep.subr.bf16.mxu1 %v12022_v47 }
 0xf25   :  { %v1831_v48 = vadd.f32 %v1830_v63, %v1829_v4 }
 0xf26   :  { %2153 = vrot.lane.b32.xlu0 %v2151_v21, %s8831_s27 }
 0xf27   :  { %v1937_v51 = vmul.f32 %v1831_v48, %v1831_v48 }
 0xf29   :  { %v1938_v23 = vsel %vm68_vm0, %v1937_v51, 0.0 }
 0xf45   :  { %1939 = vadd.xlane.f32.xlu0 %v1938_v23 }
 0xf98   :  { %v2154_v21 = vpop.permute.xlu0 %2153 }
 0xf99   :  { %v9932_v12 = vadd.f32 %v2154_v21, %v2146_v18 }
 0xf9b   :  { %8583 = vtanh.f32 %v9932_v12 }
 0xfa5   :  { %v8584_v37 = vpop.eup %8583 }
 0xfa6   :  { %2159 = vrot.lane.b32.xlu1 %v8584_v37, %s8834_s25 }
 0xfd2   :  { %v1940_v40 = vpop.xlane.xlu0 %1939 }
 0xfd3   :  { %vm1943_vm4 = vcmp.eq.f32.partialorder %v1940_v40, inf  ;;  %v1946_v18 = vand.u32 2147483648, %v1940_v40  ;;  %vm1945_vm5 = vcmp.eq.f32.partialorder %v1940_v40, 0.0 }
 0xff5   :  { %v1932_v35 = vpop.f32.mrb[10].mxu1 }
 0xff6   :  { %v1933_v20 = vadd.f32 %v9939_v26, %v1932_v35  ;;  %v7434_v44 = vpop.f32.mrb[11].mxu1 }
 0xff8   :  { %8585 = vtanh.f32 %v1933_v20 }
 0xff9   :  { %8587 = vrsqrt.f32 %v1940_v40 }
0x1002   :  { %v8586_v2 = vpop.eup %8585 }
0x1003   :  { %v1948_v5 = vmul.f32 %v8586_v2, %v8586_v2  ;;  %v8588_v3 = vpop.eup %8587 }
0x1004   :  { %v1942_v4 = vmul.f32 %v8588_v3, %v1940_v40 }
0x1005   :  { %v1949_v58 = vsel %vm68_vm0, %v1948_v5, 0.0 }
0x1006   :  { %1950 = vadd.xlane.f32.xlu1 %v1949_v58  ;;  %v1944_v23 = vsel %vm1943_vm4, %v1940_v40, %v1942_v4 }
0x1007   :  { %v1947_v21 = vsel %vm1945_vm5, %v1946_v18, %v1944_v23 }
0x1008   :  { %v1954_v37 = vmul.f32 0.2, %v1947_v21 }
0x100a   :  { %v1955_v35 = vmul.f32 %v8586_v2, %v1954_v37 }
0x1018   :  { %v2160_v49 = vpop.permute.xlu1 %2159 }
0x1019   :  { %v9943_v15 = vmul.f32 %v2160_v49, %v2145_v6  ;;  %v1960_v6 = vld [vmem:[%s11949_s10 + $0x10] sm:$0xff] }
0x101a   :  { %v8218_v0 = vpack.c.bf16 %v1961_v61, %v1960_v6 }
0x101b   :  { %2168 = vrot.lane.b32.xlu0 %v9943_v15, %s8831_s27 }
0x101c   :  { %8219 = vmatpush3.bf16.msra.mxu1 %v8218_v0 }
0x101d   :  { %8232 = vmatprep.subr.bf16.mxu1 %v12022_v47 }
0x108d   :  { %v9968_v58 = vpop.permute.xlu0 %2168 }
0x1093   :  { %v1951_v63 = vpop.xlane.xlu1 %1950 }
0x1094   :  { %v1952_v51 = vadd.f32 1e-08, %v1951_v63 }
0x1096   :  { %8589 = vrsqrt.f32 %v1952_v51 }
0x10a0   :  { %v8590_v20 = vpop.eup %8589 }
0x10a1   :  { %v1956_v44 = vmul.f32 %v8590_v20, %v1955_v35 }
0x10a3   :  { %v1957_v5 = vadd.f32 %v1956_v44, %v1831_v48 }
0x10a5   :  { %7444 = vmatmul.mubr.msk.f32.vlgmr.msra.gmra.mrb[12].mxu1 %vm68_vm0, %v1957_v5 }
0x10a6   :  { %8234 = vmatpush3.bf16.msra.mxu1 %v9507_v31  ;;  %7473 = vmatprep.mubr.msk.f32.mxu1 %vm8836_vm3, %v12021_v43 }
0x10a7   :  { %8235 = vmatprep.subr.bf16.mxu1 %v12022_v47 }
0x10aa   :  { %8237 = vmatpush3.bf16.msra.mxu1 %v9517_v42 }
0x10ab   :  { %8256 = vmatprep.subr.bf16.mxu1 %v12022_v47 }
0x10ad   :  { %7474 = vmatmul.mubr.msk.f32.vlgmr.msra.gmra.mrb[14].mxu1 %vm68_vm0, %v9968_v58 }
0x10ae   :  { %8258 = vmatpush3.bf16.msra.mxu1 %v8215_v56  ;;  %7511 = vmatprep.mubr.msk.f32.mxu1 %vm8836_vm3, %v12021_v43 }
0x10af   :  { %8259 = vmatprep.subr.bf16.mxu1 %v12022_v47 }
0x10b2   :  { %8261 = vmatpush3.bf16.msra.mxu1 %v8218_v0 }
0x10b3   :  { %8262 = vmatprep.subr.bf16.mxu1 %v12022_v47 }
0x1178   :  { %v9976_v31 = vpop.f32.mrb[12].mxu1 }
0x1179   :  { %12023 = vst [vmem:[#allocation17_spill] sm:$0xff] %v9976_v31  ;;  %v7445_v48 = vpop.f32.mrb[13].mxu1 }
0x1180   :  { %v2238_v42 = vpop.f32.mrb[14].mxu1 }
0x1181   :  { %v7475_v2 = vpop.f32.mrb[15].mxu1  ;;  %v2275_v49 = vmul.f32 %v2238_v42, %v9604_v32  ;;  %v2274_v54 = vmul.f32 %v2238_v42, %v9621_v17  ;;  %v2277_v16 = vmul.f32 %v2238_v42, %v9616_v59  ;;  %v2276_v56 = vmul.f32 %v2238_v42, %v9606_v9 }
0x1182   :  { %v2279_v6 = vmul.f32 %v2238_v42, %v9628_v19  ;;  %v2278_v61 = vmul.f32 %v2238_v42, %v9626_v11  ;;  %v2281_v0 = vmul.f32 %v2238_v42, %v9638_v29  ;;  %v2280_v40 = vmul.f32 %v2238_v42, %v9636_v25 }
0x1183   :  { %2292 = vrot.lane.b32.xlu0 %v2275_v49, %s8837_s15  ;;  %2290 = vrot.lane.b32.xlu1 %v2274_v54, %s8837_s15  ;;  %v2243_v3 = vmul.f32 %v2238_v42, %v9658_v14  ;;  %v2244_v63 = vmul.f32 %v2238_v42, %v9663_v22  ;;  %v2242_v51 = vmul.f32 %v2238_v42, %v9654_v8 }
0x1184   :  { %v2245_v18 = vmul.f32 %v2238_v42, %v9668_v39  ;;  %v2246_v35 = vmul.f32 %v2238_v42, %v9673_v1  ;;  %v2247_v22 = vmul.f32 %v2238_v42, %v9678_v52  ;;  %v2248_v48 = vmul.f32 %v2238_v42, %v9683_v62 }
0x1185   :  { %v2253_v4 = vsel %vm68_vm0, %v2243_v3, 0.0  ;;  %v2256_v23 = vsel %vm68_vm0, %v2244_v63, 0.0  ;;  %v2250_v21 = vsel %vm68_vm0, %v2242_v51, 0.0  ;;  %v2249_v52 = vmul.f32 %v2238_v42, %v9688_v24 }
0x1186   :  { %v2259_v37 = vsel %vm68_vm0, %v2245_v18, 0.0  ;;  %v2262_v14 = vsel %vm68_vm0, %v2246_v35, 0.0  ;;  %v2265_v8 = vsel %vm68_vm0, %v2247_v22, 0.0  ;;  %v2268_v2 = vsel %vm68_vm0, %v2248_v48, 0.0 }
0x1187   :  { %2296 = vrot.lane.b32.xlu0 %v2277_v16, %s8837_s15  ;;  %2294 = vrot.lane.b32.xlu1 %v2276_v56, %s8837_s15  ;;  %v2271_v16 = vsel %vm68_vm0, %v2249_v52, 0.0 }
0x118b   :  { %2300 = vrot.lane.b32.xlu0 %v2279_v6, %s8837_s15  ;;  %2298 = vrot.lane.b32.xlu1 %v2278_v61, %s8837_s15 }
0x118f   :  { %2304 = vrot.lane.b32.xlu0 %v2281_v0, %s8837_s15  ;;  %2302 = vrot.lane.b32.xlu1 %v2280_v40, %s8837_s15 }
0x11ae   :  { %2254 = vadd.xlane.f32.xlu0 %v2253_v4 }
0x11b2   :  { %2257 = vadd.xlane.f32.xlu0 %v2256_v23 }
0x11b3   :  { %2251 = vadd.xlane.f32.xlu1 %v2250_v21 }
0x11b6   :  { %2260 = vadd.xlane.f32.xlu0 %v2259_v37 }
0x11ba   :  { %2263 = vadd.xlane.f32.xlu0 %v2262_v14 }
0x11be   :  { %2266 = vadd.xlane.f32.xlu0 %v2265_v8 }
0x11f5   :  { %v2293_v20 = vpop.permute.xlu0 %2292  ;;  %v2291_v44 = vpop.permute.xlu1 %2290 }
0x11f6   :  { %v2314_v39 = vsel %vm68_vm0, %v2291_v44, 0.0  ;;  %v2317_v5 = vsel %vm68_vm0, %v2293_v20, 0.0 }
0x11f7   :  { %2315 = vadd.xlane.f32.xlu0 %v2314_v39  ;;  %2318 = vadd.xlane.f32.xlu1 %v2317_v5 }
0x11f9   :  { %v2295_v1 = vpop.permute.xlu1 %2294  ;;  %v2297_v54 = vpop.permute.xlu0 %2296 }
0x11fa   :  { %v2320_v49 = vsel %vm68_vm0, %v2295_v1, 0.0  ;;  %v2323_v56 = vsel %vm68_vm0, %v2297_v54, 0.0 }
0x11fb   :  { %2269 = vadd.xlane.f32.xlu0 %v2268_v2  ;;  %2321 = vadd.xlane.f32.xlu1 %v2320_v49 }
0x11fd   :  { %v2299_v6 = vpop.permute.xlu1 %2298  ;;  %v2301_v61 = vpop.permute.xlu0 %2300 }
0x11fe   :  { %v2326_v62 = vsel %vm68_vm0, %v2299_v6, 0.0  ;;  %v2329_v0 = vsel %vm68_vm0, %v2301_v61, 0.0 }
0x11ff   :  { %2272 = vadd.xlane.f32.xlu0 %v2271_v16  ;;  %2324 = vadd.xlane.f32.xlu1 %v2323_v56 }
0x1201   :  { %v2303_v40 = vpop.permute.xlu1 %2302  ;;  %v2305_v42 = vpop.permute.xlu0 %2304 }
0x1202   :  { %v2332_v24 = vsel %vm68_vm0, %v2303_v40, 0.0  ;;  %v2335_v3 = vsel %vm68_vm0, %v2305_v42, 0.0 }
0x1203   :  { %2327 = vadd.xlane.f32.xlu1 %v2326_v62 }
0x1207   :  { %2330 = vadd.xlane.f32.xlu1 %v2329_v0 }
0x120b   :  { %2333 = vadd.xlane.f32.xlu1 %v2332_v24 }
0x120f   :  { %2336 = vadd.xlane.f32.xlu1 %v2335_v3 }
0x123b   :  { %v2255_v4 = vpop.xlane.xlu0 %2254 }
0x123f   :  { %v2258_v63 = vpop.xlane.xlu0 %2257 }
0x1240   :  { %v2252_v51 = vpop.xlane.xlu1 %2251 }
0x1243   :  { %v2261_v23 = vpop.xlane.xlu0 %2260 }
0x1247   :  { %v2264_v21 = vpop.xlane.xlu0 %2263 }
0x124b   :  { %v2267_v35 = vpop.xlane.xlu0 %2266 }
0x1284   :  { %v2319_v18 = vpop.xlane.xlu1 %2318  ;;  %v2316_v22 = vpop.xlane.xlu0 %2315 }
0x1285   :  { %v2338_v20 = vadd.f32 %v2316_v22, %v2252_v51  ;;  %v2339_v44 = vadd.f32 %v2319_v18, %v2255_v4 }
0x1287   :  { %v2357_v49 = vrot.slane %v2338_v20, %v9713_v53  ;;  %v2361_v52 = vrot.slane %v2339_v44, %v9713_v53 }
0x1288   :  { %v2322_v37 = vpop.xlane.xlu1 %2321  ;;  %v2270_v1 = vpop.xlane.xlu0 %2269 }
0x1289   :  { %v2340_v39 = vadd.f32 %v2322_v37, %v2258_v63  ;;  %v2386_v0 = vsel %vm1668_vm7, %v2361_v52, %v2357_v49 }
0x128b   :  { %v2365_v16 = vrot.slane %v2340_v39, %v9713_v53 }
0x128c   :  { %v2325_v14 = vpop.xlane.xlu1 %2324  ;;  %v2273_v42 = vpop.xlane.xlu0 %2272 }
0x128d   :  { %v2341_v48 = vadd.f32 %v2325_v14, %v2261_v23  ;;  %v2387_v24 = vsel %vm1670_vm8, %v2365_v16, %v2386_v0 }
0x128f   :  { %v2369_v6 = vrot.slane %v2341_v48, %v9713_v53 }
0x1290   :  { %v2328_v8 = vpop.xlane.xlu1 %2327 }
0x1291   :  { %v2342_v2 = vadd.f32 %v2328_v8, %v2264_v21  ;;  %v2388_v63 = vsel %vm1672_vm9, %v2369_v6, %v2387_v24 }
0x1293   :  { %v2373_v61 = vrot.slane %v2342_v2, %v9713_v53 }
0x1294   :  { %v2331_v5 = vpop.xlane.xlu1 %2330 }
0x1295   :  { %v2343_v54 = vadd.f32 %v2331_v5, %v2267_v35  ;;  %v2389_v23 = vsel %vm1674_vm10, %v2373_v61, %v2388_v63 }
0x1297   :  { %v2377_v40 = vrot.slane %v2343_v54, %v9713_v53 }
0x1298   :  { %v2334_v56 = vpop.xlane.xlu1 %2333 }
0x1299   :  { %v2344_v62 = vadd.f32 %v2334_v56, %v2270_v1  ;;  %v2390_v18 = vsel %vm1676_vm11, %v2377_v40, %v2389_v23 }
0x129b   :  { %v2381_v3 = vrot.slane %v2344_v62, %v9713_v53 }
0x129c   :  { %v2337_v4 = vpop.xlane.xlu1 %2336 }
0x129d   :  { %v2345_v51 = vadd.f32 %v2337_v4, %v2273_v42  ;;  %v2391_v37 = vsel %vm1678_vm12, %v2381_v3, %v2390_v18 }
0x129f   :  { %v2385_v21 = vrot.slane %v2345_v51, %v9713_v53 }
0x12a1   :  { %v2392_v35 = vsel %vm1680_vm13, %v2385_v21, %v2391_v37 }
0x12a2   :  { %v2394_v14 = vsel %vm1301_vm14, %v2392_v35, -1e+09 }
0x12a3   :  { %v2395_v22 = vsel %vm1684_vm15, %v2394_v14, -inf }
0x12a4   :  { %v2396_v8 = vrot.slane %v2395_v22, 4 }
0x12a6   :  { %v2397_v20 = vmax.f32 %v2395_v22, %v2396_v8  ;;  %v10053_v8 = vld [vmem:[#allocation2 + $0x8] sm:$0xff] }
0x12a8   :  { %v2398_v44 = vrot.slane %v2397_v20, 2 }
0x12aa   :  { %v2399_v39 = vmax.f32 %v2397_v20, %v2398_v44  ;;  %v10057_v44 = vld [vmem:[#allocation3 + $0x8] sm:$0xff] }
0x12ab   :  { %12024 = vst [vmem:[#allocation18_spill] sm:$0xff] %v10057_v44 }
0x12ac   :  { %v2400_v5 = vrot.slane %v2399_v39, 1 }
0x12ae   :  { %v2401_v48 = vmax.f32 %v2399_v39, %v2400_v5  ;;  %v10061_v5 = vld [vmem:[#allocation2] sm:$0xff] }
0x12b0   :  { %v2402_v1 = vsub.f32 %v2394_v14, %v2401_v48 }
0x12b2   :  { %v2403_v2 = vmul.f32 1.442695, %v2402_v1  ;;  %v10065_v1 = vld [vmem:[#allocation3] sm:$0xff] }
0x12b3   :  { %12025 = vst [vmem:[#allocation19_spill] sm:$0xff] %v10065_v1 }
0x12b4   :  { %8591 = vpow2.f32 %v2403_v2 }
0x12be   :  { %v8592_v49 = vpop.eup %8591 }
0x12bf   :  { %v2405_v52 = vsel %vm1684_vm15, %v8592_v49, 0.0 }
0x12c0   :  { %v2406_v54 = vrot.slane %v2405_v52, 4 }
0x12c2   :  { %v2407_v16 = vadd.f32 %v2406_v54, %v2405_v52 }
0x12c4   :  { %v2408_v56 = vrot.slane %v2407_v16, 2 }
0x12c6   :  { %v2409_v6 = vadd.f32 %v2408_v56, %v2407_v16 }
0x12c8   :  { %v2410_v62 = vrot.slane %v2409_v6, 1 }
0x12ca   :  { %v2411_v61 = vadd.f32 %v2410_v62, %v2409_v6  ;;  %v10075_v62 = vld [vmem:[#allocation2 + $0x10] sm:$0xff] }
0x12cc   :  { %8593 = vrcp.f32 %v2411_v61 }
0x12d6   :  { %v8594_v0 = vpop.eup %8593 }
0x12d7   :  { %v2413_v40 = vmul.f32 %v8594_v0, %v2411_v61 }
0x12d9   :  { %v2414_v24 = vsub.f32 2.0, %v2413_v40 }
0x12db   :  { %v2415_v42 = vmul.f32 %v8594_v0, %v2414_v24  ;;  %v10078_v0 = vld [vmem:[#allocation3 + $0x10] sm:$0xff] }
0x12dc   :  { %12026 = vst [vmem:[#allocation20_spill] sm:$0xff] %v10078_v0 }
0x12dd   :  { %v2416_v3 = vmul.f32 %v8592_v49, %v2415_v42 }
0x12df   :  { %7073 = vst.msk [vmem:[%s11951_s12 + $0x8] sm:$0xff] %vm1684_vm15, %v2416_v3  ;;  %v2427_v4 = vrot.slane %v2416_v3, %v9113_v60  ;;  %v2420_v63 = vrot.slane %v2416_v3, %v9106_v57  ;;  %v2434_v51 = vrot.slane %v2416_v3, %v9747_v27  ;;  %v2441_v23 = vrot.slane %v2416_v3, %v9750_v33 }
0x12e0   :  { %v2448_v18 = vrot.slane %v2416_v3, %v9755_v46  ;;  %v2455_v21 = vrot.slane %v2416_v3, %v9758_v30  ;;  %v2462_v37 = vrot.slane %v2416_v3, %v9763_v38  ;;  %v2469_v35 = vrot.slane %v2416_v3, %v9766_v41  ;;  %v10081_v3 = vld [vmem:[#allocation2 + $0x18] sm:$0xff] }
0x12e1   :  { %2429 = vbcast.lane.b32.xlu1 %v2427_v4, 256  ;;  %2422 = vbcast.lane.b32.xlu0 %v2420_v63, 256  ;;  %v10085_v63 = vld [vmem:[#allocation3 + $0x18] sm:$0xff] }
0x12e2   :  { %12027 = vst [vmem:[#allocation21_spill] sm:$0xff] %v10085_v63 }
0x12e5   :  { %2436 = vbcast.lane.b32.xlu1 %v2434_v51, 256  ;;  %2443 = vbcast.lane.b32.xlu0 %v2441_v23, 256 }
0x12e9   :  { %2450 = vbcast.lane.b32.xlu1 %v2448_v18, 256  ;;  %2457 = vbcast.lane.b32.xlu0 %v2455_v21, 256 }
0x12ed   :  { %2464 = vbcast.lane.b32.xlu1 %v2462_v37, 256  ;;  %2471 = vbcast.lane.b32.xlu0 %v2469_v35, 256 }
0x1353   :  { %v10049_v14 = vpop.permute.xlu1 %2429  ;;  %v10051_v22 = vpop.permute.xlu0 %2422 }
0x1354   :  { %v2474_v20 = vmul.f32 %v10053_v8, %v10049_v14  ;;  %v2497_v39 = vmul.f32 %v10057_v44, %v10049_v14  ;;  %v2473_v48 = vmul.f32 %v10061_v5, %v10051_v22  ;;  %v2496_v2 = vmul.f32 %v10065_v1, %v10051_v22 }
0x1356   :  { %v2482_v49 = vsel %vm68_vm0, %v2474_v20, 0.0  ;;  %v2505_v52 = vsel %vm68_vm0, %v2497_v39, 0.0  ;;  %v2481_v54 = vsel %vm68_vm0, %v2473_v48, 0.0  ;;  %v2504_v16 = vsel %vm68_vm0, %v2496_v2, 0.0  ;;  %v10093_v2 = vld [vmem:[#allocation2 + $0x20] sm:$0xff] }
0x1357   :  { %v2437_v56 = vpop.permute.xlu1 %2436  ;;  %v10073_v6 = vpop.permute.xlu0 %2443  ;;  %v2483_v24 = vadd.f32 %v2482_v49, %v2481_v54  ;;  %v2506_v42 = vadd.f32 %v2505_v52, %v2504_v16  ;;  %v10096_v16 = vld [vmem:[#allocation3 + $0x20] sm:$0xff] }
0x1358   :  { %v2475_v61 = vmul.f32 %v10075_v62, %v2437_v56  ;;  %v2498_v40 = vmul.f32 %v10078_v0, %v2437_v56  ;;  %v2476_v4 = vmul.f32 %v10081_v3, %v10073_v6  ;;  %v2499_v51 = vmul.f32 %v10085_v63, %v10073_v6  ;;  %12028 = vst [vmem:[#allocation22_spill] sm:$0xff] %v10096_v16  ;;  %v10112_v0 = vld [vmem:[#allocation3 + $0x30] sm:$0xff] }
0x1359   :  { %12030 = vst [vmem:[#allocation24_spill] sm:$0xff] %v10112_v0 }
0x135a   :  { %v2484_v23 = vsel %vm68_vm0, %v2475_v61, 0.0  ;;  %v2507_v18 = vsel %vm68_vm0, %v2498_v40, 0.0  ;;  %v2486_v39 = vsel %vm68_vm0, %v2476_v4, 0.0  ;;  %v2509_v48 = vsel %vm68_vm0, %v2499_v51, 0.0 }
0x135b   :  { %v2485_v21 = vadd.f32 %v2484_v23, %v2483_v24  ;;  %v2508_v37 = vadd.f32 %v2507_v18, %v2506_v42  ;;  %v2451_v35 = vpop.permute.xlu1 %2450  ;;  %v2458_v20 = vpop.permute.xlu0 %2457  ;;  %v10100_v24 = vld [vmem:[#allocation2 + $0x28] sm:$0xff] }
0x135c   :  { %v2477_v49 = vmul.f32 %v10093_v2, %v2451_v35  ;;  %v2500_v61 = vmul.f32 %v10096_v16, %v2451_v35  ;;  %v2478_v42 = vmul.f32 %v10100_v24, %v2458_v20  ;;  %v10103_v23 = vld [vmem:[#allocation3 + $0x28] sm:$0xff] }
0x135d   :  { %v2487_v52 = vadd.f32 %v2486_v39, %v2485_v21  ;;  %v2510_v54 = vadd.f32 %v2509_v48, %v2508_v37  ;;  %12029 = vst [vmem:[#allocation23_spill] sm:$0xff] %v10103_v23  ;;  %v2501_v4 = vmul.f32 %v10103_v23, %v2458_v20 }
0x135e   :  { %v2488_v40 = vsel %vm68_vm0, %v2477_v49, 0.0  ;;  %v2511_v18 = vsel %vm68_vm0, %v2500_v61, 0.0  ;;  %v2490_v39 = vsel %vm68_vm0, %v2478_v42, 0.0  ;;  %v10109_v49 = vld [vmem:[#allocation2 + $0x30] sm:$0xff]  ;;  %v10120_v42 = vld [vmem:[#allocation3 + $0x38] sm:$0xff] }
0x135f   :  { %v2489_v51 = vadd.f32 %v2488_v40, %v2487_v52  ;;  %v2465_v31 = vpop.permute.xlu1 %2464  ;;  %v2472_v21 = vpop.permute.xlu0 %2471  ;;  %v2512_v37 = vadd.f32 %v2511_v18, %v2510_v54  ;;  %v2513_v63 = vsel %vm68_vm0, %v2501_v4, 0.0  ;;  %v10115_v52 = vld [vmem:[#allocation2 + $0x38] sm:$0xff] }
0x1360   :  { %v2479_v16 = vmul.f32 %v10109_v49, %v2465_v31  ;;  %v2502_v1 = vmul.f32 %v10112_v0, %v2465_v31  ;;  %v2480_v61 = vmul.f32 %v10115_v52, %v2472_v21  ;;  %v2503_v4 = vmul.f32 %v10120_v42, %v2472_v21 }
0x1361   :  { %v2491_v48 = vadd.f32 %v2490_v39, %v2489_v51  ;;  %v2514_v23 = vadd.f32 %v2513_v63, %v2512_v37  ;;  %v2520_v63 = vmul.f32 %v10049_v14, %v9876_v45  ;;  %v10130_v37 = vld [vmem:[%s11939_s0] sm:$0xff] }
0x1362   :  { %v2492_v54 = vsel %vm68_vm0, %v2479_v16, 0.0  ;;  %v2515_v40 = vsel %vm68_vm0, %v2502_v1, 0.0  ;;  %v2494_v39 = vsel %vm68_vm0, %v2480_v61, 0.0  ;;  %v2517_v44 = vsel %vm68_vm0, %v2503_v4, 0.0 }
0x1363   :  { %v2493_v51 = vadd.f32 %v2492_v54, %v2491_v48  ;;  %v2516_v18 = vadd.f32 %v2515_v40, %v2514_v23  ;;  %v2519_v1 = vmul.f32 %v10130_v37, %v10051_v22  ;;  %v2521_v48 = vmul.f32 %v2437_v56, %v9881_v34 }
0x1364   :  { %v2528_v23 = vsel %vm68_vm0, %v2520_v63, 0.0  ;;  %v2522_v54 = vmul.f32 %v10073_v6, %v9899_v55  ;;  %v2523_v22 = vmul.f32 %v2451_v35, %v9905_v13  ;;  %v10152_v55 = vld [vmem:[%s11939_s0 + $0x38] sm:$0xff] }
0x1365   :  { %v2518_v16 = vadd.f32 %v2517_v44, %v2516_v18  ;;  %v2495_v0 = vadd.f32 %v2494_v39, %v2493_v51  ;;  %v2527_v45 = vsel %vm68_vm0, %v2519_v1, 0.0  ;;  %v2530_v14 = vsel %vm68_vm0, %v2521_v48, 0.0 }
0x1366   :  { %v2529_v61 = vadd.f32 %v2528_v23, %v2527_v45  ;;  %v2532_v44 = vsel %vm68_vm0, %v2522_v54, 0.0  ;;  %v2534_v56 = vsel %vm68_vm0, %v2523_v22, 0.0  ;;  %v2525_v51 = vmul.f32 %v2465_v31, %v9921_v10 }
0x1367   :  { %2548 = vrot.lane.b32.xlu0 %v2518_v16, %s8834_s25  ;;  %2544 = vrot.lane.b32.xlu1 %v2495_v0, %s8831_s27  ;;  %v2524_v0 = vmul.f32 %v2458_v20, %v9915_v7  ;;  %v2526_v13 = vmul.f32 %v10152_v55, %v2472_v21 }
0x1368   :  { %v2531_v40 = vadd.f32 %v2530_v14, %v2529_v61  ;;  %v2538_v63 = vsel %vm68_vm0, %v2525_v51, 0.0 }
0x1369   :  { %v2536_v18 = vsel %vm68_vm0, %v2524_v0, 0.0  ;;  %v2540_v35 = vsel %vm68_vm0, %v2526_v13, 0.0 }
0x136a   :  { %v2533_v34 = vadd.f32 %v2532_v44, %v2531_v40 }
0x136c   :  { %v2535_v4 = vadd.f32 %v2534_v56, %v2533_v34 }
0x136e   :  { %v2537_v39 = vadd.f32 %v2536_v18, %v2535_v4  ;;  %v2765_v18 = vld [vmem:[%s11944_s5] sm:$0xff] }
0x1370   :  { %v2539_v6 = vadd.f32 %v2538_v63, %v2537_v39 }
0x1372   :  { %v2541_v1 = vadd.f32 %v2540_v35, %v2539_v6  ;;  %v2767_v35 = vld [vmem:[%s11944_s5 + $0x10] sm:$0xff] }
0x1374   :  { %v2646_v7 = vmul.f32 %v2541_v1, %v2541_v1 }
0x1376   :  { %v2647_v20 = vsel %vm68_vm0, %v2646_v7, 0.0  ;;  %v2768_v7 = vld [vmem:[%s11944_s5 + $0x18] sm:$0xff] }
0x138b   :  { %2648 = vadd.xlane.f32.xlu1 %v2647_v20  ;;  %v10183_v20 = vpack.c.bf16 %v2768_v7, %v2767_v35  ;;  %v2876_v35 = vld [vmem:[%s11946_s7 + $0x10] sm:$0xff] }
0x13d9   :  { %v2549_v10 = vpop.permute.xlu0 %2548  ;;  %v2545_v31 = vpop.permute.xlu1 %2544 }
0x13da   :  { %v2551_v16 = vsel %vm68_vm0, %v9968_v58, %v2545_v31 }
0x13db   :  { %v2552_v48 = vsel %vm70_vm1, %v2551_v16, %v2549_v10  ;;  %v2770_v10 = vld [vmem:[%s11944_s5 + $0x28] sm:$0xff]  ;;  %v2771_v16 = vld [vmem:[%s11944_s5 + $0x30] sm:$0xff] }
0x13dc   :  { %7501 = vmatmul.mubr.msk.f32.vlgmr.msra.gmra.mrb[12].mxu0 %vm1862_vm2, %v2552_v48  ;;  %v2772_v48 = vld [vmem:[%s11944_s5 + $0x38] sm:$0xff] }
0x13dd   :  { %7541 = vmatprep.mubr.msk.f32.mxu0 %vm8836_vm3, %v12021_v43 }
0x1418   :  { %v2649_v58 = vpop.xlane.xlu1 %2648 }
0x1419   :  { %vm2652_vm6 = vcmp.eq.f32.partialorder %v2649_v58, inf  ;;  %vm2654_vm4 = vcmp.eq.f32.partialorder %v2649_v58, 0.0 }
0x14af   :  { %v2641_v21 = vpop.f32.mrb[12].mxu0 }
0x14b0   :  { %v2642_v23 = vadd.f32 %v9939_v26, %v2641_v21  ;;  %v7502_v45 = vpop.f32.mrb[13].mxu0  ;;  %v2655_v26 = vand.u32 2147483648, %v2649_v58  ;;  %v10205_v21 = vpack.c.bf16 %v2772_v48, %v2771_v16 }
0x14b2   :  { %8595 = vtanh.f32 %v2642_v23  ;;  %v7074_v23 = vld [vmem:[%s11940_s1 + $0x10] sm:$0xff] }
0x14b3   :  { %8597 = vrsqrt.f32 %v2649_v58 }
0x14bc   :  { %v8596_v14 = vpop.eup %8595 }
0x14bd   :  { %v2657_v61 = vmul.f32 %v8596_v14, %v8596_v14  ;;  %v8598_v40 = vpop.eup %8597 }
0x14be   :  { %v2651_v22 = vmul.f32 %v8598_v40, %v2649_v58 }
0x14bf   :  { %v2658_v54 = vsel %vm68_vm0, %v2657_v61, 0.0 }
0x14c0   :  { %2659 = vadd.xlane.f32.xlu0 %v2658_v54  ;;  %v2653_v56 = vsel %vm2652_vm6, %v2649_v58, %v2651_v22  ;;  %v10222_v58 = vld [vmem:[%s11945_s6] ss:$0 sm:$0xff] }
0x14c1   :  { %v2656_v0 = vsel %vm2654_vm4, %v2655_v26, %v2653_v56 }
0x14c2   :  { %v2663_v4 = vmul.f32 0.2, %v2656_v0 }
0x14c4   :  { %v2664_v51 = vmul.f32 %v8596_v14, %v2663_v4 }
0x14d6   :  { %2761 = vrot.lane.b32.xlu0 %v9943_v15, %s8834_s25  ;;  %v2766_v15 = vld [vmem:[%s11944_s5 + $0x8] sm:$0xff] }
0x14d7   :  { %v10173_v13 = vpack.c.bf16 %v2766_v15, %v2765_v18 }
0x154d   :  { %v2660_v44 = vpop.xlane.xlu0 %2659 }
0x154e   :  { %v2661_v34 = vadd.f32 1e-08, %v2660_v44 }
0x1550   :  { %8599 = vrsqrt.f32 %v2661_v34 }
0x1551   :  { %v2762_v45 = vpop.permute.xlu0 %2761 }
0x1552   :  { %v2764_v14 = vsel %vm68_vm0, %v7074_v23, %v2762_v45 }
0x155a   :  { %v8600_v39 = vpop.eup %8599 }
0x155b   :  { %v2665_v63 = vmul.f32 %v8600_v39, %v2664_v51 }
0x155d   :  { %v2666_v6 = vadd.f32 %v2665_v63, %v2541_v1  ;;  %v2769_v1 = vld [vmem:[%s11944_s5 + $0x20] sm:$0xff] }
0x155e   :  { %v10195_v31 = vpack.c.bf16 %v2770_v10, %v2769_v1  ;;  %v2874_v63 = vld [vmem:[%s11946_s7] sm:$0xff] }
0x155f   :  { %7512 = vmatmul.mubr.msk.f32.vlgmr.msra.gmra.mrb[16].mxu1 %vm68_vm0, %v2666_v6  ;;  %v2875_v6 = vld [vmem:[%s11946_s7 + $0x8] sm:$0xff] }
0x1560   :  { %8264 = vmatpush3.bf16.msra.mxu1 %v10173_v13  ;;  %7530 = vmatprep.mubr.msk.f32.mxu1 %vm8836_vm3, %v12021_v43  ;;  %v10243_v7 = vpack.c.bf16 %v2875_v6, %v2874_v63 }
0x1561   :  { %8265 = vmatprep.subr.bf16.mxu1 %v12022_v47 }
0x1562   :  { %8276 = vmatpush3.bf16.msra.mxu0 %v10243_v7 }
0x1563   :  { %8277 = vmatprep.subr.bf16.mxu0 %v12022_v47 }
0x1564   :  { %8267 = vmatpush3.bf16.msra.mxu1 %v10183_v20 }
0x1565   :  { %8268 = vmatprep.subr.bf16.mxu1 %v12022_v47 }
0x1568   :  { %8270 = vmatpush3.bf16.msra.mxu1 %v10195_v31 }
0x1569   :  { %8271 = vmatprep.subr.bf16.mxu1 %v12022_v47 }
0x156c   :  { %8273 = vmatpush3.bf16.msra.mxu1 %v10205_v21 }
0x156d   :  { %8280 = vmatprep.subr.bf16.mxu1 %v12022_v47 }
0x156f   :  { %7531 = vmatmul.mubr.msk.f32.vlgmr.msra.gmra.mrb[18].mxu1 %vm70_vm1, %v2764_v14 }
0x1570   :  { %7568 = vmatprep.mubr.msk.f32.mxu1 %vm8836_vm3, %v12021_v43 }
0x1632   :  { %v10217_v61 = vpop.f32.mrb[16].mxu1 }
0x1633   :  { %12031 = vst [vmem:[#allocation25_spill] sm:$0xff] %v10217_v61  ;;  %v7513_v54 = vpop.f32.mrb[17].mxu1 }
0x1642   :  { %v2849_v40 = vpop.f32.mrb[18].mxu1 }
0x1643   :  { %v2850_v22 = vadd.f32 %v10222_v58, %v2849_v40  ;;  %v7532_v44 = vpop.f32.mrb[19].mxu1 }
0x1645   :  { %v2853_v34 = vmul.f32 %v2850_v22, %v9461_v36 }
0x1647   :  { %8601 = vtanh.f32 %v2853_v34 }
0x1651   :  { %v8602_v56 = vpop.eup %8601 }
0x1652   :  { %v2855_v26 = vmul.f32 %v8602_v56, %v9461_v36 }
0x1654   :  { %v2856_v0 = vadd.f32 %v2855_v26, %v9471_v28 }
0x1656   :  { %2859 = vrot.lane.b32.xlu1 %v2856_v0, %s8834_s25  ;;  %v2857_v18 = vmul.f32 %v2856_v0, %v9932_v12  ;;  %v2877_v12 = vld [vmem:[%s11946_s7 + $0x18] sm:$0xff] }
0x1657   :  { %v10249_v1 = vpack.c.bf16 %v2877_v12, %v2876_v35 }
0x1659   :  { %8279 = vmatpush3.bf16.msra.mxu0 %v10249_v1 }
0x165a   :  { %8298 = vmatprep.subr.bf16.mxu0 %v12022_v47 }
0x16c8   :  { %v2860_v4 = vpop.permute.xlu1 %2859 }
0x16c9   :  { %v2862_v51 = vmul.f32 %v2860_v4, %v2856_v0 }
0x16cb   :  { %2864 = vrot.lane.b32.xlu1 %v2862_v51, %s8831_s27 }
0x173d   :  { %v2865_v15 = vpop.permute.xlu1 %2864 }
0x173e   :  { %v10231_v39 = vadd.f32 %v2865_v15, %v2857_v18 }
0x1740   :  { %8603 = vtanh.f32 %v10231_v39 }
0x174a   :  { %v8604_v10 = vpop.eup %8603 }
0x174b   :  { %2870 = vrot.lane.b32.xlu0 %v8604_v10, %s8834_s25 }
0x17bd   :  { %v2871_v16 = vpop.permute.xlu0 %2870 }
0x17be   :  { %v10255_v48 = vmul.f32 %v2871_v16, %v2856_v0 }
0x17c0   :  { %2879 = vrot.lane.b32.xlu1 %v10255_v48, %s8831_s27 }
0x1832   :  { %v10259_v23 = vpop.permute.xlu1 %2879 }
0x1833   :  { %7542 = vmatmul.mubr.msk.f32.vlgmr.msra.gmra.mrb[14].mxu0 %vm68_vm0, %v10259_v23 }
0x1834   :  { %7579 = vmatprep.mubr.msk.f32.mxu0 %vm8836_vm3, %v12021_v43 }
0x1906   :  { %v2949_v45 = vpop.f32.mrb[14].mxu0 }
0x1907   :  { %v7543_v14 = vpop.f32.mrb[15].mxu0  ;;  %v2986_v54 = vmul.f32 %v2949_v45, %v9604_v32  ;;  %v2985_v40 = vmul.f32 %v2949_v45, %v9621_v17  ;;  %v2988_v22 = vmul.f32 %v2949_v45, %v9616_v59  ;;  %v2987_v44 = vmul.f32 %v2949_v45, %v9606_v9 }
0x1908   :  { %v2990_v34 = vmul.f32 %v2949_v45, %v9628_v19  ;;  %v2989_v56 = vmul.f32 %v2949_v45, %v9626_v11  ;;  %v2992_v26 = vmul.f32 %v2949_v45, %v9638_v29  ;;  %v2991_v0 = vmul.f32 %v2949_v45, %v9636_v25 }
0x1909   :  { %3003 = vrot.lane.b32.xlu1 %v2986_v54, %s8837_s15  ;;  %3001 = vrot.lane.b32.xlu0 %v2985_v40, %s8837_s15  ;;  %v2953_v4 = vmul.f32 %v10061_v5, %v2949_v45  ;;  %v2954_v18 = vmul.f32 %v10053_v8, %v2949_v45  ;;  %v2955_v63 = vmul.f32 %v10075_v62, %v2949_v45 }
0x190a   :  { %v2956_v35 = vmul.f32 %v10081_v3, %v2949_v45  ;;  %v2957_v10 = vmul.f32 %v10093_v2, %v2949_v45  ;;  %v2958_v14 = vmul.f32 %v10100_v24, %v2949_v45  ;;  %v2959_v40 = vmul.f32 %v10109_v49, %v2949_v45 }
0x190b   :  { %v2961_v51 = vsel %vm68_vm0, %v2953_v4, 0.0  ;;  %v2964_v15 = vsel %vm68_vm0, %v2954_v18, 0.0  ;;  %v2967_v6 = vsel %vm68_vm0, %v2955_v63, 0.0 }
0x190c   :  { %v2970_v12 = vsel %vm68_vm0, %v2956_v35, 0.0  ;;  %v2973_v16 = vsel %vm68_vm0, %v2957_v10, 0.0  ;;  %v2976_v54 = vsel %vm68_vm0, %v2958_v14, 0.0 }
0x190d   :  { %3007 = vrot.lane.b32.xlu1 %v2988_v22, %s8837_s15  ;;  %3005 = vrot.lane.b32.xlu0 %v2987_v44, %s8837_s15  ;;  %v2979_v22 = vsel %vm68_vm0, %v2959_v40, 0.0  ;;  %v2960_v44 = vmul.f32 %v10115_v52, %v2949_v45 }
0x1911   :  { %3011 = vrot.lane.b32.xlu1 %v2990_v34, %s8837_s15  ;;  %3009 = vrot.lane.b32.xlu0 %v2989_v56, %s8837_s15  ;;  %v2982_v34 = vsel %vm68_vm0, %v2960_v44, 0.0 }
0x1915   :  { %3015 = vrot.lane.b32.xlu1 %v2992_v26, %s8837_s15  ;;  %3013 = vrot.lane.b32.xlu0 %v2991_v0, %s8837_s15 }
0x1934   :  { %2962 = vadd.xlane.f32.xlu0 %v2961_v51 }
0x1939   :  { %2965 = vadd.xlane.f32.xlu1 %v2964_v15 }
0x193d   :  { %2968 = vadd.xlane.f32.xlu1 %v2967_v6 }
0x1941   :  { %2971 = vadd.xlane.f32.xlu1 %v2970_v12 }
0x1945   :  { %2974 = vadd.xlane.f32.xlu1 %v2973_v16 }
0x1949   :  { %2977 = vadd.xlane.f32.xlu1 %v2976_v54 }
0x194d   :  { %2980 = vadd.xlane.f32.xlu1 %v2979_v22 }
0x1951   :  { %2983 = vadd.xlane.f32.xlu1 %v2982_v34 }
0x197b   :  { %v3002_v56 = vpop.permute.xlu0 %3001  ;;  %v3004_v0 = vpop.permute.xlu1 %3003 }
0x197c   :  { %v3025_v26 = vsel %vm68_vm0, %v3002_v56, 0.0  ;;  %v3028_v4 = vsel %vm68_vm0, %v3004_v0, 0.0 }
0x197d   :  { %3026 = vadd.xlane.f32.xlu0 %v3025_v26 }
0x197f   :  { %v3006_v51 = vpop.permute.xlu0 %3005  ;;  %v3008_v15 = vpop.permute.xlu1 %3007 }
0x1980   :  { %v3031_v18 = vsel %vm68_vm0, %v3006_v51, 0.0  ;;  %v3034_v63 = vsel %vm68_vm0, %v3008_v15, 0.0 }
0x1981   :  { %3029 = vadd.xlane.f32.xlu0 %v3028_v4 }
0x1983   :  { %v3010_v45 = vpop.permute.xlu0 %3009  ;;  %v3012_v35 = vpop.permute.xlu1 %3011 }
0x1984   :  { %v3037_v6 = vsel %vm68_vm0, %v3010_v45, 0.0  ;;  %v3040_v12 = vsel %vm68_vm0, %v3012_v35, 0.0 }
0x1985   :  { %3032 = vadd.xlane.f32.xlu0 %v3031_v18 }
0x1987   :  { %v3014_v10 = vpop.permute.xlu0 %3013  ;;  %v3016_v14 = vpop.permute.xlu1 %3015 }
0x1988   :  { %v3043_v16 = vsel %vm68_vm0, %v3014_v10, 0.0  ;;  %v3046_v54 = vsel %vm68_vm0, %v3016_v14, 0.0 }
0x1989   :  { %3035 = vadd.xlane.f32.xlu0 %v3034_v63 }
0x198d   :  { %3038 = vadd.xlane.f32.xlu0 %v3037_v6 }
0x1991   :  { %3041 = vadd.xlane.f32.xlu0 %v3040_v12 }
0x1995   :  { %3044 = vadd.xlane.f32.xlu0 %v3043_v16 }
0x1999   :  { %3047 = vadd.xlane.f32.xlu0 %v3046_v54 }
0x19c1   :  { %v2963_v22 = vpop.xlane.xlu0 %2962 }
0x19c6   :  { %v2966_v40 = vpop.xlane.xlu1 %2965 }
0x19ca   :  { %v2969_v44 = vpop.xlane.xlu1 %2968 }
0x19ce   :  { %v2972_v56 = vpop.xlane.xlu1 %2971 }
0x19d2   :  { %v2975_v4 = vpop.xlane.xlu1 %2974 }
0x19d6   :  { %v2978_v18 = vpop.xlane.xlu1 %2977 }
0x19da   :  { %v2981_v10 = vpop.xlane.xlu1 %2980 }
0x1a0a   :  { %v3027_v34 = vpop.xlane.xlu0 %3026 }
0x1a0b   :  { %v3049_v35 = vadd.f32 %v3027_v34, %v2963_v22 }
0x1a0d   :  { %v3068_v29 = vrot.slane %v3049_v35, %v9713_v53 }
0x1a0e   :  { %v3030_v26 = vpop.xlane.xlu0 %3029 }
0x1a0f   :  { %v3050_v63 = vadd.f32 %v3030_v26, %v2966_v40 }
0x1a11   :  { %v3072_v14 = vrot.slane %v3050_v63, %v9713_v53 }
0x1a12   :  { %v3033_v0 = vpop.xlane.xlu0 %3032 }
0x1a13   :  { %v3051_v45 = vadd.f32 %v3033_v0, %v2969_v44  ;;  %v3097_v40 = vsel %vm1668_vm7, %v3072_v14, %v3068_v29  ;;  %v2984_v44 = vpop.xlane.xlu1 %2983 }
0x1a15   :  { %v3076_v61 = vrot.slane %v3051_v45, %v9713_v53 }
0x1a16   :  { %v3036_v51 = vpop.xlane.xlu0 %3035 }
0x1a17   :  { %v3052_v12 = vadd.f32 %v3036_v51, %v2972_v56  ;;  %v3098_v34 = vsel %vm1670_vm8, %v3076_v61, %v3097_v40 }
0x1a19   :  { %v3080_v11 = vrot.slane %v3052_v12, %v9713_v53 }
0x1a1a   :  { %v3039_v15 = vpop.xlane.xlu0 %3038 }
0x1a1b   :  { %v3053_v16 = vadd.f32 %v3039_v15, %v2975_v4  ;;  %v3099_v0 = vsel %vm1672_vm9, %v3080_v11, %v3098_v34 }
0x1a1d   :  { %v3084_v9 = vrot.slane %v3053_v16, %v9713_v53 }
0x1a1e   :  { %v3042_v6 = vpop.xlane.xlu0 %3041 }
0x1a1f   :  { %v3054_v54 = vadd.f32 %v3042_v6, %v2978_v18  ;;  %v3100_v51 = vsel %vm1674_vm10, %v3084_v9, %v3099_v0 }
0x1a21   :  { %v3088_v22 = vrot.slane %v3054_v54, %v9713_v53 }
0x1a22   :  { %v3045_v25 = vpop.xlane.xlu0 %3044 }
0x1a23   :  { %v3055_v19 = vadd.f32 %v3045_v25, %v2981_v10  ;;  %v3101_v18 = vsel %vm1676_vm11, %v3088_v22, %v3100_v51 }
0x1a25   :  { %v3092_v56 = vrot.slane %v3055_v19, %v9713_v53 }
0x1a26   :  { %v3048_v26 = vpop.xlane.xlu0 %3047 }
0x1a27   :  { %v3056_v4 = vadd.f32 %v3048_v26, %v2984_v44  ;;  %v3102_v15 = vsel %vm1678_vm12, %v3092_v56, %v3101_v18 }
0x1a29   :  { %v3096_v25 = vrot.slane %v3056_v4, %v9713_v53 }
0x1a2b   :  { %v3103_v29 = vsel %vm1680_vm13, %v3096_v25, %v3102_v15 }
0x1a2c   :  { %v3105_v63 = vsel %vm1301_vm14, %v3103_v29, -1e+09 }
0x1a2d   :  { %v3106_v61 = vsel %vm1684_vm15, %v3105_v63, -inf }
0x1a2e   :  { %v3107_v19 = vrot.slane %v3106_v61, 4 }
0x1a30   :  { %v3108_v45 = vmax.f32 %v3106_v61, %v3107_v19 }
0x1a32   :  { %v3109_v6 = vrot.slane %v3108_v45, 2 }
0x1a34   :  { %v3110_v11 = vmax.f32 %v3108_v45, %v3109_v6 }
0x1a36   :  { %v3111_v35 = vrot.slane %v3110_v11, 1 }
0x1a38   :  { %v3112_v12 = vmax.f32 %v3110_v11, %v3111_v35  ;;  %v3264_v11 = vld [vmem:[%s11947_s8] sm:$0xff]  ;;  %v3265_v35 = vld [vmem:[%s11947_s8 + $0x8] sm:$0xff] }
0x1a3a   :  { %v3113_v9 = vsub.f32 %v3105_v63, %v3112_v12  ;;  %v3266_v12 = vld [vmem:[%s11947_s8 + $0x10] sm:$0xff] }
0x1a3c   :  { %v3114_v10 = vmul.f32 1.442695, %v3113_v9  ;;  %v10345_v9 = vpack.c.bf16 %v3265_v35, %v3264_v11 }
0x1a3e   :  { %8605 = vpow2.f32 %v3114_v10  ;;  %v3267_v10 = vld [vmem:[%s11947_s8 + $0x18] sm:$0xff]  ;;  %8282 = vmatpush3.bf16.msra.mxu1 %v10345_v9 }
0x1a3f   :  { %8283 = vmatprep.subr.bf16.mxu1 %v12022_v47 }
0x1a48   :  { %v8606_v16 = vpop.eup %8605 }
0x1a49   :  { %v3116_v14 = vsel %vm1684_vm15, %v8606_v16, 0.0 }
0x1a4a   :  { %v3117_v54 = vrot.slane %v3116_v14, 4 }
0x1a4c   :  { %v3118_v40 = vadd.f32 %v3117_v54, %v3116_v14  ;;  %v3268_v14 = vld [vmem:[%s11947_s8 + $0x20] sm:$0xff]  ;;  %v3269_v54 = vld [vmem:[%s11947_s8 + $0x28] sm:$0xff] }
0x1a4e   :  { %v3119_v22 = vrot.slane %v3118_v40, 2 }
0x1a50   :  { %v3120_v44 = vadd.f32 %v3119_v22, %v3118_v40  ;;  %v10361_v40 = vpack.c.bf16 %v3269_v54, %v3268_v14  ;;  %v3270_v22 = vld [vmem:[%s11947_s8 + $0x30] sm:$0xff] }
0x1a52   :  { %v3121_v34 = vrot.slane %v3120_v44, 1 }
0x1a54   :  { %v3122_v56 = vadd.f32 %v3121_v34, %v3120_v44  ;;  %v3271_v44 = vld [vmem:[%s11947_s8 + $0x38] sm:$0xff] }
0x1a55   :  { %v10371_v34 = vpack.c.bf16 %v3271_v44, %v3270_v22  ;;  %v12034_v44 = vld [vmem:[#allocation20_spill] sm:$0xff] }
0x1a56   :  { %8607 = vrcp.f32 %v3122_v56 }
0x1a60   :  { %v8608_v26 = vpop.eup %8607 }
0x1a61   :  { %v3124_v0 = vmul.f32 %v8608_v26, %v3122_v56  ;;  %v3272_v56 = vld [vmem:[%s11947_s8 + $0x40] sm:$0xff] }
0x1a63   :  { %v3125_v4 = vsub.f32 2.0, %v3124_v0 }
0x1a65   :  { %v3126_v51 = vmul.f32 %v8608_v26, %v3125_v4  ;;  %v3273_v26 = vld [vmem:[%s11947_s8 + $0x48] sm:$0xff]  ;;  %v3274_v4 = vld [vmem:[%s11947_s8 + $0x50] sm:$0xff] }
0x1a66   :  { %v10381_v0 = vpack.c.bf16 %v3273_v26, %v3272_v56 }
0x1a67   :  { %v3127_v18 = vmul.f32 %v8606_v16, %v3126_v51  ;;  %v10351_v16 = vpack.c.bf16 %v3267_v10, %v3266_v12  ;;  %v3275_v51 = vld [vmem:[%s11947_s8 + $0x58] sm:$0xff] }
0x1a69   :  { %7081 = vst.msk [vmem:[%s11951_s12 + $0x10] sm:$0xff] %vm1684_vm15, %v3127_v18  ;;  %v3138_v25 = vrot.slane %v3127_v18, %v9113_v60  ;;  %v3131_v15 = vrot.slane %v3127_v18, %v9106_v57  ;;  %v3159_v29 = vrot.slane %v3127_v18, %v9755_v46  ;;  %v3145_v63 = vrot.slane %v3127_v18, %v9747_v27 }
0x1a6a   :  { %v3173_v61 = vrot.slane %v3127_v18, %v9763_v38  ;;  %v3152_v19 = vrot.slane %v3127_v18, %v9750_v33  ;;  %v3166_v45 = vrot.slane %v3127_v18, %v9758_v30  ;;  %v3180_v6 = vrot.slane %v3127_v18, %v9766_v41  ;;  %8285 = vmatpush3.bf16.msra.mxu1 %v10351_v16 }
0x1a6b   :  { %3140 = vbcast.lane.b32.xlu0 %v3138_v25, 256  ;;  %3133 = vbcast.lane.b32.xlu1 %v3131_v15, 256  ;;  %v10391_v18 = vpack.c.bf16 %v3275_v51, %v3274_v4 }
0x1a6c   :  { %8286 = vmatprep.subr.bf16.mxu1 %v12022_v47 }
0x1a6e   :  { %8288 = vmatpush3.bf16.msra.mxu1 %v10361_v40 }
0x1a6f   :  { %3161 = vbcast.lane.b32.xlu0 %v3159_v29, 256  ;;  %3147 = vbcast.lane.b32.xlu1 %v3145_v63, 256  ;;  %v12032_v63 = vld [vmem:[#allocation18_spill] sm:$0xff] }
0x1a70   :  { %8289 = vmatprep.subr.bf16.mxu1 %v12022_v47 }
0x1a72   :  { %8291 = vmatpush3.bf16.msra.mxu1 %v10371_v34 }
0x1a73   :  { %3175 = vbcast.lane.b32.xlu0 %v3173_v61, 256  ;;  %3154 = vbcast.lane.b32.xlu1 %v3152_v19, 256 }
0x1a74   :  { %8292 = vmatprep.subr.bf16.mxu1 %v12022_v47 }
0x1a76   :  { %8294 = vmatpush3.bf16.msra.mxu1 %v10381_v0 }
0x1a77   :  { %3168 = vbcast.lane.b32.xlu1 %v3166_v45, 256  ;;  %8295 = vmatprep.subr.bf16.mxu1 %v12022_v47  ;;  %v12033_v45 = vld [vmem:[#allocation19_spill] sm:$0xff] }
0x1a7a   :  { %8297 = vmatpush3.bf16.msra.mxu1 %v10391_v18 }
0x1a7b   :  { %3182 = vbcast.lane.b32.xlu1 %v3180_v6, 256  ;;  %8316 = vmatprep.subr.bf16.mxu1 %v12022_v47 }
0x1add   :  { %v3141_v25 = vpop.permute.xlu0 %3140  ;;  %v3134_v15 = vpop.permute.xlu1 %3133 }
0x1ade   :  { %v3185_v29 = vmul.f32 %v10053_v8, %v3141_v25  ;;  %v3208_v61 = vmul.f32 %v12032_v63, %v3141_v25  ;;  %v3184_v19 = vmul.f32 %v10061_v5, %v3134_v15  ;;  %v3207_v6 = vmul.f32 %v12033_v45, %v3134_v15  ;;  %v12035_v63 = vld [vmem:[#allocation22_spill] sm:$0xff] }
0x1ae0   :  { %v3193_v35 = vsel %vm68_vm0, %v3185_v29, 0.0  ;;  %v3216_v12 = vsel %vm68_vm0, %v3208_v61, 0.0  ;;  %v3192_v14 = vsel %vm68_vm0, %v3184_v19, 0.0  ;;  %v3215_v54 = vsel %vm68_vm0, %v3207_v6, 0.0  ;;  %v12036_v19 = vld [vmem:[#allocation21_spill] sm:$0xff] }
0x1ae1   :  { %v3148_v11 = vpop.permute.xlu1 %3147  ;;  %v3162_v10 = vpop.permute.xlu0 %3161  ;;  %v3194_v4 = vadd.f32 %v3193_v35, %v3192_v14  ;;  %v3217_v51 = vadd.f32 %v3216_v12, %v3215_v54  ;;  %v12037_v54 = vld [vmem:[#allocation24_spill] sm:$0xff] }
0x1ae2   :  { %v3186_v22 = vmul.f32 %v10075_v62, %v3148_v11  ;;  %v3209_v8 = vmul.f32 %v12034_v44, %v3148_v11  ;;  %v3188_v29 = vmul.f32 %v10093_v2, %v3162_v10  ;;  %v3211_v61 = vmul.f32 %v12035_v63, %v3162_v10 }
0x1ae4   :  { %v3195_v56 = vsel %vm68_vm0, %v3186_v22, 0.0  ;;  %v3218_v5 = vsel %vm68_vm0, %v3209_v8, 0.0  ;;  %v3199_v8 = vsel %vm68_vm0, %v3188_v29, 0.0  ;;  %v3222_v14 = vsel %vm68_vm0, %v3211_v61, 0.0 }
0x1ae5   :  { %v3155_v26 = vpop.permute.xlu1 %3154  ;;  %v3196_v6 = vadd.f32 %v3195_v56, %v3194_v4  ;;  %v3219_v38 = vadd.f32 %v3218_v5, %v3217_v51  ;;  %v3176_v62 = vpop.permute.xlu0 %3175  ;;  %v12038_v56 = vld [vmem:[#allocation23_spill] sm:$0xff] }
0x1ae6   :  { %v3187_v45 = vmul.f32 %v10081_v3, %v3155_v26  ;;  %v3210_v41 = vmul.f32 %v12036_v19, %v3155_v26  ;;  %v3190_v3 = vmul.f32 %v10109_v49, %v3176_v62  ;;  %v3213_v63 = vmul.f32 %v12037_v54, %v3176_v62  ;;  %v10427_v49 = vld [vmem:[%s11939_s0 + $0x8] sm:$0xff] }
0x1ae7   :  { %v3231_v61 = vmul.f32 %v10427_v49, %v3141_v25 }
0x1ae8   :  { %v3197_v44 = vsel %vm68_vm0, %v3187_v45, 0.0  ;;  %v3220_v22 = vsel %vm68_vm0, %v3210_v41, 0.0 }
0x1ae9   :  { %v3169_v30 = vpop.permute.xlu1 %3168  ;;  %v3198_v35 = vadd.f32 %v3197_v44, %v3196_v6  ;;  %v3221_v12 = vadd.f32 %v3220_v22, %v3219_v38  ;;  %v3230_v44 = vmul.f32 %v10130_v37, %v3134_v15  ;;  %v3203_v22 = vsel %vm68_vm0, %v3190_v3, 0.0  ;;  %v10446_v3 = vld [vmem:[%s11939_s0 + $0x18] sm:$0xff] }
0x1aea   :  { %v3189_v2 = vmul.f32 %v10100_v24, %v3169_v30  ;;  %v3212_v5 = vmul.f32 %v12038_v56, %v3169_v30  ;;  %v3239_v37 = vsel %vm68_vm0, %v3231_v61, 0.0  ;;  %v10470_v61 = vld [vmem:[%s11939_s0 + $0x30] sm:$0xff] }
0x1aeb   :  { %v3200_v4 = vadd.f32 %v3199_v8, %v3198_v35  ;;  %v3223_v51 = vadd.f32 %v3222_v14, %v3221_v12  ;;  %v3226_v8 = vsel %vm68_vm0, %v3213_v63, 0.0  ;;  %v3238_v15 = vsel %vm68_vm0, %v3230_v44, 0.0 }
0x1aec   :  { %v3201_v45 = vsel %vm68_vm0, %v3189_v2, 0.0  ;;  %v3224_v41 = vsel %vm68_vm0, %v3212_v5, 0.0  ;;  %v3233_v63 = vmul.f32 %v10446_v3, %v3155_v26  ;;  %v10462_v26 = vld [vmem:[%s11939_s0 + $0x28] sm:$0xff] }
0x1aed   :  { %v3183_v19 = vpop.permute.xlu1 %3182  ;;  %v3202_v29 = vadd.f32 %v3201_v45, %v3200_v4  ;;  %v3225_v6 = vadd.f32 %v3224_v41, %v3223_v51  ;;  %v10456_v51 = vld [vmem:[%s11939_s0 + $0x20] sm:$0xff] }
0x1aee   :  { %v3191_v38 = vmul.f32 %v10115_v52, %v3183_v19  ;;  %v3214_v24 = vmul.f32 %v10120_v42, %v3183_v19  ;;  %v10438_v42 = vld [vmem:[%s11939_s0 + $0x10] sm:$0xff]  ;;  %v3243_v5 = vsel %vm68_vm0, %v3233_v63, 0.0  ;;  %v3234_v45 = vmul.f32 %v10456_v51, %v3162_v10  ;;  %v3379_v63 = vld [vmem:[%s11949_s10 + $0x8] sm:$0xff] }
0x1aef   :  { %v3227_v52 = vadd.f32 %v3226_v8, %v3225_v6  ;;  %v3204_v2 = vadd.f32 %v3203_v22, %v3202_v29  ;;  %v3232_v14 = vmul.f32 %v10438_v42, %v3148_v11  ;;  %v3240_v11 = vadd.f32 %v3239_v37, %v3238_v15 }
0x1af0   :  { %v3205_v35 = vsel %vm68_vm0, %v3191_v38, 0.0  ;;  %v3228_v12 = vsel %vm68_vm0, %v3214_v24, 0.0  ;;  %v3235_v29 = vmul.f32 %v10462_v26, %v3169_v30  ;;  %v3245_v6 = vsel %vm68_vm0, %v3234_v45, 0.0 }
0x1af1   :  { %v3229_v25 = vadd.f32 %v3228_v12, %v3227_v52  ;;  %v3206_v54 = vadd.f32 %v3205_v35, %v3204_v2  ;;  %v3241_v56 = vsel %vm68_vm0, %v3232_v14, 0.0  ;;  %v3236_v10 = vmul.f32 %v10470_v61, %v3176_v62 }
0x1af2   :  { %v3242_v4 = vadd.f32 %v3241_v56, %v3240_v11  ;;  %v3247_v24 = vsel %vm68_vm0, %v3235_v29, 0.0  ;;  %v3237_v22 = vmul.f32 %v10152_v55, %v3183_v19  ;;  %v3380_v11 = vld [vmem:[%s11949_s10 + $0x10] sm:$0xff] }
0x1af3   :  { %3259 = vrot.lane.b32.xlu1 %v3229_v25, %s8834_s25  ;;  %3255 = vrot.lane.b32.xlu0 %v3206_v54, %s8831_s27  ;;  %v3249_v8 = vsel %vm68_vm0, %v3236_v10, 0.0 }
0x1af4   :  { %v3244_v41 = vadd.f32 %v3243_v5, %v3242_v4  ;;  %v3251_v30 = vsel %vm68_vm0, %v3237_v22, 0.0  ;;  %v3381_v5 = vld [vmem:[%s11949_s10 + $0x18] sm:$0xff] }
0x1af5   :  { %v10512_v4 = vpack.c.bf16 %v3381_v5, %v3380_v11  ;;  %v12041_v5 = vld [vmem:[#allocation10_spill] sm:$0xff] }
0x1af6   :  { %v3246_v38 = vadd.f32 %v3245_v6, %v3244_v41 }
0x1af8   :  { %v3248_v44 = vadd.f32 %v3247_v24, %v3246_v38 }
0x1afa   :  { %v3250_v35 = vadd.f32 %v3249_v8, %v3248_v44 }
0x1afc   :  { %v3252_v12 = vadd.f32 %v3251_v30, %v3250_v35 }
0x1afe   :  { %v3357_v52 = vmul.f32 %v3252_v12, %v3252_v12 }
0x1b00   :  { %v3358_v2 = vsel %vm68_vm0, %v3357_v52, 0.0 }
0x1b12   :  { %3359 = vadd.xlane.f32.xlu0 %v3358_v2 }
0x1b28   :  { %3472 = vrot.lane.b32.xlu0 %v10255_v48, %s8834_s25  ;;  %v10492_v48 = vld [vmem:[%s11948_s9] ss:$0 sm:$0xff] }
0x1b65   :  { %v3260_v14 = vpop.permute.xlu1 %3259  ;;  %v3256_v25 = vpop.permute.xlu0 %3255 }
0x1b66   :  { %v3262_v62 = vsel %vm68_vm0, %v10259_v23, %v3256_v25 }
0x1b67   :  { %v3263_v55 = vsel %vm70_vm1, %v3262_v62, %v3260_v14 }
0x1b68   :  { %7569 = vmatmul.mubr.msk.f32.vlgmr.msra.gmra.mrb[20].mxu1 %vm1862_vm2, %v3263_v55 }
0x1b69   :  { %8318 = vmatpush3.bf16.msra.mxu1 %v10243_v7  ;;  %7609 = vmatprep.mubr.msk.f32.mxu1 %vm8836_vm3, %v12021_v43 }
0x1b6a   :  { %8319 = vmatprep.subr.bf16.mxu1 %v12022_v47 }
0x1b6d   :  { %8321 = vmatpush3.bf16.msra.mxu1 %v10249_v1  ;;  %v3378_v1 = vld [vmem:[%s11949_s10] sm:$0xff] }
0x1b6e   :  { %8340 = vmatprep.subr.bf16.mxu1 %v12022_v47  ;;  %v10502_v56 = vpack.c.bf16 %v3379_v63, %v3378_v1 }
0x1b70   :  { %8300 = vmatpush3.bf16.msra.mxu0 %v10502_v56 }
0x1b71   :  { %8301 = vmatprep.subr.bf16.mxu0 %v12022_v47 }
0x1b74   :  { %8303 = vmatpush3.bf16.msra.mxu0 %v10512_v4 }
0x1b75   :  { %8304 = vmatprep.subr.bf16.mxu0 %v12022_v47 }
0x1b9f   :  { %v3360_v45 = vpop.xlane.xlu0 %3359 }
0x1ba0   :  { %vm3363_vm5 = vcmp.eq.f32.partialorder %v3360_v45, inf  ;;  %v3366_v10 = vand.u32 2147483648, %v3360_v45  ;;  %vm3365_vm6 = vcmp.eq.f32.partialorder %v3360_v45, 0.0 }
0x1ba3   :  { %v3473_v2 = vpop.permute.xlu0 %3472 }
0x1c3b   :  { %v3352_v23 = vpop.f32.mrb[20].mxu1 }
0x1c3c   :  { %v3353_v19 = vadd.f32 %v10492_v48, %v3352_v23  ;;  %v7570_v54 = vpop.f32.mrb[21].mxu1 }
0x1c3e   :  { %8609 = vtanh.f32 %v3353_v19 }
0x1c3f   :  { %8611 = vrsqrt.f32 %v3360_v45 }
0x1c48   :  { %v8610_v7 = vpop.eup %8609 }
0x1c49   :  { %v3368_v37 = vmul.f32 %v8610_v7, %v8610_v7  ;;  %v8612_v41 = vpop.eup %8611 }
0x1c4a   :  { %v3362_v29 = vmul.f32 %v8612_v41, %v3360_v45 }
0x1c4b   :  { %v3369_v15 = vsel %vm68_vm0, %v3368_v37, 0.0 }
0x1c4c   :  { %3370 = vadd.xlane.f32.xlu1 %v3369_v15  ;;  %v3364_v24 = vsel %vm3363_vm5, %v3360_v45, %v3362_v29  ;;  %v12042_v45 = vld [vmem:[#allocation9_spill] sm:$0xff]  ;;  %v12043_v29 = vld [vmem:[#allocation12_spill] sm:$0xff] }
0x1c4d   :  { %v3367_v44 = vsel %vm3365_vm6, %v3366_v10, %v3364_v24  ;;  %v10589_v10 = vld [vmem:[#allocation2 + $0x8] sm:$0xff] }
0x1c4e   :  { %v3374_v22 = vmul.f32 0.2, %v3367_v44 }
0x1c50   :  { %v3375_v8 = vmul.f32 %v8610_v7, %v3374_v22 }
0x1cd9   :  { %v3371_v6 = vpop.xlane.xlu1 %3370 }
0x1cda   :  { %v3372_v38 = vadd.f32 1e-08, %v3371_v6 }
0x1cdc   :  { %8613 = vrsqrt.f32 %v3372_v38  ;;  %v12044_v38 = vld [vmem:[#allocation11_spill] sm:$0xff] }
0x1ce6   :  { %v8614_v35 = vpop.eup %8613 }
0x1ce7   :  { %v3376_v30 = vmul.f32 %v8614_v35, %v3375_v8  ;;  %v10593_v8 = vld [vmem:[#allocation2 + $0x10] sm:$0xff] }
0x1ce9   :  { %v3377_v52 = vadd.f32 %v3376_v30, %v3252_v12  ;;  %v7082_v12 = vld [vmem:[%s11940_s1 + $0x18] sm:$0xff]  ;;  %v10596_v30 = vld [vmem:[#allocation2] sm:$0xff] }
0x1ceb   :  { %7580 = vmatmul.mubr.msk.f32.vlgmr.msra.gmra.mrb[16].mxu0 %vm68_vm0, %v3377_v52 }
0x1cec   :  { %8306 = vmatpush3.bf16.msra.mxu0 %v10173_v13  ;;  %7598 = vmatprep.mubr.msk.f32.mxu0 %vm8836_vm3, %v12021_v43  ;;  %v3475_v13 = vsel %vm68_vm0, %v7082_v12, %v3473_v2  ;;  %v10600_v2 = vld [vmem:[#allocation2 + $0x18] sm:$0xff] }
0x1ced   :  { %8307 = vmatprep.subr.bf16.mxu0 %v12022_v47 }
0x1cf0   :  { %8309 = vmatpush3.bf16.msra.mxu0 %v10183_v20 }
0x1cf1   :  { %8310 = vmatprep.subr.bf16.mxu0 %v12022_v47 }
0x1cf4   :  { %8312 = vmatpush3.bf16.msra.mxu0 %v10195_v31 }
0x1cf5   :  { %8313 = vmatprep.subr.bf16.mxu0 %v12022_v47 }
0x1cf8   :  { %8315 = vmatpush3.bf16.msra.mxu0 %v10205_v21 }
0x1cf9   :  { %8322 = vmatprep.subr.bf16.mxu0 %v12022_v47 }
0x1cfb   :  { %7599 = vmatmul.mubr.msk.f32.vlgmr.msra.gmra.mrb[18].mxu0 %vm70_vm1, %v3475_v13 }
0x1cfc   :  { %8324 = vmatpush3.bf16.msra.mxu0 %v10345_v9  ;;  %7636 = vmatprep.mubr.msk.f32.mxu0 %vm8836_vm3, %v12021_v43 }
0x1cfd   :  { %8325 = vmatprep.subr.bf16.mxu0 %v12022_v47 }
0x1d00   :  { %8327 = vmatpush3.bf16.msra.mxu0 %v10351_v16 }
0x1d01   :  { %8328 = vmatprep.subr.bf16.mxu0 %v12022_v47 }
0x1d04   :  { %8330 = vmatpush3.bf16.msra.mxu0 %v10361_v40 }
0x1d05   :  { %8331 = vmatprep.subr.bf16.mxu0 %v12022_v47 }
0x1d08   :  { %8333 = vmatpush3.bf16.msra.mxu0 %v10371_v34 }
0x1d09   :  { %8334 = vmatprep.subr.bf16.mxu0 %v12022_v47 }
0x1d0c   :  { %8336 = vmatpush3.bf16.msra.mxu0 %v10381_v0 }
0x1d0d   :  { %8337 = vmatprep.subr.bf16.mxu0 %v12022_v47 }
0x1d10   :  { %8339 = vmatpush3.bf16.msra.mxu0 %v10391_v18 }
0x1d11   :  { %8358 = vmatprep.subr.bf16.mxu0 %v12022_v47 }
0x1dbe   :  { %v10546_v20 = vpop.f32.mrb[16].mxu0 }
0x1dbf   :  { %12039 = vst [vmem:[#allocation18_spill] sm:$0xff] %v10546_v20  ;;  %v7581_v31 = vpop.f32.mrb[17].mxu0 }
0x1dce   :  { %v3560_v21 = vpop.f32.mrb[18].mxu0 }
0x1dcf   :  { %v3561_v9 = vadd.f32 %v10222_v58, %v3560_v21  ;;  %v7600_v16 = vpop.f32.mrb[19].mxu0 }
0x1dd1   :  { %v3564_v40 = vmul.f32 %v3561_v9, %v9461_v36  ;;  %v10605_v9 = vld [vmem:[#allocation2 + $0x20] sm:$0xff] }
0x1dd3   :  { %8615 = vtanh.f32 %v3564_v40 }
0x1ddd   :  { %v8616_v34 = vpop.eup %8615 }
0x1dde   :  { %v3566_v14 = vmul.f32 %v8616_v34, %v9461_v36  ;;  %v10609_v34 = vld [vmem:[#allocation2 + $0x28] sm:$0xff] }
0x1de0   :  { %v3567_v0 = vadd.f32 %v3566_v14, %v9471_v28 }
0x1de2   :  { %3570 = vrot.lane.b32.xlu1 %v3567_v0, %s8834_s25  ;;  %v3568_v62 = vmul.f32 %v3567_v0, %v10231_v39 }
0x1e54   :  { %v3571_v18 = vpop.permute.xlu1 %3570 }
0x1e55   :  { %v3573_v25 = vmul.f32 %v3571_v18, %v3567_v0 }
0x1e57   :  { %3575 = vrot.lane.b32.xlu0 %v3573_v25, %s8831_s27 }
0x1ec9   :  { %v3576_v55 = vpop.permute.xlu0 %3575 }
0x1eca   :  { %v10555_v23 = vadd.f32 %v3576_v55, %v3568_v62 }
0x1ecc   :  { %8617 = vtanh.f32 %v10555_v23 }
0x1ed6   :  { %v8618_v58 = vpop.eup %8617 }
0x1ed7   :  { %3581 = vrot.lane.b32.xlu1 %v8618_v58, %s8834_s25  ;;  %v10615_v58 = vld [vmem:[#allocation2 + $0x30] sm:$0xff] }
0x1f49   :  { %v3582_v19 = vpop.permute.xlu1 %3581 }
0x1f4a   :  { %v10559_v54 = vmul.f32 %v3582_v19, %v3567_v0 }
0x1f4c   :  { %3590 = vrot.lane.b32.xlu0 %v10559_v54, %s8831_s27 }
0x1fbe   :  { %v10563_v7 = vpop.permute.xlu0 %3590 }
0x1fbf   :  { %7610 = vmatmul.mubr.msk.f32.vlgmr.msra.gmra.mrb[22].mxu1 %vm68_vm0, %v10563_v7 }
0x1fc0   :  { %8342 = vmatpush3.bf16.msra.mxu1 %v10502_v56  ;;  %7647 = vmatprep.mubr.msk.f32.mxu1 %vm8836_vm3, %v12021_v43  ;;  %v12040_v56 = vld [vmem:[#allocation8_spill] sm:$0xff] }
0x1fc1   :  { %8343 = vmatprep.subr.bf16.mxu1 %v12022_v47 }
0x1fc4   :  { %8345 = vmatpush3.bf16.msra.mxu1 %v10512_v4 }
0x1fc5   :  { %8346 = vmatprep.subr.bf16.mxu1 %v12022_v47 }
0x2092   :  { %v3660_v39 = vpop.f32.mrb[22].mxu1 }
0x2093   :  { %v7611_v37 = vpop.f32.mrb[23].mxu1  ;;  %v3697_v15 = vmul.f32 %v3660_v39, %v9604_v32  ;;  %v3696_v1 = vmul.f32 %v3660_v39, %v9621_v17  ;;  %v3699_v63 = vmul.f32 %v3660_v39, %v9616_v59  ;;  %v3698_v11 = vmul.f32 %v3660_v39, %v12040_v56 }
0x2094   :  { %v3701_v4 = vmul.f32 %v3660_v39, %v12041_v5  ;;  %v3700_v41 = vmul.f32 %v3660_v39, %v12042_v45  ;;  %v3703_v6 = vmul.f32 %v3660_v39, %v12043_v29  ;;  %v3702_v24 = vmul.f32 %v3660_v39, %v12044_v38 }
0x2095   :  { %3714 = vrot.lane.b32.xlu0 %v3697_v15, %s8837_s15  ;;  %3712 = vrot.lane.b32.xlu1 %v3696_v1, %s8837_s15  ;;  %v3665_v44 = vmul.f32 %v10589_v10, %v3660_v39  ;;  %v3666_v35 = vmul.f32 %v10593_v8, %v3660_v39  ;;  %v3664_v52 = vmul.f32 %v10596_v30, %v3660_v39 }
0x2096   :  { %v3667_v13 = vmul.f32 %v10600_v2, %v3660_v39  ;;  %v3668_v16 = vmul.f32 %v10605_v9, %v3660_v39  ;;  %v3669_v14 = vmul.f32 %v10609_v34, %v3660_v39  ;;  %v3670_v19 = vmul.f32 %v10615_v58, %v3660_v39 }
0x2097   :  { %v3675_v22 = vsel %vm68_vm0, %v3665_v44, 0.0  ;;  %v3678_v12 = vsel %vm68_vm0, %v3666_v35, 0.0  ;;  %v3672_v31 = vsel %vm68_vm0, %v3664_v52, 0.0 }
0x2098   :  { %v3681_v21 = vsel %vm68_vm0, %v3667_v13, 0.0  ;;  %v3684_v40 = vsel %vm68_vm0, %v3668_v16, 0.0  ;;  %v3687_v0 = vsel %vm68_vm0, %v3669_v14, 0.0  ;;  %v3690_v15 = vsel %vm68_vm0, %v3670_v19, 0.0 }
0x2099   :  { %3718 = vrot.lane.b32.xlu0 %v3699_v63, %s8837_s15  ;;  %3716 = vrot.lane.b32.xlu1 %v3698_v11, %s8837_s15  ;;  %v10620_v63 = vld [vmem:[#allocation2 + $0x38] sm:$0xff] }
0x209a   :  { %v3671_v11 = vmul.f32 %v10620_v63, %v3660_v39 }
0x209d   :  { %3722 = vrot.lane.b32.xlu0 %v3701_v4, %s8837_s15  ;;  %3720 = vrot.lane.b32.xlu1 %v3700_v41, %s8837_s15  ;;  %v3693_v41 = vsel %vm68_vm0, %v3671_v11, 0.0 }
0x20a1   :  { %3726 = vrot.lane.b32.xlu0 %v3703_v6, %s8837_s15  ;;  %3724 = vrot.lane.b32.xlu1 %v3702_v24, %s8837_s15 }
0x20c0   :  { %3676 = vadd.xlane.f32.xlu0 %v3675_v22 }
0x20c4   :  { %3679 = vadd.xlane.f32.xlu0 %v3678_v12 }
0x20c5   :  { %3673 = vadd.xlane.f32.xlu1 %v3672_v31 }
0x20c8   :  { %3682 = vadd.xlane.f32.xlu0 %v3681_v21 }
0x20cc   :  { %3685 = vadd.xlane.f32.xlu0 %v3684_v40 }
0x20d0   :  { %3688 = vadd.xlane.f32.xlu0 %v3687_v0 }
0x2107   :  { %v3715_v18 = vpop.permute.xlu0 %3714  ;;  %v3713_v25 = vpop.permute.xlu1 %3712 }
0x2108   :  { %v3736_v62 = vsel %vm68_vm0, %v3713_v25, 0.0  ;;  %v3739_v55 = vsel %vm68_vm0, %v3715_v18, 0.0 }
0x2109   :  { %3737 = vadd.xlane.f32.xlu0 %v3736_v62  ;;  %3740 = vadd.xlane.f32.xlu1 %v3739_v55 }
0x210b   :  { %v3717_v37 = vpop.permute.xlu1 %3716  ;;  %v3719_v4 = vpop.permute.xlu0 %3718 }
0x210c   :  { %v3742_v1 = vsel %vm68_vm0, %v3717_v37, 0.0  ;;  %v3745_v6 = vsel %vm68_vm0, %v3719_v4, 0.0 }
0x210d   :  { %3691 = vadd.xlane.f32.xlu0 %v3690_v15  ;;  %3743 = vadd.xlane.f32.xlu1 %v3742_v1 }
0x210f   :  { %v3721_v24 = vpop.permute.xlu1 %3720  ;;  %v3723_v22 = vpop.permute.xlu0 %3722 }
0x2110   :  { %v3748_v44 = vsel %vm68_vm0, %v3721_v24, 0.0  ;;  %v3751_v35 = vsel %vm68_vm0, %v3723_v22, 0.0 }
0x2111   :  { %3694 = vadd.xlane.f32.xlu0 %v3693_v41  ;;  %3746 = vadd.xlane.f32.xlu1 %v3745_v6 }
0x2113   :  { %v3725_v52 = vpop.permute.xlu1 %3724  ;;  %v3727_v12 = vpop.permute.xlu0 %3726 }
0x2114   :  { %v3754_v39 = vsel %vm68_vm0, %v3725_v52, 0.0  ;;  %v3757_v13 = vsel %vm68_vm0, %v3727_v12, 0.0 }
0x2115   :  { %3749 = vadd.xlane.f32.xlu1 %v3748_v44 }
0x2119   :  { %3752 = vadd.xlane.f32.xlu1 %v3751_v35 }
0x211d   :  { %3755 = vadd.xlane.f32.xlu1 %v3754_v39 }
0x2121   :  { %3758 = vadd.xlane.f32.xlu1 %v3757_v13 }
0x214d   :  { %v3677_v31 = vpop.xlane.xlu0 %3676 }
0x2151   :  { %v3680_v21 = vpop.xlane.xlu0 %3679 }
0x2152   :  { %v3674_v16 = vpop.xlane.xlu1 %3673 }
0x2155   :  { %v3683_v40 = vpop.xlane.xlu0 %3682 }
0x2159   :  { %v3686_v0 = vpop.xlane.xlu0 %3685 }
0x215d   :  { %v3689_v25 = vpop.xlane.xlu0 %3688 }
0x2196   :  { %v3741_v14 = vpop.xlane.xlu1 %3740  ;;  %v3738_v55 = vpop.xlane.xlu0 %3737 }
0x2197   :  { %v3760_v37 = vadd.f32 %v3738_v55, %v3674_v16  ;;  %v3761_v15 = vadd.f32 %v3741_v14, %v3677_v31 }
0x2199   :  { %v3779_v24 = vrot.slane %v3760_v37, %v9713_v53  ;;  %v3783_v44 = vrot.slane %v3761_v15, %v9713_v53 }
0x219a   :  { %v3744_v18 = vpop.xlane.xlu1 %3743  ;;  %v3692_v41 = vpop.xlane.xlu0 %3691 }
0x219b   :  { %v3762_v1 = vadd.f32 %v3744_v18, %v3680_v21  ;;  %v3808_v31 = vsel %vm1668_vm7, %v3783_v44, %v3779_v24 }
0x219d   :  { %v3787_v35 = vrot.slane %v3762_v1, %v9713_v53 }
0x219e   :  { %v3747_v62 = vpop.xlane.xlu1 %3746 }
0x219f   :  { %v3763_v4 = vadd.f32 %v3747_v62, %v3683_v40  ;;  %v3809_v16 = vsel %vm1670_vm8, %v3787_v35, %v3808_v31  ;;  %v3695_v40 = vpop.xlane.xlu0 %3694 }
0x21a1   :  { %v3791_v39 = vrot.slane %v3763_v4, %v9713_v53 }
0x21a2   :  { %v3750_v19 = vpop.xlane.xlu1 %3749 }
0x21a3   :  { %v3764_v6 = vadd.f32 %v3750_v19, %v3686_v0  ;;  %v3810_v18 = vsel %vm1672_vm9, %v3791_v39, %v3809_v16 }
0x21a5   :  { %v3795_v13 = vrot.slane %v3764_v6, %v9713_v53 }
0x21a6   :  { %v3753_v11 = vpop.xlane.xlu1 %3752 }
0x21a7   :  { %v3765_v22 = vadd.f32 %v3753_v11, %v3689_v25  ;;  %v3811_v62 = vsel %vm1674_vm10, %v3795_v13, %v3810_v18 }
0x21a9   :  { %v3799_v21 = vrot.slane %v3765_v22, %v9713_v53 }
0x21aa   :  { %v3756_v52 = vpop.xlane.xlu1 %3755 }
0x21ab   :  { %v3766_v12 = vadd.f32 %v3756_v52, %v3692_v41  ;;  %v3812_v55 = vsel %vm1676_vm11, %v3799_v21, %v3811_v62 }
0x21ad   :  { %v3803_v14 = vrot.slane %v3766_v12, %v9713_v53 }
0x21ae   :  { %v3759_v0 = vpop.xlane.xlu1 %3758 }
0x21af   :  { %v3767_v25 = vadd.f32 %v3759_v0, %v3695_v40  ;;  %v3813_v37 = vsel %vm1678_vm12, %v3803_v14, %v3812_v55 }
0x21b1   :  { %v3807_v19 = vrot.slane %v3767_v25, %v9713_v53 }
0x21b3   :  { %v3814_v15 = vsel %vm1680_vm13, %v3807_v19, %v3813_v37 }
0x21b4   :  { %v3816_v1 = vsel %vm1301_vm14, %v3814_v15, -1e+09 }
0x21b5   :  { %v3817_v11 = vsel %vm1684_vm15, %v3816_v1, -inf }
0x21b6   :  { %v3818_v4 = vrot.slane %v3817_v11, 4 }
0x21b8   :  { %v3819_v41 = vmax.f32 %v3817_v11, %v3818_v4  ;;  %v12045_v4 = vld [vmem:[#allocation14_spill] sm:$0xff] }
0x21ba   :  { %v3820_v6 = vrot.slane %v3819_v41, 2 }
0x21bc   :  { %v3821_v24 = vmax.f32 %v3819_v41, %v3820_v6  ;;  %v12046_v6 = vld [vmem:[#allocation15_spill] sm:$0xff] }
0x21be   :  { %v3822_v44 = vrot.slane %v3821_v24, 1 }
0x21c0   :  { %v3823_v22 = vmax.f32 %v3821_v24, %v3822_v44  ;;  %v12047_v44 = vld [vmem:[#allocation16_spill] sm:$0xff] }
0x21c2   :  { %v3824_v35 = vsub.f32 %v3816_v1, %v3823_v22 }
0x21c4   :  { %v3825_v52 = vmul.f32 1.442695, %v3824_v35 }
0x21c6   :  { %8619 = vpow2.f32 %v3825_v52 }
0x21d0   :  { %v8620_v39 = vpop.eup %8619 }
0x21d1   :  { %v3827_v12 = vsel %vm1684_vm15, %v8620_v39, 0.0 }
0x21d2   :  { %v3828_v13 = vrot.slane %v3827_v12, 4 }
0x21d4   :  { %v3829_v31 = vadd.f32 %v3828_v13, %v3827_v12  ;;  %v10661_v12 = vld [vmem:[#allocation3 + $0x8] sm:$0xff] }
0x21d5   :  { %12048 = vst [vmem:[#allocation19_spill] sm:$0xff] %v10661_v12 }
0x21d6   :  { %v3830_v21 = vrot.slane %v3829_v31, 2 }
0x21d8   :  { %v3831_v16 = vadd.f32 %v3830_v21, %v3829_v31  ;;  %v10665_v21 = vld [vmem:[#allocation3] sm:$0xff] }
0x21d9   :  { %12049 = vst [vmem:[#allocation20_spill] sm:$0xff] %v10665_v21 }
0x21da   :  { %v3832_v40 = vrot.slane %v3831_v16, 1 }
0x21dc   :  { %v3833_v14 = vadd.f32 %v3832_v40, %v3831_v16 }
0x21de   :  { %8621 = vrcp.f32 %v3833_v14 }
0x21e8   :  { %v8622_v0 = vpop.eup %8621 }
0x21e9   :  { %v3835_v18 = vmul.f32 %v8622_v0, %v3833_v14 }
0x21eb   :  { %v3836_v25 = vsub.f32 2.0, %v3835_v18 }
0x21ed   :  { %v3837_v62 = vmul.f32 %v8622_v0, %v3836_v25 }
0x21ef   :  { %v3838_v55 = vmul.f32 %v8620_v39, %v3837_v62 }
0x21f1   :  { %7089 = vst.msk [vmem:[%s11951_s12 + $0x18] sm:$0xff] %vm1684_vm15, %v3838_v55  ;;  %v3849_v19 = vrot.slane %v3838_v55, %v9113_v60  ;;  %v3842_v37 = vrot.slane %v3838_v55, %v9106_v57  ;;  %v3856_v15 = vrot.slane %v3838_v55, %v9747_v27  ;;  %v3863_v1 = vrot.slane %v3838_v55, %v9750_v33 }
0x21f2   :  { %v3870_v11 = vrot.slane %v3838_v55, %v9755_v46  ;;  %v3877_v41 = vrot.slane %v3838_v55, %v12045_v4  ;;  %v3884_v24 = vrot.slane %v3838_v55, %v12046_v6  ;;  %v3891_v22 = vrot.slane %v3838_v55, %v12047_v44 }
0x21f3   :  { %3851 = vbcast.lane.b32.xlu1 %v3849_v19, 256  ;;  %3844 = vbcast.lane.b32.xlu0 %v3842_v37, 256  ;;  %v10673_v19 = vld [vmem:[#allocation3 + $0x10] sm:$0xff] }
0x21f4   :  { %12050 = vst [vmem:[#allocation22_spill] sm:$0xff] %v10673_v19 }
0x21f7   :  { %3858 = vbcast.lane.b32.xlu1 %v3856_v15, 256  ;;  %3865 = vbcast.lane.b32.xlu0 %v3863_v1, 256 }
0x21fb   :  { %3872 = vbcast.lane.b32.xlu1 %v3870_v11, 256  ;;  %3879 = vbcast.lane.b32.xlu0 %v3877_v41, 256  ;;  %v10677_v41 = vld [vmem:[#allocation3 + $0x18] sm:$0xff] }
0x21fc   :  { %12051 = vst [vmem:[#allocation21_spill] sm:$0xff] %v10677_v41 }
0x21ff   :  { %3886 = vbcast.lane.b32.xlu1 %v3884_v24, 256  ;;  %3893 = vbcast.lane.b32.xlu0 %v3891_v22, 256 }
0x2265   :  { %v3852_v35 = vpop.permute.xlu1 %3851  ;;  %v3845_v52 = vpop.permute.xlu0 %3844 }
0x2266   :  { %v3896_v39 = vmul.f32 %v10589_v10, %v3852_v35  ;;  %v3919_v13 = vmul.f32 %v10661_v12, %v3852_v35  ;;  %v3895_v31 = vmul.f32 %v10596_v30, %v3845_v52  ;;  %v3918_v16 = vmul.f32 %v10665_v21, %v3845_v52 }
0x2268   :  { %v3904_v40 = vsel %vm68_vm0, %v3896_v39, 0.0  ;;  %v3927_v14 = vsel %vm68_vm0, %v3919_v13, 0.0  ;;  %v3903_v0 = vsel %vm68_vm0, %v3895_v31, 0.0  ;;  %v3926_v18 = vsel %vm68_vm0, %v3918_v16, 0.0 }
0x2269   :  { %v3859_v25 = vpop.permute.xlu1 %3858  ;;  %v3866_v62 = vpop.permute.xlu0 %3865  ;;  %v3905_v15 = vadd.f32 %v3904_v40, %v3903_v0  ;;  %v3928_v1 = vadd.f32 %v3927_v14, %v3926_v18  ;;  %v10685_v18 = vld [vmem:[#allocation3 + $0x20] sm:$0xff] }
0x226a   :  { %v3897_v55 = vmul.f32 %v10593_v8, %v3859_v25  ;;  %v3920_v37 = vmul.f32 %v10673_v19, %v3859_v25  ;;  %v3898_v11 = vmul.f32 %v10600_v2, %v3866_v62  ;;  %v3921_v24 = vmul.f32 %v10677_v41, %v3866_v62  ;;  %12052 = vst [vmem:[#allocation24_spill] sm:$0xff] %v10685_v18 }
0x226c   :  { %v3906_v22 = vsel %vm68_vm0, %v3897_v55, 0.0  ;;  %v3929_v39 = vsel %vm68_vm0, %v3920_v37, 0.0  ;;  %v3908_v21 = vsel %vm68_vm0, %v3898_v11, 0.0  ;;  %v3931_v19 = vsel %vm68_vm0, %v3921_v24, 0.0 }
0x226d   :  { %v3907_v13 = vadd.f32 %v3906_v22, %v3905_v15  ;;  %v3930_v31 = vadd.f32 %v3929_v39, %v3928_v1  ;;  %v3873_v16 = vpop.permute.xlu1 %3872  ;;  %v3880_v20 = vpop.permute.xlu0 %3879  ;;  %v10690_v15 = vld [vmem:[#allocation3 + $0x28] sm:$0xff] }
0x226e   :  { %v3899_v40 = vmul.f32 %v10605_v9, %v3873_v16  ;;  %v3922_v41 = vmul.f32 %v10685_v18, %v3873_v16  ;;  %v3900_v37 = vmul.f32 %v10609_v34, %v3880_v20  ;;  %12053 = vst [vmem:[#allocation23_spill] sm:$0xff] %v10690_v15  ;;  %v3923_v1 = vmul.f32 %v10690_v15, %v3880_v20 }
0x226f   :  { %v3909_v14 = vadd.f32 %v3908_v21, %v3907_v13  ;;  %v3932_v0 = vadd.f32 %v3931_v19, %v3930_v31 }
0x2270   :  { %v3910_v55 = vsel %vm68_vm0, %v3899_v40, 0.0  ;;  %v3933_v11 = vsel %vm68_vm0, %v3922_v41, 0.0  ;;  %v3912_v21 = vsel %vm68_vm0, %v3900_v37, 0.0  ;;  %v3935_v13 = vsel %vm68_vm0, %v3923_v1, 0.0  ;;  %v10697_v40 = vld [vmem:[#allocation3 + $0x30] sm:$0xff] }
0x2271   :  { %v3911_v22 = vadd.f32 %v3910_v55, %v3909_v14  ;;  %v3887_v24 = vpop.permute.xlu1 %3886  ;;  %v3894_v39 = vpop.permute.xlu0 %3893  ;;  %v3934_v12 = vadd.f32 %v3933_v11, %v3932_v0  ;;  %12054 = vst [vmem:[#allocation8_spill] sm:$0xff] %v10697_v40  ;;  %v10703_v55 = vld [vmem:[#allocation3 + $0x38] sm:$0xff] }
0x2272   :  { %v3901_v31 = vmul.f32 %v10615_v58, %v3887_v24  ;;  %v3924_v18 = vmul.f32 %v10697_v40, %v3887_v24  ;;  %v3902_v15 = vmul.f32 %v10620_v63, %v3894_v39  ;;  %v3925_v0 = vmul.f32 %v10703_v55, %v3894_v39 }
0x2273   :  { %v3913_v19 = vadd.f32 %v3912_v21, %v3911_v22  ;;  %v3936_v44 = vadd.f32 %v3935_v13, %v3934_v12  ;;  %v3942_v21 = vmul.f32 %v10427_v49, %v3852_v35  ;;  %v10712_v12 = vld [vmem:[%s11939_s0] sm:$0xff]  ;;  %v3943_v40 = vmul.f32 %v10438_v42, %v3859_v25 }
0x2274   :  { %v3914_v14 = vsel %vm68_vm0, %v3901_v31, 0.0  ;;  %v3937_v41 = vsel %vm68_vm0, %v3924_v18, 0.0  ;;  %v3916_v1 = vsel %vm68_vm0, %v3902_v15, 0.0  ;;  %v3939_v11 = vsel %vm68_vm0, %v3925_v0, 0.0 }
0x2275   :  { %v3915_v37 = vadd.f32 %v3914_v14, %v3913_v19  ;;  %v3938_v22 = vadd.f32 %v3937_v41, %v3936_v44  ;;  %v3941_v13 = vmul.f32 %v10712_v12, %v3845_v52  ;;  %v3950_v44 = vsel %vm68_vm0, %v3942_v21, 0.0 }
0x2276   :  { %v3952_v49 = vsel %vm68_vm0, %v3943_v40, 0.0  ;;  %v3944_v19 = vmul.f32 %v10446_v3, %v3866_v62  ;;  %v3945_v52 = vmul.f32 %v10456_v51, %v3873_v16  ;;  %v3946_v25 = vmul.f32 %v10462_v26, %v3880_v20  ;;  %v10732_v3 = vld [vmem:[%s11939_s0 + $0x38] sm:$0xff] }
0x2277   :  { %v3940_v18 = vadd.f32 %v3939_v11, %v3938_v22  ;;  %v3917_v31 = vadd.f32 %v3916_v1, %v3915_v37  ;;  %v3949_v15 = vsel %vm68_vm0, %v3941_v13, 0.0  ;;  %v3947_v22 = vmul.f32 %v10470_v61, %v3887_v24 }
0x2278   :  { %v3951_v35 = vadd.f32 %v3950_v44, %v3949_v15  ;;  %v3954_v41 = vsel %vm68_vm0, %v3944_v19, 0.0  ;;  %v3956_v42 = vsel %vm68_vm0, %v3945_v52, 0.0  ;;  %v3958_v1 = vsel %vm68_vm0, %v3946_v25, 0.0 }
0x2279   :  { %3970 = vrot.lane.b32.xlu0 %v3940_v18, %s8834_s25  ;;  %3966 = vrot.lane.b32.xlu1 %v3917_v31, %s8831_s27  ;;  %v3960_v40 = vsel %vm68_vm0, %v3947_v22, 0.0  ;;  %v3948_v51 = vmul.f32 %v10732_v3, %v3894_v39  ;;  %v4187_v22 = vld [vmem:[%s11944_s5] sm:$0xff] }
0x227a   :  { %v3953_v14 = vadd.f32 %v3952_v49, %v3951_v35 }
0x227b   :  { %v3962_v16 = vsel %vm68_vm0, %v3948_v51, 0.0 }
0x227c   :  { %v3955_v0 = vadd.f32 %v3954_v41, %v3953_v14 }
0x227e   :  { %v3957_v37 = vadd.f32 %v3956_v42, %v3955_v0 }
0x2280   :  { %v3959_v11 = vadd.f32 %v3958_v1, %v3957_v37 }
0x2282   :  { %v3961_v62 = vadd.f32 %v3960_v40, %v3959_v11 }
0x2284   :  { %v3963_v21 = vadd.f32 %v3962_v16, %v3961_v62  ;;  %v4189_v62 = vld [vmem:[%s11944_s5 + $0x10] sm:$0xff]  ;;  %v4190_v16 = vld [vmem:[%s11944_s5 + $0x18] sm:$0xff] }
0x2286   :  { %v4068_v26 = vmul.f32 %v3963_v21, %v3963_v21 }
0x2288   :  { %v4069_v20 = vsel %vm68_vm0, %v4068_v26, 0.0  ;;  %v10763_v26 = vpack.c.bf16 %v4190_v16, %v4189_v62 }
0x229d   :  { %4070 = vadd.xlane.f32.xlu1 %v4069_v20  ;;  %v4192_v20 = vld [vmem:[%s11944_s5 + $0x28] sm:$0xff] }
0x22eb   :  { %v3971_v61 = vpop.permute.xlu0 %3970  ;;  %v3967_v24 = vpop.permute.xlu1 %3966 }
0x22ec   :  { %v3973_v13 = vsel %vm68_vm0, %v10563_v7, %v3967_v24  ;;  %v4193_v24 = vld [vmem:[%s11944_s5 + $0x30] sm:$0xff] }
0x22ed   :  { %v3974_v18 = vsel %vm70_vm1, %v3973_v13, %v3971_v61  ;;  %v4194_v13 = vld [vmem:[%s11944_s5 + $0x38] sm:$0xff] }
0x22ee   :  { %7637 = vmatmul.mubr.msk.f32.vlgmr.msra.gmra.mrb[20].mxu0 %vm1862_vm2, %v3974_v18  ;;  %v10785_v18 = vpack.c.bf16 %v4194_v13, %v4193_v24 }
0x22ef   :  { %7677 = vmatprep.mubr.msk.f32.mxu0 %vm8836_vm3, %v12021_v43 }
0x232a   :  { %v4071_v7 = vpop.xlane.xlu1 %4070 }
0x232b   :  { %vm4074_vm4 = vcmp.eq.f32.partialorder %v4071_v7, inf  ;;  %vm4076_vm5 = vcmp.eq.f32.partialorder %v4071_v7, 0.0 }
0x23c1   :  { %v4063_v39 = vpop.f32.mrb[20].mxu0 }
0x23c2   :  { %v4064_v31 = vadd.f32 %v10492_v48, %v4063_v39  ;;  %v7638_v44 = vpop.f32.mrb[21].mxu0  ;;  %v4077_v48 = vand.u32 2147483648, %v4071_v7  ;;  %v7090_v39 = vld [vmem:[%s11940_s1 + $0x20] sm:$0xff] }
0x23c4   :  { %8623 = vtanh.f32 %v4064_v31 }
0x23c5   :  { %8625 = vrsqrt.f32 %v4071_v7 }
0x23ce   :  { %v8624_v15 = vpop.eup %8623 }
0x23cf   :  { %v4079_v49 = vmul.f32 %v8624_v15, %v8624_v15  ;;  %v8626_v19 = vpop.eup %8625 }
0x23d0   :  { %v4073_v14 = vmul.f32 %v8626_v19, %v4071_v7 }
0x23d1   :  { %v4080_v35 = vsel %vm68_vm0, %v4079_v49, 0.0 }
0x23d2   :  { %4081 = vadd.xlane.f32.xlu0 %v4080_v35  ;;  %v4075_v0 = vsel %vm4074_vm4, %v4071_v7, %v4073_v14  ;;  %v10802_v35 = vld [vmem:[%s11945_s6] ss:$0 sm:$0xff] }
0x23d3   :  { %v4078_v42 = vsel %vm4076_vm5, %v4077_v48, %v4075_v0 }
0x23d4   :  { %v4085_v25 = vmul.f32 0.2, %v4078_v42 }
0x23d6   :  { %v4086_v37 = vmul.f32 %v8624_v15, %v4085_v25 }
0x23e8   :  { %4183 = vrot.lane.b32.xlu0 %v10559_v54, %s8834_s25  ;;  %v4188_v54 = vld [vmem:[%s11944_s5 + $0x8] sm:$0xff] }
0x23e9   :  { %v10753_v40 = vpack.c.bf16 %v4188_v54, %v4187_v22 }
0x245f   :  { %v4082_v52 = vpop.xlane.xlu0 %4081 }
0x2460   :  { %v4083_v41 = vadd.f32 1e-08, %v4082_v52 }
0x2462   :  { %8627 = vrsqrt.f32 %v4083_v41 }
0x2463   :  { %v4184_v31 = vpop.permute.xlu0 %4183 }
0x2464   :  { %v4186_v44 = vsel %vm68_vm0, %v7090_v39, %v4184_v31 }
0x246c   :  { %v8628_v1 = vpop.eup %8627 }
0x246d   :  { %v4087_v11 = vmul.f32 %v8628_v1, %v4086_v37  ;;  %v4296_v1 = vld [vmem:[%s11946_s7] sm:$0xff] }
0x246f   :  { %v4088_v51 = vadd.f32 %v4087_v11, %v3963_v21  ;;  %v4191_v21 = vld [vmem:[%s11944_s5 + $0x20] sm:$0xff]  ;;  %v4297_v11 = vld [vmem:[%s11946_s7 + $0x8] sm:$0xff] }
0x2470   :  { %v10775_v61 = vpack.c.bf16 %v4192_v20, %v4191_v21  ;;  %v10823_v62 = vpack.c.bf16 %v4297_v11, %v4296_v1 }
0x2471   :  { %7648 = vmatmul.mubr.msk.f32.vlgmr.msra.gmra.mrb[24].mxu1 %vm68_vm0, %v4088_v51  ;;  %v4298_v51 = vld [vmem:[%s11946_s7 + $0x10] sm:$0xff] }
0x2472   :  { %8348 = vmatpush3.bf16.msra.mxu1 %v10753_v40  ;;  %7666 = vmatprep.mubr.msk.f32.mxu1 %vm8836_vm3, %v12021_v43 }
0x2473   :  { %8349 = vmatprep.subr.bf16.mxu1 %v12022_v47  ;;  %8360 = vmatpush3.bf16.msra.mxu0 %v10823_v62 }
0x2474   :  { %8361 = vmatprep.subr.bf16.mxu0 %v12022_v47 }
0x2476   :  { %8351 = vmatpush3.bf16.msra.mxu1 %v10763_v26 }
0x2477   :  { %8352 = vmatprep.subr.bf16.mxu1 %v12022_v47 }
0x247a   :  { %8354 = vmatpush3.bf16.msra.mxu1 %v10775_v61 }
0x247b   :  { %8355 = vmatprep.subr.bf16.mxu1 %v12022_v47 }
0x247e   :  { %8357 = vmatpush3.bf16.msra.mxu1 %v10785_v18 }
0x247f   :  { %8364 = vmatprep.subr.bf16.mxu1 %v12022_v47 }
0x2481   :  { %7667 = vmatmul.mubr.msk.f32.vlgmr.msra.gmra.mrb[26].mxu1 %vm70_vm1, %v4186_v44 }
0x2482   :  { %7704 = vmatprep.mubr.msk.f32.mxu1 %vm8836_vm3, %v12021_v43 }
0x2544   :  { %v10797_v15 = vpop.f32.mrb[24].mxu1 }
0x2545   :  { %12055 = vst [vmem:[#allocation26_spill] sm:$0xff] %v10797_v15  ;;  %v7649_v49 = vpop.f32.mrb[25].mxu1 }
0x2554   :  { %v4271_v7 = vpop.f32.mrb[26].mxu1 }
0x2555   :  { %v4272_v19 = vadd.f32 %v10802_v35, %v4271_v7  ;;  %v7668_v14 = vpop.f32.mrb[27].mxu1 }
0x2557   :  { %v4275_v52 = vmul.f32 %v4272_v19, %v9461_v36 }
0x2559   :  { %8629 = vtanh.f32 %v4275_v52 }
0x2563   :  { %v8630_v41 = vpop.eup %8629 }
0x2564   :  { %v4277_v0 = vmul.f32 %v8630_v41, %v9461_v36 }
0x2566   :  { %v4278_v48 = vadd.f32 %v4277_v0, %v9471_v28 }
0x2568   :  { %4281 = vrot.lane.b32.xlu1 %v4278_v48, %s8834_s25  ;;  %v4279_v37 = vmul.f32 %v4278_v48, %v10555_v23  ;;  %v4299_v23 = vld [vmem:[%s11946_s7 + $0x18] sm:$0xff] }
0x2569   :  { %v10829_v16 = vpack.c.bf16 %v4299_v23, %v4298_v51 }
0x256b   :  { %8363 = vmatpush3.bf16.msra.mxu0 %v10829_v16 }
0x256c   :  { %8382 = vmatprep.subr.bf16.mxu0 %v12022_v47 }
0x25da   :  { %v4282_v42 = vpop.permute.xlu1 %4281 }
0x25db   :  { %v4284_v25 = vmul.f32 %v4282_v42, %v4278_v48 }
0x25dd   :  { %4286 = vrot.lane.b32.xlu1 %v4284_v25, %s8831_s27 }
0x264f   :  { %v4287_v22 = vpop.permute.xlu1 %4286 }
0x2650   :  { %v10811_v54 = vadd.f32 %v4287_v22, %v4279_v37 }
0x2652   :  { %8631 = vtanh.f32 %v10811_v54 }
0x265c   :  { %v8632_v21 = vpop.eup %8631 }
0x265d   :  { %4292 = vrot.lane.b32.xlu0 %v8632_v21, %s8834_s25 }
0x26cf   :  { %v4293_v20 = vpop.permute.xlu0 %4292 }
0x26d0   :  { %v10835_v24 = vmul.f32 %v4293_v20, %v4278_v48 }
0x26d2   :  { %4301 = vrot.lane.b32.xlu1 %v10835_v24, %s8831_s27 }
0x2744   :  { %v10839_v13 = vpop.permute.xlu1 %4301 }
0x2745   :  { %7678 = vmatmul.mubr.msk.f32.vlgmr.msra.gmra.mrb[22].mxu0 %vm68_vm0, %v10839_v13 }
0x2746   :  { %7715 = vmatprep.mubr.msk.f32.mxu0 %vm8836_vm3, %v12021_v43 }
0x2818   :  { %v4371_v39 = vpop.f32.mrb[22].mxu0 }
0x2819   :  { %v7679_v31 = vpop.f32.mrb[23].mxu0  ;;  %v4408_v44 = vmul.f32 %v4371_v39, %v9604_v32  ;;  %v4407_v49 = vmul.f32 %v4371_v39, %v9621_v17  ;;  %v4410_v7 = vmul.f32 %v4371_v39, %v9616_v59  ;;  %v4409_v19 = vmul.f32 %v4371_v39, %v12040_v56 }
0x281a   :  { %v4412_v14 = vmul.f32 %v4371_v39, %v12041_v5  ;;  %v4411_v52 = vmul.f32 %v4371_v39, %v12042_v45  ;;  %v4414_v41 = vmul.f32 %v4371_v39, %v12043_v29  ;;  %v4413_v0 = vmul.f32 %v4371_v39, %v12044_v38 }
0x281b   :  { %4425 = vrot.lane.b32.xlu1 %v4408_v44, %s8837_s15  ;;  %4423 = vrot.lane.b32.xlu0 %v4407_v49, %s8837_s15  ;;  %v4375_v48 = vmul.f32 %v10596_v30, %v4371_v39  ;;  %v4376_v25 = vmul.f32 %v10589_v10, %v4371_v39  ;;  %v4377_v22 = vmul.f32 %v10593_v8, %v4371_v39 }
0x281c   :  { %v4378_v11 = vmul.f32 %v10600_v2, %v4371_v39  ;;  %v4379_v23 = vmul.f32 %v10605_v9, %v4371_v39  ;;  %v4380_v20 = vmul.f32 %v10609_v34, %v4371_v39  ;;  %v4381_v44 = vmul.f32 %v10615_v58, %v4371_v39 }
0x281d   :  { %v4383_v42 = vsel %vm68_vm0, %v4375_v48, 0.0  ;;  %v4386_v37 = vsel %vm68_vm0, %v4376_v25, 0.0  ;;  %v4389_v1 = vsel %vm68_vm0, %v4377_v22, 0.0 }
0x281e   :  { %v4392_v51 = vsel %vm68_vm0, %v4378_v11, 0.0  ;;  %v4395_v21 = vsel %vm68_vm0, %v4379_v23, 0.0  ;;  %v4398_v31 = vsel %vm68_vm0, %v4380_v20, 0.0  ;;  %v4401_v49 = vsel %vm68_vm0, %v4381_v44, 0.0 }
0x281f   :  { %4429 = vrot.lane.b32.xlu1 %v4410_v7, %s8837_s15  ;;  %4427 = vrot.lane.b32.xlu0 %v4409_v19, %s8837_s15  ;;  %v4382_v7 = vmul.f32 %v10620_v63, %v4371_v39 }
0x2821   :  { %v4404_v19 = vsel %vm68_vm0, %v4382_v7, 0.0 }
0x2823   :  { %4433 = vrot.lane.b32.xlu1 %v4412_v14, %s8837_s15  ;;  %4431 = vrot.lane.b32.xlu0 %v4411_v52, %s8837_s15 }
0x2827   :  { %4437 = vrot.lane.b32.xlu1 %v4414_v41, %s8837_s15  ;;  %4435 = vrot.lane.b32.xlu0 %v4413_v0, %s8837_s15 }
0x2846   :  { %4384 = vadd.xlane.f32.xlu0 %v4383_v42 }
0x284b   :  { %4387 = vadd.xlane.f32.xlu1 %v4386_v37 }
0x284f   :  { %4390 = vadd.xlane.f32.xlu1 %v4389_v1 }
0x2853   :  { %4393 = vadd.xlane.f32.xlu1 %v4392_v51 }
0x2857   :  { %4396 = vadd.xlane.f32.xlu1 %v4395_v21 }
0x285b   :  { %4399 = vadd.xlane.f32.xlu1 %v4398_v31 }
0x285f   :  { %4402 = vadd.xlane.f32.xlu1 %v4401_v49 }
0x2863   :  { %4405 = vadd.xlane.f32.xlu1 %v4404_v19 }
0x288d   :  { %v4424_v14 = vpop.permute.xlu0 %4423  ;;  %v4426_v41 = vpop.permute.xlu1 %4425 }
0x288e   :  { %v4447_v52 = vsel %vm68_vm0, %v4424_v14, 0.0  ;;  %v4450_v0 = vsel %vm68_vm0, %v4426_v41, 0.0 }
0x288f   :  { %4448 = vadd.xlane.f32.xlu0 %v4447_v52 }
0x2891   :  { %v4428_v48 = vpop.permute.xlu0 %4427  ;;  %v4430_v25 = vpop.permute.xlu1 %4429 }
0x2892   :  { %v4453_v42 = vsel %vm68_vm0, %v4428_v48, 0.0  ;;  %v4456_v37 = vsel %vm68_vm0, %v4430_v25, 0.0 }
0x2893   :  { %4451 = vadd.xlane.f32.xlu0 %v4450_v0 }
0x2895   :  { %v4432_v39 = vpop.permute.xlu0 %4431  ;;  %v4434_v1 = vpop.permute.xlu1 %4433 }
0x2896   :  { %v4459_v22 = vsel %vm68_vm0, %v4432_v39, 0.0  ;;  %v4462_v11 = vsel %vm68_vm0, %v4434_v1, 0.0 }
0x2897   :  { %4454 = vadd.xlane.f32.xlu0 %v4453_v42 }
0x2899   :  { %v4436_v51 = vpop.permute.xlu0 %4435  ;;  %v4438_v21 = vpop.permute.xlu1 %4437 }
0x289a   :  { %v4465_v23 = vsel %vm68_vm0, %v4436_v51, 0.0  ;;  %v4468_v20 = vsel %vm68_vm0, %v4438_v21, 0.0 }
0x289b   :  { %4457 = vadd.xlane.f32.xlu0 %v4456_v37 }
0x289f   :  { %4460 = vadd.xlane.f32.xlu0 %v4459_v22 }
0x28a3   :  { %4463 = vadd.xlane.f32.xlu0 %v4462_v11 }
0x28a7   :  { %4466 = vadd.xlane.f32.xlu0 %v4465_v23 }
0x28ab   :  { %4469 = vadd.xlane.f32.xlu0 %v4468_v20 }
0x28d3   :  { %v4385_v44 = vpop.xlane.xlu0 %4384 }
0x28d8   :  { %v4388_v31 = vpop.xlane.xlu1 %4387 }
0x28dc   :  { %v4391_v49 = vpop.xlane.xlu1 %4390 }
0x28e0   :  { %v4394_v19 = vpop.xlane.xlu1 %4393 }
0x28e4   :  { %v4397_v41 = vpop.xlane.xlu1 %4396 }
0x28e8   :  { %v4400_v48 = vpop.xlane.xlu1 %4399 }
0x28ec   :  { %v4403_v11 = vpop.xlane.xlu1 %4402 }
0x291c   :  { %v4449_v7 = vpop.xlane.xlu0 %4448 }
0x291d   :  { %v4471_v22 = vadd.f32 %v4449_v7, %v4385_v44 }
0x291f   :  { %v4490_v38 = vrot.slane %v4471_v22, %v9713_v53 }
0x2920   :  { %v4452_v14 = vpop.xlane.xlu0 %4451 }
0x2921   :  { %v4472_v25 = vadd.f32 %v4452_v14, %v4388_v31 }
0x2923   :  { %v4494_v23 = vrot.slane %v4472_v25, %v9713_v53 }
0x2924   :  { %v4455_v52 = vpop.xlane.xlu0 %4454 }
0x2925   :  { %v4473_v37 = vadd.f32 %v4455_v52, %v4391_v49  ;;  %v4519_v31 = vsel %vm1668_vm7, %v4494_v23, %v4490_v38  ;;  %v4406_v49 = vpop.xlane.xlu1 %4405 }
0x2927   :  { %v4498_v20 = vrot.slane %v4473_v37, %v9713_v53 }
0x2928   :  { %v4458_v0 = vpop.xlane.xlu0 %4457 }
0x2929   :  { %v4474_v1 = vadd.f32 %v4458_v0, %v4394_v19  ;;  %v4520_v7 = vsel %vm1670_vm8, %v4498_v20, %v4519_v31 }
0x292b   :  { %v4502_v29 = vrot.slane %v4474_v1, %v9713_v53 }
0x292c   :  { %v4461_v42 = vpop.xlane.xlu0 %4460 }
0x292d   :  { %v4475_v51 = vadd.f32 %v4461_v42, %v4397_v41  ;;  %v4521_v52 = vsel %vm1672_vm9, %v4502_v29, %v4520_v7 }
0x292f   :  { %v4506_v5 = vrot.slane %v4475_v51, %v9713_v53 }
0x2930   :  { %v4464_v39 = vpop.xlane.xlu0 %4463 }
0x2931   :  { %v4476_v21 = vadd.f32 %v4464_v39, %v4400_v48  ;;  %v4522_v0 = vsel %vm1674_vm10, %v4506_v5, %v4521_v52 }
0x2933   :  { %v4510_v44 = vrot.slane %v4476_v21, %v9713_v53 }
0x2934   :  { %v4467_v15 = vpop.xlane.xlu0 %4466 }
0x2935   :  { %v4477_v45 = vadd.f32 %v4467_v15, %v4403_v11  ;;  %v4523_v48 = vsel %vm1676_vm11, %v4510_v44, %v4522_v0 }
0x2937   :  { %v4514_v19 = vrot.slane %v4477_v45, %v9713_v53 }
0x2938   :  { %v4470_v14 = vpop.xlane.xlu0 %4469 }
0x2939   :  { %v4478_v41 = vadd.f32 %v4470_v14, %v4406_v49  ;;  %v4524_v42 = vsel %vm1678_vm12, %v4514_v19, %v4523_v48 }
0x293b   :  { %v4518_v15 = vrot.slane %v4478_v41, %v9713_v53 }
0x293d   :  { %v4525_v38 = vsel %vm1680_vm13, %v4518_v15, %v4524_v42 }
0x293e   :  { %v4527_v25 = vsel %vm1301_vm14, %v4525_v38, -1e+09 }
0x293f   :  { %v4528_v37 = vsel %vm1684_vm15, %v4527_v25, -inf }
0x2940   :  { %v4529_v45 = vrot.slane %v4528_v37, 4 }
0x2942   :  { %v4530_v39 = vmax.f32 %v4528_v37, %v4529_v45 }
0x2944   :  { %v4531_v22 = vrot.slane %v4530_v39, 2 }
0x2946   :  { %v4532_v29 = vmax.f32 %v4530_v39, %v4531_v22  ;;  %v12056_v22 = vld [vmem:[#allocation16_spill] sm:$0xff] }
0x2948   :  { %v4533_v1 = vrot.slane %v4532_v29, 1 }
0x294a   :  { %v4534_v11 = vmax.f32 %v4532_v29, %v4533_v1  ;;  %v4686_v1 = vld [vmem:[%s11947_s8] sm:$0xff] }
0x294c   :  { %v4535_v5 = vsub.f32 %v4527_v25, %v4534_v11  ;;  %v4687_v11 = vld [vmem:[%s11947_s8 + $0x8] sm:$0xff] }
0x294e   :  { %v4536_v51 = vmul.f32 1.442695, %v4535_v5  ;;  %v4688_v5 = vld [vmem:[%s11947_s8 + $0x10] sm:$0xff] }
0x2950   :  { %8633 = vpow2.f32 %v4536_v51  ;;  %v10925_v51 = vpack.c.bf16 %v4687_v11, %v4686_v1 }
0x2952   :  { %8366 = vmatpush3.bf16.msra.mxu1 %v10925_v51 }
0x2953   :  { %8367 = vmatprep.subr.bf16.mxu1 %v12022_v47 }
0x295a   :  { %v8634_v23 = vpop.eup %8633 }
0x295b   :  { %v4538_v21 = vsel %vm1684_vm15, %v8634_v23, 0.0 }
0x295c   :  { %v4539_v20 = vrot.slane %v4538_v21, 4 }
0x295e   :  { %v4540_v31 = vadd.f32 %v4539_v20, %v4538_v21  ;;  %v4690_v20 = vld [vmem:[%s11947_s8 + $0x20] sm:$0xff] }
0x2960   :  { %v4541_v44 = vrot.slane %v4540_v31, 2 }
0x2962   :  { %v4542_v49 = vadd.f32 %v4541_v44, %v4540_v31  ;;  %v4691_v31 = vld [vmem:[%s11947_s8 + $0x28] sm:$0xff] }
0x2963   :  { %v10941_v44 = vpack.c.bf16 %v4691_v31, %v4690_v20 }
0x2964   :  { %v4543_v7 = vrot.slane %v4542_v49, 1 }
0x2966   :  { %v4544_v19 = vadd.f32 %v4543_v7, %v4542_v49  ;;  %v4692_v49 = vld [vmem:[%s11947_s8 + $0x30] sm:$0xff]  ;;  %v4693_v7 = vld [vmem:[%s11947_s8 + $0x38] sm:$0xff] }
0x2968   :  { %8635 = vrcp.f32 %v4544_v19 }
0x2972   :  { %v8636_v14 = vpop.eup %8635 }
0x2973   :  { %v4546_v52 = vmul.f32 %v8636_v14, %v4544_v19  ;;  %v10951_v19 = vpack.c.bf16 %v4693_v7, %v4692_v49 }
0x2975   :  { %v4547_v41 = vsub.f32 2.0, %v4546_v52  ;;  %v4695_v52 = vld [vmem:[%s11947_s8 + $0x48] sm:$0xff] }
0x2977   :  { %v4548_v0 = vmul.f32 %v8636_v14, %v4547_v41  ;;  %v4694_v14 = vld [vmem:[%s11947_s8 + $0x40] sm:$0xff] }
0x2978   :  { %v10961_v41 = vpack.c.bf16 %v4695_v52, %v4694_v14  ;;  %v12059_v14 = vld [vmem:[#allocation22_spill] sm:$0xff] }
0x2979   :  { %v4549_v48 = vmul.f32 %v8634_v23, %v4548_v0  ;;  %v4689_v23 = vld [vmem:[%s11947_s8 + $0x18] sm:$0xff]  ;;  %v4696_v0 = vld [vmem:[%s11947_s8 + $0x50] sm:$0xff] }
0x297a   :  { %v10931_v21 = vpack.c.bf16 %v4689_v23, %v4688_v5 }
0x297b   :  { %7097 = vst.msk [vmem:[%s11951_s12 + $0x20] sm:$0xff] %vm1684_vm15, %v4549_v48  ;;  %v4560_v15 = vrot.slane %v4549_v48, %v9113_v60  ;;  %v4553_v42 = vrot.slane %v4549_v48, %v9106_v57  ;;  %v4581_v38 = vrot.slane %v4549_v48, %v9755_v46  ;;  %v4567_v25 = vrot.slane %v4549_v48, %v9747_v27 }
0x297c   :  { %v4595_v37 = vrot.slane %v4549_v48, %v12046_v6  ;;  %v4574_v45 = vrot.slane %v4549_v48, %v9750_v33  ;;  %v4588_v39 = vrot.slane %v4549_v48, %v12045_v4  ;;  %v4602_v29 = vrot.slane %v4549_v48, %v12056_v22  ;;  %8369 = vmatpush3.bf16.msra.mxu1 %v10931_v21  ;;  %v4697_v48 = vld [vmem:[%s11947_s8 + $0x58] sm:$0xff] }
0x297d   :  { %4562 = vbcast.lane.b32.xlu0 %v4560_v15, 256  ;;  %4555 = vbcast.lane.b32.xlu1 %v4553_v42, 256  ;;  %v10971_v15 = vpack.c.bf16 %v4697_v48, %v4696_v0 }
0x297e   :  { %8370 = vmatprep.subr.bf16.mxu1 %v12022_v47 }
0x2980   :  { %8372 = vmatpush3.bf16.msra.mxu1 %v10941_v44 }
0x2981   :  { %4583 = vbcast.lane.b32.xlu0 %v4581_v38, 256  ;;  %4569 = vbcast.lane.b32.xlu1 %v4567_v25, 256 }
0x2982   :  { %8373 = vmatprep.subr.bf16.mxu1 %v12022_v47 }
0x2984   :  { %8375 = vmatpush3.bf16.msra.mxu1 %v10951_v19 }
0x2985   :  { %4597 = vbcast.lane.b32.xlu0 %v4595_v37, 256  ;;  %4576 = vbcast.lane.b32.xlu1 %v4574_v45, 256  ;;  %v12057_v37 = vld [vmem:[#allocation19_spill] sm:$0xff] }
0x2986   :  { %8376 = vmatprep.subr.bf16.mxu1 %v12022_v47 }
0x2988   :  { %8378 = vmatpush3.bf16.msra.mxu1 %v10961_v41 }
0x2989   :  { %4590 = vbcast.lane.b32.xlu1 %v4588_v39, 256  ;;  %8379 = vmatprep.subr.bf16.mxu1 %v12022_v47 }
0x298c   :  { %8381 = vmatpush3.bf16.msra.mxu1 %v10971_v15 }
0x298d   :  { %4604 = vbcast.lane.b32.xlu1 %v4602_v29, 256  ;;  %8400 = vmatprep.subr.bf16.mxu1 %v12022_v47  ;;  %v12058_v29 = vld [vmem:[#allocation20_spill] sm:$0xff] }
0x29ef   :  { %v4563_v42 = vpop.permute.xlu0 %4562  ;;  %v4556_v38 = vpop.permute.xlu1 %4555 }
0x29f0   :  { %v4607_v25 = vmul.f32 %v10589_v10, %v4563_v42  ;;  %v4630_v45 = vmul.f32 %v12057_v37, %v4563_v42  ;;  %v4606_v39 = vmul.f32 %v10596_v30, %v4556_v38  ;;  %v4629_v1 = vmul.f32 %v12058_v29, %v4556_v38  ;;  %v12060_v29 = vld [vmem:[#allocation24_spill] sm:$0xff] }
0x29f2   :  { %v4615_v5 = vsel %vm68_vm0, %v4607_v25, 0.0  ;;  %v4638_v23 = vsel %vm68_vm0, %v4630_v45, 0.0  ;;  %v4614_v31 = vsel %vm68_vm0, %v4606_v39, 0.0  ;;  %v4637_v49 = vsel %vm68_vm0, %v4629_v1, 0.0  ;;  %v12061_v39 = vld [vmem:[#allocation21_spill] sm:$0xff] }
0x29f3   :  { %v4570_v11 = vpop.permute.xlu1 %4569  ;;  %v4584_v20 = vpop.permute.xlu0 %4583  ;;  %v4616_v48 = vadd.f32 %v4615_v5, %v4614_v31  ;;  %v4639_v37 = vadd.f32 %v4638_v23, %v4637_v49  ;;  %v12062_v49 = vld [vmem:[#allocation8_spill] sm:$0xff] }
0x29f4   :  { %v4608_v7 = vmul.f32 %v10593_v8, %v4570_v11  ;;  %v4631_v10 = vmul.f32 %v12059_v14, %v4570_v11  ;;  %v4610_v25 = vmul.f32 %v10605_v9, %v4584_v20  ;;  %v4633_v45 = vmul.f32 %v12060_v29, %v4584_v20 }
0x29f6   :  { %v4617_v52 = vsel %vm68_vm0, %v4608_v7, 0.0  ;;  %v4640_v30 = vsel %vm68_vm0, %v4631_v10, 0.0  ;;  %v4621_v10 = vsel %vm68_vm0, %v4610_v25, 0.0  ;;  %v4644_v31 = vsel %vm68_vm0, %v4633_v45, 0.0 }
0x29f7   :  { %v4577_v0 = vpop.permute.xlu1 %4576  ;;  %v4618_v1 = vadd.f32 %v4617_v52, %v4616_v48  ;;  %v4641_v4 = vadd.f32 %v4640_v30, %v4639_v37  ;;  %v4598_v8 = vpop.permute.xlu0 %4597  ;;  %v12063_v52 = vld [vmem:[#allocation23_spill] sm:$0xff] }
0x29f8   :  { %v4609_v22 = vmul.f32 %v10600_v2, %v4577_v0  ;;  %v4632_v6 = vmul.f32 %v12061_v39, %v4577_v0  ;;  %v4612_v2 = vmul.f32 %v10615_v58, %v4598_v8  ;;  %v4635_v29 = vmul.f32 %v12062_v49, %v4598_v8  ;;  %v11007_v58 = vld [vmem:[%s11939_s0 + $0x8] sm:$0xff] }
0x29f9   :  { %v4653_v45 = vmul.f32 %v11007_v58, %v4563_v42 }
0x29fa   :  { %v4619_v14 = vsel %vm68_vm0, %v4609_v22, 0.0  ;;  %v4642_v7 = vsel %vm68_vm0, %v4632_v6, 0.0 }
0x29fb   :  { %v4591_v46 = vpop.permute.xlu1 %4590  ;;  %v4620_v5 = vadd.f32 %v4619_v14, %v4618_v1  ;;  %v4643_v23 = vadd.f32 %v4642_v7, %v4641_v4  ;;  %v4652_v14 = vmul.f32 %v10712_v12, %v4556_v38  ;;  %v4625_v7 = vsel %vm68_vm0, %v4612_v2, 0.0  ;;  %v11026_v2 = vld [vmem:[%s11939_s0 + $0x18] sm:$0xff] }
0x29fc   :  { %v4611_v9 = vmul.f32 %v10609_v34, %v4591_v46  ;;  %v4634_v30 = vmul.f32 %v12063_v52, %v4591_v46  ;;  %v4661_v12 = vsel %vm68_vm0, %v4653_v45, 0.0  ;;  %v11050_v45 = vld [vmem:[%s11939_s0 + $0x30] sm:$0xff] }
0x29fd   :  { %v4622_v48 = vadd.f32 %v4621_v10, %v4620_v5  ;;  %v4645_v37 = vadd.f32 %v4644_v31, %v4643_v23  ;;  %v4648_v10 = vsel %vm68_vm0, %v4635_v29, 0.0  ;;  %v4660_v38 = vsel %vm68_vm0, %v4652_v14, 0.0 }
0x29fe   :  { %v4623_v22 = vsel %vm68_vm0, %v4611_v9, 0.0  ;;  %v4646_v6 = vsel %vm68_vm0, %v4634_v30, 0.0  ;;  %v4655_v29 = vmul.f32 %v11026_v2, %v4577_v0  ;;  %v11042_v0 = vld [vmem:[%s11939_s0 + $0x28] sm:$0xff] }
0x29ff   :  { %v4605_v39 = vpop.permute.xlu1 %4604  ;;  %v4624_v25 = vadd.f32 %v4623_v22, %v4622_v48  ;;  %v4647_v1 = vadd.f32 %v4646_v6, %v4645_v37  ;;  %v11036_v37 = vld [vmem:[%s11939_s0 + $0x20] sm:$0xff] }
0x2a00   :  { %v4613_v4 = vmul.f32 %v10620_v63, %v4605_v39  ;;  %v4636_v34 = vmul.f32 %v10703_v55, %v4605_v39  ;;  %v11018_v55 = vld [vmem:[%s11939_s0 + $0x10] sm:$0xff]  ;;  %v4665_v30 = vsel %vm68_vm0, %v4655_v29, 0.0  ;;  %v4656_v22 = vmul.f32 %v11036_v37, %v4584_v20  ;;  %v4801_v29 = vld [vmem:[%s11949_s10 + $0x8] sm:$0xff] }
0x2a01   :  { %v4649_v63 = vadd.f32 %v4648_v10, %v4647_v1  ;;  %v4626_v9 = vadd.f32 %v4625_v7, %v4624_v25  ;;  %v4654_v31 = vmul.f32 %v11018_v55, %v4570_v11  ;;  %v4662_v11 = vadd.f32 %v4661_v12, %v4660_v38 }
0x2a02   :  { %v4627_v5 = vsel %vm68_vm0, %v4613_v4, 0.0  ;;  %v4650_v23 = vsel %vm68_vm0, %v4636_v34, 0.0  ;;  %v4657_v25 = vmul.f32 %v11042_v0, %v4591_v46  ;;  %v4667_v1 = vsel %vm68_vm0, %v4656_v22, 0.0 }
0x2a03   :  { %v4651_v42 = vadd.f32 %v4650_v23, %v4649_v63  ;;  %v4628_v49 = vadd.f32 %v4627_v5, %v4626_v9  ;;  %v4663_v52 = vsel %vm68_vm0, %v4654_v31, 0.0  ;;  %v4658_v20 = vmul.f32 %v11050_v45, %v4598_v8 }
0x2a04   :  { %v4664_v48 = vadd.f32 %v4663_v52, %v4662_v11  ;;  %v4669_v34 = vsel %vm68_vm0, %v4657_v25, 0.0  ;;  %v4659_v7 = vmul.f32 %v10732_v3, %v4605_v39  ;;  %v4802_v11 = vld [vmem:[%s11949_s10 + $0x10] sm:$0xff] }
0x2a05   :  { %4681 = vrot.lane.b32.xlu1 %v4651_v42, %s8834_s25  ;;  %4677 = vrot.lane.b32.xlu0 %v4628_v49, %s8831_s27  ;;  %v4671_v10 = vsel %vm68_vm0, %v4658_v20, 0.0 }
0x2a06   :  { %v4666_v6 = vadd.f32 %v4665_v30, %v4664_v48  ;;  %v4673_v46 = vsel %vm68_vm0, %v4659_v7, 0.0  ;;  %v4803_v30 = vld [vmem:[%s11949_s10 + $0x18] sm:$0xff] }
0x2a07   :  { %v11092_v48 = vpack.c.bf16 %v4803_v30, %v4802_v11  ;;  %v12065_v11 = vld [vmem:[#allocation10_spill] sm:$0xff] }
0x2a08   :  { %v4668_v4 = vadd.f32 %v4667_v1, %v4666_v6 }
0x2a0a   :  { %v4670_v14 = vadd.f32 %v4669_v34, %v4668_v4 }
0x2a0c   :  { %v4672_v5 = vadd.f32 %v4671_v10, %v4670_v14 }
0x2a0e   :  { %v4674_v23 = vadd.f32 %v4673_v46, %v4672_v5 }
0x2a10   :  { %v4779_v63 = vmul.f32 %v4674_v23, %v4674_v23 }
0x2a12   :  { %v4780_v9 = vsel %vm68_vm0, %v4779_v63, 0.0 }
0x2a24   :  { %4781 = vadd.xlane.f32.xlu0 %v4780_v9 }
0x2a3a   :  { %4894 = vrot.lane.b32.xlu0 %v10835_v24, %s8834_s25  ;;  %v11072_v24 = vld [vmem:[%s11948_s9] ss:$0 sm:$0xff] }
0x2a77   :  { %v4682_v31 = vpop.permute.xlu1 %4681  ;;  %v4678_v42 = vpop.permute.xlu0 %4677 }
0x2a78   :  { %v4684_v8 = vsel %vm68_vm0, %v10839_v13, %v4678_v42 }
0x2a79   :  { %v4685_v3 = vsel %vm70_vm1, %v4684_v8, %v4682_v31 }
0x2a7a   :  { %7705 = vmatmul.mubr.msk.f32.vlgmr.msra.gmra.mrb[28].mxu1 %vm1862_vm2, %v4685_v3 }
0x2a7b   :  { %8402 = vmatpush3.bf16.msra.mxu1 %v10823_v62  ;;  %7745 = vmatprep.mubr.msk.f32.mxu1 %vm8836_vm3, %v12021_v43 }
0x2a7c   :  { %8403 = vmatprep.subr.bf16.mxu1 %v12022_v47 }
0x2a7f   :  { %8405 = vmatpush3.bf16.msra.mxu1 %v10829_v16  ;;  %v4800_v16 = vld [vmem:[%s11949_s10] sm:$0xff] }
0x2a80   :  { %8424 = vmatprep.subr.bf16.mxu1 %v12022_v47  ;;  %v11082_v52 = vpack.c.bf16 %v4801_v29, %v4800_v16 }
0x2a82   :  { %8384 = vmatpush3.bf16.msra.mxu0 %v11082_v52 }
0x2a83   :  { %8385 = vmatprep.subr.bf16.mxu0 %v12022_v47 }
0x2a86   :  { %8387 = vmatpush3.bf16.msra.mxu0 %v11092_v48 }
0x2a87   :  { %8388 = vmatprep.subr.bf16.mxu0 %v12022_v47 }
0x2ab1   :  { %v4782_v22 = vpop.xlane.xlu0 %4781 }
0x2ab2   :  { %vm4785_vm6 = vcmp.eq.f32.partialorder %v4782_v22, inf  ;;  %v4788_v20 = vand.u32 2147483648, %v4782_v22  ;;  %vm4787_vm4 = vcmp.eq.f32.partialorder %v4782_v22, 0.0 }
0x2ab5   :  { %v4895_v9 = vpop.permute.xlu0 %4894 }
0x2b4d   :  { %v4774_v13 = vpop.f32.mrb[28].mxu1 }
0x2b4e   :  { %v4775_v39 = vadd.f32 %v11072_v24, %v4774_v13  ;;  %v7706_v49 = vpop.f32.mrb[29].mxu1 }
0x2b50   :  { %8637 = vtanh.f32 %v4775_v39 }
0x2b51   :  { %8639 = vrsqrt.f32 %v4782_v22 }
0x2b5a   :  { %v8638_v62 = vpop.eup %8637 }
0x2b5b   :  { %v4790_v12 = vmul.f32 %v8638_v62, %v8638_v62  ;;  %v8640_v6 = vpop.eup %8639 }
0x2b5c   :  { %v4784_v25 = vmul.f32 %v8640_v6, %v4782_v22  ;;  %v12067_v6 = vld [vmem:[#allocation12_spill] sm:$0xff] }
0x2b5d   :  { %v4791_v38 = vsel %vm68_vm0, %v4790_v12, 0.0 }
0x2b5e   :  { %4792 = vadd.xlane.f32.xlu1 %v4791_v38  ;;  %v4786_v34 = vsel %vm4785_vm6, %v4782_v22, %v4784_v25 }
0x2b5f   :  { %v4789_v14 = vsel %vm4787_vm4, %v4788_v20, %v4786_v34  ;;  %v11169_v34 = vld [vmem:[#allocation2 + $0x8] sm:$0xff] }
0x2b60   :  { %v4796_v7 = vmul.f32 0.2, %v4789_v14 }
0x2b62   :  { %v4797_v10 = vmul.f32 %v8638_v62, %v4796_v7  ;;  %v11173_v7 = vld [vmem:[#allocation2 + $0x10] sm:$0xff] }
0x2beb   :  { %v4793_v1 = vpop.xlane.xlu1 %4792 }
0x2bec   :  { %v4794_v4 = vadd.f32 1e-08, %v4793_v1  ;;  %v12068_v1 = vld [vmem:[#allocation11_spill] sm:$0xff] }
0x2bee   :  { %8641 = vrsqrt.f32 %v4794_v4 }
0x2bf8   :  { %v8642_v5 = vpop.eup %8641 }
0x2bf9   :  { %v4798_v46 = vmul.f32 %v8642_v5, %v4797_v10  ;;  %v11176_v5 = vld [vmem:[#allocation2] sm:$0xff] }
0x2bfb   :  { %v4799_v63 = vadd.f32 %v4798_v46, %v4674_v23  ;;  %v7098_v23 = vld [vmem:[%s11940_s1 + $0x28] sm:$0xff] }
0x2bfd   :  { %7716 = vmatmul.mubr.msk.f32.vlgmr.msra.gmra.mrb[24].mxu0 %vm68_vm0, %v4799_v63 }
0x2bfe   :  { %8390 = vmatpush3.bf16.msra.mxu0 %v10753_v40  ;;  %7734 = vmatprep.mubr.msk.f32.mxu0 %vm8836_vm3, %v12021_v43  ;;  %v4897_v40 = vsel %vm68_vm0, %v7098_v23, %v4895_v9  ;;  %v11180_v23 = vld [vmem:[#allocation2 + $0x18] sm:$0xff] }
0x2bff   :  { %8391 = vmatprep.subr.bf16.mxu0 %v12022_v47 }
0x2c02   :  { %8393 = vmatpush3.bf16.msra.mxu0 %v10763_v26 }
0x2c03   :  { %8394 = vmatprep.subr.bf16.mxu0 %v12022_v47 }
0x2c06   :  { %8396 = vmatpush3.bf16.msra.mxu0 %v10775_v61 }
0x2c07   :  { %8397 = vmatprep.subr.bf16.mxu0 %v12022_v47 }
0x2c0a   :  { %8399 = vmatpush3.bf16.msra.mxu0 %v10785_v18 }
0x2c0b   :  { %8406 = vmatprep.subr.bf16.mxu0 %v12022_v47 }
0x2c0d   :  { %7735 = vmatmul.mubr.msk.f32.vlgmr.msra.gmra.mrb[26].mxu0 %vm70_vm1, %v4897_v40 }
0x2c0e   :  { %8408 = vmatpush3.bf16.msra.mxu0 %v10925_v51  ;;  %7772 = vmatprep.mubr.msk.f32.mxu0 %vm8836_vm3, %v12021_v43 }
0x2c0f   :  { %8409 = vmatprep.subr.bf16.mxu0 %v12022_v47 }
0x2c12   :  { %8411 = vmatpush3.bf16.msra.mxu0 %v10931_v21 }
0x2c13   :  { %8412 = vmatprep.subr.bf16.mxu0 %v12022_v47 }
0x2c16   :  { %8414 = vmatpush3.bf16.msra.mxu0 %v10941_v44 }
0x2c17   :  { %8415 = vmatprep.subr.bf16.mxu0 %v12022_v47 }
0x2c1a   :  { %8417 = vmatpush3.bf16.msra.mxu0 %v10951_v19 }
0x2c1b   :  { %8418 = vmatprep.subr.bf16.mxu0 %v12022_v47 }
0x2c1e   :  { %8420 = vmatpush3.bf16.msra.mxu0 %v10961_v41 }
0x2c1f   :  { %8421 = vmatprep.subr.bf16.mxu0 %v12022_v47 }
0x2c22   :  { %8423 = vmatpush3.bf16.msra.mxu0 %v10971_v15 }
0x2c23   :  { %8442 = vmatprep.subr.bf16.mxu0 %v12022_v47 }
0x2cd0   :  { %v11126_v26 = vpop.f32.mrb[24].mxu0 }
0x2cd1   :  { %12064 = vst [vmem:[#allocation19_spill] sm:$0xff] %v11126_v26  ;;  %v7717_v61 = vpop.f32.mrb[25].mxu0 }
0x2ce0   :  { %v4982_v18 = vpop.f32.mrb[26].mxu0 }
0x2ce1   :  { %v4983_v51 = vadd.f32 %v10802_v35, %v4982_v18  ;;  %v7736_v21 = vpop.f32.mrb[27].mxu0  ;;  %v11185_v18 = vld [vmem:[#allocation2 + $0x20] sm:$0xff] }
0x2ce3   :  { %v4986_v44 = vmul.f32 %v4983_v51, %v9461_v36 }
0x2ce5   :  { %8643 = vtanh.f32 %v4986_v44  ;;  %v11189_v44 = vld [vmem:[#allocation2 + $0x28] sm:$0xff] }
0x2cef   :  { %v8644_v19 = vpop.eup %8643 }
0x2cf0   :  { %v4988_v31 = vmul.f32 %v8644_v19, %v9461_v36 }
0x2cf2   :  { %v4989_v41 = vadd.f32 %v4988_v31, %v9471_v28 }
0x2cf4   :  { %4992 = vrot.lane.b32.xlu1 %v4989_v41, %s8834_s25  ;;  %v4990_v8 = vmul.f32 %v4989_v41, %v10811_v54 }
0x2d66   :  { %v4993_v15 = vpop.permute.xlu1 %4992 }
0x2d67   :  { %v4995_v42 = vmul.f32 %v4993_v15, %v4989_v41 }
0x2d69   :  { %4997 = vrot.lane.b32.xlu0 %v4995_v42, %s8831_s27 }
0x2ddb   :  { %v4998_v3 = vpop.permute.xlu0 %4997 }
0x2ddc   :  { %v11135_v13 = vadd.f32 %v4998_v3, %v4990_v8  ;;  %v11195_v3 = vld [vmem:[#allocation2 + $0x30] sm:$0xff] }
0x2dde   :  { %8645 = vtanh.f32 %v11135_v13 }
0x2de8   :  { %v8646_v35 = vpop.eup %8645 }
0x2de9   :  { %5003 = vrot.lane.b32.xlu1 %v8646_v35, %s8834_s25 }
0x2e5b   :  { %v5004_v39 = vpop.permute.xlu1 %5003 }
0x2e5c   :  { %v11139_v49 = vmul.f32 %v5004_v39, %v4989_v41 }
0x2e5e   :  { %5012 = vrot.lane.b32.xlu0 %v11139_v49, %s8831_s27 }
0x2ed0   :  { %v11143_v62 = vpop.permute.xlu0 %5012 }
0x2ed1   :  { %7746 = vmatmul.mubr.msk.f32.vlgmr.msra.gmra.mrb[30].mxu1 %vm68_vm0, %v11143_v62 }
0x2ed2   :  { %8426 = vmatpush3.bf16.msra.mxu1 %v11082_v52  ;;  %7783 = vmatprep.mubr.msk.f32.mxu1 %vm8836_vm3, %v12021_v43 }
0x2ed3   :  { %8427 = vmatprep.subr.bf16.mxu1 %v12022_v47 }
0x2ed6   :  { %8429 = vmatpush3.bf16.msra.mxu1 %v11092_v48  ;;  %v12066_v48 = vld [vmem:[#allocation9_spill] sm:$0xff] }
0x2ed7   :  { %8430 = vmatprep.subr.bf16.mxu1 %v12022_v47 }
0x2fa4   :  { %v5082_v54 = vpop.f32.mrb[30].mxu1 }
0x2fa5   :  { %v7747_v12 = vpop.f32.mrb[31].mxu1  ;;  %v5119_v38 = vmul.f32 %v5082_v54, %v9604_v32  ;;  %v5118_v16 = vmul.f32 %v5082_v54, %v9621_v17  ;;  %v5121_v29 = vmul.f32 %v5082_v54, %v9616_v59  ;;  %v5120_v52 = vmul.f32 %v5082_v54, %v12040_v56 }
0x2fa6   :  { %v5123_v30 = vmul.f32 %v5082_v54, %v12065_v11  ;;  %v5122_v22 = vmul.f32 %v5082_v54, %v12066_v48  ;;  %v5125_v25 = vmul.f32 %v5082_v54, %v12067_v6  ;;  %v5124_v4 = vmul.f32 %v5082_v54, %v12068_v1 }
0x2fa7   :  { %5136 = vrot.lane.b32.xlu0 %v5119_v38, %s8837_s15  ;;  %5134 = vrot.lane.b32.xlu1 %v5118_v16, %s8837_s15  ;;  %v5087_v20 = vmul.f32 %v11169_v34, %v5082_v54  ;;  %v5088_v10 = vmul.f32 %v11173_v7, %v5082_v54  ;;  %v5086_v46 = vmul.f32 %v11176_v5, %v5082_v54  ;;  %v11200_v16 = vld [vmem:[#allocation2 + $0x38] sm:$0xff] }
0x2fa8   :  { %v5089_v9 = vmul.f32 %v11180_v23, %v5082_v54  ;;  %v5090_v51 = vmul.f32 %v11185_v18, %v5082_v54  ;;  %v5091_v19 = vmul.f32 %v11189_v44, %v5082_v54  ;;  %v5092_v35 = vmul.f32 %v11195_v3, %v5082_v54 }
0x2fa9   :  { %v5097_v14 = vsel %vm68_vm0, %v5087_v20, 0.0  ;;  %v5100_v63 = vsel %vm68_vm0, %v5088_v10, 0.0  ;;  %v5094_v40 = vsel %vm68_vm0, %v5086_v46, 0.0 }
0x2faa   :  { %v5103_v61 = vsel %vm68_vm0, %v5089_v9, 0.0  ;;  %v5106_v21 = vsel %vm68_vm0, %v5090_v51, 0.0  ;;  %v5109_v31 = vsel %vm68_vm0, %v5091_v19, 0.0  ;;  %v5112_v12 = vsel %vm68_vm0, %v5092_v35, 0.0 }
0x2fab   :  { %5140 = vrot.lane.b32.xlu0 %v5121_v29, %s8837_s15  ;;  %5138 = vrot.lane.b32.xlu1 %v5120_v52, %s8837_s15  ;;  %v5093_v29 = vmul.f32 %v11200_v16, %v5082_v54 }
0x2faf   :  { %5144 = vrot.lane.b32.xlu0 %v5123_v30, %s8837_s15  ;;  %5142 = vrot.lane.b32.xlu1 %v5122_v22, %s8837_s15  ;;  %v5115_v30 = vsel %vm68_vm0, %v5093_v29, 0.0 }
0x2fb3   :  { %5148 = vrot.lane.b32.xlu0 %v5125_v25, %s8837_s15  ;;  %5146 = vrot.lane.b32.xlu1 %v5124_v4, %s8837_s15 }
0x2fd2   :  { %5098 = vadd.xlane.f32.xlu0 %v5097_v14 }
0x2fd6   :  { %5101 = vadd.xlane.f32.xlu0 %v5100_v63 }
0x2fd7   :  { %5095 = vadd.xlane.f32.xlu1 %v5094_v40 }
0x2fda   :  { %5104 = vadd.xlane.f32.xlu0 %v5103_v61 }
0x2fde   :  { %5107 = vadd.xlane.f32.xlu0 %v5106_v21 }
0x2fe2   :  { %5110 = vadd.xlane.f32.xlu0 %v5109_v31 }
0x3019   :  { %v5137_v41 = vpop.permute.xlu0 %5136  ;;  %v5135_v15 = vpop.permute.xlu1 %5134 }
0x301a   :  { %v5158_v42 = vsel %vm68_vm0, %v5135_v15, 0.0  ;;  %v5161_v8 = vsel %vm68_vm0, %v5137_v41, 0.0 }
0x301b   :  { %5159 = vadd.xlane.f32.xlu0 %v5158_v42  ;;  %5162 = vadd.xlane.f32.xlu1 %v5161_v8 }
0x301d   :  { %v5139_v39 = vpop.permute.xlu1 %5138  ;;  %v5141_v52 = vpop.permute.xlu0 %5140 }
0x301e   :  { %v5164_v38 = vsel %vm68_vm0, %v5139_v39, 0.0  ;;  %v5167_v22 = vsel %vm68_vm0, %v5141_v52, 0.0 }
0x301f   :  { %5113 = vadd.xlane.f32.xlu0 %v5112_v12  ;;  %5165 = vadd.xlane.f32.xlu1 %v5164_v38 }
0x3021   :  { %v5143_v25 = vpop.permute.xlu1 %5142  ;;  %v5145_v20 = vpop.permute.xlu0 %5144 }
0x3022   :  { %v5170_v4 = vsel %vm68_vm0, %v5143_v25, 0.0  ;;  %v5173_v14 = vsel %vm68_vm0, %v5145_v20, 0.0 }
0x3023   :  { %5116 = vadd.xlane.f32.xlu0 %v5115_v30  ;;  %5168 = vadd.xlane.f32.xlu1 %v5167_v22 }
0x3025   :  { %v5147_v10 = vpop.permute.xlu1 %5146  ;;  %v5149_v46 = vpop.permute.xlu0 %5148 }
0x3026   :  { %v5176_v54 = vsel %vm68_vm0, %v5147_v10, 0.0  ;;  %v5179_v63 = vsel %vm68_vm0, %v5149_v46, 0.0 }
0x3027   :  { %5171 = vadd.xlane.f32.xlu1 %v5170_v4 }
0x302b   :  { %5174 = vadd.xlane.f32.xlu1 %v5173_v14 }
0x302f   :  { %5177 = vadd.xlane.f32.xlu1 %v5176_v54 }
0x3033   :  { %5180 = vadd.xlane.f32.xlu1 %v5179_v63 }
0x305f   :  { %v5099_v9 = vpop.xlane.xlu0 %5098 }
0x3063   :  { %v5102_v40 = vpop.xlane.xlu0 %5101 }
0x3064   :  { %v5096_v61 = vpop.xlane.xlu1 %5095 }
0x3067   :  { %v5105_v51 = vpop.xlane.xlu0 %5104 }
0x306b   :  { %v5108_v19 = vpop.xlane.xlu0 %5107 }
0x306f   :  { %v5111_v41 = vpop.xlane.xlu0 %5110 }
0x30a8   :  { %v5163_v21 = vpop.xlane.xlu1 %5162  ;;  %v5160_v42 = vpop.xlane.xlu0 %5159 }
0x30a9   :  { %v5182_v35 = vadd.f32 %v5160_v42, %v5096_v61  ;;  %v5183_v39 = vadd.f32 %v5163_v21, %v5099_v9 }
0x30ab   :  { %v5201_v22 = vrot.slane %v5182_v35, %v9713_v53  ;;  %v5205_v25 = vrot.slane %v5183_v39, %v9713_v53 }
0x30ac   :  { %v5166_v31 = vpop.xlane.xlu1 %5165  ;;  %v5114_v52 = vpop.xlane.xlu0 %5113 }
0x30ad   :  { %v5184_v12 = vadd.f32 %v5166_v31, %v5102_v40  ;;  %v5230_v63 = vsel %vm1668_vm7, %v5205_v25, %v5201_v22 }
0x30af   :  { %v5209_v20 = vrot.slane %v5184_v12, %v9713_v53 }
0x30b0   :  { %v5169_v15 = vpop.xlane.xlu1 %5168  ;;  %v5117_v61 = vpop.xlane.xlu0 %5116 }
0x30b1   :  { %v5185_v29 = vadd.f32 %v5169_v15, %v5105_v51  ;;  %v5231_v40 = vsel %vm1670_vm8, %v5209_v20, %v5230_v63 }
0x30b3   :  { %v5213_v10 = vrot.slane %v5185_v29, %v9713_v53 }
0x30b4   :  { %v5172_v8 = vpop.xlane.xlu1 %5171 }
0x30b5   :  { %v5186_v30 = vadd.f32 %v5172_v8, %v5108_v19  ;;  %v5232_v19 = vsel %vm1672_vm9, %v5213_v10, %v5231_v40 }
0x30b7   :  { %v5217_v46 = vrot.slane %v5186_v30, %v9713_v53 }
0x30b8   :  { %v5175_v38 = vpop.xlane.xlu1 %5174 }
0x30b9   :  { %v5187_v4 = vadd.f32 %v5175_v38, %v5111_v41  ;;  %v5233_v41 = vsel %vm1674_vm10, %v5217_v46, %v5232_v19 }
0x30bb   :  { %v5221_v9 = vrot.slane %v5187_v4, %v9713_v53 }
0x30bc   :  { %v5178_v14 = vpop.xlane.xlu1 %5177 }
0x30bd   :  { %v5188_v54 = vadd.f32 %v5178_v14, %v5114_v52  ;;  %v5234_v15 = vsel %vm1676_vm11, %v5221_v9, %v5233_v41 }
0x30bf   :  { %v5225_v51 = vrot.slane %v5188_v54, %v9713_v53 }
0x30c0   :  { %v5181_v21 = vpop.xlane.xlu1 %5180 }
0x30c1   :  { %v5189_v31 = vadd.f32 %v5181_v21, %v5117_v61  ;;  %v5235_v8 = vsel %vm1678_vm12, %v5225_v51, %v5234_v15 }
0x30c3   :  { %v5229_v42 = vrot.slane %v5189_v31, %v9713_v53 }
0x30c5   :  { %v5236_v35 = vsel %vm1680_vm13, %v5229_v42, %v5235_v8 }
0x30c6   :  { %v5238_v39 = vsel %vm1301_vm14, %v5236_v35, -1e+09 }
0x30c7   :  { %v5239_v12 = vsel %vm1684_vm15, %v5238_v39, -inf }
0x30c8   :  { %v5240_v38 = vrot.slane %v5239_v12, 4 }
0x30ca   :  { %v5241_v29 = vmax.f32 %v5239_v12, %v5240_v38  ;;  %v12070_v38 = vld [vmem:[#allocation14_spill] sm:$0xff] }
0x30cc   :  { %v5242_v52 = vrot.slane %v5241_v29, 2 }
0x30ce   :  { %v5243_v30 = vmax.f32 %v5241_v29, %v5242_v52  ;;  %v12071_v52 = vld [vmem:[#allocation15_spill] sm:$0xff] }
0x30d0   :  { %v5244_v22 = vrot.slane %v5243_v30, 1 }
0x30d2   :  { %v5245_v25 = vmax.f32 %v5243_v30, %v5244_v22  ;;  %v12072_v22 = vld [vmem:[#allocation16_spill] sm:$0xff] }
0x30d4   :  { %v5246_v4 = vsub.f32 %v5238_v39, %v5245_v25  ;;  %v12069_v39 = vld [vmem:[#allocation13_spill] sm:$0xff] }
0x30d6   :  { %v5247_v20 = vmul.f32 1.442695, %v5246_v4 }
0x30d8   :  { %8647 = vpow2.f32 %v5247_v20 }
0x30e2   :  { %v8648_v14 = vpop.eup %8647 }
0x30e3   :  { %v5249_v10 = vsel %vm1684_vm15, %v8648_v14, 0.0 }
0x30e4   :  { %v5250_v54 = vrot.slane %v5249_v10, 4 }
0x30e6   :  { %v5251_v46 = vadd.f32 %v5250_v54, %v5249_v10  ;;  %v11241_v10 = vld [vmem:[#allocation3 + $0x8] sm:$0xff] }
0x30e7   :  { %12073 = vst [vmem:[#allocation20_spill] sm:$0xff] %v11241_v10 }
0x30e8   :  { %v5252_v63 = vrot.slane %v5251_v46, 2 }
0x30ea   :  { %v5253_v9 = vadd.f32 %v5252_v63, %v5251_v46  ;;  %v11245_v63 = vld [vmem:[#allocation3] sm:$0xff] }
0x30eb   :  { %12074 = vst [vmem:[#allocation22_spill] sm:$0xff] %v11245_v63 }
0x30ec   :  { %v5254_v40 = vrot.slane %v5253_v9, 1 }
0x30ee   :  { %v5255_v61 = vadd.f32 %v5254_v40, %v5253_v9 }
0x30f0   :  { %8649 = vrcp.f32 %v5255_v61 }
0x30fa   :  { %v8650_v51 = vpop.eup %8649 }
0x30fb   :  { %v5257_v21 = vmul.f32 %v8650_v51, %v5255_v61 }
0x30fd   :  { %v5258_v19 = vsub.f32 2.0, %v5257_v21 }
0x30ff   :  { %v5259_v31 = vmul.f32 %v8650_v51, %v5258_v19 }
0x3101   :  { %v5260_v41 = vmul.f32 %v8648_v14, %v5259_v31 }
0x3103   :  { %7105 = vst.msk [vmem:[%s11951_s12 + $0x28] sm:$0xff] %vm1684_vm15, %v5260_v41  ;;  %v5271_v15 = vrot.slane %v5260_v41, %v9113_v60  ;;  %v5264_v42 = vrot.slane %v5260_v41, %v9106_v57  ;;  %v5278_v8 = vrot.slane %v5260_v41, %v9747_v27  ;;  %v5285_v35 = vrot.slane %v5260_v41, %v9750_v33 }
0x3104   :  { %v5292_v12 = vrot.slane %v5260_v41, %v12069_v39  ;;  %v5299_v29 = vrot.slane %v5260_v41, %v12070_v38  ;;  %v5306_v30 = vrot.slane %v5260_v41, %v12071_v52  ;;  %v5313_v25 = vrot.slane %v5260_v41, %v12072_v22 }
0x3105   :  { %5273 = vbcast.lane.b32.xlu1 %v5271_v15, 256  ;;  %5266 = vbcast.lane.b32.xlu0 %v5264_v42, 256  ;;  %v11253_v15 = vld [vmem:[#allocation3 + $0x10] sm:$0xff] }
0x3106   :  { %12075 = vst [vmem:[#allocation24_spill] sm:$0xff] %v11253_v15 }
0x3109   :  { %5280 = vbcast.lane.b32.xlu1 %v5278_v8, 256  ;;  %5287 = vbcast.lane.b32.xlu0 %v5285_v35, 256 }
0x310d   :  { %5294 = vbcast.lane.b32.xlu1 %v5292_v12, 256  ;;  %5301 = vbcast.lane.b32.xlu0 %v5299_v29, 256  ;;  %v11257_v29 = vld [vmem:[#allocation3 + $0x18] sm:$0xff] }
0x310e   :  { %12076 = vst [vmem:[#allocation21_spill] sm:$0xff] %v11257_v29 }
0x3111   :  { %5308 = vbcast.lane.b32.xlu1 %v5306_v30, 256  ;;  %5315 = vbcast.lane.b32.xlu0 %v5313_v25, 256 }
0x3177   :  { %v5274_v4 = vpop.permute.xlu1 %5273  ;;  %v5267_v20 = vpop.permute.xlu0 %5266 }
0x3178   :  { %v5318_v14 = vmul.f32 %v11169_v34, %v5274_v4  ;;  %v5341_v54 = vmul.f32 %v11241_v10, %v5274_v4  ;;  %v5317_v46 = vmul.f32 %v11176_v5, %v5267_v20  ;;  %v5340_v9 = vmul.f32 %v11245_v63, %v5267_v20 }
0x317a   :  { %v5326_v40 = vsel %vm68_vm0, %v5318_v14, 0.0  ;;  %v5349_v61 = vsel %vm68_vm0, %v5341_v54, 0.0  ;;  %v5325_v51 = vsel %vm68_vm0, %v5317_v46, 0.0  ;;  %v5348_v21 = vsel %vm68_vm0, %v5340_v9, 0.0 }
0x317b   :  { %v5281_v19 = vpop.permute.xlu1 %5280  ;;  %v5288_v31 = vpop.permute.xlu0 %5287  ;;  %v5327_v8 = vadd.f32 %v5326_v40, %v5325_v51  ;;  %v5350_v35 = vadd.f32 %v5349_v61, %v5348_v21  ;;  %v11265_v21 = vld [vmem:[#allocation3 + $0x20] sm:$0xff] }
0x317c   :  { %v5319_v41 = vmul.f32 %v11173_v7, %v5281_v19  ;;  %v5342_v42 = vmul.f32 %v11253_v15, %v5281_v19  ;;  %v5320_v12 = vmul.f32 %v11180_v23, %v5288_v31  ;;  %v5343_v30 = vmul.f32 %v11257_v29, %v5288_v31  ;;  %12077 = vst [vmem:[#allocation8_spill] sm:$0xff] %v11265_v21 }
0x317e   :  { %v5328_v25 = vsel %vm68_vm0, %v5319_v41, 0.0  ;;  %v5351_v14 = vsel %vm68_vm0, %v5342_v42, 0.0  ;;  %v5330_v63 = vsel %vm68_vm0, %v5320_v12, 0.0  ;;  %v5353_v15 = vsel %vm68_vm0, %v5343_v30, 0.0 }
0x317f   :  { %v5329_v54 = vadd.f32 %v5328_v25, %v5327_v8  ;;  %v5352_v46 = vadd.f32 %v5351_v14, %v5350_v35  ;;  %v5295_v9 = vpop.permute.xlu1 %5294  ;;  %v5302_v26 = vpop.permute.xlu0 %5301  ;;  %v11270_v8 = vld [vmem:[#allocation3 + $0x28] sm:$0xff] }
0x3180   :  { %v5321_v40 = vmul.f32 %v11185_v18, %v5295_v9  ;;  %v5344_v29 = vmul.f32 %v11265_v21, %v5295_v9  ;;  %v5322_v42 = vmul.f32 %v11189_v44, %v5302_v26  ;;  %12078 = vst [vmem:[#allocation23_spill] sm:$0xff] %v11270_v8  ;;  %v5345_v35 = vmul.f32 %v11270_v8, %v5302_v26 }
0x3181   :  { %v5331_v61 = vadd.f32 %v5330_v63, %v5329_v54  ;;  %v5354_v51 = vadd.f32 %v5353_v15, %v5352_v46 }
0x3182   :  { %v5332_v41 = vsel %vm68_vm0, %v5321_v40, 0.0  ;;  %v5355_v12 = vsel %vm68_vm0, %v5344_v29, 0.0  ;;  %v5334_v63 = vsel %vm68_vm0, %v5322_v42, 0.0  ;;  %v5357_v54 = vsel %vm68_vm0, %v5345_v35, 0.0  ;;  %v11277_v40 = vld [vmem:[#allocation3 + $0x30] sm:$0xff] }
0x3183   :  { %v5333_v25 = vadd.f32 %v5332_v41, %v5331_v61  ;;  %v5309_v30 = vpop.permute.xlu1 %5308  ;;  %v5316_v14 = vpop.permute.xlu0 %5315  ;;  %v5356_v10 = vadd.f32 %v5355_v12, %v5354_v51  ;;  %12079 = vst [vmem:[#allocation27_spill] sm:$0xff] %v11277_v40  ;;  %v11283_v41 = vld [vmem:[#allocation3 + $0x38] sm:$0xff] }
0x3184   :  { %v5323_v46 = vmul.f32 %v11195_v3, %v5309_v30  ;;  %v5346_v21 = vmul.f32 %v11277_v40, %v5309_v30  ;;  %v5324_v8 = vmul.f32 %v11200_v16, %v5316_v14  ;;  %v5347_v51 = vmul.f32 %v11283_v41, %v5316_v14 }
0x3185   :  { %v5335_v15 = vadd.f32 %v5334_v63, %v5333_v25  ;;  %v5358_v22 = vadd.f32 %v5357_v54, %v5356_v10  ;;  %v5364_v63 = vmul.f32 %v11007_v58, %v5274_v4  ;;  %v11292_v10 = vld [vmem:[%s11939_s0] sm:$0xff]  ;;  %v5365_v40 = vmul.f32 %v11018_v55, %v5281_v19 }
0x3186   :  { %v5336_v61 = vsel %vm68_vm0, %v5323_v46, 0.0  ;;  %v5359_v29 = vsel %vm68_vm0, %v5346_v21, 0.0  ;;  %v5338_v35 = vsel %vm68_vm0, %v5324_v8, 0.0  ;;  %v5361_v12 = vsel %vm68_vm0, %v5347_v51, 0.0 }
0x3187   :  { %v5337_v42 = vadd.f32 %v5336_v61, %v5335_v15  ;;  %v5360_v25 = vadd.f32 %v5359_v29, %v5358_v22  ;;  %v5363_v54 = vmul.f32 %v11292_v10, %v5267_v20  ;;  %v5372_v22 = vsel %vm68_vm0, %v5364_v63, 0.0 }
0x3188   :  { %v5374_v58 = vsel %vm68_vm0, %v5365_v40, 0.0  ;;  %v5366_v15 = vmul.f32 %v11026_v2, %v5288_v31  ;;  %v5367_v20 = vmul.f32 %v11036_v37, %v5295_v9  ;;  %v5368_v19 = vmul.f32 %v11042_v0, %v5302_v26  ;;  %v11312_v2 = vld [vmem:[%s11939_s0 + $0x38] sm:$0xff] }
0x3189   :  { %v5362_v21 = vadd.f32 %v5361_v12, %v5360_v25  ;;  %v5339_v46 = vadd.f32 %v5338_v35, %v5337_v42  ;;  %v5371_v8 = vsel %vm68_vm0, %v5363_v54, 0.0  ;;  %v5369_v25 = vmul.f32 %v11050_v45, %v5309_v30 }
0x318a   :  { %v5373_v4 = vadd.f32 %v5372_v22, %v5371_v8  ;;  %v5376_v29 = vsel %vm68_vm0, %v5366_v15, 0.0  ;;  %v5378_v55 = vsel %vm68_vm0, %v5367_v20, 0.0  ;;  %v5380_v35 = vsel %vm68_vm0, %v5368_v19, 0.0 }
0x318b   :  { %5392 = vrot.lane.b32.xlu0 %v5362_v21, %s8834_s25  ;;  %5388 = vrot.lane.b32.xlu1 %v5339_v46, %s8831_s27  ;;  %v5382_v40 = vsel %vm68_vm0, %v5369_v25, 0.0  ;;  %v5370_v37 = vmul.f32 %v11312_v2, %v5316_v14  ;;  %v5609_v25 = vld [vmem:[%s11944_s5] sm:$0xff] }
0x318c   :  { %v5375_v61 = vadd.f32 %v5374_v58, %v5373_v4 }
0x318d   :  { %v5384_v9 = vsel %vm68_vm0, %v5370_v37, 0.0 }
0x318e   :  { %v5377_v51 = vadd.f32 %v5376_v29, %v5375_v61 }
0x3190   :  { %v5379_v42 = vadd.f32 %v5378_v55, %v5377_v51 }
0x3192   :  { %v5381_v12 = vadd.f32 %v5380_v35, %v5379_v42 }
0x3194   :  { %v5383_v31 = vadd.f32 %v5382_v40, %v5381_v12 }
0x3196   :  { %v5385_v63 = vadd.f32 %v5384_v9, %v5383_v31  ;;  %v5611_v31 = vld [vmem:[%s11944_s5 + $0x10] sm:$0xff]  ;;  %v5612_v9 = vld [vmem:[%s11944_s5 + $0x18] sm:$0xff] }
0x3198   :  { %v5490_v0 = vmul.f32 %v5385_v63, %v5385_v63 }
0x319a   :  { %v5491_v26 = vsel %vm68_vm0, %v5490_v0, 0.0  ;;  %v11343_v0 = vpack.c.bf16 %v5612_v9, %v5611_v31 }
0x31af   :  { %5492 = vadd.xlane.f32.xlu1 %v5491_v26  ;;  %v5614_v26 = vld [vmem:[%s11944_s5 + $0x28] sm:$0xff] }
0x31fd   :  { %v5393_v45 = vpop.permute.xlu0 %5392  ;;  %v5389_v30 = vpop.permute.xlu1 %5388 }
0x31fe   :  { %v5395_v54 = vsel %vm68_vm0, %v11143_v62, %v5389_v30  ;;  %v5615_v30 = vld [vmem:[%s11944_s5 + $0x30] sm:$0xff] }
0x31ff   :  { %v5396_v21 = vsel %vm70_vm1, %v5395_v54, %v5393_v45  ;;  %v5616_v54 = vld [vmem:[%s11944_s5 + $0x38] sm:$0xff] }
0x3200   :  { %7773 = vmatmul.mubr.msk.f32.vlgmr.msra.gmra.mrb[28].mxu0 %vm1862_vm2, %v5396_v21  ;;  %v11365_v21 = vpack.c.bf16 %v5616_v54, %v5615_v30 }
0x3201   :  { %7813 = vmatprep.mubr.msk.f32.mxu0 %vm8836_vm3, %v12021_v43 }
0x323c   :  { %v5493_v62 = vpop.xlane.xlu1 %5492 }
0x323d   :  { %vm5496_vm5 = vcmp.eq.f32.partialorder %v5493_v62, inf  ;;  %vm5498_vm6 = vcmp.eq.f32.partialorder %v5493_v62, 0.0 }
0x32d3   :  { %v5485_v14 = vpop.f32.mrb[28].mxu0 }
0x32d4   :  { %v5486_v46 = vadd.f32 %v11072_v24, %v5485_v14  ;;  %v7774_v22 = vpop.f32.mrb[29].mxu0  ;;  %v5499_v24 = vand.u32 2147483648, %v5493_v62  ;;  %v7106_v14 = vld [vmem:[%s11940_s1 + $0x30] sm:$0xff] }
0x32d6   :  { %8651 = vtanh.f32 %v5486_v46 }
0x32d7   :  { %8653 = vrsqrt.f32 %v5493_v62 }
0x32e0   :  { %v8652_v8 = vpop.eup %8651 }
0x32e1   :  { %v5501_v58 = vmul.f32 %v8652_v8, %v8652_v8  ;;  %v8654_v15 = vpop.eup %8653 }
0x32e2   :  { %v5495_v61 = vmul.f32 %v8654_v15, %v5493_v62 }
0x32e3   :  { %v5502_v4 = vsel %vm68_vm0, %v5501_v58, 0.0 }
0x32e4   :  { %5503 = vadd.xlane.f32.xlu0 %v5502_v4  ;;  %v5497_v51 = vsel %vm5496_vm5, %v5493_v62, %v5495_v61  ;;  %v11382_v4 = vld [vmem:[%s11945_s6] ss:$0 sm:$0xff] }
0x32e5   :  { %v5500_v55 = vsel %vm5498_vm6, %v5499_v24, %v5497_v51 }
0x32e6   :  { %v5507_v19 = vmul.f32 0.2, %v5500_v55 }
0x32e8   :  { %v5508_v42 = vmul.f32 %v8652_v8, %v5507_v19 }
0x32fa   :  { %5605 = vrot.lane.b32.xlu0 %v11139_v49, %s8834_s25  ;;  %v5610_v49 = vld [vmem:[%s11944_s5 + $0x8] sm:$0xff] }
0x32fb   :  { %v11333_v40 = vpack.c.bf16 %v5610_v49, %v5609_v25 }
0x3371   :  { %v5504_v20 = vpop.xlane.xlu0 %5503 }
0x3372   :  { %v5505_v29 = vadd.f32 1e-08, %v5504_v20 }
0x3374   :  { %8655 = vrsqrt.f32 %v5505_v29 }
0x3375   :  { %v5606_v46 = vpop.permute.xlu0 %5605 }
0x3376   :  { %v5608_v22 = vsel %vm68_vm0, %v7106_v14, %v5606_v46 }
0x337e   :  { %v8656_v35 = vpop.eup %8655 }
0x337f   :  { %v5509_v12 = vmul.f32 %v8656_v35, %v5508_v42  ;;  %v5718_v35 = vld [vmem:[%s11946_s7] sm:$0xff] }
0x3381   :  { %v5510_v37 = vadd.f32 %v5509_v12, %v5385_v63  ;;  %v5613_v63 = vld [vmem:[%s11944_s5 + $0x20] sm:$0xff]  ;;  %v5719_v12 = vld [vmem:[%s11946_s7 + $0x8] sm:$0xff] }
0x3382   :  { %v11355_v45 = vpack.c.bf16 %v5614_v26, %v5613_v63  ;;  %v11403_v31 = vpack.c.bf16 %v5719_v12, %v5718_v35 }
0x3383   :  { %7784 = vmatmul.mubr.msk.f32.vlgmr.msra.gmra.mrb[32].mxu1 %vm68_vm0, %v5510_v37  ;;  %v5720_v37 = vld [vmem:[%s11946_s7 + $0x10] sm:$0xff] }
0x3384   :  { %8432 = vmatpush3.bf16.msra.mxu1 %v11333_v40  ;;  %7802 = vmatprep.mubr.msk.f32.mxu1 %vm8836_vm3, %v12021_v43 }
0x3385   :  { %8433 = vmatprep.subr.bf16.mxu1 %v12022_v47  ;;  %8444 = vmatpush3.bf16.msra.mxu0 %v11403_v31 }
0x3386   :  { %8445 = vmatprep.subr.bf16.mxu0 %v12022_v47 }
0x3388   :  { %8435 = vmatpush3.bf16.msra.mxu1 %v11343_v0 }
0x3389   :  { %8436 = vmatprep.subr.bf16.mxu1 %v12022_v47 }
0x338c   :  { %8438 = vmatpush3.bf16.msra.mxu1 %v11355_v45 }
0x338d   :  { %8439 = vmatprep.subr.bf16.mxu1 %v12022_v47 }
0x3390   :  { %8441 = vmatpush3.bf16.msra.mxu1 %v11365_v21 }
0x3391   :  { %8448 = vmatprep.subr.bf16.mxu1 %v12022_v47 }
0x3393   :  { %7803 = vmatmul.mubr.msk.f32.vlgmr.msra.gmra.mrb[34].mxu1 %vm70_vm1, %v5608_v22 }
0x3394   :  { %7840 = vmatprep.mubr.msk.f32.mxu1 %vm8836_vm3, %v12021_v43 }
0x3456   :  { %v11377_v8 = vpop.f32.mrb[32].mxu1 }
0x3457   :  { %12080 = vst [vmem:[#allocation28_spill] sm:$0xff] %v11377_v8  ;;  %v7785_v58 = vpop.f32.mrb[33].mxu1 }
0x3466   :  { %v5693_v62 = vpop.f32.mrb[34].mxu1 }
0x3467   :  { %v5694_v15 = vadd.f32 %v11382_v4, %v5693_v62  ;;  %v7804_v61 = vpop.f32.mrb[35].mxu1 }
0x3469   :  { %v5697_v20 = vmul.f32 %v5694_v15, %v9461_v36 }
0x346b   :  { %8657 = vtanh.f32 %v5697_v20 }
0x3475   :  { %v8658_v29 = vpop.eup %8657 }
0x3476   :  { %v5699_v51 = vmul.f32 %v8658_v29, %v9461_v36 }
0x3478   :  { %v5700_v24 = vadd.f32 %v5699_v51, %v9471_v28 }
0x347a   :  { %5703 = vrot.lane.b32.xlu1 %v5700_v24, %s8834_s25  ;;  %v5701_v42 = vmul.f32 %v5700_v24, %v11135_v13  ;;  %v5721_v13 = vld [vmem:[%s11946_s7 + $0x18] sm:$0xff] }
0x347b   :  { %v11409_v9 = vpack.c.bf16 %v5721_v13, %v5720_v37 }
0x347d   :  { %8447 = vmatpush3.bf16.msra.mxu0 %v11409_v9 }
0x347e   :  { %8466 = vmatprep.subr.bf16.mxu0 %v12022_v47 }
0x34ec   :  { %v5704_v55 = vpop.permute.xlu1 %5703 }
0x34ed   :  { %v5706_v19 = vmul.f32 %v5704_v55, %v5700_v24 }
0x34ef   :  { %5708 = vrot.lane.b32.xlu1 %v5706_v19, %s8831_s27 }
0x3561   :  { %v5709_v25 = vpop.permute.xlu1 %5708 }
0x3562   :  { %v11391_v49 = vadd.f32 %v5709_v25, %v5701_v42 }
0x3564   :  { %8659 = vtanh.f32 %v11391_v49 }
0x356e   :  { %v8660_v63 = vpop.eup %8659 }
0x356f   :  { %5714 = vrot.lane.b32.xlu0 %v8660_v63, %s8834_s25 }
0x35e1   :  { %v5715_v26 = vpop.permute.xlu0 %5714 }
0x35e2   :  { %v11415_v30 = vmul.f32 %v5715_v26, %v5700_v24 }
0x35e4   :  { %5723 = vrot.lane.b32.xlu1 %v11415_v30, %s8831_s27 }
0x3656   :  { %v11419_v54 = vpop.permute.xlu1 %5723 }
0x3657   :  { %7814 = vmatmul.mubr.msk.f32.vlgmr.msra.gmra.mrb[30].mxu0 %vm68_vm0, %v11419_v54 }
0x3658   :  { %7851 = vmatprep.mubr.msk.f32.mxu0 %vm8836_vm3, %v12021_v43 }
0x372a   :  { %v5793_v14 = vpop.f32.mrb[30].mxu0 }
0x372b   :  { %v7815_v46 = vpop.f32.mrb[31].mxu0  ;;  %v5830_v22 = vmul.f32 %v5793_v14, %v9604_v32  ;;  %v5829_v58 = vmul.f32 %v5793_v14, %v9621_v17  ;;  %v5832_v62 = vmul.f32 %v5793_v14, %v9616_v59  ;;  %v5831_v15 = vmul.f32 %v5793_v14, %v12040_v56 }
0x372c   :  { %v5834_v61 = vmul.f32 %v5793_v14, %v12065_v11  ;;  %v5833_v20 = vmul.f32 %v5793_v14, %v12066_v48  ;;  %v5836_v29 = vmul.f32 %v5793_v14, %v12067_v6  ;;  %v5835_v51 = vmul.f32 %v5793_v14, %v12068_v1 }
0x372d   :  { %5847 = vrot.lane.b32.xlu1 %v5830_v22, %s8837_s15  ;;  %5845 = vrot.lane.b32.xlu0 %v5829_v58, %s8837_s15  ;;  %v5797_v24 = vmul.f32 %v11176_v5, %v5793_v14  ;;  %v5798_v19 = vmul.f32 %v11169_v34, %v5793_v14  ;;  %v5799_v25 = vmul.f32 %v11173_v7, %v5793_v14 }
0x372e   :  { %v5800_v12 = vmul.f32 %v11180_v23, %v5793_v14  ;;  %v5801_v13 = vmul.f32 %v11185_v18, %v5793_v14  ;;  %v5802_v26 = vmul.f32 %v11189_v44, %v5793_v14  ;;  %v5803_v22 = vmul.f32 %v11195_v3, %v5793_v14 }
0x372f   :  { %v5805_v55 = vsel %vm68_vm0, %v5797_v24, 0.0  ;;  %v5808_v42 = vsel %vm68_vm0, %v5798_v19, 0.0  ;;  %v5811_v35 = vsel %vm68_vm0, %v5799_v25, 0.0 }
0x3730   :  { %v5814_v37 = vsel %vm68_vm0, %v5800_v12, 0.0  ;;  %v5817_v63 = vsel %vm68_vm0, %v5801_v13, 0.0  ;;  %v5820_v46 = vsel %vm68_vm0, %v5802_v26, 0.0  ;;  %v5823_v58 = vsel %vm68_vm0, %v5803_v22, 0.0 }
0x3731   :  { %5851 = vrot.lane.b32.xlu1 %v5832_v62, %s8837_s15  ;;  %5849 = vrot.lane.b32.xlu0 %v5831_v15, %s8837_s15  ;;  %v5804_v62 = vmul.f32 %v11200_v16, %v5793_v14 }
0x3733   :  { %v5826_v15 = vsel %vm68_vm0, %v5804_v62, 0.0 }
0x3735   :  { %5855 = vrot.lane.b32.xlu1 %v5834_v61, %s8837_s15  ;;  %5853 = vrot.lane.b32.xlu0 %v5833_v20, %s8837_s15 }
0x3739   :  { %5859 = vrot.lane.b32.xlu1 %v5836_v29, %s8837_s15  ;;  %5857 = vrot.lane.b32.xlu0 %v5835_v51, %s8837_s15 }
0x3758   :  { %5806 = vadd.xlane.f32.xlu0 %v5805_v55 }
0x375d   :  { %5809 = vadd.xlane.f32.xlu1 %v5808_v42 }
0x3761   :  { %5812 = vadd.xlane.f32.xlu1 %v5811_v35 }
0x3765   :  { %5815 = vadd.xlane.f32.xlu1 %v5814_v37 }
0x3769   :  { %5818 = vadd.xlane.f32.xlu1 %v5817_v63 }
0x376d   :  { %5821 = vadd.xlane.f32.xlu1 %v5820_v46 }
0x3771   :  { %5824 = vadd.xlane.f32.xlu1 %v5823_v58 }
0x3775   :  { %5827 = vadd.xlane.f32.xlu1 %v5826_v15 }
0x379f   :  { %v5846_v61 = vpop.permute.xlu0 %5845  ;;  %v5848_v29 = vpop.permute.xlu1 %5847 }
0x37a0   :  { %v5869_v20 = vsel %vm68_vm0, %v5846_v61, 0.0  ;;  %v5872_v51 = vsel %vm68_vm0, %v5848_v29, 0.0 }
0x37a1   :  { %5870 = vadd.xlane.f32.xlu0 %v5869_v20 }
0x37a3   :  { %v5850_v24 = vpop.permute.xlu0 %5849  ;;  %v5852_v19 = vpop.permute.xlu1 %5851 }
0x37a4   :  { %v5875_v55 = vsel %vm68_vm0, %v5850_v24, 0.0  ;;  %v5878_v42 = vsel %vm68_vm0, %v5852_v19, 0.0 }
0x37a5   :  { %5873 = vadd.xlane.f32.xlu0 %v5872_v51 }
0x37a7   :  { %v5854_v14 = vpop.permute.xlu0 %5853  ;;  %v5856_v35 = vpop.permute.xlu1 %5855 }
0x37a8   :  { %v5881_v25 = vsel %vm68_vm0, %v5854_v14, 0.0  ;;  %v5884_v12 = vsel %vm68_vm0, %v5856_v35, 0.0 }
0x37a9   :  { %5876 = vadd.xlane.f32.xlu0 %v5875_v55 }
0x37ab   :  { %v5858_v37 = vpop.permute.xlu0 %5857  ;;  %v5860_v63 = vpop.permute.xlu1 %5859 }
0x37ac   :  { %v5887_v13 = vsel %vm68_vm0, %v5858_v37, 0.0  ;;  %v5890_v26 = vsel %vm68_vm0, %v5860_v63, 0.0 }
0x37ad   :  { %5879 = vadd.xlane.f32.xlu0 %v5878_v42 }
0x37b1   :  { %5882 = vadd.xlane.f32.xlu0 %v5881_v25 }
0x37b5   :  { %5885 = vadd.xlane.f32.xlu0 %v5884_v12 }
0x37b9   :  { %5888 = vadd.xlane.f32.xlu0 %v5887_v13 }
0x37bd   :  { %5891 = vadd.xlane.f32.xlu0 %v5890_v26 }
0x37e5   :  { %v5807_v22 = vpop.xlane.xlu0 %5806 }
0x37ea   :  { %v5810_v46 = vpop.xlane.xlu1 %5809 }
0x37ee   :  { %v5813_v58 = vpop.xlane.xlu1 %5812 }
0x37f2   :  { %v5816_v15 = vpop.xlane.xlu1 %5815 }
0x37f6   :  { %v5819_v29 = vpop.xlane.xlu1 %5818 }
0x37fa   :  { %v5822_v24 = vpop.xlane.xlu1 %5821 }
0x37fe   :  { %v5825_v12 = vpop.xlane.xlu1 %5824 }
0x382e   :  { %v5871_v62 = vpop.xlane.xlu0 %5870 }
0x382f   :  { %v5893_v25 = vadd.f32 %v5871_v62, %v5807_v22 }
0x3831   :  { %v5912_v1 = vrot.slane %v5893_v25, %v9713_v53 }
0x3832   :  { %v5874_v61 = vpop.xlane.xlu0 %5873 }
0x3833   :  { %v5894_v19 = vadd.f32 %v5874_v61, %v5810_v46 }
0x3835   :  { %v5916_v13 = vrot.slane %v5894_v19, %v9713_v53 }
0x3836   :  { %v5877_v20 = vpop.xlane.xlu0 %5876 }
0x3837   :  { %v5895_v42 = vadd.f32 %v5877_v20, %v5813_v58  ;;  %v5941_v46 = vsel %vm1668_vm7, %v5916_v13, %v5912_v1  ;;  %v5828_v58 = vpop.xlane.xlu1 %5827 }
0x3839   :  { %v5920_v26 = vrot.slane %v5895_v42, %v9713_v53 }
0x383a   :  { %v5880_v51 = vpop.xlane.xlu0 %5879 }
0x383b   :  { %v5896_v35 = vadd.f32 %v5880_v51, %v5816_v15  ;;  %v5942_v62 = vsel %vm1670_vm8, %v5920_v26, %v5941_v46 }
0x383d   :  { %v5924_v6 = vrot.slane %v5896_v35, %v9713_v53 }
0x383e   :  { %v5883_v55 = vpop.xlane.xlu0 %5882 }
0x383f   :  { %v5897_v37 = vadd.f32 %v5883_v55, %v5819_v29  ;;  %v5943_v20 = vsel %vm1672_vm9, %v5924_v6, %v5942_v62 }
0x3841   :  { %v5928_v11 = vrot.slane %v5897_v37, %v9713_v53 }
0x3842   :  { %v5886_v14 = vpop.xlane.xlu0 %5885 }
0x3843   :  { %v5898_v63 = vadd.f32 %v5886_v14, %v5822_v24  ;;  %v5944_v51 = vsel %vm1674_vm10, %v5928_v11, %v5943_v20 }
0x3845   :  { %v5932_v22 = vrot.slane %v5898_v63, %v9713_v53 }
0x3846   :  { %v5889_v8 = vpop.xlane.xlu0 %5888 }
0x3847   :  { %v5899_v48 = vadd.f32 %v5889_v8, %v5825_v12  ;;  %v5945_v24 = vsel %vm1676_vm11, %v5932_v22, %v5944_v51 }
0x3849   :  { %v5936_v15 = vrot.slane %v5899_v48, %v9713_v53 }
0x384a   :  { %v5892_v61 = vpop.xlane.xlu0 %5891 }
0x384b   :  { %v5900_v29 = vadd.f32 %v5892_v61, %v5828_v58  ;;  %v5946_v55 = vsel %vm1678_vm12, %v5936_v15, %v5945_v24 }
0x384d   :  { %v5940_v8 = vrot.slane %v5900_v29, %v9713_v53 }
0x384f   :  { %v5947_v1 = vsel %vm1680_vm13, %v5940_v8, %v5946_v55 }
0x3850   :  { %v5949_v19 = vsel %vm1301_vm14, %v5947_v1, -1e+09 }
0x3851   :  { %v5950_v42 = vsel %vm1684_vm15, %v5949_v19, -inf }
0x3852   :  { %v5951_v48 = vrot.slane %v5950_v42, 4 }
0x3854   :  { %v5952_v14 = vmax.f32 %v5950_v42, %v5951_v48 }
0x3856   :  { %v5953_v25 = vrot.slane %v5952_v14, 2 }
0x3858   :  { %v5954_v6 = vmax.f32 %v5952_v14, %v5953_v25  ;;  %v12081_v25 = vld [vmem:[#allocation16_spill] sm:$0xff] }
0x385a   :  { %v5955_v35 = vrot.slane %v5954_v6, 1 }
0x385c   :  { %v5956_v12 = vmax.f32 %v5954_v6, %v5955_v35  ;;  %v6108_v35 = vld [vmem:[%s11947_s8] sm:$0xff] }
0x385e   :  { %v5957_v11 = vsub.f32 %v5949_v19, %v5956_v12  ;;  %v6109_v12 = vld [vmem:[%s11947_s8 + $0x8] sm:$0xff] }
0x3860   :  { %v5958_v37 = vmul.f32 1.442695, %v5957_v11  ;;  %v6110_v11 = vld [vmem:[%s11947_s8 + $0x10] sm:$0xff] }
0x3862   :  { %8661 = vpow2.f32 %v5958_v37  ;;  %v11505_v37 = vpack.c.bf16 %v6109_v12, %v6108_v35 }
0x3864   :  { %8450 = vmatpush3.bf16.msra.mxu1 %v11505_v37 }
0x3865   :  { %8451 = vmatprep.subr.bf16.mxu1 %v12022_v47 }
0x386c   :  { %v8662_v13 = vpop.eup %8661 }
0x386d   :  { %v5960_v63 = vsel %vm1684_vm15, %v8662_v13, 0.0 }
0x386e   :  { %v5961_v26 = vrot.slane %v5960_v63, 4 }
0x3870   :  { %v5962_v46 = vadd.f32 %v5961_v26, %v5960_v63  ;;  %v6112_v26 = vld [vmem:[%s11947_s8 + $0x20] sm:$0xff] }
0x3872   :  { %v5963_v22 = vrot.slane %v5962_v46, 2 }
0x3874   :  { %v5964_v58 = vadd.f32 %v5963_v22, %v5962_v46  ;;  %v6113_v46 = vld [vmem:[%s11947_s8 + $0x28] sm:$0xff] }
0x3875   :  { %v11521_v22 = vpack.c.bf16 %v6113_v46, %v6112_v26 }
0x3876   :  { %v5965_v62 = vrot.slane %v5964_v58, 1 }
0x3878   :  { %v5966_v15 = vadd.f32 %v5965_v62, %v5964_v58  ;;  %v6114_v58 = vld [vmem:[%s11947_s8 + $0x30] sm:$0xff]  ;;  %v6115_v62 = vld [vmem:[%s11947_s8 + $0x38] sm:$0xff] }
0x387a   :  { %8663 = vrcp.f32 %v5966_v15 }
0x3884   :  { %v8664_v61 = vpop.eup %8663 }
0x3885   :  { %v5968_v20 = vmul.f32 %v8664_v61, %v5966_v15  ;;  %v11531_v15 = vpack.c.bf16 %v6115_v62, %v6114_v58 }
0x3887   :  { %v5969_v29 = vsub.f32 2.0, %v5968_v20  ;;  %v6117_v20 = vld [vmem:[%s11947_s8 + $0x48] sm:$0xff] }
0x3889   :  { %v5970_v51 = vmul.f32 %v8664_v61, %v5969_v29  ;;  %v6116_v61 = vld [vmem:[%s11947_s8 + $0x40] sm:$0xff] }
0x388a   :  { %v11541_v29 = vpack.c.bf16 %v6117_v20, %v6116_v61  ;;  %v12084_v61 = vld [vmem:[#allocation24_spill] sm:$0xff] }
0x388b   :  { %v5971_v24 = vmul.f32 %v8662_v13, %v5970_v51  ;;  %v6111_v13 = vld [vmem:[%s11947_s8 + $0x18] sm:$0xff]  ;;  %v6118_v51 = vld [vmem:[%s11947_s8 + $0x50] sm:$0xff] }
0x388c   :  { %v11511_v63 = vpack.c.bf16 %v6111_v13, %v6110_v11 }
0x388d   :  { %7113 = vst.msk [vmem:[%s11951_s12 + $0x30] sm:$0xff] %vm1684_vm15, %v5971_v24  ;;  %v5982_v8 = vrot.slane %v5971_v24, %v9113_v60  ;;  %v5975_v55 = vrot.slane %v5971_v24, %v9106_v57  ;;  %v6003_v1 = vrot.slane %v5971_v24, %v12069_v39  ;;  %v5989_v19 = vrot.slane %v5971_v24, %v9747_v27 }
0x388e   :  { %v6017_v42 = vrot.slane %v5971_v24, %v12071_v52  ;;  %v5996_v48 = vrot.slane %v5971_v24, %v9750_v33  ;;  %v6010_v14 = vrot.slane %v5971_v24, %v12070_v38  ;;  %v6024_v6 = vrot.slane %v5971_v24, %v12081_v25  ;;  %8453 = vmatpush3.bf16.msra.mxu1 %v11511_v63  ;;  %v6119_v24 = vld [vmem:[%s11947_s8 + $0x58] sm:$0xff] }
0x388f   :  { %5984 = vbcast.lane.b32.xlu0 %v5982_v8, 256  ;;  %5977 = vbcast.lane.b32.xlu1 %v5975_v55, 256  ;;  %v11551_v8 = vpack.c.bf16 %v6119_v24, %v6118_v51 }
0x3890   :  { %8454 = vmatprep.subr.bf16.mxu1 %v12022_v47 }
0x3892   :  { %8456 = vmatpush3.bf16.msra.mxu1 %v11521_v22 }
0x3893   :  { %6005 = vbcast.lane.b32.xlu0 %v6003_v1, 256  ;;  %5991 = vbcast.lane.b32.xlu1 %v5989_v19, 256 }
0x3894   :  { %8457 = vmatprep.subr.bf16.mxu1 %v12022_v47 }
0x3896   :  { %8459 = vmatpush3.bf16.msra.mxu1 %v11531_v15 }
0x3897   :  { %6019 = vbcast.lane.b32.xlu0 %v6017_v42, 256  ;;  %5998 = vbcast.lane.b32.xlu1 %v5996_v48, 256  ;;  %v12082_v42 = vld [vmem:[#allocation20_spill] sm:$0xff] }
0x3898   :  { %8460 = vmatprep.subr.bf16.mxu1 %v12022_v47 }
0x389a   :  { %8462 = vmatpush3.bf16.msra.mxu1 %v11541_v29 }
0x389b   :  { %6012 = vbcast.lane.b32.xlu1 %v6010_v14, 256  ;;  %8463 = vmatprep.subr.bf16.mxu1 %v12022_v47 }
0x389e   :  { %8465 = vmatpush3.bf16.msra.mxu1 %v11551_v8 }
0x389f   :  { %6026 = vbcast.lane.b32.xlu1 %v6024_v6, 256  ;;  %8484 = vmatprep.subr.bf16.mxu1 %v12022_v47  ;;  %v12083_v6 = vld [vmem:[#allocation22_spill] sm:$0xff] }
0x3901   :  { %v5985_v55 = vpop.permute.xlu0 %5984  ;;  %v5978_v1 = vpop.permute.xlu1 %5977 }
0x3902   :  { %v6029_v19 = vmul.f32 %v11169_v34, %v5985_v55  ;;  %v6052_v48 = vmul.f32 %v12082_v42, %v5985_v55  ;;  %v6028_v14 = vmul.f32 %v11176_v5, %v5978_v1  ;;  %v6051_v35 = vmul.f32 %v12083_v6, %v5978_v1  ;;  %v12085_v6 = vld [vmem:[#allocation8_spill] sm:$0xff] }
0x3904   :  { %v6037_v11 = vsel %vm68_vm0, %v6029_v19, 0.0  ;;  %v6060_v13 = vsel %vm68_vm0, %v6052_v48, 0.0  ;;  %v6036_v46 = vsel %vm68_vm0, %v6028_v14, 0.0  ;;  %v6059_v58 = vsel %vm68_vm0, %v6051_v35, 0.0  ;;  %v12086_v14 = vld [vmem:[#allocation21_spill] sm:$0xff] }
0x3905   :  { %v5992_v12 = vpop.permute.xlu1 %5991  ;;  %v6006_v26 = vpop.permute.xlu0 %6005  ;;  %v6038_v24 = vadd.f32 %v6037_v11, %v6036_v46  ;;  %v6061_v42 = vadd.f32 %v6060_v13, %v6059_v58  ;;  %v12087_v58 = vld [vmem:[#allocation27_spill] sm:$0xff] }
0x3906   :  { %v6030_v62 = vmul.f32 %v11173_v7, %v5992_v12  ;;  %v6053_v34 = vmul.f32 %v12084_v61, %v5992_v12  ;;  %v6032_v19 = vmul.f32 %v11185_v18, %v6006_v26  ;;  %v6055_v48 = vmul.f32 %v12085_v6, %v6006_v26 }
0x3908   :  { %v6039_v20 = vsel %vm68_vm0, %v6030_v62, 0.0  ;;  %v6062_v5 = vsel %vm68_vm0, %v6053_v34, 0.0  ;;  %v6043_v34 = vsel %vm68_vm0, %v6032_v19, 0.0  ;;  %v6066_v46 = vsel %vm68_vm0, %v6055_v48, 0.0 }
0x3909   :  { %v5999_v51 = vpop.permute.xlu1 %5998  ;;  %v6040_v35 = vadd.f32 %v6039_v20, %v6038_v24  ;;  %v6063_v38 = vadd.f32 %v6062_v5, %v6061_v42  ;;  %v6020_v7 = vpop.permute.xlu0 %6019  ;;  %v12088_v20 = vld [vmem:[#allocation23_spill] sm:$0xff] }
0x390a   :  { %v6031_v25 = vmul.f32 %v11180_v23, %v5999_v51  ;;  %v6054_v52 = vmul.f32 %v12086_v14, %v5999_v51  ;;  %v6034_v23 = vmul.f32 %v11195_v3, %v6020_v7  ;;  %v6057_v6 = vmul.f32 %v12087_v58, %v6020_v7  ;;  %v11587_v3 = vld [vmem:[%s11939_s0 + $0x8] sm:$0xff] }
0x390b   :  { %v6075_v48 = vmul.f32 %v11587_v3, %v5985_v55 }
0x390c   :  { %v6041_v61 = vsel %vm68_vm0, %v6031_v25, 0.0  ;;  %v6064_v62 = vsel %vm68_vm0, %v6054_v52, 0.0 }
0x390d   :  { %v6013_v39 = vpop.permute.xlu1 %6012  ;;  %v6042_v11 = vadd.f32 %v6041_v61, %v6040_v35  ;;  %v6065_v13 = vadd.f32 %v6064_v62, %v6063_v38  ;;  %v6074_v61 = vmul.f32 %v11292_v10, %v5978_v1  ;;  %v6047_v62 = vsel %vm68_vm0, %v6034_v23, 0.0  ;;  %v11606_v23 = vld [vmem:[%s11939_s0 + $0x18] sm:$0xff] }
0x390e   :  { %v6033_v18 = vmul.f32 %v11189_v44, %v6013_v39  ;;  %v6056_v5 = vmul.f32 %v12088_v20, %v6013_v39  ;;  %v6083_v10 = vsel %vm68_vm0, %v6075_v48, 0.0  ;;  %v11630_v48 = vld [vmem:[%s11939_s0 + $0x30] sm:$0xff] }
0x390f   :  { %v6044_v24 = vadd.f32 %v6043_v34, %v6042_v11  ;;  %v6067_v42 = vadd.f32 %v6066_v46, %v6065_v13  ;;  %v6070_v34 = vsel %vm68_vm0, %v6057_v6, 0.0  ;;  %v6082_v1 = vsel %vm68_vm0, %v6074_v61, 0.0 }
0x3910   :  { %v6045_v25 = vsel %vm68_vm0, %v6033_v18, 0.0  ;;  %v6068_v52 = vsel %vm68_vm0, %v6056_v5, 0.0  ;;  %v6077_v6 = vmul.f32 %v11606_v23, %v5999_v51  ;;  %v11622_v51 = vld [vmem:[%s11939_s0 + $0x28] sm:$0xff] }
0x3911   :  { %v6027_v14 = vpop.permute.xlu1 %6026  ;;  %v6046_v19 = vadd.f32 %v6045_v25, %v6044_v24  ;;  %v6069_v35 = vadd.f32 %v6068_v52, %v6067_v42  ;;  %v11616_v42 = vld [vmem:[%s11939_s0 + $0x20] sm:$0xff] }
0x3912   :  { %v6035_v38 = vmul.f32 %v11200_v16, %v6027_v14  ;;  %v6058_v44 = vmul.f32 %v11283_v41, %v6027_v14  ;;  %v11598_v41 = vld [vmem:[%s11939_s0 + $0x10] sm:$0xff]  ;;  %v6087_v5 = vsel %vm68_vm0, %v6077_v6, 0.0  ;;  %v6078_v25 = vmul.f32 %v11616_v42, %v6006_v26  ;;  %v6223_v6 = vld [vmem:[%s11949_s10 + $0x8] sm:$0xff] }
0x3913   :  { %v6048_v11 = vadd.f32 %v6047_v62, %v6046_v19  ;;  %v6071_v13 = vadd.f32 %v6070_v34, %v6069_v35  ;;  %v6076_v46 = vmul.f32 %v11598_v41, %v5992_v12  ;;  %v6084_v12 = vadd.f32 %v6083_v10, %v6082_v1 }
0x3914   :  { %v6049_v18 = vsel %vm68_vm0, %v6035_v38, 0.0  ;;  %v6072_v16 = vsel %vm68_vm0, %v6058_v44, 0.0  ;;  %v6079_v19 = vmul.f32 %v11622_v51, %v6013_v39  ;;  %v6089_v35 = vsel %vm68_vm0, %v6078_v25, 0.0 }
0x3915   :  { %v6050_v55 = vadd.f32 %v6049_v18, %v6048_v11  ;;  %v6073_v58 = vadd.f32 %v6072_v16, %v6071_v13  ;;  %v6085_v20 = vsel %vm68_vm0, %v6076_v46, 0.0  ;;  %v6080_v26 = vmul.f32 %v11630_v48, %v6020_v7 }
0x3916   :  { %v6086_v24 = vadd.f32 %v6085_v20, %v6084_v12  ;;  %v6091_v44 = vsel %vm68_vm0, %v6079_v19, 0.0  ;;  %v6081_v62 = vmul.f32 %v11312_v2, %v6027_v14  ;;  %v6224_v12 = vld [vmem:[%s11949_s10 + $0x10] sm:$0xff] }
0x3917   :  { %6103 = vrot.lane.b32.xlu1 %v6073_v58, %s8834_s25  ;;  %6099 = vrot.lane.b32.xlu0 %v6050_v55, %s8831_s27  ;;  %v6093_v34 = vsel %vm68_vm0, %v6080_v26, 0.0 }
0x3918   :  { %v6088_v52 = vadd.f32 %v6087_v5, %v6086_v24  ;;  %v6095_v39 = vsel %vm68_vm0, %v6081_v62, 0.0  ;;  %v6225_v5 = vld [vmem:[%s11949_s10 + $0x18] sm:$0xff] }
0x3919   :  { %v11672_v24 = vpack.c.bf16 %v6225_v5, %v6224_v12  ;;  %v12092_v12 = vld [vmem:[#allocation11_spill] sm:$0xff] }
0x391a   :  { %v6090_v38 = vadd.f32 %v6089_v35, %v6088_v52 }
0x391c   :  { %v6092_v61 = vadd.f32 %v6091_v44, %v6090_v38 }
0x391e   :  { %v6094_v11 = vadd.f32 %v6093_v34, %v6092_v61 }
0x3920   :  { %v6096_v13 = vadd.f32 %v6095_v39, %v6094_v11 }
0x3922   :  { %v6201_v18 = vmul.f32 %v6096_v13, %v6096_v13 }
0x3924   :  { %v6202_v16 = vsel %vm68_vm0, %v6201_v18, 0.0 }
0x3936   :  { %6203 = vadd.xlane.f32.xlu0 %v6202_v16 }
0x394c   :  { %6316 = vrot.lane.b32.xlu0 %v11415_v30, %s8834_s25  ;;  %v11652_v30 = vld [vmem:[%s11948_s9] ss:$0 sm:$0xff] }
0x3989   :  { %v6104_v46 = vpop.permute.xlu1 %6103  ;;  %v6100_v55 = vpop.permute.xlu0 %6099 }
0x398a   :  { %v6106_v7 = vsel %vm68_vm0, %v11419_v54, %v6100_v55 }
0x398b   :  { %v6107_v2 = vsel %vm70_vm1, %v6106_v7, %v6104_v46 }
0x398c   :  { %7841 = vmatmul.mubr.msk.f32.vlgmr.msra.gmra.mrb[36].mxu1 %vm1862_vm2, %v6107_v2 }
0x398d   :  { %8486 = vmatpush3.bf16.msra.mxu1 %v11403_v31  ;;  %7881 = vmatprep.mubr.msk.f32.mxu1 %vm8836_vm3, %v12021_v43 }
0x398e   :  { %8487 = vmatprep.subr.bf16.mxu1 %v12022_v47 }
0x3991   :  { %8489 = vmatpush3.bf16.msra.mxu1 %v11409_v9  ;;  %v6222_v9 = vld [vmem:[%s11949_s10] sm:$0xff] }
0x3992   :  { %8508 = vmatprep.subr.bf16.mxu1 %v12022_v47  ;;  %v11662_v20 = vpack.c.bf16 %v6223_v6, %v6222_v9  ;;  %v12090_v6 = vld [vmem:[#allocation9_spill] sm:$0xff] }
0x3994   :  { %8468 = vmatpush3.bf16.msra.mxu0 %v11662_v20 }
0x3995   :  { %8469 = vmatprep.subr.bf16.mxu0 %v12022_v47 }
0x3998   :  { %8471 = vmatpush3.bf16.msra.mxu0 %v11672_v24 }
0x3999   :  { %8472 = vmatprep.subr.bf16.mxu0 %v12022_v47 }
0x39c3   :  { %v6204_v25 = vpop.xlane.xlu0 %6203 }
0x39c4   :  { %vm6207_vm4 = vcmp.eq.f32.partialorder %v6204_v25, inf  ;;  %v6210_v26 = vand.u32 2147483648, %v6204_v25  ;;  %vm6209_vm5 = vcmp.eq.f32.partialorder %v6204_v25, 0.0 }
0x39c7   :  { %v6317_v16 = vpop.permute.xlu0 %6316 }
0x3a5f   :  { %v6196_v54 = vpop.f32.mrb[36].mxu1 }
0x3a60   :  { %v6197_v14 = vadd.f32 %v11652_v30, %v6196_v54  ;;  %v7842_v58 = vpop.f32.mrb[37].mxu1 }
0x3a62   :  { %8665 = vtanh.f32 %v6197_v14 }
0x3a63   :  { %8667 = vrsqrt.f32 %v6204_v25 }
0x3a6c   :  { %v8666_v31 = vpop.eup %8665 }
0x3a6d   :  { %v6212_v10 = vmul.f32 %v8666_v31, %v8666_v31  ;;  %v8668_v52 = vpop.eup %8667 }
0x3a6e   :  { %v6206_v19 = vmul.f32 %v8668_v52, %v6204_v25 }
0x3a6f   :  { %v6213_v1 = vsel %vm68_vm0, %v6212_v10, 0.0 }
0x3a70   :  { %6214 = vadd.xlane.f32.xlu1 %v6213_v1  ;;  %v6208_v44 = vsel %vm6207_vm4, %v6204_v25, %v6206_v19  ;;  %v11745_v25 = vld [vmem:[#allocation2 + $0x10] sm:$0xff]  ;;  %v11748_v19 = vld [vmem:[#allocation2] sm:$0xff] }
0x3a71   :  { %v6211_v61 = vsel %vm6209_vm5, %v6210_v26, %v6208_v44  ;;  %v11752_v44 = vld [vmem:[#allocation2 + $0x18] sm:$0xff] }
0x3a72   :  { %v6218_v62 = vmul.f32 0.2, %v6211_v61 }
0x3a74   :  { %v6219_v34 = vmul.f32 %v8666_v31, %v6218_v62 }
0x3afd   :  { %v6215_v35 = vpop.xlane.xlu1 %6214 }
0x3afe   :  { %v6216_v38 = vadd.f32 1e-08, %v6215_v35 }
0x3b00   :  { %8669 = vrsqrt.f32 %v6216_v38 }
0x3b0a   :  { %v8670_v11 = vpop.eup %8669 }
0x3b0b   :  { %v6220_v39 = vmul.f32 %v8670_v11, %v6219_v34  ;;  %v11757_v34 = vld [vmem:[#allocation2 + $0x20] sm:$0xff] }
0x3b0d   :  { %v6221_v18 = vadd.f32 %v6220_v39, %v6096_v13  ;;  %v7114_v13 = vld [vmem:[%s11940_s1 + $0x38] sm:$0xff] }
0x3b0f   :  { %7852 = vmatmul.mubr.msk.f32.vlgmr.msra.gmra.mrb[32].mxu0 %vm68_vm0, %v6221_v18  ;;  %v11761_v18 = vld [vmem:[#allocation2 + $0x28] sm:$0xff] }
0x3b10   :  { %8474 = vmatpush3.bf16.msra.mxu0 %v11333_v40  ;;  %7870 = vmatprep.mubr.msk.f32.mxu0 %vm8836_vm3, %v12021_v43  ;;  %v6319_v40 = vsel %vm68_vm0, %v7114_v13, %v6317_v16 }
0x3b11   :  { %8475 = vmatprep.subr.bf16.mxu0 %v12022_v47 }
0x3b14   :  { %8477 = vmatpush3.bf16.msra.mxu0 %v11343_v0 }
0x3b15   :  { %8478 = vmatprep.subr.bf16.mxu0 %v12022_v47 }
0x3b18   :  { %8480 = vmatpush3.bf16.msra.mxu0 %v11355_v45 }
0x3b19   :  { %8481 = vmatprep.subr.bf16.mxu0 %v12022_v47 }
0x3b1c   :  { %8483 = vmatpush3.bf16.msra.mxu0 %v11365_v21 }
0x3b1d   :  { %8490 = vmatprep.subr.bf16.mxu0 %v12022_v47 }
0x3b1f   :  { %7871 = vmatmul.mubr.msk.f32.vlgmr.msra.gmra.mrb[34].mxu0 %vm70_vm1, %v6319_v40 }
0x3b20   :  { %8492 = vmatpush3.bf16.msra.mxu0 %v11505_v37  ;;  %7908 = vmatprep.mubr.msk.f32.mxu0 %vm8836_vm3, %v12021_v43 }
0x3b21   :  { %8493 = vmatprep.subr.bf16.mxu0 %v12022_v47 }
0x3b24   :  { %8495 = vmatpush3.bf16.msra.mxu0 %v11511_v63 }
0x3b25   :  { %8496 = vmatprep.subr.bf16.mxu0 %v12022_v47 }
0x3b28   :  { %8498 = vmatpush3.bf16.msra.mxu0 %v11521_v22 }
0x3b29   :  { %8499 = vmatprep.subr.bf16.mxu0 %v12022_v47 }
0x3b2c   :  { %8501 = vmatpush3.bf16.msra.mxu0 %v11531_v15 }
0x3b2d   :  { %8502 = vmatprep.subr.bf16.mxu0 %v12022_v47 }
0x3b30   :  { %8504 = vmatpush3.bf16.msra.mxu0 %v11541_v29 }
0x3b31   :  { %8505 = vmatprep.subr.bf16.mxu0 %v12022_v47 }
0x3b34   :  { %8507 = vmatpush3.bf16.msra.mxu0 %v11551_v8 }
0x3be2   :  { %v11705_v0 = vpop.f32.mrb[32].mxu0 }
0x3be3   :  { %v7853_v45 = vpop.f32.mrb[33].mxu0 }
0x3bf2   :  { %v6404_v21 = vpop.f32.mrb[34].mxu0 }
0x3bf3   :  { %v6405_v37 = vadd.f32 %v11382_v4, %v6404_v21  ;;  %v7872_v63 = vpop.f32.mrb[35].mxu0 }
0x3bf4   :  { %v11767_v63 = vld [vmem:[#allocation2 + $0x30] sm:$0xff] }
0x3bf5   :  { %v6408_v22 = vmul.f32 %v6405_v37, %v9461_v36 }
0x3bf7   :  { %8671 = vtanh.f32 %v6408_v22 }
0x3c01   :  { %v8672_v46 = vpop.eup %8671 }
0x3c02   :  { %v6410_v15 = vmul.f32 %v8672_v46, %v9461_v36 }
0x3c04   :  { %v6411_v55 = vadd.f32 %v6410_v15, %v9471_v28 }
0x3c06   :  { %6414 = vrot.lane.b32.xlu1 %v6411_v55, %s8834_s25  ;;  %v6412_v8 = vmul.f32 %v6411_v55, %v11391_v49 }
0x3c78   :  { %v6415_v29 = vpop.permute.xlu1 %6414 }
0x3c79   :  { %v6417_v7 = vmul.f32 %v6415_v29, %v6411_v55  ;;  %v11772_v29 = vld [vmem:[#allocation2 + $0x38] sm:$0xff] }
0x3c7b   :  { %6419 = vrot.lane.b32.xlu0 %v6417_v7, %s8831_s27 }
0x3ced   :  { %v6420_v2 = vpop.permute.xlu0 %6419 }
0x3cee   :  { %v6422_v54 = vadd.f32 %v6420_v2, %v6412_v8 }
0x3cf0   :  { %8673 = vtanh.f32 %v6422_v54 }
0x3cfa   :  { %v8674_v4 = vpop.eup %8673 }
0x3cfb   :  { %6425 = vrot.lane.b32.xlu1 %v8674_v4, %s8834_s25 }
0x3d6d   :  { %v6426_v14 = vpop.permute.xlu1 %6425 }
0x3d6e   :  { %v6428_v58 = vmul.f32 %v6426_v14, %v6411_v55 }
0x3d70   :  { %6434 = vrot.lane.b32.xlu0 %v6428_v58, %s8831_s27 }
0x3de2   :  { %v11716_v36 = vpop.permute.xlu0 %6434 }
0x3de3   :  { %7882 = vmatmul.mubr.msk.f32.vlgmr.msra.gmra.mrb[38].mxu1 %vm68_vm0, %v11716_v36 }
0x3de4   :  { %8510 = vmatpush3.bf16.msra.mxu1 %v11662_v20  ;;  %7919 = vmatprep.mubr.msk.f32.mxu1 %vm8836_vm3, %v12021_v43  ;;  %v12089_v43 = vld [vmem:[#allocation10_spill] sm:$0xff] }
0x3de5   :  { %8511 = vmatprep.subr.bf16.mxu1 %v12022_v47 }
0x3de8   :  { %8513 = vmatpush3.bf16.msra.mxu1 %v11672_v24 }
0x3eb6   :  { %v6504_v28 = vpop.f32.mrb[38].mxu1 }
0x3eb7   :  { %v7883_v49 = vpop.f32.mrb[39].mxu1  ;;  %v6541_v31 = vmul.f32 %v6504_v28, %v9604_v32  ;;  %v6540_v10 = vmul.f32 %v6504_v28, %v9621_v17  ;;  %v6543_v1 = vmul.f32 %v6504_v28, %v9616_v59  ;;  %v6542_v9 = vmul.f32 %v6504_v28, %v12040_v56  ;;  %v12091_v32 = vld [vmem:[#allocation12_spill] sm:$0xff] }
0x3eb8   :  { %v6545_v47 = vmul.f32 %v6504_v28, %v12089_v43  ;;  %v6544_v20 = vmul.f32 %v6504_v28, %v12090_v6  ;;  %v6547_v17 = vmul.f32 %v6504_v28, %v12091_v32  ;;  %v6546_v5 = vmul.f32 %v6504_v28, %v12092_v12  ;;  %v11741_v59 = vld [vmem:[#allocation2 + $0x8] sm:$0xff] }
0x3eb9   :  { %6558 = vrot.lane.b32.xlu0 %v6541_v31, %s8837_s15  ;;  %6556 = vrot.lane.b32.xlu1 %v6540_v10, %s8837_s15  ;;  %v6509_v56 = vmul.f32 %v11741_v59, %v6504_v28  ;;  %v6510_v52 = vmul.f32 %v11745_v25, %v6504_v28  ;;  %v6508_v35 = vmul.f32 %v11748_v19, %v6504_v28 }
0x3eba   :  { %v6511_v26 = vmul.f32 %v11752_v44, %v6504_v28  ;;  %v6512_v11 = vmul.f32 %v11757_v34, %v6504_v28  ;;  %v6513_v13 = vmul.f32 %v11761_v18, %v6504_v28  ;;  %v6514_v22 = vmul.f32 %v11767_v63, %v6504_v28 }
0x3ebb   :  { %v6519_v24 = vsel %vm68_vm0, %v6509_v56, 0.0  ;;  %v6522_v38 = vsel %vm68_vm0, %v6510_v52, 0.0  ;;  %v6516_v61 = vsel %vm68_vm0, %v6508_v35, 0.0  ;;  %v6515_v7 = vmul.f32 %v11772_v29, %v6504_v28 }
0x3ebc   :  { %v6525_v62 = vsel %vm68_vm0, %v6511_v26, 0.0  ;;  %v6528_v39 = vsel %vm68_vm0, %v6512_v11, 0.0  ;;  %v6531_v16 = vsel %vm68_vm0, %v6513_v13, 0.0  ;;  %v6534_v55 = vsel %vm68_vm0, %v6514_v22, 0.0 }
0x3ebd   :  { %6562 = vrot.lane.b32.xlu0 %v6543_v1, %s8837_s15  ;;  %6560 = vrot.lane.b32.xlu1 %v6542_v9, %s8837_s15  ;;  %v6537_v54 = vsel %vm68_vm0, %v6515_v7, 0.0 }
0x3ec1   :  { %6566 = vrot.lane.b32.xlu0 %v6545_v47, %s8837_s15  ;;  %6564 = vrot.lane.b32.xlu1 %v6544_v20, %s8837_s15 }
0x3ec5   :  { %6570 = vrot.lane.b32.xlu0 %v6547_v17, %s8837_s15  ;;  %6568 = vrot.lane.b32.xlu1 %v6546_v5, %s8837_s15 }
0x3ee4   :  { %6520 = vadd.xlane.f32.xlu0 %v6519_v24 }
0x3ee8   :  { %6523 = vadd.xlane.f32.xlu0 %v6522_v38 }
0x3ee9   :  { %6517 = vadd.xlane.f32.xlu1 %v6516_v61 }
0x3eec   :  { %6526 = vadd.xlane.f32.xlu0 %v6525_v62 }
0x3ef0   :  { %6529 = vadd.xlane.f32.xlu0 %v6528_v39 }
0x3ef4   :  { %6532 = vadd.xlane.f32.xlu0 %v6531_v16 }
0x3f2b   :  { %v6559_v40 = vpop.permute.xlu0 %6558  ;;  %v6557_v45 = vpop.permute.xlu1 %6556 }
0x3f2c   :  { %v6583_v21 = vsel %vm68_vm0, %v6559_v40, 0.0  ;;  %v6580_v37 = vsel %vm68_vm0, %v6557_v45, 0.0 }
0x3f2d   :  { %6581 = vadd.xlane.f32.xlu0 %v6580_v37  ;;  %6584 = vadd.xlane.f32.xlu1 %v6583_v21 }
0x3f2f   :  { %v6561_v46 = vpop.permute.xlu1 %6560  ;;  %v6563_v8 = vpop.permute.xlu0 %6562 }
0x3f30   :  { %v6586_v15 = vsel %vm68_vm0, %v6561_v46, 0.0  ;;  %v6589_v2 = vsel %vm68_vm0, %v6563_v8, 0.0 }
0x3f31   :  { %6535 = vadd.xlane.f32.xlu0 %v6534_v55  ;;  %6587 = vadd.xlane.f32.xlu1 %v6586_v15 }
0x3f33   :  { %v6565_v4 = vpop.permute.xlu1 %6564  ;;  %v6567_v58 = vpop.permute.xlu0 %6566 }
0x3f34   :  { %v6592_v14 = vsel %vm68_vm0, %v6565_v4, 0.0  ;;  %v6595_v49 = vsel %vm68_vm0, %v6567_v58, 0.0 }
0x3f35   :  { %6538 = vadd.xlane.f32.xlu0 %v6537_v54  ;;  %6590 = vadd.xlane.f32.xlu1 %v6589_v2 }
0x3f37   :  { %v6569_v31 = vpop.permute.xlu1 %6568  ;;  %v6571_v10 = vpop.permute.xlu0 %6570 }
0x3f38   :  { %v6598_v28 = vsel %vm68_vm0, %v6569_v31, 0.0  ;;  %v6601_v1 = vsel %vm68_vm0, %v6571_v10, 0.0 }
0x3f39   :  { %6593 = vadd.xlane.f32.xlu1 %v6592_v14 }
0x3f3d   :  { %6596 = vadd.xlane.f32.xlu1 %v6595_v49 }
0x3f41   :  { %6599 = vadd.xlane.f32.xlu1 %v6598_v28 }
0x3f45   :  { %6602 = vadd.xlane.f32.xlu1 %v6601_v1 }
0x3f71   :  { %v6521_v9 = vpop.xlane.xlu0 %6520 }
0x3f75   :  { %v6524_v43 = vpop.xlane.xlu0 %6523 }
0x3f76   :  { %v6518_v47 = vpop.xlane.xlu1 %6517 }
0x3f79   :  { %v6527_v6 = vpop.xlane.xlu0 %6526 }
0x3f7d   :  { %v6530_v32 = vpop.xlane.xlu0 %6529 }
0x3f81   :  { %v6533_v12 = vpop.xlane.xlu0 %6532 }
0x3fba   :  { %v6585_v20 = vpop.xlane.xlu1 %6584  ;;  %v6582_v56 = vpop.xlane.xlu0 %6581 }
0x3fbb   :  { %v6604_v52 = vadd.f32 %v6582_v56, %v6518_v47  ;;  %v6605_v35 = vadd.f32 %v6585_v20, %v6521_v9 }
0x3fbd   :  { %v6623_v39 = vrot.slane %v6604_v52, %v9713_v53  ;;  %v6627_v13 = vrot.slane %v6605_v35, %v9713_v53 }
0x3fbe   :  { %v6588_v17 = vpop.xlane.xlu1 %6587  ;;  %v6536_v62 = vpop.xlane.xlu0 %6535 }
0x3fbf   :  { %v6606_v38 = vadd.f32 %v6588_v17, %v6524_v43  ;;  %v6652_v46 = vsel %vm1668_vm7, %v6627_v13, %v6623_v39 }
0x3fc1   :  { %v6631_v40 = vrot.slane %v6606_v38, %v9713_v53 }
0x3fc2   :  { %v6591_v5 = vpop.xlane.xlu1 %6590  ;;  %v6539_v7 = vpop.xlane.xlu0 %6538 }
0x3fc3   :  { %v6607_v61 = vadd.f32 %v6591_v5, %v6527_v6  ;;  %v6653_v55 = vsel %vm1670_vm8, %v6631_v40, %v6652_v46 }
0x3fc5   :  { %v6635_v21 = vrot.slane %v6607_v61, %v9713_v53 }
0x3fc6   :  { %v6594_v24 = vpop.xlane.xlu1 %6593 }
0x3fc7   :  { %v6608_v11 = vadd.f32 %v6594_v24, %v6530_v32  ;;  %v6654_v54 = vsel %vm1672_vm9, %v6635_v21, %v6653_v55  ;;  %v12093_v21 = vld [vmem:[#allocation13_spill] sm:$0xff] }
0x3fc9   :  { %v6639_v22 = vrot.slane %v6608_v11, %v9713_v53 }
0x3fca   :  { %v6597_v26 = vpop.xlane.xlu1 %6596 }
0x3fcb   :  { %v6609_v16 = vadd.f32 %v6597_v26, %v6533_v12  ;;  %v6655_v14 = vsel %vm1674_vm10, %v6639_v22, %v6654_v54  ;;  %v12094_v22 = vld [vmem:[#allocation14_spill] sm:$0xff] }
0x3fcd   :  { %v6643_v15 = vrot.slane %v6609_v16, %v9713_v53 }
0x3fce   :  { %v6600_v45 = vpop.xlane.xlu1 %6599 }
0x3fcf   :  { %v6610_v37 = vadd.f32 %v6600_v45, %v6536_v62  ;;  %v6656_v58 = vsel %vm1676_vm11, %v6643_v15, %v6655_v14  ;;  %v12095_v15 = vld [vmem:[#allocation15_spill] sm:$0xff] }
0x3fd1   :  { %v6647_v8 = vrot.slane %v6610_v37, %v9713_v53 }
0x3fd2   :  { %v6603_v2 = vpop.xlane.xlu1 %6602 }
0x3fd3   :  { %v6611_v4 = vadd.f32 %v6603_v2, %v6539_v7  ;;  %v6657_v31 = vsel %vm1678_vm12, %v6647_v8, %v6656_v58  ;;  %v12096_v7 = vld [vmem:[#allocation16_spill] sm:$0xff] }
0x3fd4   :  { %v8797_v2 = vld [vmem:[#allocation3 + $0x8] sm:$0xff] }
0x3fd5   :  { %v6651_v49 = vrot.slane %v6611_v4, %v9713_v53  ;;  %v8798_v4 = vld [vmem:[#allocation3] sm:$0xff] }
0x3fd7   :  { %v6658_v28 = vsel %vm1680_vm13, %v6651_v49, %v6657_v31 }
0x3fd8   :  { %v6660_v10 = vsel %vm1301_vm14, %v6658_v28, -1e+09 }
0x3fd9   :  { %v6661_v1 = vsel %vm1684_vm15, %v6660_v10, -inf }
0x3fda   :  { %v6662_v9 = vrot.slane %v6661_v1, 4 }
0x3fdc   :  { %v6663_v43 = vmax.f32 %v6661_v1, %v6662_v9 }
0x3fde   :  { %v6664_v47 = vrot.slane %v6663_v43, 2 }
0x3fe0   :  { %v6665_v6 = vmax.f32 %v6663_v43, %v6664_v47  ;;  %v8799_v43 = vld [vmem:[#allocation3 + $0x10] sm:$0xff] }
0x3fe2   :  { %v6666_v20 = vrot.slane %v6665_v6, 1 }
0x3fe4   :  { %v6667_v32 = vmax.f32 %v6665_v6, %v6666_v20  ;;  %v8800_v20 = vld [vmem:[#allocation3 + $0x18] sm:$0xff] }
0x3fe6   :  { %v6668_v17 = vsub.f32 %v6660_v10, %v6667_v32 }
0x3fe8   :  { %v6669_v12 = vmul.f32 1.442695, %v6668_v17 }
0x3fea   :  { %8675 = vpow2.f32 %v6669_v12 }
0x3ff4   :  { %v8676_v5 = vpop.eup %8675 }
0x3ff5   :  { %v6671_v53 = vsel %vm1684_vm15, %v8676_v5, 0.0 }
0x3ff6   :  { %v6672_v56 = vrot.slane %v6671_v53, 4 }
0x3ff8   :  { %v6673_v24 = vadd.f32 %v6672_v56, %v6671_v53 }
0x3ffa   :  { %v6674_v52 = vrot.slane %v6673_v24, 2 }
0x3ffc   :  { %v6675_v35 = vadd.f32 %v6674_v52, %v6673_v24 }
0x3ffe   :  { %v6676_v50 = vrot.slane %v6675_v35, 1 }
0x4000   :  { %v6677_v38 = vadd.f32 %v6676_v50, %v6675_v35 }
0x4002   :  { %8677 = vrcp.f32 %v6677_v38 }
0x400c   :  { %v8678_v26 = vpop.eup %8677 }
0x400d   :  { %v6679_v61 = vmul.f32 %v8678_v26, %v6677_v38 }
0x400f   :  { %v6680_v62 = vsub.f32 2.0, %v6679_v61 }
0x4011   :  { %v6681_v11 = vmul.f32 %v8678_v26, %v6680_v62  ;;  %v8801_v26 = vld [vmem:[#allocation3 + $0x20] sm:$0xff] }
0x4013   :  { %v6682_v39 = vmul.f32 %v8676_v5, %v6681_v11  ;;  %v8802_v11 = vld [vmem:[#allocation3 + $0x28] sm:$0xff] }
0x4015   :  { %7121 = vst.msk [vmem:[%s11951_s12 + $0x38] sm:$0xff] %vm1684_vm15, %v6682_v39  ;;  %v6693_v13 = vrot.slane %v6682_v39, %v9113_v60  ;;  %v6686_v16 = vrot.slane %v6682_v39, %v9106_v57  ;;  %v6700_v40 = vrot.slane %v6682_v39, %v9747_v27  ;;  %v6707_v45 = vrot.slane %v6682_v39, %v9750_v33 }
0x4016   :  { %v6714_v37 = vrot.slane %v6682_v39, %v12093_v21  ;;  %v6721_v46 = vrot.slane %v6682_v39, %v12094_v22  ;;  %v6728_v55 = vrot.slane %v6682_v39, %v12095_v15  ;;  %v6735_v60 = vrot.slane %v6682_v39, %v12096_v7  ;;  %v8803_v15 = vld [vmem:[#allocation3 + $0x30] sm:$0xff] }
0x4017   :  { %6695 = vbcast.lane.b32.xlu1 %v6693_v13, 256  ;;  %6688 = vbcast.lane.b32.xlu0 %v6686_v16, 256 }
0x401b   :  { %6702 = vbcast.lane.b32.xlu1 %v6700_v40, 256  ;;  %6709 = vbcast.lane.b32.xlu0 %v6707_v45, 256 }
0x401f   :  { %6716 = vbcast.lane.b32.xlu1 %v6714_v37, 256  ;;  %6723 = vbcast.lane.b32.xlu0 %v6721_v46, 256 }
0x4023   :  { %6730 = vbcast.lane.b32.xlu1 %v6728_v55, 256  ;;  %6737 = vbcast.lane.b32.xlu0 %v6735_v60, 256 }
0x4089   :  { %v6696_v57 = vpop.permute.xlu1 %6695  ;;  %v6689_v8 = vpop.permute.xlu0 %6688 }
0x408a   :  { %v6740_v27 = vmul.f32 %v11741_v59, %v6696_v57  ;;  %v6763_v33 = vmul.f32 %v8797_v2, %v6696_v57  ;;  %v6739_v54 = vmul.f32 %v11748_v19, %v6689_v8  ;;  %v6762_v14 = vmul.f32 %v8798_v4, %v6689_v8  ;;  %v8804_v2 = vld [vmem:[#allocation3 + $0x38] sm:$0xff] }
0x408c   :  { %v6748_v58 = vsel %vm68_vm0, %v6740_v27, 0.0  ;;  %v6771_v49 = vsel %vm68_vm0, %v6763_v33, 0.0  ;;  %v6747_v31 = vsel %vm68_vm0, %v6739_v54, 0.0  ;;  %v6770_v28 = vsel %vm68_vm0, %v6762_v14, 0.0 }
0x408d   :  { %v6703_v10 = vpop.permute.xlu1 %6702  ;;  %v6710_v1 = vpop.permute.xlu0 %6709  ;;  %v6749_v47 = vadd.f32 %v6748_v58, %v6747_v31  ;;  %v6772_v6 = vadd.f32 %v6771_v49, %v6770_v28  ;;  %v6786_v49 = vmul.f32 %v11587_v3, %v6696_v57 }
0x408e   :  { %v6741_v9 = vmul.f32 %v11745_v25, %v6703_v10  ;;  %v6764_v59 = vmul.f32 %v8799_v43, %v6703_v10  ;;  %v6742_v19 = vmul.f32 %v11752_v44, %v6710_v1  ;;  %v6765_v32 = vmul.f32 %v8800_v20, %v6710_v1 }
0x408f   :  { %v6794_v43 = vsel %vm68_vm0, %v6786_v49, 0.0  ;;  %v6788_v57 = vmul.f32 %v11606_v23, %v6710_v1  ;;  %v8806_v23 = vld [vmem:[%s11939_s0 + $0x38] sm:$0xff] }
0x4090   :  { %v6750_v17 = vsel %vm68_vm0, %v6741_v9, 0.0  ;;  %v6773_v12 = vsel %vm68_vm0, %v6764_v59, 0.0  ;;  %v6752_v52 = vsel %vm68_vm0, %v6742_v19, 0.0  ;;  %v6775_v25 = vsel %vm68_vm0, %v6765_v32, 0.0 }
0x4091   :  { %v6751_v5 = vadd.f32 %v6750_v17, %v6749_v47  ;;  %v6774_v53 = vadd.f32 %v6773_v12, %v6772_v6  ;;  %v6717_v56 = vpop.permute.xlu1 %6716  ;;  %v6724_v24 = vpop.permute.xlu0 %6723  ;;  %v6787_v9 = vmul.f32 %v11598_v41, %v6703_v10  ;;  %v6798_v19 = vsel %vm68_vm0, %v6788_v57, 0.0 }
0x4092   :  { %v6743_v35 = vmul.f32 %v11757_v34, %v6717_v56  ;;  %v6766_v44 = vmul.f32 %v8801_v26, %v6717_v56  ;;  %v6744_v62 = vmul.f32 %v11761_v18, %v6724_v24  ;;  %v6767_v39 = vmul.f32 %v8802_v11, %v6724_v24 }
0x4093   :  { %v6753_v50 = vadd.f32 %v6752_v52, %v6751_v5  ;;  %v6776_v38 = vadd.f32 %v6775_v25, %v6774_v53  ;;  %v6796_v47 = vsel %vm68_vm0, %v6787_v9, 0.0  ;;  %v6790_v10 = vmul.f32 %v11622_v51, %v6724_v24 }
0x4094   :  { %v6754_v61 = vsel %vm68_vm0, %v6743_v35, 0.0  ;;  %v6777_v16 = vsel %vm68_vm0, %v6766_v44, 0.0  ;;  %v6756_v37 = vsel %vm68_vm0, %v6744_v62, 0.0  ;;  %v6779_v34 = vsel %vm68_vm0, %v6767_v39, 0.0  ;;  %v12097_v62 = vld [vmem:[#allocation7_spill] sm:$0xff] }
0x4095   :  { %v6755_v13 = vadd.f32 %v6754_v61, %v6753_v50  ;;  %v6731_v40 = vpop.permute.xlu1 %6730  ;;  %v6738_v45 = vpop.permute.xlu0 %6737  ;;  %v6778_v21 = vadd.f32 %v6777_v16, %v6776_v38  ;;  %v6802_v12 = vsel %vm68_vm0, %v6790_v10, 0.0  ;;  %vm59_vm3 = vcmp.lt.s32.totalorder %v12097_v62, 20 }
0x4096   :  { %v6745_v46 = vmul.f32 %v11767_v63, %v6731_v40  ;;  %v6768_v55 = vmul.f32 %v8803_v15, %v6731_v40  ;;  %v6746_v18 = vmul.f32 %v11772_v29, %v6738_v45  ;;  %v6769_v33 = vmul.f32 %v8804_v2, %v6738_v45  ;;  %v8805_v63 = vld [vmem:[%s11939_s0] sm:$0xff]  ;;  %s8839_s0 = smov [#allocation4]  }
0x4097   :  { %v6757_v22 = vadd.f32 %v6756_v37, %v6755_v13  ;;  %v6780_v7 = vadd.f32 %v6779_v34, %v6778_v21  ;;  %v6785_v31 = vmul.f32 %v8805_v63, %v6689_v8  ;;  %v6789_v8 = vmul.f32 %v11616_v42, %v6717_v56  ;;  %v12100_v21 = vld [vmem:[#allocation18_spill] sm:$0xff]  ;;  %s7030_s2 = sshll.u32 %s8839_s0, 4  ;;  %s7031_s2 = int_to_ptr.vmem [resolvable:$true] %s7030_s2 }
0x4098   :  { %v6758_v60 = vsel %vm68_vm0, %v6745_v46, 0.0  ;;  %v6781_v27 = vsel %vm68_vm0, %v6768_v55, 0.0  ;;  %v6760_v14 = vsel %vm68_vm0, %v6746_v18, 0.0  ;;  %v6783_v58 = vsel %vm68_vm0, %v6769_v33, 0.0  ;;  %v12102_v46 = vld [vmem:[#allocation19_spill] sm:$0xff]  ;;  %v12103_v55 = vld [vmem:[#allocation28_spill] sm:$0xff]  ;;  %p8812_p1 = scmp.lt.s32.totalorder %s7031_s2, %s7031_s2 }
0x4099   :  { %v6759_v54 = vadd.f32 %v6758_v60, %v6757_v22  ;;  %v6782_v4 = vadd.f32 %v6781_v27, %v6780_v7  ;;  %v6793_v59 = vsel %vm68_vm0, %v6785_v31, 0.0  ;;  %v6800_v41 = vsel %vm68_vm0, %v6789_v8, 0.0  ;;  %v12101_v22 = vld [vmem:[#allocation26_spill] sm:$0xff]  ;;  %s8807_s20 = scalar_lea.vmem %s7031_s2, 1024 }
0x409a   :  { %v6795_v3 = vadd.f32 %v6794_v43, %v6793_v59  ;;  %v6791_v17 = vmul.f32 %v11630_v48, %v6731_v40  ;;  %v6792_v42 = vmul.f32 %v8806_v23, %v6738_v45  ;;  %v8838_v39 = vmov -1e+09   ;;  %p8808_p0 = scmp.ne.s32.totalorder %s7031_s2, %s8807_s20  ;;  %p8813_p2 = scmp.lt.s32.totalorder %s8807_s20, %s8807_s20 }
0x409b   :  { %v6761_v29 = vadd.f32 %v6760_v14, %v6759_v54  ;;  %v6784_v28 = vadd.f32 %v6783_v58, %v6782_v4  ;;  %v11865_v13 = vsel %vm59_vm3, 0.0, %v8838_v39 }
0x409c   :  { %v6797_v6 = vadd.f32 %v6796_v47, %v6795_v3  ;;  %v6804_v53 = vsel %vm68_vm0, %v6791_v17, 0.0  ;;  %v6806_v56 = vsel %vm68_vm0, %v6792_v42, 0.0  ;;  %v11880_v37 = vadd.f32 %v12100_v21, %v11865_v13  ;;  %p8814_p3 = por %p8813_p2, %p8812_p1 }
0x409d   :  { %6814 = vrot.lane.b32.xlu0 %v6784_v28, %s8834_s25  ;;  %6810 = vrot.lane.b32.xlu1 %v6761_v29, %s8831_s27  ;;  %v11885_v34 = vadd.f32 %v12101_v22, %v11865_v13  ;;  %v11890_v15 = vadd.f32 %v12102_v46, %v11865_v13  ;;  %v11895_v7 = vadd.f32 %v12103_v55, %v11865_v13 }
0x409e   :  { %v6799_v20 = vadd.f32 %v6798_v19, %v6797_v6  ;;  %v11900_v18 = vadd.f32 %v11705_v0, %v11865_v13  ;;  %p8815_p4 = pnand %p8814_p3, %p8808_p0 }
0x40a0   :  { %v6801_v32 = vadd.f32 %v6800_v41, %v6799_v20 }
0x40a2   :  { %v6803_v5 = vadd.f32 %v6802_v12, %v6801_v32 }
0x40a4   :  { %v6805_v1 = vadd.f32 %v6804_v53, %v6803_v5 }
0x40a6   :  { %v6807_v52 = vadd.f32 %v6806_v56, %v6805_v1 }
0x40a8   :  { %v6912_v25 = vmul.f32 %v6807_v52, %v6807_v52 }
0x40aa   :  { %v6913_v51 = vsel %vm68_vm0, %v6912_v25, 0.0 }
0x40c1   :  { %6914 = vadd.xlane.f32.xlu1 %v6913_v51 }
0x410f   :  { %v6815_v24 = vpop.permute.xlu0 %6814  ;;  %v6811_v48 = vpop.permute.xlu1 %6810 }
0x4110   :  { %v6817_v35 = vsel %vm68_vm0, %v11716_v36, %v6811_v48  ;;  %v12098_v36 = vld [vmem:[#allocation17_spill] sm:$0xff] }
0x4111   :  { %v6818_v50 = vsel %vm70_vm1, %v6817_v35, %v6815_v24  ;;  %v11870_v40 = vadd.f32 %v12098_v36, %v11865_v13 }
0x4112   :  { %7909 = vmatmul.mubr.msk.f32.vlgmr.msra.gmra.mrb[36].mxu0 %vm1862_vm2, %v6818_v50 }
0x414e   :  { %v6915_v60 = vpop.xlane.xlu1 %6914 }
0x414f   :  { %vm6918_vm1 = vcmp.eq.f32.partialorder %v6915_v60, inf  ;;  %v6921_v58 = vand.u32 2147483648, %v6915_v60  ;;  %vm6920_vm7 = vcmp.eq.f32.partialorder %v6915_v60, 0.0 }
0x41e5   :  { %v6907_v38 = vpop.f32.mrb[36].mxu0 }
0x41e6   :  { %v6908_v26 = vadd.f32 %v11652_v30, %v6907_v38  ;;  %v7910_v44 = vpop.f32.mrb[37].mxu0  ;;  %v12099_v30 = vld [vmem:[#allocation25_spill] sm:$0xff] }
0x41e7   :  { %v11875_v45 = vadd.f32 %v12099_v30, %v11865_v13 }
0x41e8   :  { %8679 = vtanh.f32 %v6908_v26 }
0x41e9   :  { %8681 = vrsqrt.f32 %v6915_v60 }
0x41f2   :  { %v8680_v61 = vpop.eup %8679 }
0x41f3   :  { %v6923_v11 = vmul.f32 %v8680_v61, %v8680_v61  ;;  %v8682_v27 = vpop.eup %8681 }
0x41f4   :  { %v6917_v2 = vmul.f32 %v8682_v27, %v6915_v60 }
0x41f5   :  { %v6924_v16 = vsel %vm68_vm0, %v6923_v11, 0.0 }
0x41f6   :  { %6925 = vadd.xlane.f32.xlu0 %v6924_v16  ;;  %v6919_v4 = vsel %vm6918_vm1, %v6915_v60, %v6917_v2 }
0x41f7   :  { %v6922_v63 = vsel %vm6920_vm7, %v6921_v58, %v6919_v4 }
0x41f8   :  { %v6929_v28 = vmul.f32 0.2, %v6922_v63 }
0x41fa   :  { %2035 = vmax.xlane.f32.xlu0 %v11870_v40  ;;  %v6930_v43 = vmul.f32 %v8680_v61, %v6929_v28 }
0x41fe   :  { %2744 = vmax.xlane.f32.xlu0 %v11875_v45 }
0x4202   :  { %3455 = vmax.xlane.f32.xlu0 %v11880_v37 }
0x4206   :  { %4166 = vmax.xlane.f32.xlu0 %v11885_v34 }
0x420a   :  { %4877 = vmax.xlane.f32.xlu0 %v11890_v15 }
0x420e   :  { %5588 = vmax.xlane.f32.xlu0 %v11895_v7 }
0x4212   :  { %6299 = vmax.xlane.f32.xlu0 %v11900_v18 }
0x4283   :  { %v6926_v33 = vpop.xlane.xlu0 %6925 }
0x4284   :  { %v6927_v54 = vadd.f32 1e-08, %v6926_v33 }
0x4286   :  { %8683 = vrsqrt.f32 %v6927_v54 }
0x4287   :  { %v2036_v14 = vpop.xlane.xlu0 %2035 }
0x4288   :  { %v2037_v49 = vsub.f32 %v11870_v40, %v2036_v14 }
0x428a   :  { %v2038_v31 = vmul.f32 1.442695, %v2037_v49 }
0x428b   :  { %v2745_v0 = vpop.xlane.xlu0 %2744 }
0x428c   :  { %8685 = vpow2.f32 %v2038_v31  ;;  %v2746_v29 = vsub.f32 %v11875_v45, %v2745_v0 }
0x428e   :  { %v2747_v9 = vmul.f32 1.442695, %v2746_v29 }
0x428f   :  { %v11905_v59 = vpop.xlane.xlu0 %3455 }
0x4290   :  { %v8684_v47 = vpop.eup %8683  ;;  %8687 = vpow2.f32 %v2747_v9  ;;  %v3457_v3 = vsub.f32 %v11880_v37, %v11905_v59 }
0x4291   :  { %v6931_v57 = vmul.f32 %v8684_v47, %v6930_v43 }
0x4292   :  { %v3458_v6 = vmul.f32 1.442695, %v3457_v3 }
0x4293   :  { %v11909_v8 = vpop.xlane.xlu0 %4166  ;;  %v6932_v19 = vadd.f32 %v6931_v57, %v6807_v52 }
0x4294   :  { %8689 = vpow2.f32 %v3458_v6  ;;  %v4168_v20 = vsub.f32 %v11885_v34, %v11909_v8 }
0x4295   :  { %7920 = vmatmul.mubr.msk.f32.vlgmr.msra.gmra.mrb[40].mxu1 %vm68_vm0, %v6932_v19 }
0x4296   :  { %v8686_v41 = vpop.eup %8685  ;;  %v4169_v10 = vmul.f32 1.442695, %v4168_v20 }
0x4297   :  { %2040 = vadd.xlane.f32.xlu1 %v8686_v41  ;;  %v4878_v32 = vpop.xlane.xlu0 %4877 }
0x4298   :  { %8691 = vpow2.f32 %v4169_v10  ;;  %v4879_v17 = vsub.f32 %v11890_v15, %v4878_v32 }
0x429a   :  { %v8688_v12 = vpop.eup %8687  ;;  %v4880_v5 = vmul.f32 1.442695, %v4879_v17 }
0x429b   :  { %2749 = vadd.xlane.f32.xlu1 %v8688_v12  ;;  %v5589_v53 = vpop.xlane.xlu0 %5588 }
0x429c   :  { %8693 = vpow2.f32 %v4880_v5  ;;  %v5590_v23 = vsub.f32 %v11895_v7, %v5589_v53 }
0x429e   :  { %v8690_v42 = vpop.eup %8689  ;;  %v5591_v1 = vmul.f32 1.442695, %v5590_v23 }
0x429f   :  { %3460 = vadd.xlane.f32.xlu1 %v8690_v42  ;;  %v6300_v56 = vpop.xlane.xlu0 %6299 }
0x42a0   :  { %8695 = vpow2.f32 %v5591_v1  ;;  %v6301_v52 = vsub.f32 %v11900_v18, %v6300_v56 }
0x42a2   :  { %v8692_v25 = vpop.eup %8691  ;;  %v6302_v51 = vmul.f32 1.442695, %v6301_v52 }
0x42a3   :  { %4171 = vadd.xlane.f32.xlu1 %v8692_v25 }
0x42a4   :  { %8697 = vpow2.f32 %v6302_v51 }
0x42a6   :  { %v8694_v24 = vpop.eup %8693 }
0x42a7   :  { %4882 = vadd.xlane.f32.xlu1 %v8694_v24 }
0x42aa   :  { %v8696_v48 = vpop.eup %8695 }
0x42ab   :  { %5593 = vadd.xlane.f32.xlu1 %v8696_v48 }
0x42ae   :  { %v8698_v35 = vpop.eup %8697 }
0x42af   :  { %6304 = vadd.xlane.f32.xlu1 %v8698_v35 }
0x4324   :  { %v2041_v50 = vpop.xlane.xlu1 %2040 }
0x4325   :  { %8699 = vlog2.f32 %v2041_v50 }
0x4328   :  { %v2750_v38 = vpop.xlane.xlu1 %2749 }
0x4329   :  { %8701 = vlog2.f32 %v2750_v38 }
0x432c   :  { %v3461_v26 = vpop.xlane.xlu1 %3460 }
0x432d   :  { %8703 = vlog2.f32 %v3461_v26 }
0x432f   :  { %v8700_v44 = vpop.eup %8699 }
0x4330   :  { %v2043_v61 = vmul.f32 0.6931472, %v8700_v44  ;;  %v4172_v62 = vpop.xlane.xlu1 %4171 }
0x4331   :  { %8705 = vlog2.f32 %v4172_v62 }
0x4332   :  { %v2044_v11 = vadd.f32 %v2043_v61, %v2036_v14 }
0x4333   :  { %v8702_v39 = vpop.eup %8701 }
0x4334   :  { %v2045_v16 = vsub.f32 %v11870_v40, %v2044_v11  ;;  %v2752_v36 = vmul.f32 0.6931472, %v8702_v39  ;;  %v4883_v30 = vpop.xlane.xlu1 %4882 }
0x4335   :  { %8707 = vlog2.f32 %v4883_v30 }
0x4336   :  { %2046 = vst [vmem:[#allocation4] sm:$0xff] %v2045_v16  ;;  %v2753_v21 = vadd.f32 %v2752_v36, %v2745_v0 }
0x4337   :  { %v8704_v22 = vpop.eup %8703 }
0x4338   :  { %v2754_v46 = vsub.f32 %v11875_v45, %v2753_v21  ;;  %v3463_v55 = vmul.f32 0.6931472, %v8704_v22  ;;  %v5594_v60 = vpop.xlane.xlu1 %5593 }
0x4339   :  { %8709 = vlog2.f32 %v5594_v60 }
0x433a   :  { %2756 = vst [vmem:[#allocation4 + $0x8] sm:$0xff] %v2754_v46  ;;  %v3464_v27 = vadd.f32 %v3463_v55, %v11905_v59 }
0x433b   :  { %v8706_v2 = vpop.eup %8705 }
0x433c   :  { %v3465_v33 = vsub.f32 %v11880_v37, %v3464_v27  ;;  %v4174_v54 = vmul.f32 0.6931472, %v8706_v2  ;;  %v6305_v4 = vpop.xlane.xlu1 %6304 }
0x433d   :  { %8711 = vlog2.f32 %v6305_v4 }
0x433e   :  { %3467 = vst [vmem:[#allocation4 + $0x10] sm:$0xff] %v3465_v33  ;;  %v4175_v40 = vadd.f32 %v4174_v54, %v11909_v8 }
0x433f   :  { %v8708_v14 = vpop.eup %8707 }
0x4340   :  { %v4176_v58 = vsub.f32 %v11885_v34, %v4175_v40  ;;  %v4885_v49 = vmul.f32 0.6931472, %v8708_v14 }
0x4342   :  { %4178 = vst [vmem:[#allocation4 + $0x18] sm:$0xff] %v4176_v58  ;;  %v4886_v45 = vadd.f32 %v4885_v49, %v4878_v32 }
0x4343   :  { %v8710_v63 = vpop.eup %8709 }
0x4344   :  { %v4887_v31 = vsub.f32 %v11890_v15, %v4886_v45  ;;  %v5596_v0 = vmul.f32 0.6931472, %v8710_v63 }
0x4346   :  { %4889 = vst [vmem:[#allocation4 + $0x20] sm:$0xff] %v4887_v31  ;;  %v5597_v29 = vadd.f32 %v5596_v0, %v5589_v53 }
0x4347   :  { %v8712_v28 = vpop.eup %8711 }
0x4348   :  { %v5598_v37 = vsub.f32 %v11895_v7, %v5597_v29  ;;  %v6307_v9 = vmul.f32 0.6931472, %v8712_v28 }
0x434a   :  { %5600 = vst [vmem:[#allocation4 + $0x28] sm:$0xff] %v5598_v37  ;;  %v6308_v43 = vadd.f32 %v6307_v9, %v6300_v56 }
0x434c   :  { %v6309_v59 = vsub.f32 %v11900_v18, %v6308_v43 }
0x434e   :  { %6311 = vst [vmem:[#allocation4 + $0x30] sm:$0xff] %v6309_v59 }
0x4368   :  { %v7006_v47 = vpop.f32.mrb[40].mxu1 }
0x4369   :  { %v7007_v34 = vadd.f32 %v7006_v47, %v11865_v13  ;;  %v7921_v3 = vpop.f32.mrb[41].mxu1 }
0x436b   :  { %7010 = vmax.xlane.f32.xlu0 %v7007_v34 }
0x43f8   :  { %v7011_v57 = vpop.xlane.xlu0 %7010 }
0x43f9   :  { %v7012_v6 = vsub.f32 %v7007_v34, %v7011_v57 }
0x43fb   :  { %v7013_v15 = vmul.f32 1.442695, %v7012_v6 }
0x43fd   :  { %8713 = vpow2.f32 %v7013_v15 }
0x4407   :  { %v8714_v8 = vpop.eup %8713 }
0x4408   :  { %7015 = vadd.xlane.f32.xlu1 %v8714_v8 }
0x4495   :  { %v7016_v19 = vpop.xlane.xlu1 %7015 }
0x4496   :  { %8715 = vlog2.f32 %v7016_v19 }
0x44a0   :  { %v8716_v7 = vpop.eup %8715 }
0x44a1   :  { %v7018_v20 = vmul.f32 0.6931472, %v8716_v7 }
0x44a3   :  { %v7019_v41 = vadd.f32 %v7018_v20, %v7011_v57 }
0x44a5   :  { %v7020_v18 = vsub.f32 %v7007_v34, %v7019_v41 }
0x44a7   :  { %7022 = vst [vmem:[#allocation4 + $0x38] sm:$0xff] %v7020_v18 }
0x44a8   :  { %8818 = shalt.err (!%p8815_p4)
}
0x44a9   :  { %s8819_s23 = scalar_lea.hbm %s11950_s11, 1024 }
0x44aa   :  { %p8820_p5 = scmp.ne.s32.totalorder %s11950_s11, %s8819_s23  ;;  %p8823_p6 = scmp.lt.u32.totalorder %s8819_s23, %s11950_s11 }
0x44ac   :  { %p8825_p7 = pnand %p8823_p6, %p8820_p5 }
0x44ae   :  { %8828 = shalt.err (!%p8825_p7)
}
0x44af   :  { %s8840_s28 = smov 128   ;;  %s8841_s29 = smov 8  }
0x44b0   :  { %7036 = dma.vmem_to_hbm [thread:$0]  %s7031_s2, 1024, %s11950_s11, [#allocation5], %s8840_s28, %s8840_s28, %s8841_s29  }
0x44b1   :  { %8829 = dma.done.wait [#allocation5], 1024  }
0x44b2   :  { %8830 = vsyncadd [#allocation5], 4294966272 }
0x44b3   :  { %7044 = vsyncpa [#allocation5], 1 }

</bundles_post_ra>
